<compile_context>
chip_gen: v6e
topology: v6e:2x2x1
jax: 0.10.0
libtpu: 0.0.40
codegen_flags: <defaults>
</compile_context>

<pallas_src>
import functools

import jax
import jax.numpy as jnp
from jax.experimental import pallas as pl
from jax.experimental.pallas import tpu as pltpu

BN_EPS = 1e-5
LRELU_SLOPE = 0.1
LANE = 128

# Tile caps.  tm=256 keeps every block <= ~1 MiB so 2 inputs x 2 buffers +
# f32 accumulator + outputs stay far under v7x's 64 MiB VMEM; kt<=640 keeps the
# K axis pipelined (nk >= 2 on every layer whose K spans more than one lane
# tile).  TODO(synk): on 128 MiB parts (v5e/v6e) tm can be raised to 512-1024
# for slightly lower per-grid-step overhead at large batch.
TM_CAP = 256
KT_CAP = 640


def _default_vmem_limit():
    """Generation-aware VMEM budget (3/4 of physical), with a safe fallback."""
    try:
        info = pltpu.get_tpu_info()
        cap = getattr(info, "vmem_capacity_bytes", None)
        if cap:
            return int(cap) * 3 // 4          # v7x: 48 MiB, v5e/v6e: 96 MiB
    except Exception:
        pass
    return 48 * 1024 * 1024


VMEM_LIMIT = _default_vmem_limit()


def _round_up(x, m):
    return (x + m - 1) // m * m


def _pick_m_tile(m_rows, cap=TM_CAP):
    """Largest multiple of 8 that divides m_rows and is <= cap (else m_rows)."""
    best = None
    t = 8
    while t <= min(m_rows, cap):
        if m_rows % t == 0:
            best = t
        t += 8
    return best if best is not None else m_rows


def _pick_k_tile(kpad, cap=KT_CAP):
    """Largest multiple of 128 that divides kpad and is <= cap."""
    best = LANE
    t = LANE
    while t <= min(kpad, cap):
        if kpad % t == 0:
            best = t
        t += LANE
    return best


# -----------------------------------------------------------------------------
# Pallas kernels
# -----------------------------------------------------------------------------
def conv_partial_kernel(x_ref, w_ref, y_ref, mean_ref, ssd_ref, acc_ref):
    """Grid (nm, nk): axis 0 tiles M ("parallel"), axis 1 tiles K ("arbitrary").

    Accumulates the conv matmul in f32 scratch; on the last K step writes the
    pre-BN activations (bf16) plus per-M-tile partial BatchNorm statistics.
    """
    k = pl.program_id(1)

    @pl.when(k == 0)
    def _():
        acc_ref[...] = jnp.zeros_like(acc_ref)

    acc_ref[...] += jnp.dot(x_ref[...], w_ref[...],
                            preferred_element_type=jnp.float32)

    @pl.when(k == pl.num_programs(1) - 1)
    def _():
        y = acc_ref[...]                                  # (tm, C) f32
        inv_tm = 1.0 / y.shape[0]
        mean = jnp.sum(y, axis=0, keepdims=True) * inv_tm  # (1, C)
        d = y - mean
        ssd = jnp.sum(d * d, axis=0, keepdims=True)        # (1, C)
        y_ref[...] = y.astype(y_ref.dtype)
        # Stats outputs are (1, 8, C) blocks (sublane-broadcast) so the store
        # satisfies the (8, 128) tiling rule; the wrapper reads row 0.
        mean_ref[...] = jnp.broadcast_to(mean, mean_ref.shape)
        ssd_ref[...] = jnp.broadcast_to(ssd, ssd_ref.shape)
        # TODO(synk): for the C=64 first layer a lane-dense (tm/2, 128) store
        # view would avoid masked vst.msk partial stores.


def bn_lrelu_kernel(y_ref, scale_ref, shift_ref, o_ref):
    """Per-channel affine (folded BatchNorm) + LeakyReLU(0.1)."""
    z = y_ref[...].astype(jnp.float32) * scale_ref[...] + shift_ref[...]
    o_ref[...] = jnp.maximum(z, LRELU_SLOPE * z).astype(o_ref.dtype)


def mlp_head_kernel(x_ref, w1_ref, b1_ref, w2_ref, b2_ref, o_ref):
    # x: (N, Fp) bf16, w1: (Fp, 512) bf16, b1: (1, 512) f32,
    # w2: (1, 512) f32 (row vector), b2: (1, 1) f32 in SMEM, o: (N, 1) f32.
    h = jnp.dot(x_ref[...], w1_ref[...], preferred_element_type=jnp.float32)
    h = jnp.maximum(h + b1_ref[...], 0.0)                       # ReLU
    # 512 -> 1 projection as a VPU multiply + XLU row-reduction (a 1-column
    # MXU matmul would use <1% of the MXU and end in a masked 1-lane store).
    y = jnp.sum(h * w2_ref[...], axis=-1, keepdims=True) + b2_ref[0, 0]
    o_ref[...] = 1.0 / (1.0 + jnp.exp(-y))                      # Sigmoid


# -----------------------------------------------------------------------------
# Pallas wrappers
# -----------------------------------------------------------------------------
def conv_matmul_stats(patches, w, *, tm, kt):
    """patches: (M, Kp) bf16, w: (Kp, C) bf16 ->
       y: (M, C) bf16 pre-BN, partial mean/ssd: (nm, 8, C) f32."""
    M, Kp = patches.shape
    C = w.shape[1]
    nm = M // tm
    nk = Kp // kt
    return pl.pallas_call(
        conv_partial_kernel,
        out_shape=(
            jax.ShapeDtypeStruct((M, C), jnp.bfloat16),
            jax.ShapeDtypeStruct((nm, 8, C), jnp.float32),
            jax.ShapeDtypeStruct((nm, 8, C), jnp.float32),
        ),
        grid_spec=pltpu.PrefetchScalarGridSpec(
            num_scalar_prefetch=0,
            grid=(nm, nk),
            in_specs=[
                pl.BlockSpec((tm, kt), lambda m, k: (m, k)),
                pl.BlockSpec((kt, C), lambda m, k: (k, 0)),
            ],
            out_specs=[
                pl.BlockSpec((tm, C), lambda m, k: (m, 0)),
                pl.BlockSpec((1, 8, C), lambda m, k: (m, 0, 0)),
                pl.BlockSpec((1, 8, C), lambda m, k: (m, 0, 0)),
            ],
            scratch_shapes=[pltpu.VMEM((tm, C), jnp.float32)],
        ),
        compiler_params=pltpu.CompilerParams(
            dimension_semantics=("parallel", "arbitrary"),
            vmem_limit_bytes=VMEM_LIMIT,
        ),
    )(patches, w)


def bn_lrelu(y, scale, shift, *, tm):
    """y: (M, C) bf16, scale/shift: (1, C) f32 -> (M, C) bf16."""
    M, C = y.shape
    nm = M // tm
    return pl.pallas_call(
        bn_lrelu_kernel,
        out_shape=jax.ShapeDtypeStruct((M, C), jnp.bfloat16),
        grid_spec=pltpu.PrefetchScalarGridSpec(
            num_scalar_prefetch=0,
            grid=(nm,),
            in_specs=[
                pl.BlockSpec((tm, C), lambda m: (m, 0)),
                pl.BlockSpec((1, C), lambda m: (0, 0)),
                pl.BlockSpec((1, C), lambda m: (0, 0)),
            ],
            out_specs=pl.BlockSpec((tm, C), lambda m: (m, 0)),
        ),
        compiler_params=pltpu.CompilerParams(
            dimension_semantics=("parallel",),
            vmem_limit_bytes=VMEM_LIMIT,
        ),
    )(y, scale, shift)


def mlp_head(x, w1, b1, w2t, b2):
    # TODO(synk): fuse this head into the last conv layer's normalize epilogue
    # to drop one pallas_call and the 2048-wide flatten round trip at small N.
    N, F = x.shape
    H = w1.shape[1]
    return pl.pallas_call(
        mlp_head_kernel,
        out_shape=jax.ShapeDtypeStruct((N, 1), jnp.float32),
        grid=(1,),
        in_specs=[
            pl.BlockSpec((N, F), lambda i: (0, 0)),
            pl.BlockSpec((F, H), lambda i: (0, 0)),
            pl.BlockSpec((1, H), lambda i: (0, 0)),
            pl.BlockSpec((1, H), lambda i: (0, 0)),
            pl.BlockSpec(memory_space=pltpu.MemorySpace.SMEM),
        ],
        out_specs=pl.BlockSpec((N, 1), lambda i: (0, 0)),
        compiler_params=pltpu.CompilerParams(vmem_limit_bytes=VMEM_LIMIT),
    )(x, w1, b1, w2t, b2)


# -----------------------------------------------------------------------------
# Glue: im2col, parameter init, full forward
# -----------------------------------------------------------------------------
def im2col(x_nhwc, kpad, k=5, stride=2, pad=2):
    """Returns (N*Ho*Wo, kpad) patches ordered (kh, kw, Cin) with the K
    zero-padding emitted inside the concat (no extra pad pass)."""
    # TODO(synk): replace im2col with in-kernel (kh, kw)-tap accumulation
    # (pl.Element-offset taps on the NHWC activation) to remove the ~25x
    # activation HBM inflation; every conv layer is HBM-bound with im2col.
    N, H, W, C = x_nhwc.shape
    xp = jnp.pad(x_nhwc, ((0, 0), (pad, pad), (pad, pad), (0, 0)))
    Ho = (H + 2 * pad - k) // stride + 1
    Wo = (W + 2 * pad - k) // stride + 1
    cols = []
    for dh in range(k):
        for dw in range(k):
            cols.append(xp[:, dh:dh + stride * Ho:stride,
                           dw:dw + stride * Wo:stride, :])
    K = k * k * C
    if kpad > K:
        cols.append(jnp.zeros((N, Ho, Wo, kpad - K), x_nhwc.dtype))
    patches = jnp.concatenate(cols, axis=-1)          # (N, Ho, Wo, kpad)
    return patches.reshape(N * Ho * Wo, kpad), (N, Ho, Wo)


def init_params(key, label_size):
    chans = [(3, 64), (64, 128), (128, 256), (256, 512)]
    params = {"conv": []}
    for cin, cout in chans:
        key, k1 = jax.random.split(key)
        w = 0.05 * jax.random.normal(k1, (5, 5, cin, cout), jnp.float32)
        K = 5 * 5 * cin
        kpad = _round_up(K, LANE)
        w2d = jnp.pad(w.reshape(K, cout), ((0, kpad - K), (0, 0)))  # pad once
        # Conv bias omitted: it is a no-op under training-mode BatchNorm.
        params["conv"].append(
            dict(w=w2d.astype(jnp.bfloat16),
                 gamma=jnp.ones((1, cout), jnp.float32),   # BN default weight
                 beta=jnp.zeros((1, cout), jnp.float32)))  # BN default bias
    fin = 2048 + label_size
    fin_padded = 2048 + _round_up(label_size, LANE)    # lane-aligned features
    key, k1, k2, k3, k4 = jax.random.split(key, 5)
    w1 = 0.02 * jax.random.normal(k1, (fin, 512), jnp.float32)
    w1 = jnp.pad(w1, ((0, fin_padded - fin), (0, 0)))  # zero rows meet zero feats
    params["fc"] = dict(
        w1=w1.astype(jnp.bfloat16),
        b1=0.01 * jax.random.normal(k2, (1, 512), jnp.float32),
        w2t=0.05 * jax.random.normal(k3, (1, 512), jnp.float32),  # row vector
        b2=0.01 * jax.random.normal(k4, (1, 1), jnp.float32),
    )
    return params


@functools.partial(jax.jit, static_argnames=("label_size",))
def discriminator_forward(params, images_nchw, labels, label_size):
    # NCHW -> NHWC, bf16 activations (matmuls bf16, BN/activation math f32).
    x = jnp.transpose(images_nchw, (0, 2, 3, 1)).astype(jnp.bfloat16)
    for layer in params["conv"]:
        kpad = layer["w"].shape[0]
        patches, (N, Ho, Wo) = im2col(x, kpad, k=5, stride=2, pad=2)
        M = patches.shape[0]
        tm = _pick_m_tile(M)
        kt = _pick_k_tile(kpad)
        y, pmean, pssd = conv_matmul_stats(patches, layer["w"], tm=tm, kt=kt)
        # Combine per-tile stats (Chan's parallel variance; all tiles have tm
        # rows since tm | M).  Biased variance over M rows = BN training mode.
        mean_t = pmean[:, 0, :]                                   # (nm, C)
        ssd_t = pssd[:, 0, :]                                     # (nm, C)
        mean = jnp.mean(mean_t, axis=0, keepdims=True)            # (1, C)
        m2 = (jnp.sum(ssd_t, axis=0, keepdims=True)
              + tm * jnp.sum((mean_t - mean) ** 2, axis=0, keepdims=True))
        var = m2 / M
        scale = layer["gamma"] * jax.lax.rsqrt(var + BN_EPS)
        shift = layer["beta"] - mean * scale
        out = bn_lrelu(y, scale, shift, tm=tm)
        x = out.reshape(N, Ho, Wo, out.shape[-1])
    # Flatten exactly like torch.nn.Flatten on NCHW: (N, C, H, W) row-major.
    N, Ho, Wo, C = x.shape
    flat = jnp.transpose(x, (0, 3, 1, 2)).reshape(N, C * Ho * Wo)  # (N, 2048)
    # One-hot padded to a lane multiple; pad columns are zero and meet zero w1
    # rows, so the result equals the unpadded Linear(2048 + label_size, 512).
    lpad = _round_up(label_size, LANE)
    one_hot = jax.nn.one_hot(labels, lpad, dtype=jnp.bfloat16)
    feat = jnp.concatenate([flat, one_hot], axis=1)                # (N, 2048+lpad)
    fc = params["fc"]
    return mlp_head(feat, fc["w1"], fc["b1"], fc["w2t"], fc["b2"])


if __name__ == "__main__":
    LABEL_SIZE = 10
    CHANNEL_SIZE = 3
    PICTURE_SIZE = 32   # 32 -> 16 -> 8 -> 4 -> 2  ==> 512*2*2 = 2048 flat feats
    BATCH = 2           # Demo batch.  The M/K tiling + partial-stat BN above is
                        # sized for real training batches (fixed VMEM footprint,
                        # megacore-parallel M axis); at BATCH=2 most layers
                        # collapse to a single M tile and launch overhead wins.

    key = jax.random.PRNGKey(0)
    key, k_img = jax.random.split(key)
    images = jax.random.normal(
        k_img, (BATCH, CHANNEL_SIZE, PICTURE_SIZE, PICTURE_SIZE), jnp.float32)
    labels = jnp.array([1, 7], dtype=jnp.int32)

    params = init_params(jax.random.PRNGKey(42), LABEL_SIZE)

    out = discriminator_forward(params, images, labels, label_size=LABEL_SIZE)
    out = jax.block_until_ready(out)

    assert out.shape == (BATCH, 1), out.shape
    assert bool(jnp.all(jnp.isfinite(out)))
    assert bool(jnp.all((out >= 0.0) & (out <= 1.0)))   # sigmoid range
    print("KERNEL_OK")
</pallas_src>

<mosaic_0001>
module attributes {stable_mosaic.version = 11 : i64} {
  func.func @bn_lrelu_kernel(%arg0: i32, %arg1: memref<256x64xbf16, #tpu.memory_space<vmem>>, %arg2: memref<1x64xf32, #tpu.memory_space<vmem>>, %arg3: memref<1x64xf32, #tpu.memory_space<vmem>>, %arg4: memref<256x64xbf16, #tpu.memory_space<vmem>>) attributes {dimension_semantics = [#tpu.dimension_semantics<parallel>], iteration_bounds = array<i64: 2>, scalar_prefetch = 0 : i64, scratch_operands = 0 : i64, tpu.core_type = #tpu.core_type<tc>, window_params = [{transform_indices = @transform_0, window_bounds = array<i64: 256, 64>}, {pipeline_mode = #tpu.pipeline_mode<synchronous>, transform_indices = @transform_1, window_bounds = array<i64: 1, 64>}, {pipeline_mode = #tpu.pipeline_mode<synchronous>, transform_indices = @transform_2, window_bounds = array<i64: 1, 64>}, {transform_indices = @transform_3, window_bounds = array<i64: 256, 64>}]} {
    %c0 = arith.constant 0 : index
    %c0_0 = arith.constant 0 : index
    %0 = vector.load %arg1[%c0, %c0_0] : memref<256x64xbf16, #tpu.memory_space<vmem>>, vector<256x64xbf16>
    %1 = arith.extf %0 : vector<256x64xbf16> to vector<256x64xf32>
    %c0_1 = arith.constant 0 : index
    %c0_2 = arith.constant 0 : index
    %2 = vector.load %arg2[%c0_1, %c0_2] : memref<1x64xf32, #tpu.memory_space<vmem>>, vector<1x64xf32>
    %3 = vector.broadcast %2 : vector<1x64xf32> to vector<256x64xf32>
    %4 = arith.mulf %1, %3 : vector<256x64xf32>
    %c0_3 = arith.constant 0 : index
    %c0_4 = arith.constant 0 : index
    %5 = vector.load %arg3[%c0_3, %c0_4] : memref<1x64xf32, #tpu.memory_space<vmem>>, vector<1x64xf32>
    %6 = vector.broadcast %5 : vector<1x64xf32> to vector<256x64xf32>
    %7 = arith.addf %4, %6 : vector<256x64xf32>
    %cst = arith.constant 1.000000e-01 : f32
    %8 = vector.broadcast %cst : f32 to vector<256x64xf32>
    %9 = arith.mulf %8, %7 : vector<256x64xf32>
    %10 = arith.maximumf %7, %9 : vector<256x64xf32>
    %11 = arith.truncf %10 : vector<256x64xf32> to vector<256x64xbf16>
    %c0_5 = arith.constant 0 : index
    %c0_6 = arith.constant 0 : index
    %12 = vector.load %arg4[%c0_5, %c0_6] : memref<256x64xbf16, #tpu.memory_space<vmem>>, vector<256x64xbf16>
    tpu.vector_store %arg4[%c0_5, %c0_6], %11 {strides = array<i32>} : memref<256x64xbf16, #tpu.memory_space<vmem>>, vector<256x64xbf16>,
    return
  }
  func.func @transform_0(%arg0: i32) -> (i32, i32) {
    %c0_i32 = arith.constant 0 : i32
    %c0_i32_0 = arith.constant 0 : i32
    return %arg0, %c0_i32 : i32, i32
  }
  func.func @transform_1(%arg0: i32) -> (i32, i32) {
    %c0_i32 = arith.constant 0 : i32
    %c0_i32_0 = arith.constant 0 : i32
    %c0_i32_1 = arith.constant 0 : i32
    return %c0_i32, %c0_i32_0 : i32, i32
  }
  func.func @transform_2(%arg0: i32) -> (i32, i32) {
    %c0_i32 = arith.constant 0 : i32
    %c0_i32_0 = arith.constant 0 : i32
    %c0_i32_1 = arith.constant 0 : i32
    return %c0_i32, %c0_i32_0 : i32, i32
  }
  func.func @transform_3(%arg0: i32) -> (i32, i32) {
    %c0_i32 = arith.constant 0 : i32
    %c0_i32_0 = arith.constant 0 : i32
    return %arg0, %c0_i32 : i32, i32
  }
}

module attributes {stable_mosaic.version = 11 : i64} {
  func.func @conv_partial_kernel(%arg0: i32, %arg1: i32, %arg2: memref<256x128xbf16, #tpu.memory_space<vmem>>, %arg3: memref<128x64xbf16, #tpu.memory_space<vmem>>, %arg4: memref<256x64xbf16, #tpu.memory_space<vmem>>, %arg5: memref<1x8x64xf32, #tpu.memory_space<vmem>>, %arg6: memref<1x8x64xf32, #tpu.memory_space<vmem>>, %arg7: memref<256x64xf32, #tpu.memory_space<vmem>>) attributes {dimension_semantics = [#tpu.dimension_semantics<parallel>, #tpu.dimension_semantics<arbitrary>], iteration_bounds = array<i64: 2, 1>, scalar_prefetch = 0 : i64, scratch_operands = 1 : i64, tpu.core_type = #tpu.core_type<tc>, window_params = [{transform_indices = @transform_0, window_bounds = array<i64: 256, 128>}, {transform_indices = @transform_1, window_bounds = array<i64: 128, 64>}, {transform_indices = @transform_2, window_bounds = array<i64: 256, 64>}, {transform_indices = @transform_3, window_bounds = array<i64: 1, 8, 64>}, {transform_indices = @transform_4, window_bounds = array<i64: 1, 8, 64>}]} {
    %c0_i32 = arith.constant 0 : i32
    %0 = arith.cmpi eq, %arg1, %c0_i32 : i32
    %1 = arith.extui %0 : i1 to i32
    %c0_i32_0 = arith.constant 0 : i32
    %2 = arith.cmpi ne, %1, %c0_i32_0 : i32
    scf.if %2 {
      %cst_10 = arith.constant 0.000000e+00 : f32
      %12 = vector.broadcast %cst_10 : f32 to vector<256x64xf32>
      %c0_11 = arith.constant 0 : index
      %c0_12 = arith.constant 0 : index
      %13 = vector.load %arg7[%c0_11, %c0_12] : memref<256x64xf32, #tpu.memory_space<vmem>>, vector<256x64xf32>
      tpu.vector_store %arg7[%c0_11, %c0_12], %12 {strides = array<i32>} : memref<256x64xf32, #tpu.memory_space<vmem>>, vector<256x64xf32>,
    } else {
    }
    %c0 = arith.constant 0 : index
    %c0_1 = arith.constant 0 : index
    %3 = vector.load %arg7[%c0, %c0_1] : memref<256x64xf32, #tpu.memory_space<vmem>>, vector<256x64xf32>
    %c0_2 = arith.constant 0 : index
    %c0_3 = arith.constant 0 : index
    %4 = vector.load %arg2[%c0_2, %c0_3] : memref<256x128xbf16, #tpu.memory_space<vmem>>, vector<256x128xbf16>
    %c0_4 = arith.constant 0 : index
    %c0_5 = arith.constant 0 : index
    %5 = vector.load %arg3[%c0_4, %c0_5] : memref<128x64xbf16, #tpu.memory_space<vmem>>, vector<128x64xbf16>
    %cst = arith.constant dense<0.000000e+00> : vector<256x64xf32>
    %6 = tpu.matmul %4, %5, %cst {dimension_numbers = #tpu.dot_dimension_numbers<[1], [0], [0], [1], [0, 0, 1, 1], [], []>} : vector<256x128xbf16>, vector<128x64xbf16>, vector<256x64xf32> -> vector<256x64xf32>
    %7 = arith.addf %3, %6 : vector<256x64xf32>
    %c0_6 = arith.constant 0 : index
    %c0_7 = arith.constant 0 : index
    %8 = vector.load %arg7[%c0_6, %c0_7] : memref<256x64xf32, #tpu.memory_space<vmem>>, vector<256x64xf32>
    tpu.vector_store %arg7[%c0_6, %c0_7], %7 {strides = array<i32>} : memref<256x64xf32, #tpu.memory_space<vmem>>, vector<256x64xf32>,
    %c0_i32_8 = arith.constant 0 : i32
    %9 = arith.cmpi eq, %arg1, %c0_i32_8 : i32
    %10 = arith.extui %9 : i1 to i32
    %c0_i32_9 = arith.constant 0 : i32
    %11 = arith.cmpi ne, %10, %c0_i32_9 : i32
    scf.if %11 {
      %c0_10 = arith.constant 0 : index
      %c0_11 = arith.constant 0 : index
      %12 = vector.load %arg7[%c0_10, %c0_11] : memref<256x64xf32, #tpu.memory_space<vmem>>, vector<256x64xf32>
      %cst_12 = arith.constant dense<0.000000e+00> : vector<64xf32>
      %13 = vector.multi_reduction <add>, %12, %cst_12 [0] : vector<256x64xf32> to vector<64xf32>
      %14 = vector.shape_cast %13 : vector<64xf32> to vector<1x64xf32>
      %cst_13 = arith.constant 3.906250e-03 : f32
      %15 = vector.broadcast %cst_13 : f32 to vector<1x64xf32>
      %16 = arith.mulf %14, %15 : vector<1x64xf32>
      %17 = vector.broadcast %16 : vector<1x64xf32> to vector<256x64xf32>
      %18 = arith.subf %12, %17 : vector<256x64xf32>
      %19 = arith.mulf %18, %18 : vector<256x64xf32>
      %cst_14 = arith.constant dense<0.000000e+00> : vector<64xf32>
      %20 = vector.multi_reduction <add>, %19, %cst_14 [0] : vector<256x64xf32> to vector<64xf32>
      %21 = vector.shape_cast %20 : vector<64xf32> to vector<1x64xf32>
      %22 = arith.truncf %12 : vector<256x64xf32> to vector<256x64xbf16>
      %c0_15 = arith.constant 0 : index
      %c0_16 = arith.constant 0 : index
      %23 = vector.load %arg4[%c0_15, %c0_16] : memref<256x64xbf16, #tpu.memory_space<vmem>>, vector<256x64xbf16>
      tpu.vector_store %arg4[%c0_15, %c0_16], %22 {strides = array<i32>} : memref<256x64xbf16, #tpu.memory_space<vmem>>, vector<256x64xbf16>,
      %24 = vector.shape_cast %16 : vector<1x64xf32> to vector<1x1x64xf32>
      %25 = vector.broadcast %24 : vector<1x1x64xf32> to vector<1x8x64xf32>
      %c0_17 = arith.constant 0 : index
      %c0_18 = arith.constant 0 : index
      %c0_19 = arith.constant 0 : index
      %26 = vector.load %arg5[%c0_17, %c0_18, %c0_19] : memref<1x8x64xf32, #tpu.memory_space<vmem>>, vector<1x8x64xf32>
      tpu.vector_store %arg5[%c0_17, %c0_18, %c0_19], %25 {strides = array<i32>} : memref<1x8x64xf32, #tpu.memory_space<vmem>>, vector<1x8x64xf32>,
      %27 = vector.shape_cast %21 : vector<1x64xf32> to vector<1x1x64xf32>
      %28 = vector.broadcast %27 : vector<1x1x64xf32> to vector<1x8x64xf32>
      %c0_20 = arith.constant 0 : index
      %c0_21 = arith.constant 0 : index
      %c0_22 = arith.constant 0 : index
      %29 = vector.load %arg6[%c0_20, %c0_21, %c0_22] : memref<1x8x64xf32, #tpu.memory_space<vmem>>, vector<1x8x64xf32>
      tpu.vector_store %arg6[%c0_20, %c0_21, %c0_22], %28 {strides = array<i32>} : memref<1x8x64xf32, #tpu.memory_space<vmem>>, vector<1x8x64xf32>,
    } else {
    }
    return
  }
  func.func @transform_0(%arg0: i32, %arg1: i32) -> (i32, i32) {
    %c0_i32 = arith.constant 0 : i32
    return %arg0, %arg1 : i32, i32
  }
  func.func @transform_1(%arg0: i32, %arg1: i32) -> (i32, i32) {
    %c0_i32 = arith.constant 0 : i32
    %c0_i32_0 = arith.constant 0 : i32
    return %arg1, %c0_i32 : i32, i32
  }
  func.func @transform_2(%arg0: i32, %arg1: i32) -> (i32, i32) {
    %c0_i32 = arith.constant 0 : i32
    %c0_i32_0 = arith.constant 0 : i32
    return %arg0, %c0_i32 : i32, i32
  }
  func.func @transform_3(%arg0: i32, %arg1: i32) -> (i32, i32, i32) {
    %c0_i32 = arith.constant 0 : i32
    %c0_i32_0 = arith.constant 0 : i32
    %c0_i32_1 = arith.constant 0 : i32
    return %arg0, %c0_i32, %c0_i32_0 : i32, i32, i32
  }
  func.func @transform_4(%arg0: i32, %arg1: i32) -> (i32, i32, i32) {
    %c0_i32 = arith.constant 0 : i32
    %c0_i32_0 = arith.constant 0 : i32
    %c0_i32_1 = arith.constant 0 : i32
    return %arg0, %c0_i32, %c0_i32_0 : i32, i32, i32
  }
}

module attributes {stable_mosaic.version = 11 : i64} {
  func.func @bn_lrelu_kernel(%arg0: i32, %arg1: memref<128x128xbf16, #tpu.memory_space<vmem>>, %arg2: memref<1x128xf32, #tpu.memory_space<vmem>>, %arg3: memref<1x128xf32, #tpu.memory_space<vmem>>, %arg4: memref<128x128xbf16, #tpu.memory_space<vmem>>) attributes {dimension_semantics = [#tpu.dimension_semantics<parallel>], iteration_bounds = array<i64: 1>, scalar_prefetch = 0 : i64, scratch_operands = 0 : i64, tpu.core_type = #tpu.core_type<tc>, window_params = [{transform_indices = @transform_0, window_bounds = array<i64: 128, 128>}, {pipeline_mode = #tpu.pipeline_mode<synchronous>, transform_indices = @transform_1, window_bounds = array<i64: 1, 128>}, {pipeline_mode = #tpu.pipeline_mode<synchronous>, transform_indices = @transform_2, window_bounds = array<i64: 1, 128>}, {transform_indices = @transform_3, window_bounds = array<i64: 128, 128>}]} {
    %c0 = arith.constant 0 : index
    %c0_0 = arith.constant 0 : index
    %0 = vector.load %arg1[%c0, %c0_0] : memref<128x128xbf16, #tpu.memory_space<vmem>>, vector<128x128xbf16>
    %1 = arith.extf %0 : vector<128x128xbf16> to vector<128x128xf32>
    %c0_1 = arith.constant 0 : index
    %c0_2 = arith.constant 0 : index
    %2 = vector.load %arg2[%c0_1, %c0_2] : memref<1x128xf32, #tpu.memory_space<vmem>>, vector<1x128xf32>
    %3 = vector.broadcast %2 : vector<1x128xf32> to vector<128x128xf32>
    %4 = arith.mulf %1, %3 : vector<128x128xf32>
    %c0_3 = arith.constant 0 : index
    %c0_4 = arith.constant 0 : index
    %5 = vector.load %arg3[%c0_3, %c0_4] : memref<1x128xf32, #tpu.memory_space<vmem>>, vector<1x128xf32>
    %6 = vector.broadcast %5 : vector<1x128xf32> to vector<128x128xf32>
    %7 = arith.addf %4, %6 : vector<128x128xf32>
    %cst = arith.constant 1.000000e-01 : f32
    %8 = vector.broadcast %cst : f32 to vector<128x128xf32>
    %9 = arith.mulf %8, %7 : vector<128x128xf32>
    %10 = arith.maximumf %7, %9 : vector<128x128xf32>
    %11 = arith.truncf %10 : vector<128x128xf32> to vector<128x128xbf16>
    %c0_5 = arith.constant 0 : index
    %c0_6 = arith.constant 0 : index
    %12 = vector.load %arg4[%c0_5, %c0_6] : memref<128x128xbf16, #tpu.memory_space<vmem>>, vector<128x128xbf16>
    tpu.vector_store %arg4[%c0_5, %c0_6], %11 {strides = array<i32>} : memref<128x128xbf16, #tpu.memory_space<vmem>>, vector<128x128xbf16>,
    return
  }
  func.func @transform_0(%arg0: i32) -> (i32, i32) {
    %c0_i32 = arith.constant 0 : i32
    %c0_i32_0 = arith.constant 0 : i32
    return %arg0, %c0_i32 : i32, i32
  }
  func.func @transform_1(%arg0: i32) -> (i32, i32) {
    %c0_i32 = arith.constant 0 : i32
    %c0_i32_0 = arith.constant 0 : i32
    %c0_i32_1 = arith.constant 0 : i32
    return %c0_i32, %c0_i32_0 : i32, i32
  }
  func.func @transform_2(%arg0: i32) -> (i32, i32) {
    %c0_i32 = arith.constant 0 : i32
    %c0_i32_0 = arith.constant 0 : i32
    %c0_i32_1 = arith.constant 0 : i32
    return %c0_i32, %c0_i32_0 : i32, i32
  }
  func.func @transform_3(%arg0: i32) -> (i32, i32) {
    %c0_i32 = arith.constant 0 : i32
    %c0_i32_0 = arith.constant 0 : i32
    return %arg0, %c0_i32 : i32, i32
  }
}

module attributes {stable_mosaic.version = 11 : i64} {
  func.func @conv_partial_kernel(%arg0: i32, %arg1: i32, %arg2: memref<128x128xbf16, #tpu.memory_space<vmem>>, %arg3: memref<128x128xbf16, #tpu.memory_space<vmem>>, %arg4: memref<128x128xbf16, #tpu.memory_space<vmem>>, %arg5: memref<1x8x128xf32, #tpu.memory_space<vmem>>, %arg6: memref<1x8x128xf32, #tpu.memory_space<vmem>>, %arg7: memref<128x128xf32, #tpu.memory_space<vmem>>) attributes {dimension_semantics = [#tpu.dimension_semantics<parallel>, #tpu.dimension_semantics<arbitrary>], iteration_bounds = array<i64: 1, 13>, scalar_prefetch = 0 : i64, scratch_operands = 1 : i64, tpu.core_type = #tpu.core_type<tc>, window_params = [{transform_indices = @transform_0, window_bounds = array<i64: 128, 128>}, {transform_indices = @transform_1, window_bounds = array<i64: 128, 128>}, {transform_indices = @transform_2, window_bounds = array<i64: 128, 128>}, {transform_indices = @transform_3, window_bounds = array<i64: 1, 8, 128>}, {transform_indices = @transform_4, window_bounds = array<i64: 1, 8, 128>}]} {
    %c0_i32 = arith.constant 0 : i32
    %0 = arith.cmpi eq, %arg1, %c0_i32 : i32
    %1 = arith.extui %0 : i1 to i32
    %c0_i32_0 = arith.constant 0 : i32
    %2 = arith.cmpi ne, %1, %c0_i32_0 : i32
    scf.if %2 {
      %cst_9 = arith.constant 0.000000e+00 : f32
      %12 = vector.broadcast %cst_9 : f32 to vector<128x128xf32>
      %c0_10 = arith.constant 0 : index
      %c0_11 = arith.constant 0 : index
      %13 = vector.load %arg7[%c0_10, %c0_11] : memref<128x128xf32, #tpu.memory_space<vmem>>, vector<128x128xf32>
      tpu.vector_store %arg7[%c0_10, %c0_11], %12 {strides = array<i32>} : memref<128x128xf32, #tpu.memory_space<vmem>>, vector<128x128xf32>,
    } else {
    }
    %c0 = arith.constant 0 : index
    %c0_1 = arith.constant 0 : index
    %3 = vector.load %arg7[%c0, %c0_1] : memref<128x128xf32, #tpu.memory_space<vmem>>, vector<128x128xf32>
    %c0_2 = arith.constant 0 : index
    %c0_3 = arith.constant 0 : index
    %4 = vector.load %arg2[%c0_2, %c0_3] : memref<128x128xbf16, #tpu.memory_space<vmem>>, vector<128x128xbf16>
    %c0_4 = arith.constant 0 : index
    %c0_5 = arith.constant 0 : index
    %5 = vector.load %arg3[%c0_4, %c0_5] : memref<128x128xbf16, #tpu.memory_space<vmem>>, vector<128x128xbf16>
    %cst = arith.constant dense<0.000000e+00> : vector<128x128xf32>
    %6 = tpu.matmul %4, %5, %cst {dimension_numbers = #tpu.dot_dimension_numbers<[1], [0], [0], [1], [0, 0, 1, 1], [], []>} : vector<128x128xbf16>, vector<128x128xbf16>, vector<128x128xf32> -> vector<128x128xf32>
    %7 = arith.addf %3, %6 : vector<128x128xf32>
    %c0_6 = arith.constant 0 : index
    %c0_7 = arith.constant 0 : index
    %8 = vector.load %arg7[%c0_6, %c0_7] : memref<128x128xf32, #tpu.memory_space<vmem>>, vector<128x128xf32>
    tpu.vector_store %arg7[%c0_6, %c0_7], %7 {strides = array<i32>} : memref<128x128xf32, #tpu.memory_space<vmem>>, vector<128x128xf32>,
    %c12_i32 = arith.constant 12 : i32
    %9 = arith.cmpi eq, %arg1, %c12_i32 : i32
    %10 = arith.extui %9 : i1 to i32
    %c0_i32_8 = arith.constant 0 : i32
    %11 = arith.cmpi ne, %10, %c0_i32_8 : i32
    scf.if %11 {
      %c0_9 = arith.constant 0 : index
      %c0_10 = arith.constant 0 : index
      %12 = vector.load %arg7[%c0_9, %c0_10] : memref<128x128xf32, #tpu.memory_space<vmem>>, vector<128x128xf32>
      %cst_11 = arith.constant dense<0.000000e+00> : vector<128xf32>
      %13 = vector.multi_reduction <add>, %12, %cst_11 [0] : vector<128x128xf32> to vector<128xf32>
      %14 = vector.shape_cast %13 : vector<128xf32> to vector<1x128xf32>
      %cst_12 = arith.constant 7.812500e-03 : f32
      %15 = vector.broadcast %cst_12 : f32 to vector<1x128xf32>
      %16 = arith.mulf %14, %15 : vector<1x128xf32>
      %17 = vector.broadcast %16 : vector<1x128xf32> to vector<128x128xf32>
      %18 = arith.subf %12, %17 : vector<128x128xf32>
      %19 = arith.mulf %18, %18 : vector<128x128xf32>
      %cst_13 = arith.constant dense<0.000000e+00> : vector<128xf32>
      %20 = vector.multi_reduction <add>, %19, %cst_13 [0] : vector<128x128xf32> to vector<128xf32>
      %21 = vector.shape_cast %20 : vector<128xf32> to vector<1x128xf32>
      %22 = arith.truncf %12 : vector<128x128xf32> to vector<128x128xbf16>
      %c0_14 = arith.constant 0 : index
      %c0_15 = arith.constant 0 : index
      %23 = vector.load %arg4[%c0_14, %c0_15] : memref<128x128xbf16, #tpu.memory_space<vmem>>, vector<128x128xbf16>
      tpu.vector_store %arg4[%c0_14, %c0_15], %22 {strides = array<i32>} : memref<128x128xbf16, #tpu.memory_space<vmem>>, vector<128x128xbf16>,
      %24 = vector.shape_cast %16 : vector<1x128xf32> to vector<1x1x128xf32>
      %25 = vector.broadcast %24 : vector<1x1x128xf32> to vector<1x8x128xf32>
      %c0_16 = arith.constant 0 : index
      %c0_17 = arith.constant 0 : index
      %c0_18 = arith.constant 0 : index
      %26 = vector.load %arg5[%c0_16, %c0_17, %c0_18] : memref<1x8x128xf32, #tpu.memory_space<vmem>>, vector<1x8x128xf32>
      tpu.vector_store %arg5[%c0_16, %c0_17, %c0_18], %25 {strides = array<i32>} : memref<1x8x128xf32, #tpu.memory_space<vmem>>, vector<1x8x128xf32>,
      %27 = vector.shape_cast %21 : vector<1x128xf32> to vector<1x1x128xf32>
      %28 = vector.broadcast %27 : vector<1x1x128xf32> to vector<1x8x128xf32>
      %c0_19 = arith.constant 0 : index
      %c0_20 = arith.constant 0 : index
      %c0_21 = arith.constant 0 : index
      %29 = vector.load %arg6[%c0_19, %c0_20, %c0_21] : memref<1x8x128xf32, #tpu.memory_space<vmem>>, vector<1x8x128xf32>
      tpu.vector_store %arg6[%c0_19, %c0_20, %c0_21], %28 {strides = array<i32>} : memref<1x8x128xf32, #tpu.memory_space<vmem>>, vector<1x8x128xf32>,
    } else {
    }
    return
  }
  func.func @transform_0(%arg0: i32, %arg1: i32) -> (i32, i32) {
    %c0_i32 = arith.constant 0 : i32
    return %arg0, %arg1 : i32, i32
  }
  func.func @transform_1(%arg0: i32, %arg1: i32) -> (i32, i32) {
    %c0_i32 = arith.constant 0 : i32
    %c0_i32_0 = arith.constant 0 : i32
    return %arg1, %c0_i32 : i32, i32
  }
  func.func @transform_2(%arg0: i32, %arg1: i32) -> (i32, i32) {
    %c0_i32 = arith.constant 0 : i32
    %c0_i32_0 = arith.constant 0 : i32
    return %arg0, %c0_i32 : i32, i32
  }
  func.func @transform_3(%arg0: i32, %arg1: i32) -> (i32, i32, i32) {
    %c0_i32 = arith.constant 0 : i32
    %c0_i32_0 = arith.constant 0 : i32
    %c0_i32_1 = arith.constant 0 : i32
    return %arg0, %c0_i32, %c0_i32_0 : i32, i32, i32
  }
  func.func @transform_4(%arg0: i32, %arg1: i32) -> (i32, i32, i32) {
    %c0_i32 = arith.constant 0 : i32
    %c0_i32_0 = arith.constant 0 : i32
    %c0_i32_1 = arith.constant 0 : i32
    return %arg0, %c0_i32, %c0_i32_0 : i32, i32, i32
  }
}

module attributes {stable_mosaic.version = 11 : i64} {
  func.func @conv_partial_kernel(%arg0: i32, %arg1: i32, %arg2: memref<32x640xbf16, #tpu.memory_space<vmem>>, %arg3: memref<640x256xbf16, #tpu.memory_space<vmem>>, %arg4: memref<32x256xbf16, #tpu.memory_space<vmem>>, %arg5: memref<1x8x256xf32, #tpu.memory_space<vmem>>, %arg6: memref<1x8x256xf32, #tpu.memory_space<vmem>>, %arg7: memref<32x256xf32, #tpu.memory_space<vmem>>) attributes {dimension_semantics = [#tpu.dimension_semantics<parallel>, #tpu.dimension_semantics<arbitrary>], iteration_bounds = array<i64: 1, 5>, scalar_prefetch = 0 : i64, scratch_operands = 1 : i64, tpu.core_type = #tpu.core_type<tc>, window_params = [{transform_indices = @transform_0, window_bounds = array<i64: 32, 640>}, {transform_indices = @transform_1, window_bounds = array<i64: 640, 256>}, {transform_indices = @transform_2, window_bounds = array<i64: 32, 256>}, {transform_indices = @transform_3, window_bounds = array<i64: 1, 8, 256>}, {transform_indices = @transform_4, window_bounds = array<i64: 1, 8, 256>}]} {
    %c0_i32 = arith.constant 0 : i32
    %0 = arith.cmpi eq, %arg1, %c0_i32 : i32
    %1 = arith.extui %0 : i1 to i32
    %c0_i32_0 = arith.constant 0 : i32
    %2 = arith.cmpi ne, %1, %c0_i32_0 : i32
    scf.if %2 {
      %cst_9 = arith.constant 0.000000e+00 : f32
      %12 = vector.broadcast %cst_9 : f32 to vector<32x256xf32>
      %c0_10 = arith.constant 0 : index
      %c0_11 = arith.constant 0 : index
      %13 = vector.load %arg7[%c0_10, %c0_11] : memref<32x256xf32, #tpu.memory_space<vmem>>, vector<32x256xf32>
      tpu.vector_store %arg7[%c0_10, %c0_11], %12 {strides = array<i32>} : memref<32x256xf32, #tpu.memory_space<vmem>>, vector<32x256xf32>,
    } else {
    }
    %c0 = arith.constant 0 : index
    %c0_1 = arith.constant 0 : index
    %3 = vector.load %arg7[%c0, %c0_1] : memref<32x256xf32, #tpu.memory_space<vmem>>, vector<32x256xf32>
    %c0_2 = arith.constant 0 : index
    %c0_3 = arith.constant 0 : index
    %4 = vector.load %arg2[%c0_2, %c0_3] : memref<32x640xbf16, #tpu.memory_space<vmem>>, vector<32x640xbf16>
    %c0_4 = arith.constant 0 : index
    %c0_5 = arith.constant 0 : index
    %5 = vector.load %arg3[%c0_4, %c0_5] : memref<640x256xbf16, #tpu.memory_space<vmem>>, vector<640x256xbf16>
    %cst = arith.constant dense<0.000000e+00> : vector<32x256xf32>
    %6 = tpu.matmul %4, %5, %cst {dimension_numbers = #tpu.dot_dimension_numbers<[1], [0], [0], [1], [0, 0, 1, 1], [], []>} : vector<32x640xbf16>, vector<640x256xbf16>, vector<32x256xf32> -> vector<32x256xf32>
    %7 = arith.addf %3, %6 : vector<32x256xf32>
    %c0_6 = arith.constant 0 : index
    %c0_7 = arith.constant 0 : index
    %8 = vector.load %arg7[%c0_6, %c0_7] : memref<32x256xf32, #tpu.memory_space<vmem>>, vector<32x256xf32>
    tpu.vector_store %arg7[%c0_6, %c0_7], %7 {strides = array<i32>} : memref<32x256xf32, #tpu.memory_space<vmem>>, vector<32x256xf32>,
    %c4_i32 = arith.constant 4 : i32
    %9 = arith.cmpi eq, %arg1, %c4_i32 : i32
    %10 = arith.extui %9 : i1 to i32
    %c0_i32_8 = arith.constant 0 : i32
    %11 = arith.cmpi ne, %10, %c0_i32_8 : i32
    scf.if %11 {
      %c0_9 = arith.constant 0 : index
      %c0_10 = arith.constant 0 : index
      %12 = vector.load %arg7[%c0_9, %c0_10] : memref<32x256xf32, #tpu.memory_space<vmem>>, vector<32x256xf32>
      %cst_11 = arith.constant dense<0.000000e+00> : vector<256xf32>
      %13 = vector.multi_reduction <add>, %12, %cst_11 [0] : vector<32x256xf32> to vector<256xf32>
      %14 = vector.shape_cast %13 : vector<256xf32> to vector<1x256xf32>
      %cst_12 = arith.constant 3.125000e-02 : f32
      %15 = vector.broadcast %cst_12 : f32 to vector<1x256xf32>
      %16 = arith.mulf %14, %15 : vector<1x256xf32>
      %17 = vector.broadcast %16 : vector<1x256xf32> to vector<32x256xf32>
      %18 = arith.subf %12, %17 : vector<32x256xf32>
      %19 = arith.mulf %18, %18 : vector<32x256xf32>
      %cst_13 = arith.constant dense<0.000000e+00> : vector<256xf32>
      %20 = vector.multi_reduction <add>, %19, %cst_13 [0] : vector<32x256xf32> to vector<256xf32>
      %21 = vector.shape_cast %20 : vector<256xf32> to vector<1x256xf32>
      %22 = arith.truncf %12 : vector<32x256xf32> to vector<32x256xbf16>
      %c0_14 = arith.constant 0 : index
      %c0_15 = arith.constant 0 : index
      %23 = vector.load %arg4[%c0_14, %c0_15] : memref<32x256xbf16, #tpu.memory_space<vmem>>, vector<32x256xbf16>
      tpu.vector_store %arg4[%c0_14, %c0_15], %22 {strides = array<i32>} : memref<32x256xbf16, #tpu.memory_space<vmem>>, vector<32x256xbf16>,
      %24 = vector.shape_cast %16 : vector<1x256xf32> to vector<1x1x256xf32>
      %25 = vector.broadcast %24 : vector<1x1x256xf32> to vector<1x8x256xf32>
      %c0_16 = arith.constant 0 : index
      %c0_17 = arith.constant 0 : index
      %c0_18 = arith.constant 0 : index
      %26 = vector.load %arg5[%c0_16, %c0_17, %c0_18] : memref<1x8x256xf32, #tpu.memory_space<vmem>>, vector<1x8x256xf32>
      tpu.vector_store %arg5[%c0_16, %c0_17, %c0_18], %25 {strides = array<i32>} : memref<1x8x256xf32, #tpu.memory_space<vmem>>, vector<1x8x256xf32>,
      %27 = vector.shape_cast %21 : vector<1x256xf32> to vector<1x1x256xf32>
      %28 = vector.broadcast %27 : vector<1x1x256xf32> to vector<1x8x256xf32>
      %c0_19 = arith.constant 0 : index
      %c0_20 = arith.constant 0 : index
      %c0_21 = arith.constant 0 : index
      %29 = vector.load %arg6[%c0_19, %c0_20, %c0_21] : memref<1x8x256xf32, #tpu.memory_space<vmem>>, vector<1x8x256xf32>
      tpu.vector_store %arg6[%c0_19, %c0_20, %c0_21], %28 {strides = array<i32>} : memref<1x8x256xf32, #tpu.memory_space<vmem>>, vector<1x8x256xf32>,
    } else {
    }
    return
  }
  func.func @transform_0(%arg0: i32, %arg1: i32) -> (i32, i32) {
    %c0_i32 = arith.constant 0 : i32
    return %arg0, %arg1 : i32, i32
  }
  func.func @transform_1(%arg0: i32, %arg1: i32) -> (i32, i32) {
    %c0_i32 = arith.constant 0 : i32
    %c0_i32_0 = arith.constant 0 : i32
    return %arg1, %c0_i32 : i32, i32
  }
  func.func @transform_2(%arg0: i32, %arg1: i32) -> (i32, i32) {
    %c0_i32 = arith.constant 0 : i32
    %c0_i32_0 = arith.constant 0 : i32
    return %arg0, %c0_i32 : i32, i32
  }
  func.func @transform_3(%arg0: i32, %arg1: i32) -> (i32, i32, i32) {
    %c0_i32 = arith.constant 0 : i32
    %c0_i32_0 = arith.constant 0 : i32
    %c0_i32_1 = arith.constant 0 : i32
    return %arg0, %c0_i32, %c0_i32_0 : i32, i32, i32
  }
  func.func @transform_4(%arg0: i32, %arg1: i32) -> (i32, i32, i32) {
    %c0_i32 = arith.constant 0 : i32
    %c0_i32_0 = arith.constant 0 : i32
    %c0_i32_1 = arith.constant 0 : i32
    return %arg0, %c0_i32, %c0_i32_0 : i32, i32, i32
  }
}

module attributes {stable_mosaic.version = 11 : i64} {
  func.func @bn_lrelu_kernel(%arg0: i32, %arg1: memref<32x256xbf16, #tpu.memory_space<vmem>>, %arg2: memref<1x256xf32, #tpu.memory_space<vmem>>, %arg3: memref<1x256xf32, #tpu.memory_space<vmem>>, %arg4: memref<32x256xbf16, #tpu.memory_space<vmem>>) attributes {dimension_semantics = [#tpu.dimension_semantics<parallel>], iteration_bounds = array<i64: 1>, scalar_prefetch = 0 : i64, scratch_operands = 0 : i64, tpu.core_type = #tpu.core_type<tc>, window_params = [{transform_indices = @transform_0, window_bounds = array<i64: 32, 256>}, {pipeline_mode = #tpu.pipeline_mode<synchronous>, transform_indices = @transform_1, window_bounds = array<i64: 1, 256>}, {pipeline_mode = #tpu.pipeline_mode<synchronous>, transform_indices = @transform_2, window_bounds = array<i64: 1, 256>}, {transform_indices = @transform_3, window_bounds = array<i64: 32, 256>}]} {
    %c0 = arith.constant 0 : index
    %c0_0 = arith.constant 0 : index
    %0 = vector.load %arg1[%c0, %c0_0] : memref<32x256xbf16, #tpu.memory_space<vmem>>, vector<32x256xbf16>
    %1 = arith.extf %0 : vector<32x256xbf16> to vector<32x256xf32>
    %c0_1 = arith.constant 0 : index
    %c0_2 = arith.constant 0 : index
    %2 = vector.load %arg2[%c0_1, %c0_2] : memref<1x256xf32, #tpu.memory_space<vmem>>, vector<1x256xf32>
    %3 = vector.broadcast %2 : vector<1x256xf32> to vector<32x256xf32>
    %4 = arith.mulf %1, %3 : vector<32x256xf32>
    %c0_3 = arith.constant 0 : index
    %c0_4 = arith.constant 0 : index
    %5 = vector.load %arg3[%c0_3, %c0_4] : memref<1x256xf32, #tpu.memory_space<vmem>>, vector<1x256xf32>
    %6 = vector.broadcast %5 : vector<1x256xf32> to vector<32x256xf32>
    %7 = arith.addf %4, %6 : vector<32x256xf32>
    %cst = arith.constant 1.000000e-01 : f32
    %8 = vector.broadcast %cst : f32 to vector<32x256xf32>
    %9 = arith.mulf %8, %7 : vector<32x256xf32>
    %10 = arith.maximumf %7, %9 : vector<32x256xf32>
    %11 = arith.truncf %10 : vector<32x256xf32> to vector<32x256xbf16>
    %c0_5 = arith.constant 0 : index
    %c0_6 = arith.constant 0 : index
    %12 = vector.load %arg4[%c0_5, %c0_6] : memref<32x256xbf16, #tpu.memory_space<vmem>>, vector<32x256xbf16>
    tpu.vector_store %arg4[%c0_5, %c0_6], %11 {strides = array<i32>} : memref<32x256xbf16, #tpu.memory_space<vmem>>, vector<32x256xbf16>,
    return
  }
  func.func @transform_0(%arg0: i32) -> (i32, i32) {
    %c0_i32 = arith.constant 0 : i32
    %c0_i32_0 = arith.constant 0 : i32
    return %arg0, %c0_i32 : i32, i32
  }
  func.func @transform_1(%arg0: i32) -> (i32, i32) {
    %c0_i32 = arith.constant 0 : i32
    %c0_i32_0 = arith.constant 0 : i32
    %c0_i32_1 = arith.constant 0 : i32
    return %c0_i32, %c0_i32_0 : i32, i32
  }
  func.func @transform_2(%arg0: i32) -> (i32, i32) {
    %c0_i32 = arith.constant 0 : i32
    %c0_i32_0 = arith.constant 0 : i32
    %c0_i32_1 = arith.constant 0 : i32
    return %c0_i32, %c0_i32_0 : i32, i32
  }
  func.func @transform_3(%arg0: i32) -> (i32, i32) {
    %c0_i32 = arith.constant 0 : i32
    %c0_i32_0 = arith.constant 0 : i32
    return %arg0, %c0_i32 : i32, i32
  }
}

module attributes {stable_mosaic.version = 11 : i64} {
  func.func @conv_partial_kernel(%arg0: i32, %arg1: i32, %arg2: memref<8x640xbf16, #tpu.memory_space<vmem>>, %arg3: memref<640x512xbf16, #tpu.memory_space<vmem>>, %arg4: memref<8x512xbf16, #tpu.memory_space<vmem>>, %arg5: memref<1x8x512xf32, #tpu.memory_space<vmem>>, %arg6: memref<1x8x512xf32, #tpu.memory_space<vmem>>, %arg7: memref<8x512xf32, #tpu.memory_space<vmem>>) attributes {dimension_semantics = [#tpu.dimension_semantics<parallel>, #tpu.dimension_semantics<arbitrary>], iteration_bounds = array<i64: 1, 10>, scalar_prefetch = 0 : i64, scratch_operands = 1 : i64, tpu.core_type = #tpu.core_type<tc>, window_params = [{transform_indices = @transform_0, window_bounds = array<i64: 8, 640>}, {transform_indices = @transform_1, window_bounds = array<i64: 640, 512>}, {transform_indices = @transform_2, window_bounds = array<i64: 8, 512>}, {transform_indices = @transform_3, window_bounds = array<i64: 1, 8, 512>}, {transform_indices = @transform_4, window_bounds = array<i64: 1, 8, 512>}]} {
    %c0_i32 = arith.constant 0 : i32
    %0 = arith.cmpi eq, %arg1, %c0_i32 : i32
    %1 = arith.extui %0 : i1 to i32
    %c0_i32_0 = arith.constant 0 : i32
    %2 = arith.cmpi ne, %1, %c0_i32_0 : i32
    scf.if %2 {
      %cst_9 = arith.constant 0.000000e+00 : f32
      %12 = vector.broadcast %cst_9 : f32 to vector<8x512xf32>
      %c0_10 = arith.constant 0 : index
      %c0_11 = arith.constant 0 : index
      %13 = vector.load %arg7[%c0_10, %c0_11] : memref<8x512xf32, #tpu.memory_space<vmem>>, vector<8x512xf32>
      tpu.vector_store %arg7[%c0_10, %c0_11], %12 {strides = array<i32>} : memref<8x512xf32, #tpu.memory_space<vmem>>, vector<8x512xf32>,
    } else {
    }
    %c0 = arith.constant 0 : index
    %c0_1 = arith.constant 0 : index
    %3 = vector.load %arg7[%c0, %c0_1] : memref<8x512xf32, #tpu.memory_space<vmem>>, vector<8x512xf32>
    %c0_2 = arith.constant 0 : index
    %c0_3 = arith.constant 0 : index
    %4 = vector.load %arg2[%c0_2, %c0_3] : memref<8x640xbf16, #tpu.memory_space<vmem>>, vector<8x640xbf16>
    %c0_4 = arith.constant 0 : index
    %c0_5 = arith.constant 0 : index
    %5 = vector.load %arg3[%c0_4, %c0_5] : memref<640x512xbf16, #tpu.memory_space<vmem>>, vector<640x512xbf16>
    %cst = arith.constant dense<0.000000e+00> : vector<8x512xf32>
    %6 = tpu.matmul %4, %5, %cst {dimension_numbers = #tpu.dot_dimension_numbers<[1], [0], [0], [1], [0, 0, 1, 1], [], []>} : vector<8x640xbf16>, vector<640x512xbf16>, vector<8x512xf32> -> vector<8x512xf32>
    %7 = arith.addf %3, %6 : vector<8x512xf32>
    %c0_6 = arith.constant 0 : index
    %c0_7 = arith.constant 0 : index
    %8 = vector.load %arg7[%c0_6, %c0_7] : memref<8x512xf32, #tpu.memory_space<vmem>>, vector<8x512xf32>
    tpu.vector_store %arg7[%c0_6, %c0_7], %7 {strides = array<i32>} : memref<8x512xf32, #tpu.memory_space<vmem>>, vector<8x512xf32>,
    %c9_i32 = arith.constant 9 : i32
    %9 = arith.cmpi eq, %arg1, %c9_i32 : i32
    %10 = arith.extui %9 : i1 to i32
    %c0_i32_8 = arith.constant 0 : i32
    %11 = arith.cmpi ne, %10, %c0_i32_8 : i32
    scf.if %11 {
      %c0_9 = arith.constant 0 : index
      %c0_10 = arith.constant 0 : index
      %12 = vector.load %arg7[%c0_9, %c0_10] : memref<8x512xf32, #tpu.memory_space<vmem>>, vector<8x512xf32>
      %cst_11 = arith.constant dense<0.000000e+00> : vector<512xf32>
      %13 = vector.multi_reduction <add>, %12, %cst_11 [0] : vector<8x512xf32> to vector<512xf32>
      %14 = vector.shape_cast %13 : vector<512xf32> to vector<1x512xf32>
      %cst_12 = arith.constant 1.250000e-01 : f32
      %15 = vector.broadcast %cst_12 : f32 to vector<1x512xf32>
      %16 = arith.mulf %14, %15 : vector<1x512xf32>
      %17 = vector.broadcast %16 : vector<1x512xf32> to vector<8x512xf32>
      %18 = arith.subf %12, %17 : vector<8x512xf32>
      %19 = arith.mulf %18, %18 : vector<8x512xf32>
      %cst_13 = arith.constant dense<0.000000e+00> : vector<512xf32>
      %20 = vector.multi_reduction <add>, %19, %cst_13 [0] : vector<8x512xf32> to vector<512xf32>
      %21 = vector.shape_cast %20 : vector<512xf32> to vector<1x512xf32>
      %22 = arith.truncf %12 : vector<8x512xf32> to vector<8x512xbf16>
      %c0_14 = arith.constant 0 : index
      %c0_15 = arith.constant 0 : index
      %23 = vector.load %arg4[%c0_14, %c0_15] : memref<8x512xbf16, #tpu.memory_space<vmem>>, vector<8x512xbf16>
      tpu.vector_store %arg4[%c0_14, %c0_15], %22 {strides = array<i32>} : memref<8x512xbf16, #tpu.memory_space<vmem>>, vector<8x512xbf16>,
      %24 = vector.shape_cast %16 : vector<1x512xf32> to vector<1x1x512xf32>
      %25 = vector.broadcast %24 : vector<1x1x512xf32> to vector<1x8x512xf32>
      %c0_16 = arith.constant 0 : index
      %c0_17 = arith.constant 0 : index
      %c0_18 = arith.constant 0 : index
      %26 = vector.load %arg5[%c0_16, %c0_17, %c0_18] : memref<1x8x512xf32, #tpu.memory_space<vmem>>, vector<1x8x512xf32>
      tpu.vector_store %arg5[%c0_16, %c0_17, %c0_18], %25 {strides = array<i32>} : memref<1x8x512xf32, #tpu.memory_space<vmem>>, vector<1x8x512xf32>,
      %27 = vector.shape_cast %21 : vector<1x512xf32> to vector<1x1x512xf32>
      %28 = vector.broadcast %27 : vector<1x1x512xf32> to vector<1x8x512xf32>
      %c0_19 = arith.constant 0 : index
      %c0_20 = arith.constant 0 : index
      %c0_21 = arith.constant 0 : index
      %29 = vector.load %arg6[%c0_19, %c0_20, %c0_21] : memref<1x8x512xf32, #tpu.memory_space<vmem>>, vector<1x8x512xf32>
      tpu.vector_store %arg6[%c0_19, %c0_20, %c0_21], %28 {strides = array<i32>} : memref<1x8x512xf32, #tpu.memory_space<vmem>>, vector<1x8x512xf32>,
    } else {
    }
    return
  }
  func.func @transform_0(%arg0: i32, %arg1: i32) -> (i32, i32) {
    %c0_i32 = arith.constant 0 : i32
    return %arg0, %arg1 : i32, i32
  }
  func.func @transform_1(%arg0: i32, %arg1: i32) -> (i32, i32) {
    %c0_i32 = arith.constant 0 : i32
    %c0_i32_0 = arith.constant 0 : i32
    return %arg1, %c0_i32 : i32, i32
  }
  func.func @transform_2(%arg0: i32, %arg1: i32) -> (i32, i32) {
    %c0_i32 = arith.constant 0 : i32
    %c0_i32_0 = arith.constant 0 : i32
    return %arg0, %c0_i32 : i32, i32
  }
  func.func @transform_3(%arg0: i32, %arg1: i32) -> (i32, i32, i32) {
    %c0_i32 = arith.constant 0 : i32
    %c0_i32_0 = arith.constant 0 : i32
    %c0_i32_1 = arith.constant 0 : i32
    return %arg0, %c0_i32, %c0_i32_0 : i32, i32, i32
  }
  func.func @transform_4(%arg0: i32, %arg1: i32) -> (i32, i32, i32) {
    %c0_i32 = arith.constant 0 : i32
    %c0_i32_0 = arith.constant 0 : i32
    %c0_i32_1 = arith.constant 0 : i32
    return %arg0, %c0_i32, %c0_i32_0 : i32, i32, i32
  }
}

module attributes {stable_mosaic.version = 11 : i64} {
  func.func @bn_lrelu_kernel(%arg0: i32, %arg1: memref<8x512xbf16, #tpu.memory_space<vmem>>, %arg2: memref<1x512xf32, #tpu.memory_space<vmem>>, %arg3: memref<1x512xf32, #tpu.memory_space<vmem>>, %arg4: memref<8x512xbf16, #tpu.memory_space<vmem>>) attributes {dimension_semantics = [#tpu.dimension_semantics<parallel>], iteration_bounds = array<i64: 1>, scalar_prefetch = 0 : i64, scratch_operands = 0 : i64, tpu.core_type = #tpu.core_type<tc>, window_params = [{transform_indices = @transform_0, window_bounds = array<i64: 8, 512>}, {pipeline_mode = #tpu.pipeline_mode<synchronous>, transform_indices = @transform_1, window_bounds = array<i64: 1, 512>}, {pipeline_mode = #tpu.pipeline_mode<synchronous>, transform_indices = @transform_2, window_bounds = array<i64: 1, 512>}, {transform_indices = @transform_3, window_bounds = array<i64: 8, 512>}]} {
    %c0 = arith.constant 0 : index
    %c0_0 = arith.constant 0 : index
    %0 = vector.load %arg1[%c0, %c0_0] : memref<8x512xbf16, #tpu.memory_space<vmem>>, vector<8x512xbf16>
    %1 = arith.extf %0 : vector<8x512xbf16> to vector<8x512xf32>
    %c0_1 = arith.constant 0 : index
    %c0_2 = arith.constant 0 : index
    %2 = vector.load %arg2[%c0_1, %c0_2] : memref<1x512xf32, #tpu.memory_space<vmem>>, vector<1x512xf32>
    %3 = vector.broadcast %2 : vector<1x512xf32> to vector<8x512xf32>
    %4 = arith.mulf %1, %3 : vector<8x512xf32>
    %c0_3 = arith.constant 0 : index
    %c0_4 = arith.constant 0 : index
    %5 = vector.load %arg3[%c0_3, %c0_4] : memref<1x512xf32, #tpu.memory_space<vmem>>, vector<1x512xf32>
    %6 = vector.broadcast %5 : vector<1x512xf32> to vector<8x512xf32>
    %7 = arith.addf %4, %6 : vector<8x512xf32>
    %cst = arith.constant 1.000000e-01 : f32
    %8 = vector.broadcast %cst : f32 to vector<8x512xf32>
    %9 = arith.mulf %8, %7 : vector<8x512xf32>
    %10 = arith.maximumf %7, %9 : vector<8x512xf32>
    %11 = arith.truncf %10 : vector<8x512xf32> to vector<8x512xbf16>
    %c0_5 = arith.constant 0 : index
    %c0_6 = arith.constant 0 : index
    %12 = vector.load %arg4[%c0_5, %c0_6] : memref<8x512xbf16, #tpu.memory_space<vmem>>, vector<8x512xbf16>
    tpu.vector_store %arg4[%c0_5, %c0_6], %11 {strides = array<i32>} : memref<8x512xbf16, #tpu.memory_space<vmem>>, vector<8x512xbf16>,
    return
  }
  func.func @transform_0(%arg0: i32) -> (i32, i32) {
    %c0_i32 = arith.constant 0 : i32
    %c0_i32_0 = arith.constant 0 : i32
    return %arg0, %c0_i32 : i32, i32
  }
  func.func @transform_1(%arg0: i32) -> (i32, i32) {
    %c0_i32 = arith.constant 0 : i32
    %c0_i32_0 = arith.constant 0 : i32
    %c0_i32_1 = arith.constant 0 : i32
    return %c0_i32, %c0_i32_0 : i32, i32
  }
  func.func @transform_2(%arg0: i32) -> (i32, i32) {
    %c0_i32 = arith.constant 0 : i32
    %c0_i32_0 = arith.constant 0 : i32
    %c0_i32_1 = arith.constant 0 : i32
    return %c0_i32, %c0_i32_0 : i32, i32
  }
  func.func @transform_3(%arg0: i32) -> (i32, i32) {
    %c0_i32 = arith.constant 0 : i32
    %c0_i32_0 = arith.constant 0 : i32
    return %arg0, %c0_i32 : i32, i32
  }
}

module attributes {stable_mosaic.version = 11 : i64} {
  func.func @mlp_head_kernel(%arg0: i32, %arg1: memref<2x2176xbf16, #tpu.memory_space<vmem>>, %arg2: memref<2176x512xbf16, #tpu.memory_space<vmem>>, %arg3: memref<1x512xf32, #tpu.memory_space<vmem>>, %arg4: memref<1x512xf32, #tpu.memory_space<vmem>>, %arg5: memref<1x1xf32, #tpu.memory_space<smem>>, %arg6: memref<2x1xf32, #tpu.memory_space<vmem>>) attributes {dimension_semantics = [#tpu.dimension_semantics<arbitrary>], iteration_bounds = array<i64: 1>, scalar_prefetch = 0 : i64, scratch_operands = 0 : i64, tpu.core_type = #tpu.core_type<tc>, window_params = [{pipeline_mode = #tpu.pipeline_mode<synchronous>, transform_indices = @transform_0, window_bounds = array<i64: 2, 2176>}, {pipeline_mode = #tpu.pipeline_mode<synchronous>, transform_indices = @transform_1, window_bounds = array<i64: 2176, 512>}, {pipeline_mode = #tpu.pipeline_mode<synchronous>, transform_indices = @transform_2, window_bounds = array<i64: 1, 512>}, {pipeline_mode = #tpu.pipeline_mode<synchronous>, transform_indices = @transform_3, window_bounds = array<i64: 1, 512>}, {transform_indices = @transform_4, window_bounds = array<i64: 1, 1>}, {pipeline_mode = #tpu.pipeline_mode<synchronous>, transform_indices = @transform_5, window_bounds = array<i64: 2, 1>}]} {
    %c0 = arith.constant 0 : index
    %c0_0 = arith.constant 0 : index
    %0 = vector.load %arg1[%c0, %c0_0] : memref<2x2176xbf16, #tpu.memory_space<vmem>>, vector<2x2176xbf16>
    %c0_1 = arith.constant 0 : index
    %c0_2 = arith.constant 0 : index
    %1 = vector.load %arg2[%c0_1, %c0_2] : memref<2176x512xbf16, #tpu.memory_space<vmem>>, vector<2176x512xbf16>
    %cst = arith.constant dense<0.000000e+00> : vector<2x512xf32>
    %2 = tpu.matmul %0, %1, %cst {dimension_numbers = #tpu.dot_dimension_numbers<[1], [0], [0], [1], [0, 0, 1, 1], [], []>} : vector<2x2176xbf16>, vector<2176x512xbf16>, vector<2x512xf32> -> vector<2x512xf32>
    %c0_3 = arith.constant 0 : index
    %c0_4 = arith.constant 0 : index
    %3 = vector.load %arg3[%c0_3, %c0_4] : memref<1x512xf32, #tpu.memory_space<vmem>>, vector<1x512xf32>
    %4 = vector.broadcast %3 : vector<1x512xf32> to vector<2x512xf32>
    %5 = arith.addf %2, %4 : vector<2x512xf32>
    %cst_5 = arith.constant 0.000000e+00 : f32
    %6 = vector.broadcast %cst_5 : f32 to vector<2x512xf32>
    %7 = arith.maximumf %5, %6 : vector<2x512xf32>
    %c0_6 = arith.constant 0 : index
    %c0_7 = arith.constant 0 : index
    %8 = vector.load %arg4[%c0_6, %c0_7] : memref<1x512xf32, #tpu.memory_space<vmem>>, vector<1x512xf32>
    %9 = vector.broadcast %8 : vector<1x512xf32> to vector<2x512xf32>
    %10 = arith.mulf %7, %9 : vector<2x512xf32>
    %cst_8 = arith.constant dense<0.000000e+00> : vector<2xf32>
    %11 = vector.multi_reduction <add>, %10, %cst_8 [1] : vector<2x512xf32> to vector<2xf32>
    %12 = vector.shape_cast %11 : vector<2xf32> to vector<2x1xf32>
    %c0_9 = arith.constant 0 : index
    %c0_10 = arith.constant 0 : index
    %13 = memref.load %arg5[%c0_9, %c0_10] : memref<1x1xf32, #tpu.memory_space<smem>>
    %14 = vector.broadcast %13 : f32 to vector<2x1xf32>
    %15 = arith.addf %12, %14 : vector<2x1xf32>
    %cst_11 = arith.constant 0.000000e+00 : f32
    %16 = vector.broadcast %cst_11 : f32 to vector<2x1xf32>
    %17 = arith.subf %16, %15 : vector<2x1xf32>
    %18 = math.exp %17 : vector<2x1xf32>
    %cst_12 = arith.constant 1.000000e+00 : f32
    %19 = vector.broadcast %cst_12 : f32 to vector<2x1xf32>
    %20 = arith.addf %19, %18 : vector<2x1xf32>
    %cst_13 = arith.constant 1.000000e+00 : f32
    %21 = vector.broadcast %cst_13 : f32 to vector<2x1xf32>
    %22 = arith.divf %21, %20 : vector<2x1xf32>
    %c0_14 = arith.constant 0 : index
    %c0_15 = arith.constant 0 : index
    %23 = vector.load %arg6[%c0_14, %c0_15] : memref<2x1xf32, #tpu.memory_space<vmem>>, vector<2x1xf32>
    tpu.vector_store %arg6[%c0_14, %c0_15], %22 {strides = array<i32>} : memref<2x1xf32, #tpu.memory_space<vmem>>, vector<2x1xf32>,
    return
  }
  func.func @transform_0(%arg0: i32) -> (i32, i32) {
    %c0_i32 = arith.constant 0 : i32
    %c0_i32_0 = arith.constant 0 : i32
    %c0_i32_1 = arith.constant 0 : i32
    return %c0_i32, %c0_i32_0 : i32, i32
  }
  func.func @transform_1(%arg0: i32) -> (i32, i32) {
    %c0_i32 = arith.constant 0 : i32
    %c0_i32_0 = arith.constant 0 : i32
    %c0_i32_1 = arith.constant 0 : i32
    return %c0_i32, %c0_i32_0 : i32, i32
  }
  func.func @transform_2(%arg0: i32) -> (i32, i32) {
    %c0_i32 = arith.constant 0 : i32
    %c0_i32_0 = arith.constant 0 : i32
    %c0_i32_1 = arith.constant 0 : i32
    return %c0_i32, %c0_i32_0 : i32, i32
  }
  func.func @transform_3(%arg0: i32) -> (i32, i32) {
    %c0_i32 = arith.constant 0 : i32
    %c0_i32_0 = arith.constant 0 : i32
    %c0_i32_1 = arith.constant 0 : i32
    return %c0_i32, %c0_i32_0 : i32, i32
  }
  func.func @transform_4(%arg0: i32) -> (i32, i32) {
    %c0_i32 = arith.constant 0 : i32
    %c0_i32_0 = arith.constant 0 : i32
    %c0_i32_1 = arith.constant 0 : i32
    return %c0_i32, %c0_i32_0 : i32, i32
  }
  func.func @transform_5(%arg0: i32) -> (i32, i32) {
    %c0_i32 = arith.constant 0 : i32
    %c0_i32_0 = arith.constant 0 : i32
    %c0_i32_1 = arith.constant 0 : i32
    return %c0_i32, %c0_i32_0 : i32, i32
  }
}

</mosaic_0001>

<bundles_post_ra>
// kernel: discriminator_forward.10
= control target key start
LH: loop header
LB: loop body
LE: loop exit
PB: predicated region body
PF: predicated region fallthrough
CT: control target
= control target key end

     0   :  { %s789_s12 = smov 0   ;;  %s971_s0 = inlined_call_operand.vmem [shape: bf16[512,64], index: 0, kind: input, shape index: {}]   ;;  %s972_s1 = inlined_call_operand.vmem [shape: f32[1,64], index: 1, kind: input, shape index: {}]   ;;  %s973_s2 = inlined_call_operand.vmem [shape: f32[1,64], index: 2, kind: input, shape index: {}]   ;;  %s974_s3 = inlined_call_operand.vmem [shape: bf16[512,64], index: 3, kind: output, shape index: {}]  }
   0x1 LB: > { %s597_s13 = sadd.s32 4294967295, %s767_s12   ;;  %p601_p0 = scmp.ge.s32.totalorder %s767_s12, 1  ;;  %s767_s12 = sphi %s789_s12, %s13_s12  }
   0x2   : > { %p138_p1 = scmp.lt.s32.totalorder %s767_s12, 3 }
   0x4   : > { %p139_p2 = pnand %p601_p0, %p138_p1 }
   0x5   : > { %s602_s14 = sshll.u32 (!%p139_p2), %s597_s13, 5 }
   0x6   : > { %142 = sbr.rel (%p139_p2) target bundleno = 67 (0x43), region = 32  ;;  %p163_p3 = scmp.lt.s32.totalorder (!%p139_p2), %s602_s14, 63 }
   0xb   : > { %s976_s14 = smov (!%p163_p3, %s602_s14), 63  ;;  %v810_v0 = vld [vmem:[%s972_s1] ss:$0 sm:$0xff]  ;;  %vm508_vm0 = vcmask 519168  }
   0xc   : > { %s603_s15 = sshll.u32 %s976_s14, 2  ;;  %v819_v9 = vld [vmem:[%s973_s2] ss:$0 sm:$0xff] }
   0xd   : > { %s805_s18 = scalar_lea.vmem %s971_s0, %s603_s15  ;;  %s843_s25 = scalar_lea.vmem %s974_s3, %s603_s15 }
   0xe   : > { %v675_v1 = vld [vmem:[%s805_s18] sm:$0xff]   ;;  %v738_v2 = vld [vmem:[%s805_s18 + $0x8] sm:$0xff]   ;;  %v739_v3 = vld [vmem:[%s805_s18 + $0x10] sm:$0xff]  }
   0xf   : > { %v676_v4 = vunpack.c.l.bf16 %v675_v1  ;;  %v677_v5 = vunpack.c.h.bf16 %v675_v1  ;;  %v680_v6 = vunpack.c.l.bf16 %v738_v2  ;;  %v681_v7 = vunpack.c.h.bf16 %v738_v2  ;;  %v740_v8 = vld [vmem:[%s805_s18 + $0x18] sm:$0xff]   ;;  %v741_v22 = vld [vmem:[%s805_s18 + $0x20] sm:$0xff]   ;;  %v742_v47 = vld [vmem:[%s805_s18 + $0x28] sm:$0xff]  }
  0x10   : > { %v684_v10 = vunpack.c.l.bf16 %v739_v3  ;;  %v685_v11 = vunpack.c.h.bf16 %v739_v3  ;;  %v688_v12 = vunpack.c.l.bf16 %v740_v8  ;;  %v689_v13 = vunpack.c.h.bf16 %v740_v8  ;;  %v743_v52 = vld [vmem:[%s805_s18 + $0x30] sm:$0xff]   ;;  %v744_v57 = vld [vmem:[%s805_s18 + $0x38] sm:$0xff]  }
  0x11   : > { %v245_v14 = vmul.f32 %v676_v4, %v810_v0  ;;  %v246_v15 = vmul.f32 %v677_v5, %v810_v0  ;;  %v247_v16 = vmul.f32 %v680_v6, %v810_v0  ;;  %v248_v17 = vmul.f32 %v681_v7, %v810_v0 }
  0x12   : > { %v249_v18 = vmul.f32 %v684_v10, %v810_v0  ;;  %v250_v19 = vmul.f32 %v685_v11, %v810_v0  ;;  %v251_v20 = vmul.f32 %v688_v12, %v810_v0  ;;  %v252_v21 = vmul.f32 %v689_v13, %v810_v0 }
  0x13   : > { %v284_v23 = vadd.f32 %v819_v9, %v245_v14  ;;  %v285_v24 = vadd.f32 %v819_v9, %v246_v15  ;;  %v286_v25 = vadd.f32 %v819_v9, %v247_v16  ;;  %v287_v26 = vadd.f32 %v819_v9, %v248_v17 }
  0x14   : > { %v288_v27 = vadd.f32 %v819_v9, %v249_v18  ;;  %v289_v28 = vadd.f32 %v819_v9, %v250_v19  ;;  %v290_v29 = vadd.f32 %v819_v9, %v251_v20  ;;  %v291_v30 = vadd.f32 %v819_v9, %v252_v21 }
  0x15   : > { %v316_v31 = vmul.f32 0.1, %v284_v23  ;;  %v317_v32 = vmul.f32 0.1, %v285_v24  ;;  %v318_v33 = vmul.f32 0.1, %v286_v25  ;;  %v692_v34 = vunpack.c.l.bf16 %v741_v22 }
  0x16   : > { %v319_v35 = vmul.f32 0.1, %v287_v26  ;;  %v320_v36 = vmul.f32 0.1, %v288_v27  ;;  %v321_v37 = vmul.f32 0.1, %v289_v28  ;;  %v693_v38 = vunpack.c.h.bf16 %v741_v22 }
  0x17   : > { %v348_v39 = vmax.f32 %v284_v23, %v316_v31  ;;  %v349_v40 = vmax.f32 %v285_v24, %v317_v32  ;;  %v350_v41 = vmax.f32 %v286_v25, %v318_v33  ;;  %v322_v42 = vmul.f32 0.1, %v290_v29  ;;  %v745_v24 = vld [vmem:[%s805_s18 + $0x40] sm:$0xff]  }
  0x18   : > { %v351_v43 = vmax.f32 %v287_v26, %v319_v35  ;;  %v352_v44 = vmax.f32 %v288_v27, %v320_v36  ;;  %v353_v45 = vmax.f32 %v289_v28, %v321_v37  ;;  %v323_v46 = vmul.f32 0.1, %v291_v30  ;;  %v746_v37 = vld [vmem:[%s805_s18 + $0x48] sm:$0xff]  }
  0x19   : > { %v642_v48 = vpack.c.bf16 %v348_v39, %v348_v39  ;;  %v643_v49 = vpack.c.bf16 %v349_v40, %v349_v40  ;;  %v644_v50 = vpack.c.bf16 %v350_v41, %v350_v41  ;;  %v354_v51 = vmax.f32 %v290_v29, %v322_v42  ;;  %v747_v42 = vld [vmem:[%s805_s18 + $0x50] sm:$0xff]  }
  0x1a   : > { %v645_v53 = vpack.c.bf16 %v351_v43, %v351_v43  ;;  %v646_v54 = vpack.c.bf16 %v352_v44, %v352_v44  ;;  %v647_v55 = vpack.c.bf16 %v353_v45, %v353_v45  ;;  %v355_v56 = vmax.f32 %v291_v30, %v323_v46 }
  0x1b   : > { %509 = vst.msk [vmem:[%s843_s25] sm:$0xf] %vm508_vm0, %v642_v48  ;;  %510 = vst.msk [vmem:[%s843_s25 + $0x4] sm:$0xf] %vm508_vm0, %v643_v49  ;;  %v648_v58 = vpack.c.bf16 %v354_v51, %v354_v51  ;;  %v253_v59 = vmul.f32 %v692_v34, %v810_v0  ;;  %v254_v60 = vmul.f32 %v693_v38, %v810_v0  ;;  %v696_v61 = vunpack.c.l.bf16 %v742_v47 }
  0x1c   : > { %511 = vst.msk [vmem:[%s843_s25 + $0x8] sm:$0xf] %vm508_vm0, %v644_v50  ;;  %512 = vst.msk [vmem:[%s843_s25 + $0xc] sm:$0xf] %vm508_vm0, %v645_v53  ;;  %v649_v62 = vpack.c.bf16 %v355_v56, %v355_v56  ;;  %v697_v63 = vunpack.c.h.bf16 %v742_v47  ;;  %v700_v1 = vunpack.c.l.bf16 %v743_v52  ;;  %v701_v2 = vunpack.c.h.bf16 %v743_v52  ;;  %v748_v47 = vld [vmem:[%s805_s18 + $0x58] sm:$0xff]  }
  0x1d   : > { %513 = vst.msk [vmem:[%s843_s25 + $0x10] sm:$0xf] %vm508_vm0, %v646_v54  ;;  %514 = vst.msk [vmem:[%s843_s25 + $0x14] sm:$0xf] %vm508_vm0, %v647_v55  ;;  %v292_v3 = vadd.f32 %v819_v9, %v253_v59  ;;  %v293_v4 = vadd.f32 %v819_v9, %v254_v60  ;;  %v255_v5 = vmul.f32 %v696_v61, %v810_v0  ;;  %v704_v6 = vunpack.c.l.bf16 %v744_v57 }
  0x1e   : > { %515 = vst.msk [vmem:[%s843_s25 + $0x18] sm:$0xf] %vm508_vm0, %v648_v58  ;;  %516 = vst.msk [vmem:[%s843_s25 + $0x1c] sm:$0xf] %vm508_vm0, %v649_v62  ;;  %v256_v7 = vmul.f32 %v697_v63, %v810_v0  ;;  %v257_v8 = vmul.f32 %v700_v1, %v810_v0  ;;  %v258_v10 = vmul.f32 %v701_v2, %v810_v0  ;;  %v705_v11 = vunpack.c.h.bf16 %v744_v57 }
  0x1f   : > { %v324_v12 = vmul.f32 0.1, %v292_v3  ;;  %v325_v13 = vmul.f32 0.1, %v293_v4  ;;  %v294_v14 = vadd.f32 %v819_v9, %v255_v5  ;;  %v259_v15 = vmul.f32 %v704_v6, %v810_v0 }
  0x20   : > { %v295_v16 = vadd.f32 %v819_v9, %v256_v7  ;;  %v296_v17 = vadd.f32 %v819_v9, %v257_v8  ;;  %v297_v18 = vadd.f32 %v819_v9, %v258_v10  ;;  %v260_v19 = vmul.f32 %v705_v11, %v810_v0 }
  0x21   : > { %v356_v20 = vmax.f32 %v292_v3, %v324_v12  ;;  %v357_v21 = vmax.f32 %v293_v4, %v325_v13  ;;  %v326_v22 = vmul.f32 0.1, %v294_v14  ;;  %v298_v23 = vadd.f32 %v819_v9, %v259_v15 }
  0x22   : > { %v327_v25 = vmul.f32 0.1, %v295_v16  ;;  %v328_v26 = vmul.f32 0.1, %v296_v17  ;;  %v329_v27 = vmul.f32 0.1, %v297_v18  ;;  %v299_v28 = vadd.f32 %v819_v9, %v260_v19 }
  0x23   : > { %v650_v29 = vpack.c.bf16 %v356_v20, %v356_v20  ;;  %v651_v30 = vpack.c.bf16 %v357_v21, %v357_v21  ;;  %v358_v31 = vmax.f32 %v294_v14, %v326_v22  ;;  %v330_v32 = vmul.f32 0.1, %v298_v23  ;;  %v749_v14 = vld [vmem:[%s805_s18 + $0x60] sm:$0xff]  }
  0x24   : > { %v359_v33 = vmax.f32 %v295_v16, %v327_v25  ;;  %v360_v34 = vmax.f32 %v296_v17, %v328_v26  ;;  %v361_v35 = vmax.f32 %v297_v18, %v329_v27  ;;  %v331_v36 = vmul.f32 0.1, %v299_v28  ;;  %v750_v27 = vld [vmem:[%s805_s18 + $0x68] sm:$0xff]  }
  0x25   : > { %517 = vst.msk [vmem:[%s843_s25 + $0x20] sm:$0xf] %vm508_vm0, %v650_v29  ;;  %518 = vst.msk [vmem:[%s843_s25 + $0x24] sm:$0xf] %vm508_vm0, %v651_v30  ;;  %v652_v38 = vpack.c.bf16 %v358_v31, %v358_v31  ;;  %v362_v39 = vmax.f32 %v298_v23, %v330_v32  ;;  %v708_v40 = vunpack.c.l.bf16 %v745_v24  ;;  %v709_v41 = vunpack.c.h.bf16 %v745_v24  ;;  %v751_v32 = vld [vmem:[%s805_s18 + $0x70] sm:$0xff]  }
  0x26   : > { %v653_v43 = vpack.c.bf16 %v359_v33, %v359_v33  ;;  %v654_v44 = vpack.c.bf16 %v360_v34, %v360_v34  ;;  %v655_v45 = vpack.c.bf16 %v361_v35, %v361_v35  ;;  %v363_v46 = vmax.f32 %v299_v28, %v331_v36 }
  0x27   : > { %519 = vst.msk [vmem:[%s843_s25 + $0x28] sm:$0xf] %vm508_vm0, %v652_v38  ;;  %v656_v48 = vpack.c.bf16 %v362_v39, %v362_v39  ;;  %v261_v49 = vmul.f32 %v708_v40, %v810_v0  ;;  %v262_v50 = vmul.f32 %v709_v41, %v810_v0  ;;  %v712_v51 = vunpack.c.l.bf16 %v746_v37 }
  0x28   : > { %520 = vst.msk [vmem:[%s843_s25 + $0x2c] sm:$0xf] %vm508_vm0, %v653_v43  ;;  %521 = vst.msk [vmem:[%s843_s25 + $0x30] sm:$0xf] %vm508_vm0, %v654_v44  ;;  %v657_v52 = vpack.c.bf16 %v363_v46, %v363_v46  ;;  %v713_v53 = vunpack.c.h.bf16 %v746_v37  ;;  %v716_v54 = vunpack.c.l.bf16 %v747_v42  ;;  %v717_v55 = vunpack.c.h.bf16 %v747_v42  ;;  %v752_v37 = vld [vmem:[%s805_s18 + $0x78] sm:$0xff]  }
  0x29   : > { %522 = vst.msk [vmem:[%s843_s25 + $0x34] sm:$0xf] %vm508_vm0, %v655_v45  ;;  %523 = vst.msk [vmem:[%s843_s25 + $0x38] sm:$0xf] %vm508_vm0, %v656_v48  ;;  %v300_v56 = vadd.f32 %v819_v9, %v261_v49  ;;  %v301_v57 = vadd.f32 %v819_v9, %v262_v50  ;;  %v263_v58 = vmul.f32 %v712_v51, %v810_v0  ;;  %v720_v59 = vunpack.c.l.bf16 %v748_v47 }
  0x2a   : > { %524 = vst.msk [vmem:[%s843_s25 + $0x3c] sm:$0xf] %vm508_vm0, %v657_v52  ;;  %v264_v60 = vmul.f32 %v713_v53, %v810_v0  ;;  %v265_v61 = vmul.f32 %v716_v54, %v810_v0  ;;  %v266_v62 = vmul.f32 %v717_v55, %v810_v0  ;;  %v721_v63 = vunpack.c.h.bf16 %v748_v47 }
  0x2b   : > { %v332_v1 = vmul.f32 0.1, %v300_v56  ;;  %v333_v2 = vmul.f32 0.1, %v301_v57  ;;  %v302_v3 = vadd.f32 %v819_v9, %v263_v58  ;;  %v267_v4 = vmul.f32 %v720_v59, %v810_v0 }
  0x2c   : > { %v303_v5 = vadd.f32 %v819_v9, %v264_v60  ;;  %v304_v6 = vadd.f32 %v819_v9, %v265_v61  ;;  %v305_v7 = vadd.f32 %v819_v9, %v266_v62  ;;  %v268_v8 = vmul.f32 %v721_v63, %v810_v0 }
  0x2d   : > { %v364_v10 = vmax.f32 %v300_v56, %v332_v1  ;;  %v365_v11 = vmax.f32 %v301_v57, %v333_v2  ;;  %v334_v12 = vmul.f32 0.1, %v302_v3  ;;  %v306_v13 = vadd.f32 %v819_v9, %v267_v4 }
  0x2e   : > { %v335_v15 = vmul.f32 0.1, %v303_v5  ;;  %v336_v16 = vmul.f32 0.1, %v304_v6  ;;  %v337_v17 = vmul.f32 0.1, %v305_v7  ;;  %v307_v18 = vadd.f32 %v819_v9, %v268_v8 }
  0x2f   : > { %v658_v19 = vpack.c.bf16 %v364_v10, %v364_v10  ;;  %v659_v20 = vpack.c.bf16 %v365_v11, %v365_v11  ;;  %v366_v21 = vmax.f32 %v302_v3, %v334_v12  ;;  %v338_v22 = vmul.f32 0.1, %v306_v13 }
  0x30   : > { %v367_v23 = vmax.f32 %v303_v5, %v335_v15  ;;  %v368_v24 = vmax.f32 %v304_v6, %v336_v16  ;;  %v369_v25 = vmax.f32 %v305_v7, %v337_v17  ;;  %v339_v26 = vmul.f32 0.1, %v307_v18 }
  0x31   : > { %525 = vst.msk [vmem:[%s843_s25 + $0x40] sm:$0xf] %vm508_vm0, %v658_v19  ;;  %526 = vst.msk [vmem:[%s843_s25 + $0x44] sm:$0xf] %vm508_vm0, %v659_v20  ;;  %v660_v28 = vpack.c.bf16 %v366_v21, %v366_v21  ;;  %v370_v29 = vmax.f32 %v306_v13, %v338_v22  ;;  %v724_v30 = vunpack.c.l.bf16 %v749_v14  ;;  %v725_v31 = vunpack.c.h.bf16 %v749_v14 }
  0x32   : > { %v661_v33 = vpack.c.bf16 %v367_v23, %v367_v23  ;;  %v662_v34 = vpack.c.bf16 %v368_v24, %v368_v24  ;;  %v663_v35 = vpack.c.bf16 %v369_v25, %v369_v25  ;;  %v371_v36 = vmax.f32 %v307_v18, %v339_v26 }
  0x33   : > { %527 = vst.msk [vmem:[%s843_s25 + $0x48] sm:$0xf] %vm508_vm0, %v660_v28  ;;  %v664_v38 = vpack.c.bf16 %v370_v29, %v370_v29  ;;  %v269_v39 = vmul.f32 %v724_v30, %v810_v0  ;;  %v270_v40 = vmul.f32 %v725_v31, %v810_v0  ;;  %v728_v41 = vunpack.c.l.bf16 %v750_v27 }
  0x34   : > { %528 = vst.msk [vmem:[%s843_s25 + $0x4c] sm:$0xf] %vm508_vm0, %v661_v33  ;;  %529 = vst.msk [vmem:[%s843_s25 + $0x50] sm:$0xf] %vm508_vm0, %v662_v34  ;;  %v665_v42 = vpack.c.bf16 %v371_v36, %v371_v36  ;;  %v729_v43 = vunpack.c.h.bf16 %v750_v27  ;;  %v732_v44 = vunpack.c.l.bf16 %v751_v32  ;;  %v733_v45 = vunpack.c.h.bf16 %v751_v32 }
  0x35   : > { %530 = vst.msk [vmem:[%s843_s25 + $0x54] sm:$0xf] %vm508_vm0, %v663_v35  ;;  %531 = vst.msk [vmem:[%s843_s25 + $0x58] sm:$0xf] %vm508_vm0, %v664_v38  ;;  %v308_v46 = vadd.f32 %v819_v9, %v269_v39  ;;  %v309_v47 = vadd.f32 %v819_v9, %v270_v40  ;;  %v271_v48 = vmul.f32 %v728_v41, %v810_v0  ;;  %v736_v49 = vunpack.c.l.bf16 %v752_v37 }
  0x36   : > { %532 = vst.msk [vmem:[%s843_s25 + $0x5c] sm:$0xf] %vm508_vm0, %v665_v42  ;;  %v272_v50 = vmul.f32 %v729_v43, %v810_v0  ;;  %v273_v51 = vmul.f32 %v732_v44, %v810_v0  ;;  %v274_v52 = vmul.f32 %v733_v45, %v810_v0  ;;  %v737_v53 = vunpack.c.h.bf16 %v752_v37 }
  0x37   : > { %v340_v54 = vmul.f32 0.1, %v308_v46  ;;  %v341_v55 = vmul.f32 0.1, %v309_v47  ;;  %v310_v56 = vadd.f32 %v819_v9, %v271_v48  ;;  %v275_v57 = vmul.f32 %v736_v49, %v810_v0 }
  0x38   : > { %v311_v58 = vadd.f32 %v819_v9, %v272_v50  ;;  %v312_v59 = vadd.f32 %v819_v9, %v273_v51  ;;  %v313_v60 = vadd.f32 %v819_v9, %v274_v52  ;;  %v276_v61 = vmul.f32 %v737_v53, %v810_v0 }
  0x39   : > { %v372_v62 = vmax.f32 %v308_v46, %v340_v54  ;;  %v373_v63 = vmax.f32 %v309_v47, %v341_v55  ;;  %v342_v1 = vmul.f32 0.1, %v310_v56  ;;  %v314_v2 = vadd.f32 %v819_v9, %v275_v57 }
  0x3a   : > { %v343_v3 = vmul.f32 0.1, %v311_v58  ;;  %v344_v4 = vmul.f32 0.1, %v312_v59  ;;  %v345_v5 = vmul.f32 0.1, %v313_v60  ;;  %v315_v6 = vadd.f32 %v819_v9, %v276_v61 }
  0x3b   : > { %v666_v7 = vpack.c.bf16 %v372_v62, %v372_v62  ;;  %v667_v8 = vpack.c.bf16 %v373_v63, %v373_v63  ;;  %v374_v10 = vmax.f32 %v310_v56, %v342_v1  ;;  %v346_v11 = vmul.f32 0.1, %v314_v2 }
  0x3c   : > { %v375_v0 = vmax.f32 %v311_v58, %v343_v3  ;;  %v376_v12 = vmax.f32 %v312_v59, %v344_v4  ;;  %v377_v13 = vmax.f32 %v313_v60, %v345_v5  ;;  %v347_v14 = vmul.f32 0.1, %v315_v6 }
  0x3d   : > { %533 = vst.msk [vmem:[%s843_s25 + $0x60] sm:$0xf] %vm508_vm0, %v666_v7  ;;  %534 = vst.msk [vmem:[%s843_s25 + $0x64] sm:$0xf] %vm508_vm0, %v667_v8  ;;  %v668_v15 = vpack.c.bf16 %v374_v10, %v374_v10  ;;  %v378_v9 = vmax.f32 %v314_v2, %v346_v11 }
  0x3e   : > { %v669_v16 = vpack.c.bf16 %v375_v0, %v375_v0  ;;  %v670_v17 = vpack.c.bf16 %v376_v12, %v376_v12  ;;  %v671_v18 = vpack.c.bf16 %v377_v13, %v377_v13  ;;  %v379_v19 = vmax.f32 %v315_v6, %v347_v14 }
  0x3f   : > { %535 = vst.msk [vmem:[%s843_s25 + $0x68] sm:$0xf] %vm508_vm0, %v668_v15  ;;  %v672_v20 = vpack.c.bf16 %v378_v9, %v378_v9 }
  0x40   : > { %536 = vst.msk [vmem:[%s843_s25 + $0x6c] sm:$0xf] %vm508_vm0, %v669_v16  ;;  %537 = vst.msk [vmem:[%s843_s25 + $0x70] sm:$0xf] %vm508_vm0, %v670_v17  ;;  %v673_v21 = vpack.c.bf16 %v379_v19, %v379_v19 }
  0x41   : > { %538 = vst.msk [vmem:[%s843_s25 + $0x74] sm:$0xf] %vm508_vm0, %v671_v18  ;;  %539 = vst.msk [vmem:[%s843_s25 + $0x78] sm:$0xf] %vm508_vm0, %v672_v20 }
  0x42   : > { %540 = vst.msk [vmem:[%s843_s25 + $0x7c] sm:$0xf] %vm508_vm0, %v673_v21 }
  0x43 PF: > { %s13_s12 = sadd.s32 1, %s767_s12  }
  0x44   : > { %p10_p4 = scmp.ge.s32.totalorder %s13_s12, 4  }
  0x46   :  { %12 = sbr.rel (!%p10_p4) target bundleno = 1 (0x1), region = 62 }

// kernel: discriminator_forward.9
= control target key start
LH: loop header
LB: loop body
LE: loop exit
PB: predicated region body
PF: predicated region fallthrough
CT: control target
= control target key end

     0   :  { %s1590_s15 = smov 0   ;;  %s1592_s16 = smov 0   ;;  %s2119_s0 = inlined_call_operand.vmem [shape: bf16[512,128], index: 0, kind: input, shape index: {}]   ;;  %s2120_s1 = inlined_call_operand.vmem [shape: bf16[128,64], index: 1, kind: input, shape index: {}]   ;;  %s2121_s2 = inlined_call_operand.vmem [shape: bf16[512,64], index: 2, kind: output, shape index: {0}]   ;;  %s2122_s3 = inlined_call_operand.vmem [shape: f32[2,8,64], index: 3, kind: output, shape index: {1}]   ;;  %s2123_s4 = inlined_call_operand.vmem [shape: f32[2,8,64], index: 4, kind: output, shape index: {2}]  }
   0x1   :  { %s1594_s17 = smov 0  }
   0x2 LB: > { %s27_s18 = sadd.s32 1, %s1558_s16  ;;  %p1306_p0 = scmp.ge.s32.totalorder %s1562_s17, 1  ;;  %s1562_s17 = sphi %s1594_s17, %s15_s17   ;;  %s1558_s16 = sphi %s1592_s16, %s2125_s16   ;;  %s1554_s15 = sphi %s1590_s15, %s2124_s15  }
   0x3   : > { %p29_p1 = scmp.ge.s32.totalorder %s27_s18, 2  ;;  %p196_p2 = scmp.lt.s32.totalorder %s1562_s17, 3 }
   0x5   : > { %s2127_s18 = smov (%p29_p1, %s27_s18), 0  ;;  %p197_p3 = pnand %p1306_p0, %p196_p2 }
   0x6   : > { %s1307_s21 = sshll.u32 (!%p197_p3), %s1554_s15, 5  ;;  %p259_p5 = scmp.lt.s32.totalorder (!%p197_p3), %s1554_s15, 1 }
   0x7   : > { %200 = sbr.rel (%p197_p3) target bundleno = 415 (0x19f), region = 28  ;;  %p239_p4 = scmp.lt.s32.totalorder (!%p197_p3), %s1307_s21, 63 }
   0xc   : > { %v1516_v0 = vld [vmem:[%s2120_s1 + $0x38] sm:$0xff]   ;;  %v1517_v1 = vld [vmem:[%s2120_s1 + $0x30] sm:$0xff]   ;;  %vm272_vm0 = vcmask 523264   ;;  %s2129_s21 = smov (!%p239_p4, %s1307_s21), 63  ;;  %v1518_v2 = vld [vmem:[%s2120_s1 + $0x28] sm:$0xff]   ;;  %v1564_v3 = vmov 0.0  }
   0xd   : > { %1427 = vmatprep.subr.bf16.mxu0 %v1516_v0  ;;  %1475 = vmatprep.subr.bf16.mxu1 %v1516_v0  ;;  %s1308_s26 = sshll.u32 %s2129_s21, 2  ;;  %275 = vst.msk [vmem:[#allocation2 + $0x10] sm:$0xff] %vm272_vm0, %v1564_v3  ;;  %273 = vst.msk [vmem:[#allocation2] sm:$0xff] %vm272_vm0, %v1564_v3  ;;  %v1519_v4 = vld [vmem:[%s2120_s1 + $0x20] sm:$0xff]   ;;  %v1520_v6 = vld [vmem:[%s2120_s1 + $0x18] sm:$0xff]   ;;  %vm1121_vm1 = vcmask 519168  }
   0xe   : > { %1428 = vmatpush3.bf16.msra.mxu0 %v1516_v0  ;;  %1483 = vmatpush3.bf16.msra.mxu1 %v1516_v0  ;;  %274 = vst.msk [vmem:[#allocation2 + $0x8] sm:$0xff] %vm272_vm0, %v1564_v3  ;;  %276 = vst.msk [vmem:[#allocation2 + $0x18] sm:$0xff] %vm272_vm0, %v1564_v3  ;;  %s1660_s29 = scalar_lea.vmem %s2119_s0, %s1308_s26  ;;  %v1521_v7 = vld [vmem:[%s2120_s1 + $0x10] sm:$0xff]   ;;  %v1522_v9 = vld [vmem:[%s2120_s1 + $0x8] sm:$0xff]   ;;  %s1706_s20 = scalar_lea.vmem %s2121_s2, %s1308_s26 }
   0xf   : > { %1429 = vmatprep.subr.bf16.mxu0 %v1517_v1  ;;  %1476 = vmatprep.subr.bf16.mxu1 %v1517_v1  ;;  %277 = vst.msk [vmem:[#allocation2 + $0x20] sm:$0xff] %vm272_vm0, %v1564_v3  ;;  %278 = vst.msk [vmem:[#allocation2 + $0x28] sm:$0xff] %vm272_vm0, %v1564_v3  ;;  %v1524_v5 = vld [vmem:[%s1660_s29] sm:$0xff]   ;;  %v1525_v11 = vld [vmem:[%s1660_s29 + $0x8] sm:$0xff]   ;;  %s2131_s15 = smov (!%p259_p5, %s1554_s15), 1 }
  0x10   : > { %279 = vst.msk [vmem:[#allocation2 + $0x30] sm:$0xff] %vm272_vm0, %v1564_v3  ;;  %280 = vst.msk [vmem:[#allocation2 + $0x38] sm:$0xff] %vm272_vm0, %v1564_v3  ;;  %1443 = vmatprep.mubr.bf16.mxu0 %v1524_v5  ;;  %v1532_v8 = vld [vmem:[%s1660_s29 + $0x40] sm:$0xff]   ;;  %v1533_v12 = vld [vmem:[%s1660_s29 + $0x48] sm:$0xff]   ;;  %s1311_s21 = sshll.u32 %s2131_s15, 3 }
  0x11   : > { %281 = vst.msk [vmem:[#allocation2 + $0x40] sm:$0xff] %vm272_vm0, %v1564_v3  ;;  %282 = vst.msk [vmem:[#allocation2 + $0x48] sm:$0xff] %vm272_vm0, %v1564_v3  ;;  %1459 = vmatprep.mubr.bf16.mxu1 %v1532_v8  ;;  %v1523_v10 = vld [vmem:[%s2120_s1] sm:$0xff]   ;;  %v1526_v13 = vld [vmem:[%s1660_s29 + $0x10] sm:$0xff]   ;;  %s262_s24 = scalar_lea.vmem %s2122_s3, %s1311_s21  ;;  %s266_s27 = scalar_lea.vmem %s2123_s4, %s1311_s21 }
  0x12   : > { %283 = vst.msk [vmem:[#allocation2 + $0x50] sm:$0xff] %vm272_vm0, %v1564_v3  ;;  %284 = vst.msk [vmem:[#allocation2 + $0x58] sm:$0xff] %vm272_vm0, %v1564_v3  ;;  %1430 = vmatpush3.bf16.msra.mxu0 %v1517_v1  ;;  %1484 = vmatpush3.bf16.msra.mxu1 %v1517_v1  ;;  %v1534_v14 = vld [vmem:[%s1660_s29 + $0x50] sm:$0xff]   ;;  %v1527_v15 = vld [vmem:[%s1660_s29 + $0x18] sm:$0xff]  }
  0x13   : > { %285 = vst.msk [vmem:[#allocation2 + $0x60] sm:$0xff] %vm272_vm0, %v1564_v3  ;;  %286 = vst.msk [vmem:[#allocation2 + $0x68] sm:$0xff] %vm272_vm0, %v1564_v3  ;;  %1431 = vmatprep.subr.bf16.mxu0 %v1518_v2  ;;  %1477 = vmatprep.subr.bf16.mxu1 %v1518_v2  ;;  %v1535_v16 = vld [vmem:[%s1660_s29 + $0x58] sm:$0xff]   ;;  %v1528_v17 = vld [vmem:[%s1660_s29 + $0x20] sm:$0xff]  }
  0x14   : > { %287 = vst.msk [vmem:[#allocation2 + $0x70] sm:$0xff] %vm272_vm0, %v1564_v3  ;;  %288 = vst.msk [vmem:[#allocation2 + $0x78] sm:$0xff] %vm272_vm0, %v1564_v3  ;;  %v1536_v18 = vld [vmem:[%s1660_s29 + $0x60] sm:$0xff]   ;;  %v1529_v19 = vld [vmem:[%s1660_s29 + $0x28] sm:$0xff]  }
  0x15   : > { %289 = vst.msk [vmem:[#allocation2 + $0x80] sm:$0xff] %vm272_vm0, %v1564_v3  ;;  %290 = vst.msk [vmem:[#allocation2 + $0x88] sm:$0xff] %vm272_vm0, %v1564_v3  ;;  %v1537_v20 = vld [vmem:[%s1660_s29 + $0x68] sm:$0xff]   ;;  %v1530_v21 = vld [vmem:[%s1660_s29 + $0x30] sm:$0xff]  }
  0x16   : > { %291 = vst.msk [vmem:[#allocation2 + $0x90] sm:$0xff] %vm272_vm0, %v1564_v3  ;;  %292 = vst.msk [vmem:[#allocation2 + $0x98] sm:$0xff] %vm272_vm0, %v1564_v3  ;;  %1432 = vmatpush3.bf16.msra.mxu0 %v1518_v2  ;;  %1485 = vmatpush3.bf16.msra.mxu1 %v1518_v2  ;;  %v1538_v22 = vld [vmem:[%s1660_s29 + $0x70] sm:$0xff]   ;;  %v1531_v23 = vld [vmem:[%s1660_s29 + $0x38] sm:$0xff]  }
  0x17   : > { %293 = vst.msk [vmem:[#allocation2 + $0xa0] sm:$0xff] %vm272_vm0, %v1564_v3  ;;  %294 = vst.msk [vmem:[#allocation2 + $0xa8] sm:$0xff] %vm272_vm0, %v1564_v3  ;;  %1433 = vmatprep.subr.bf16.mxu0 %v1519_v4  ;;  %1478 = vmatprep.subr.bf16.mxu1 %v1519_v4  ;;  %v1539_v24 = vld [vmem:[%s1660_s29 + $0x78] sm:$0xff]   ;;  %v307_v25 = vld [vmem:[#allocation2 + $0x10] sm:$0xff] }
  0x18   : > { %295 = vst.msk [vmem:[#allocation2 + $0xb0] sm:$0xff] %vm272_vm0, %v1564_v3  ;;  %296 = vst.msk [vmem:[#allocation2 + $0xb8] sm:$0xff] %vm272_vm0, %v1564_v3  ;;  %v305_v28 = vld [vmem:[#allocation2] sm:$0xff]  ;;  %v308_v34 = vld [vmem:[#allocation2 + $0x18] sm:$0xff] }
  0x19   : > { %297 = vst.msk [vmem:[#allocation2 + $0xc0] sm:$0xff] %vm272_vm0, %v1564_v3  ;;  %298 = vst.msk [vmem:[#allocation2 + $0xc8] sm:$0xff] %vm272_vm0, %v1564_v3  ;;  %v306_v40 = vld [vmem:[#allocation2 + $0x8] sm:$0xff]  ;;  %v311_v46 = vld [vmem:[#allocation2 + $0x30] sm:$0xff] }
  0x1a   : > { %299 = vst.msk [vmem:[#allocation2 + $0xd0] sm:$0xff] %vm272_vm0, %v1564_v3  ;;  %300 = vst.msk [vmem:[#allocation2 + $0xd8] sm:$0xff] %vm272_vm0, %v1564_v3  ;;  %1434 = vmatpush3.bf16.msra.mxu0 %v1519_v4  ;;  %1486 = vmatpush3.bf16.msra.mxu1 %v1519_v4  ;;  %v309_v52 = vld [vmem:[#allocation2 + $0x20] sm:$0xff]  ;;  %v312_v59 = vld [vmem:[#allocation2 + $0x38] sm:$0xff] }
  0x1b   : > { %301 = vst.msk [vmem:[#allocation2 + $0xe0] sm:$0xff] %vm272_vm0, %v1564_v3  ;;  %302 = vst.msk [vmem:[#allocation2 + $0xe8] sm:$0xff] %vm272_vm0, %v1564_v3  ;;  %1435 = vmatprep.subr.bf16.mxu0 %v1520_v6  ;;  %1479 = vmatprep.subr.bf16.mxu1 %v1520_v6 }
  0x1c   : > { %303 = vst.msk [vmem:[#allocation2 + $0xf0] sm:$0xff] %vm272_vm0, %v1564_v3  ;;  %304 = vst.msk [vmem:[#allocation2 + $0xf8] sm:$0xff] %vm272_vm0, %v1564_v3  ;;  %v321_v30 = vld [vmem:[#allocation2 + $0x80] sm:$0xff]  ;;  %v322_v42 = vld [vmem:[#allocation2 + $0x88] sm:$0xff] }
  0x1d   : > { %v323_v26 = vld [vmem:[#allocation2 + $0x90] sm:$0xff]  ;;  %v324_v36 = vld [vmem:[#allocation2 + $0x98] sm:$0xff]  ;;  %v310_v3 = vld [vmem:[#allocation2 + $0x28] sm:$0xff] }
  0x1e   : > { %1436 = vmatpush3.bf16.msra.mxu0 %v1520_v6  ;;  %1487 = vmatpush3.bf16.msra.mxu1 %v1520_v6  ;;  %v325_v56 = vld [vmem:[#allocation2 + $0xa0] sm:$0xff] }
  0x1f   : > { %1437 = vmatprep.subr.bf16.mxu0 %v1521_v7  ;;  %1480 = vmatprep.subr.bf16.mxu1 %v1521_v7  ;;  %v327_v48 = vld [vmem:[#allocation2 + $0xb0] sm:$0xff]  ;;  %v328_v0 = vld [vmem:[#allocation2 + $0xb8] sm:$0xff] }
  0x22   : > { %1438 = vmatpush3.bf16.msra.mxu0 %v1521_v7  ;;  %1488 = vmatpush3.bf16.msra.mxu1 %v1521_v7 }
  0x23   : > { %1439 = vmatprep.subr.bf16.mxu0 %v1522_v9  ;;  %1481 = vmatprep.subr.bf16.mxu1 %v1522_v9 }
  0x26   : > { %1440 = vmatpush3.bf16.msra.mxu0 %v1522_v9  ;;  %1489 = vmatpush3.bf16.msra.mxu1 %v1522_v9 }
  0x27   : > { %1441 = vmatprep.subr.bf16.mxu0 %v1523_v10  ;;  %1482 = vmatprep.subr.bf16.mxu1 %v1523_v10 }
  0x2a   : > { %1442 = vmatpush3.bf16.msra.mxu0 %v1523_v10  ;;  %1490 = vmatpush3.bf16.msra.mxu1 %v1523_v10  ;;  %v326_v10 = vld [vmem:[#allocation2 + $0xa8] sm:$0xff] }
  0x2d   : > { %1444 = vmatmul.mubr.bf16.vlgmr.msra.gmra.mxu0 %v1525_v11  ;;  %1460 = vmatmul.mubr.bf16.vlgmr.msra.gmra.mxu1 %v1533_v12 }
  0x2e   : > { %1447 = vmatprep.mubr.bf16.mxu0 %v1526_v13  ;;  %1463 = vmatprep.mubr.bf16.mxu1 %v1534_v14  ;;  %v315_v13 = vld [vmem:[#allocation2 + $0x50] sm:$0xff] }
  0x35   : > { %1448 = vmatmul.mubr.bf16.gmra.mxu0 %v1527_v15  ;;  %1464 = vmatmul.mubr.bf16.gmra.mxu1 %v1535_v16 }
  0x36   : > { %1451 = vmatprep.mubr.bf16.mxu0 %v1528_v17  ;;  %1467 = vmatprep.mubr.bf16.mxu1 %v1536_v18 }
  0x3d   : > { %1452 = vmatmul.mubr.bf16.gmra.mxu0 %v1529_v19  ;;  %1468 = vmatmul.mubr.bf16.gmra.mxu1 %v1537_v20  ;;  %v331_v20 = vld [vmem:[#allocation2 + $0xd0] sm:$0xff] }
  0x3e   : > { %1455 = vmatprep.mubr.bf16.mxu0 %v1530_v21  ;;  %1471 = vmatprep.mubr.bf16.mxu1 %v1538_v22 }
  0x45   : > { %1456 = vmatmul.mubr.bf16.gmra.mxu0 %v1531_v23  ;;  %1472 = vmatmul.mubr.bf16.gmra.mxu1 %v1539_v24  ;;  %v313_v23 = vld [vmem:[#allocation2 + $0x40] sm:$0xff] }
  0xed   : > { %v1445_v27 = vpop.f32.mrf.mxu0  ;;  %v1461_v29 = vpop.f32.mrf.mxu1 }
  0xee   : > { %v692_v31 = vadd.f32 %v1445_v27, %v307_v25  ;;  %v708_v32 = vadd.f32 %v1461_v29, %v323_v26 }
  0xef   : > { %v563_v33 = vpop.f32.mrf.mxu0  ;;  %v627_v35 = vpop.f32.mrf.mxu1 }
  0xf0   : > { %725 = vst.msk [vmem:[#allocation2 + $0x10] sm:$0xff] %vm272_vm0, %v692_v31  ;;  %v690_v37 = vadd.f32 %v563_v33, %v305_v28  ;;  %741 = vst.msk [vmem:[#allocation2 + $0x90] sm:$0xff] %vm272_vm0, %v708_v32  ;;  %v706_v38 = vadd.f32 %v627_v35, %v321_v30  ;;  %v316_v32 = vld [vmem:[#allocation2 + $0x58] sm:$0xff]  ;;  %v329_v33 = vld [vmem:[#allocation2 + $0xc0] sm:$0xff] }
  0xf1   : > { %v1446_v39 = vpop.f32.mrf.mxu0  ;;  %v1462_v41 = vpop.f32.mrf.mxu1 }
  0xf2   : > { %723 = vst.msk [vmem:[#allocation2] sm:$0xff] %vm272_vm0, %v690_v37  ;;  %v693_v43 = vadd.f32 %v1446_v39, %v308_v34  ;;  %739 = vst.msk [vmem:[#allocation2 + $0x80] sm:$0xff] %vm272_vm0, %v706_v38  ;;  %v709_v44 = vadd.f32 %v1462_v41, %v324_v36  ;;  %v332_v41 = vld [vmem:[#allocation2 + $0xd8] sm:$0xff] }
  0xf3   : > { %v566_v45 = vpop.f32.mrf.mxu0  ;;  %v630_v47 = vpop.f32.mrf.mxu1 }
  0xf4   : > { %726 = vst.msk [vmem:[#allocation2 + $0x18] sm:$0xff] %vm272_vm0, %v693_v43  ;;  %v691_v49 = vadd.f32 %v566_v45, %v306_v40  ;;  %742 = vst.msk [vmem:[#allocation2 + $0x98] sm:$0xff] %vm272_vm0, %v709_v44  ;;  %v707_v50 = vadd.f32 %v630_v47, %v322_v42 }
  0xf5   : > { %v1449_v51 = vpop.f32.mrf.mxu0  ;;  %v1465_v53 = vpop.f32.mrf.mxu1 }
  0xf6   : > { %724 = vst.msk [vmem:[#allocation2 + $0x8] sm:$0xff] %vm272_vm0, %v691_v49  ;;  %v696_v54 = vadd.f32 %v1449_v51, %v311_v46  ;;  %740 = vst.msk [vmem:[#allocation2 + $0x88] sm:$0xff] %vm272_vm0, %v707_v50  ;;  %v712_v55 = vadd.f32 %v1465_v53, %v327_v48  ;;  %v314_v48 = vld [vmem:[#allocation2 + $0x48] sm:$0xff] }
  0xf7   : > { %v1708_v57 = vld [vmem:[#allocation2 + $0x10] sm:$0xff]  ;;  %v579_v58 = vpop.f32.mrf.mxu0  ;;  %v643_v61 = vpop.f32.mrf.mxu1 }
  0xf8   : > { %v1710_v60 = vld [vmem:[#allocation2 + $0x90] sm:$0xff]  ;;  %v1373_v62 = vpack.c.bf16 %v1708_v57, %v1708_v57  ;;  %729 = vst.msk [vmem:[#allocation2 + $0x30] sm:$0xff] %vm272_vm0, %v696_v54  ;;  %v694_v63 = vadd.f32 %v579_v58, %v309_v52  ;;  %745 = vst.msk [vmem:[#allocation2 + $0xb0] sm:$0xff] %vm272_vm0, %v712_v55  ;;  %v710_v6 = vadd.f32 %v643_v61, %v325_v56  ;;  %v793_v42 = vsel %vm272_vm0, %v1708_v57, 0.0  ;;  %v330_v52 = vld [vmem:[#allocation2 + $0xc8] sm:$0xff] }
  0xf9   : > { %v1716_v1 = vld [vmem:[#allocation2] sm:$0xff]  ;;  %v1450_v2 = vpop.f32.mrf.mxu0  ;;  %v1389_v4 = vpack.c.bf16 %v1710_v60, %v1710_v60  ;;  %v1466_v7 = vpop.f32.mrf.mxu1 }
  0xfa   : > { %v1720_v5 = vld [vmem:[#allocation2 + $0x80] sm:$0xff]  ;;  %1124 = vst.msk [vmem:[%s1706_s20 + $0x8] sm:$0xf] %vm1121_vm1, %v1373_v62  ;;  %v1371_v8 = vpack.c.bf16 %v1716_v1, %v1716_v1  ;;  %v697_v9 = vadd.f32 %v1450_v2, %v312_v59  ;;  %v713_v16 = vadd.f32 %v1466_v7, %v328_v0  ;;  %v790_v28 = vsel %vm272_vm0, %v1716_v1, 0.0 }
  0xfb   : > { %727 = vst.msk [vmem:[#allocation2 + $0x20] sm:$0xff] %vm272_vm0, %v694_v63  ;;  %v1727_v11 = vld [vmem:[#allocation2 + $0x18] sm:$0xff]  ;;  %v582_v12 = vpop.f32.mrf.mxu0  ;;  %v1387_v14 = vpack.c.bf16 %v1720_v5, %v1720_v5  ;;  %743 = vst.msk [vmem:[#allocation2 + $0xa0] sm:$0xff] %vm272_vm0, %v710_v6  ;;  %v646_v17 = vpop.f32.mrf.mxu1  ;;  %v319_v63 = vld [vmem:[#allocation2 + $0x70] sm:$0xff] }
  0xfc   : > { %1140 = vst.msk [vmem:[%s1706_s20 + $0x48] sm:$0xf] %vm1121_vm1, %v1389_v4  ;;  %v1733_v15 = vld [vmem:[#allocation2 + $0x98] sm:$0xff]  ;;  %1122 = vst.msk [vmem:[%s1706_s20] sm:$0xf] %vm1121_vm1, %v1371_v8  ;;  %v1374_v18 = vpack.c.bf16 %v1727_v11, %v1727_v11  ;;  %v695_v19 = vadd.f32 %v582_v12, %v310_v3  ;;  %v711_v26 = vadd.f32 %v646_v17, %v326_v10  ;;  %v795_v53 = vsel %vm272_vm0, %v1727_v11, 0.0 }
  0xfd   : > { %730 = vst.msk [vmem:[#allocation2 + $0x38] sm:$0xff] %vm272_vm0, %v697_v9  ;;  %v1741_v21 = vld [vmem:[#allocation2 + $0x8] sm:$0xff]  ;;  %v1453_v22 = vpop.f32.mrf.mxu0  ;;  %v1390_v24 = vpack.c.bf16 %v1733_v15, %v1733_v15  ;;  %746 = vst.msk [vmem:[#allocation2 + $0xb8] sm:$0xff] %vm272_vm0, %v713_v16  ;;  %v1469_v27 = vpop.f32.mrf.mxu1  ;;  %v335_v3 = vld [vmem:[#allocation2 + $0xf0] sm:$0xff] }
  0xfe   : > { %1138 = vst.msk [vmem:[%s1706_s20 + $0x40] sm:$0xf] %vm1121_vm1, %v1387_v14  ;;  %v1747_v25 = vld [vmem:[#allocation2 + $0x88] sm:$0xff]  ;;  %1125 = vst.msk [vmem:[%s1706_s20 + $0xc] sm:$0xf] %vm1121_vm1, %v1374_v18  ;;  %v791_v29 = vsel %vm272_vm0, %v1741_v21, 0.0  ;;  %v1372_v30 = vpack.c.bf16 %v1741_v21, %v1741_v21  ;;  %v700_v31 = vadd.f32 %v1453_v22, %v315_v13  ;;  %v716_v39 = vadd.f32 %v1469_v27, %v331_v20 }
  0xff   : > { %728 = vst.msk [vmem:[#allocation2 + $0x28] sm:$0xff] %vm272_vm0, %v695_v19  ;;  %v792_v34 = vadd.f32 %v791_v29, %v790_v28  ;;  %v1759_v35 = vld [vmem:[#allocation2 + $0x30] sm:$0xff]  ;;  %v595_v36 = vpop.f32.mrf.mxu0  ;;  %v1388_v37 = vpack.c.bf16 %v1747_v25, %v1747_v25  ;;  %744 = vst.msk [vmem:[#allocation2 + $0xa8] sm:$0xff] %vm272_vm0, %v711_v26  ;;  %v659_v40 = vpop.f32.mrf.mxu1  ;;  %v317_v14 = vld [vmem:[#allocation2 + $0x60] sm:$0xff] }
 0x100   : > { %1141 = vst.msk [vmem:[%s1706_s20 + $0x4c] sm:$0xf] %vm1121_vm1, %v1390_v24  ;;  %v1765_v38 = vld [vmem:[#allocation2 + $0xb0] sm:$0xff]  ;;  %1123 = vst.msk [vmem:[%s1706_s20 + $0x4] sm:$0xf] %vm1121_vm1, %v1372_v30  ;;  %v1377_v43 = vpack.c.bf16 %v1759_v35, %v1759_v35  ;;  %v698_v44 = vadd.f32 %v595_v36, %v313_v23  ;;  %v714_v50 = vadd.f32 %v659_v40, %v329_v33  ;;  %v333_v18 = vld [vmem:[#allocation2 + $0xe0] sm:$0xff] }
 0x101   : > { %733 = vst.msk [vmem:[#allocation2 + $0x50] sm:$0xff] %vm272_vm0, %v700_v31  ;;  %v794_v45 = vadd.f32 %v793_v42, %v792_v34  ;;  %v1454_v47 = vpop.f32.mrf.mxu0  ;;  %v1393_v49 = vpack.c.bf16 %v1765_v38, %v1765_v38  ;;  %749 = vst.msk [vmem:[#allocation2 + $0xd0] sm:$0xff] %vm272_vm0, %v716_v39  ;;  %v1470_v51 = vpop.f32.mrf.mxu1  ;;  %v320_v29 = vld [vmem:[#allocation2 + $0x78] sm:$0xff]  ;;  %v801_v33 = vsel %vm272_vm0, %v1759_v35, 0.0 }
 0x102   : > { %v1775_v46 = vld [vmem:[#allocation2 + $0x20] sm:$0xff]  ;;  %1139 = vst.msk [vmem:[%s1706_s20 + $0x44] sm:$0xf] %vm1121_vm1, %v1388_v37  ;;  %1128 = vst.msk [vmem:[%s1706_s20 + $0x18] sm:$0xf] %vm1121_vm1, %v1377_v43  ;;  %v701_v55 = vadd.f32 %v1454_v47, %v316_v32  ;;  %v717_v58 = vadd.f32 %v1470_v51, %v332_v41  ;;  %v336_v32 = vld [vmem:[#allocation2 + $0xf8] sm:$0xff] }
 0x103   : > { %v1375_v54 = vpack.c.bf16 %v1775_v46, %v1775_v46  ;;  %731 = vst.msk [vmem:[#allocation2 + $0x40] sm:$0xff] %vm272_vm0, %v698_v44  ;;  %v1789_v56 = vld [vmem:[#allocation2 + $0xa0] sm:$0xff]  ;;  %v796_v59 = vadd.f32 %v795_v53, %v794_v45  ;;  %v598_v62 = vpop.f32.mrf.mxu0  ;;  %747 = vst.msk [vmem:[#allocation2 + $0xc0] sm:$0xff] %vm272_vm0, %v714_v50  ;;  %v662_v2 = vpop.f32.mrf.mxu1  ;;  %v797_v4 = vsel %vm272_vm0, %v1775_v46, 0.0  ;;  %v318_v43 = vld [vmem:[#allocation2 + $0x68] sm:$0xff] }
 0x104   : > { %v1791_v61 = vld [vmem:[#allocation2 + $0x38] sm:$0xff]  ;;  %1144 = vst.msk [vmem:[%s1706_s20 + $0x58] sm:$0xf] %vm1121_vm1, %v1393_v49  ;;  %v1391_v0 = vpack.c.bf16 %v1789_v56, %v1789_v56  ;;  %v699_v7 = vadd.f32 %v598_v62, %v314_v48  ;;  %v715_v9 = vadd.f32 %v662_v2, %v330_v52  ;;  %v334_v52 = vld [vmem:[#allocation2 + $0xe8] sm:$0xff] }
 0x105   : > { %1126 = vst.msk [vmem:[%s1706_s20 + $0x10] sm:$0xf] %vm1121_vm1, %v1375_v54  ;;  %v1378_v6 = vpack.c.bf16 %v1791_v61, %v1791_v61  ;;  %v1805_v8 = vld [vmem:[#allocation2 + $0xb8] sm:$0xff]  ;;  %v798_v10 = vadd.f32 %v797_v4, %v796_v59  ;;  %v1457_v13 = vpop.f32.mrf.mxu0  ;;  %v1473_v17 = vpop.f32.mrf.mxu1  ;;  %v803_v47 = vsel %vm272_vm0, %v1791_v61, 0.0 }
 0x106   : > { %734 = vst.msk [vmem:[#allocation2 + $0x58] sm:$0xff] %vm272_vm0, %v701_v55  ;;  %750 = vst.msk [vmem:[#allocation2 + $0xd8] sm:$0xff] %vm272_vm0, %v717_v58  ;;  %v1808_v12 = vld [vmem:[#allocation2 + $0x28] sm:$0xff]  ;;  %v1394_v16 = vpack.c.bf16 %v1805_v8, %v1805_v8  ;;  %v704_v22 = vadd.f32 %v1457_v13, %v319_v63  ;;  %v720_v24 = vadd.f32 %v1473_v17, %v335_v3 }
 0x107   : > { %1142 = vst.msk [vmem:[%s1706_s20 + $0x50] sm:$0xf] %vm1121_vm1, %v1391_v0  ;;  %1129 = vst.msk [vmem:[%s1706_s20 + $0x1c] sm:$0xf] %vm1121_vm1, %v1378_v6  ;;  %v799_v19 = vsel %vm272_vm0, %v1808_v12, 0.0  ;;  %v1376_v20 = vpack.c.bf16 %v1808_v12, %v1808_v12  ;;  %v1821_v23 = vld [vmem:[#allocation2 + $0xa8] sm:$0xff]  ;;  %v611_v28 = vpop.f32.mrf.mxu0  ;;  %v675_v31 = vpop.f32.mrf.mxu1 }
 0x108   : > { %732 = vst.msk [vmem:[#allocation2 + $0x48] sm:$0xff] %vm272_vm0, %v699_v7  ;;  %748 = vst.msk [vmem:[#allocation2 + $0xc8] sm:$0xff] %vm272_vm0, %v715_v9  ;;  %v800_v26 = vadd.f32 %v799_v19, %v798_v10  ;;  %v1824_v27 = vld [vmem:[#allocation2 + $0x50] sm:$0xff]  ;;  %v1392_v30 = vpack.c.bf16 %v1821_v23, %v1821_v23  ;;  %v702_v36 = vadd.f32 %v611_v28, %v317_v14 }
 0x109   : > { %1145 = vst.msk [vmem:[%s1706_s20 + $0x5c] sm:$0xf] %vm1121_vm1, %v1394_v16  ;;  %1127 = vst.msk [vmem:[%s1706_s20 + $0x14] sm:$0xf] %vm1121_vm1, %v1376_v20  ;;  %v1381_v34 = vpack.c.bf16 %v1824_v27, %v1824_v27  ;;  %v1837_v37 = vld [vmem:[#allocation2 + $0xd0] sm:$0xff]  ;;  %v718_v39 = vadd.f32 %v675_v31, %v333_v18  ;;  %v1458_v42 = vpop.f32.mrf.mxu0  ;;  %v1474_v45 = vpop.f32.mrf.mxu1  ;;  %v809_v19 = vsel %vm272_vm0, %v1824_v27, 0.0 }
 0x10a   : > { %737 = vst.msk [vmem:[#allocation2 + $0x70] sm:$0xff] %vm272_vm0, %v704_v22  ;;  %753 = vst.msk [vmem:[#allocation2 + $0xf0] sm:$0xff] %vm272_vm0, %v720_v24  ;;  %v802_v40 = vadd.f32 %v801_v33, %v800_v26  ;;  %v1840_v41 = vld [vmem:[#allocation2 + $0x40] sm:$0xff]  ;;  %v1397_v44 = vpack.c.bf16 %v1837_v37, %v1837_v37  ;;  %v705_v49 = vadd.f32 %v1458_v42, %v320_v29 }
 0x10b   : > { %1143 = vst.msk [vmem:[%s1706_s20 + $0x54] sm:$0xf] %vm1121_vm1, %v1392_v30  ;;  %1132 = vst.msk [vmem:[%s1706_s20 + $0x28] sm:$0xf] %vm1121_vm1, %v1381_v34  ;;  %v1379_v48 = vpack.c.bf16 %v1840_v41, %v1840_v41  ;;  %v1853_v50 = vld [vmem:[#allocation2 + $0xc0] sm:$0xff]  ;;  %v721_v51 = vadd.f32 %v1474_v45, %v336_v32  ;;  %v614_v55 = vpop.f32.mrf.mxu0  ;;  %v678_v62 = vpop.f32.mrf.mxu1  ;;  %v805_v63 = vsel %vm272_vm0, %v1840_v41, 0.0 }
 0x10c   : > { %735 = vst.msk [vmem:[#allocation2 + $0x60] sm:$0xff] %vm272_vm0, %v702_v36  ;;  %751 = vst.msk [vmem:[#allocation2 + $0xe0] sm:$0xff] %vm272_vm0, %v718_v39  ;;  %v804_v53 = vadd.f32 %v803_v47, %v802_v40  ;;  %v1395_v58 = vpack.c.bf16 %v1853_v50, %v1853_v50  ;;  %v703_v2 = vadd.f32 %v614_v55, %v318_v43 }
 0x10d   : > { %v1856_v54 = vld [vmem:[#allocation2 + $0x58] sm:$0xff]  ;;  %1148 = vst.msk [vmem:[%s1706_s20 + $0x68] sm:$0xf] %vm1121_vm1, %v1397_v44  ;;  %1130 = vst.msk [vmem:[%s1706_s20 + $0x20] sm:$0xf] %vm1121_vm1, %v1379_v48  ;;  %v719_v9 = vadd.f32 %v678_v62, %v334_v52 }
 0x10e   : > { %v1862_v59 = vld [vmem:[#allocation2 + $0xd8] sm:$0xff]  ;;  %v1382_v0 = vpack.c.bf16 %v1856_v54, %v1856_v54  ;;  %738 = vst.msk [vmem:[#allocation2 + $0x78] sm:$0xff] %vm272_vm0, %v705_v49  ;;  %754 = vst.msk [vmem:[#allocation2 + $0xf8] sm:$0xff] %vm272_vm0, %v721_v51  ;;  %v806_v3 = vadd.f32 %v805_v63, %v804_v53  ;;  %v811_v29 = vsel %vm272_vm0, %v1856_v54, 0.0  ;;  %v823_v63 = vsel %vm272_vm0, %v1747_v25, 0.0 }
 0x10f   : > { %v1872_v4 = vld [vmem:[#allocation2 + $0x48] sm:$0xff]  ;;  %1146 = vst.msk [vmem:[%s1706_s20 + $0x60] sm:$0xf] %vm1121_vm1, %v1395_v58  ;;  %v1398_v6 = vpack.c.bf16 %v1862_v59, %v1862_v59  ;;  %v821_v58 = vsel %vm272_vm0, %v1720_v5, 0.0 }
 0x110   : > { %v1878_v7 = vld [vmem:[#allocation2 + $0xc8] sm:$0xff]  ;;  %1133 = vst.msk [vmem:[%s1706_s20 + $0x2c] sm:$0xf] %vm1121_vm1, %v1382_v0  ;;  %v807_v10 = vsel %vm272_vm0, %v1872_v4, 0.0  ;;  %v1380_v13 = vpack.c.bf16 %v1872_v4, %v1872_v4 }
 0x111   : > { %736 = vst.msk [vmem:[#allocation2 + $0x68] sm:$0xff] %vm272_vm0, %v703_v2  ;;  %v1396_v14 = vpack.c.bf16 %v1878_v7, %v1878_v7  ;;  %v808_v16 = vadd.f32 %v807_v10, %v806_v3  ;;  %v1889_v17 = vld [vmem:[#allocation2 + $0x70] sm:$0xff]  ;;  %752 = vst.msk [vmem:[#allocation2 + $0xe8] sm:$0xff] %vm272_vm0, %v719_v9  ;;  %v825_v2 = vsel %vm272_vm0, %v1710_v60, 0.0  ;;  %v829_v10 = vsel %vm272_vm0, %v1789_v56, 0.0 }
 0x112   : > { %1149 = vst.msk [vmem:[%s1706_s20 + $0x6c] sm:$0xf] %vm1121_vm1, %v1398_v6  ;;  %v1893_v18 = vld [vmem:[#allocation2 + $0xf0] sm:$0xff]  ;;  %1131 = vst.msk [vmem:[%s1706_s20 + $0x24] sm:$0xf] %vm1121_vm1, %v1380_v13  ;;  %v1385_v20 = vpack.c.bf16 %v1889_v17, %v1889_v17  ;;  %v817_v51 = vsel %vm272_vm0, %v1889_v17, 0.0 }
 0x113   : > { %1147 = vst.msk [vmem:[%s1706_s20 + $0x64] sm:$0xf] %vm1121_vm1, %v1396_v14  ;;  %v1401_v22 = vpack.c.bf16 %v1893_v18, %v1893_v18  ;;  %v810_v24 = vadd.f32 %v809_v19, %v808_v16  ;;  %v1906_v26 = vld [vmem:[#allocation2 + $0x60] sm:$0xff]  ;;  %v827_v6 = vsel %vm272_vm0, %v1733_v15, 0.0  ;;  %v831_v14 = vsel %vm272_vm0, %v1821_v23, 0.0 }
 0x114   : > { %v1908_v28 = vld [vmem:[#allocation2 + $0xe0] sm:$0xff]  ;;  %1136 = vst.msk [vmem:[%s1706_s20 + $0x38] sm:$0xf] %vm1121_vm1, %v1385_v20  ;;  %v1383_v30 = vpack.c.bf16 %v1906_v26, %v1906_v26  ;;  %v813_v36 = vsel %vm272_vm0, %v1906_v26, 0.0  ;;  %v833_v19 = vsel %vm272_vm0, %v1765_v38, 0.0 }
 0x115   : > { %1152 = vst.msk [vmem:[%s1706_s20 + $0x78] sm:$0xf] %vm1121_vm1, %v1401_v22  ;;  %v1399_v31 = vpack.c.bf16 %v1908_v28, %v1908_v28  ;;  %v812_v32 = vadd.f32 %v811_v29, %v810_v24  ;;  %v1920_v33 = vld [vmem:[#allocation2 + $0x78] sm:$0xff]  ;;  %v835_v22 = vsel %vm272_vm0, %v1805_v8, 0.0  ;;  %v837_v29 = vsel %vm272_vm0, %v1853_v50, 0.0 }
 0x116   : > { %v1922_v34 = vld [vmem:[#allocation2 + $0xf8] sm:$0xff]  ;;  %1134 = vst.msk [vmem:[%s1706_s20 + $0x30] sm:$0xf] %vm1121_vm1, %v1383_v30  ;;  %v1386_v39 = vpack.c.bf16 %v1920_v33, %v1920_v33  ;;  %v819_v53 = vsel %vm272_vm0, %v1920_v33, 0.0 }
 0x117   : > { %1150 = vst.msk [vmem:[%s1706_s20 + $0x70] sm:$0xf] %vm1121_vm1, %v1399_v31  ;;  %v1402_v40 = vpack.c.bf16 %v1922_v34, %v1922_v34  ;;  %v814_v42 = vadd.f32 %v813_v36, %v812_v32  ;;  %v839_v31 = vsel %vm272_vm0, %v1878_v7, 0.0  ;;  %v841_v36 = vsel %vm272_vm0, %v1837_v37, 0.0 }
 0x118   : > { %v1934_v43 = vld [vmem:[#allocation2 + $0x68] sm:$0xff]  ;;  %1137 = vst.msk [vmem:[%s1706_s20 + $0x3c] sm:$0xf] %vm1121_vm1, %v1386_v39 }
 0x119   : > { %v815_v44 = vsel %vm272_vm0, %v1934_v43, 0.0  ;;  %v1384_v45 = vpack.c.bf16 %v1934_v43, %v1934_v43  ;;  %1153 = vst.msk [vmem:[%s1706_s20 + $0x7c] sm:$0xf] %vm1121_vm1, %v1402_v40  ;;  %v787_v47 = vld [vmem:[#allocation2 + $0xe8] sm:$0xff]  ;;  %v843_v40 = vsel %vm272_vm0, %v1862_v59, 0.0 }
 0x11a   : > { %v816_v48 = vadd.f32 %v815_v44, %v814_v42  ;;  %v1400_v49 = vpack.c.bf16 %v787_v47, %v787_v47  ;;  %v845_v44 = vsel %vm272_vm0, %v1908_v28, 0.0 }
 0x11b   : > { %1135 = vst.msk [vmem:[%s1706_s20 + $0x34] sm:$0xf] %vm1121_vm1, %v1384_v45 }
 0x11c   : > { %v818_v52 = vadd.f32 %v817_v51, %v816_v48  ;;  %1151 = vst.msk [vmem:[%s1706_s20 + $0x74] sm:$0xf] %vm1121_vm1, %v1400_v49  ;;  %v847_v48 = vsel %vm272_vm0, %v787_v47, 0.0  ;;  %v849_v51 = vsel %vm272_vm0, %v1893_v18, 0.0 }
 0x11e   : > { %v820_v55 = vadd.f32 %v819_v53, %v818_v52  ;;  %v851_v53 = vsel %vm272_vm0, %v1922_v34, 0.0 }
 0x120   : > { %v822_v62 = vadd.f32 %v821_v58, %v820_v55 }
 0x122   : > { %v824_v0 = vadd.f32 %v823_v63, %v822_v62 }
 0x124   : > { %v826_v3 = vadd.f32 %v825_v2, %v824_v0 }
 0x126   : > { %v828_v9 = vadd.f32 %v827_v6, %v826_v3 }
 0x128   : > { %v830_v13 = vadd.f32 %v829_v10, %v828_v9 }
 0x12a   : > { %v832_v16 = vadd.f32 %v831_v14, %v830_v13 }
 0x12c   : > { %v834_v20 = vadd.f32 %v833_v19, %v832_v16 }
 0x12e   : > { %v836_v24 = vadd.f32 %v835_v22, %v834_v20 }
 0x130   : > { %v838_v30 = vadd.f32 %v837_v29, %v836_v24 }
 0x132   : > { %v840_v32 = vadd.f32 %v839_v31, %v838_v30 }
 0x134   : > { %v842_v39 = vadd.f32 %v841_v36, %v840_v32 }
 0x136   : > { %v844_v42 = vadd.f32 %v843_v40, %v842_v39 }
 0x138   : > { %v846_v45 = vadd.f32 %v845_v44, %v844_v42 }
 0x13a   : > { %v848_v49 = vadd.f32 %v847_v48, %v846_v45 }
 0x13c   : > { %v850_v52 = vadd.f32 %v849_v51, %v848_v49 }
 0x13e   : > { %v852_v55 = vadd.f32 %v851_v53, %v850_v52 }
 0x140   : > { %v853_v58 = vrot.slane %v852_v55, 4 }
 0x142   : > { %v854_v62 = vadd.f32 %v853_v58, %v852_v55 }
 0x144   : > { %v855_v63 = vrot.slane %v854_v62, 2 }
 0x146   : > { %v856_v0 = vadd.f32 %v855_v63, %v854_v62 }
 0x148   : > { %v857_v2 = vrot.slane %v856_v0, 1 }
 0x14a   : > { %v858_v3 = vadd.f32 %v857_v2, %v856_v0 }
 0x14c   : > { %v1993_v6 = vmul.f32 0.00390625, %v858_v3 }
 0x14e   : > { %1154 = vst.msk [vmem:[%s262_s24] sm:$0xff] %vm272_vm0, %v1993_v6  ;;  %v1999_v9 = vsub.f32 %v1908_v28, %v1993_v6  ;;  %v2002_v10 = vsub.f32 %v787_v47, %v1993_v6  ;;  %v2006_v13 = vsub.f32 %v1922_v34, %v1993_v6  ;;  %v860_v14 = vsub.f32 %v1716_v1, %v1993_v6 }
 0x14f   : > { %v861_v16 = vsub.f32 %v1741_v21, %v1993_v6  ;;  %v862_v19 = vsub.f32 %v1708_v57, %v1993_v6  ;;  %v863_v28 = vsub.f32 %v1727_v11, %v1993_v6  ;;  %v864_v47 = vsub.f32 %v1775_v46, %v1993_v6 }
 0x150   : > { %v892_v20 = vmul.f32 %v860_v14, %v860_v14  ;;  %v865_v34 = vsub.f32 %v1808_v12, %v1993_v6  ;;  %v866_v57 = vsub.f32 %v1759_v35, %v1993_v6  ;;  %v867_v46 = vsub.f32 %v1791_v61, %v1993_v6 }
 0x151   : > { %v893_v22 = vmul.f32 %v861_v16, %v861_v16  ;;  %v894_v24 = vmul.f32 %v862_v19, %v862_v19  ;;  %v895_v29 = vmul.f32 %v863_v28, %v863_v28  ;;  %v896_v31 = vmul.f32 %v864_v47, %v864_v47 }
 0x152   : > { %v924_v1 = vsel %vm272_vm0, %v892_v20, 0.0  ;;  %v897_v36 = vmul.f32 %v865_v34, %v865_v34  ;;  %v868_v40 = vsub.f32 %v1840_v41, %v1993_v6  ;;  %v898_v42 = vmul.f32 %v866_v57, %v866_v57 }
 0x153   : > { %v925_v21 = vsel %vm272_vm0, %v893_v22, 0.0  ;;  %v927_v11 = vsel %vm272_vm0, %v894_v24, 0.0  ;;  %v929_v39 = vsel %vm272_vm0, %v895_v29, 0.0  ;;  %v931_v44 = vsel %vm272_vm0, %v896_v31, 0.0 }
 0x154   : > { %v926_v30 = vadd.f32 %v925_v21, %v924_v1  ;;  %v869_v35 = vsub.f32 %v1872_v4, %v1993_v6  ;;  %v899_v48 = vmul.f32 %v867_v46, %v867_v46  ;;  %v933_v49 = vsel %vm272_vm0, %v897_v36, 0.0 }
 0x155   : > { %v870_v61 = vsub.f32 %v1824_v27, %v1993_v6  ;;  %v900_v52 = vmul.f32 %v868_v40, %v868_v40  ;;  %v935_v53 = vsel %vm272_vm0, %v898_v42, 0.0  ;;  %v871_v41 = vsub.f32 %v1856_v54, %v1993_v6 }
 0x156   : > { %v928_v32 = vadd.f32 %v927_v11, %v926_v30  ;;  %v901_v58 = vmul.f32 %v869_v35, %v869_v35  ;;  %v937_v62 = vsel %vm272_vm0, %v899_v48, 0.0  ;;  %v872_v4 = vsub.f32 %v1906_v26, %v1993_v6 }
 0x157   : > { %v902_v0 = vmul.f32 %v870_v61, %v870_v61  ;;  %v939_v2 = vsel %vm272_vm0, %v900_v52, 0.0  ;;  %v873_v27 = vsub.f32 %v1934_v43, %v1993_v6  ;;  %v903_v14 = vmul.f32 %v871_v41, %v871_v41 }
 0x158   : > { %v930_v12 = vadd.f32 %v929_v39, %v928_v32  ;;  %v941_v16 = vsel %vm272_vm0, %v901_v58, 0.0  ;;  %v874_v54 = vsub.f32 %v1889_v17, %v1993_v6  ;;  %v904_v28 = vmul.f32 %v872_v4, %v872_v4 }
 0x159   : > { %v943_v20 = vsel %vm272_vm0, %v902_v0, 0.0  ;;  %v875_v26 = vsub.f32 %v1920_v33, %v1993_v6  ;;  %v905_v47 = vmul.f32 %v873_v27, %v873_v27  ;;  %v945_v24 = vsel %vm272_vm0, %v903_v14, 0.0 }
 0x15a   : > { %v932_v45 = vadd.f32 %v931_v44, %v930_v12  ;;  %v876_v43 = vsub.f32 %v1720_v5, %v1993_v6  ;;  %v906_v29 = vmul.f32 %v874_v54, %v874_v54  ;;  %v947_v1 = vsel %vm272_vm0, %v904_v28, 0.0 }
 0x15b   : > { %v877_v17 = vsub.f32 %v1747_v25, %v1993_v6  ;;  %v907_v30 = vmul.f32 %v875_v26, %v875_v26  ;;  %v949_v57 = vsel %vm272_vm0, %v905_v47, 0.0  ;;  %v878_v33 = vsub.f32 %v1710_v60, %v1993_v6 }
 0x15c   : > { %v934_v51 = vadd.f32 %v933_v49, %v932_v45  ;;  %v908_v11 = vmul.f32 %v876_v43, %v876_v43  ;;  %v951_v32 = vsel %vm272_vm0, %v906_v29, 0.0  ;;  %v879_v5 = vsub.f32 %v1733_v15, %v1993_v6 }
 0x15d   : > { %v909_v36 = vmul.f32 %v877_v17, %v877_v17  ;;  %v953_v39 = vsel %vm272_vm0, %v907_v30, 0.0  ;;  %v880_v25 = vsub.f32 %v1789_v56, %v1993_v6  ;;  %v910_v40 = vmul.f32 %v878_v33, %v878_v33 }
 0x15e   : > { %v936_v55 = vadd.f32 %v935_v53, %v934_v51  ;;  %v955_v42 = vsel %vm272_vm0, %v908_v11, 0.0  ;;  %v881_v60 = vsub.f32 %v1821_v23, %v1993_v6  ;;  %v911_v45 = vmul.f32 %v879_v5, %v879_v5 }
 0x15f   : > { %v957_v35 = vsel %vm272_vm0, %v909_v36, 0.0  ;;  %v882_v15 = vsub.f32 %v1765_v38, %v1993_v6  ;;  %v912_v49 = vmul.f32 %v880_v25, %v880_v25  ;;  %v959_v51 = vsel %vm272_vm0, %v910_v40, 0.0 }
 0x160   : > { %v938_v63 = vadd.f32 %v937_v62, %v936_v55  ;;  %v883_v56 = vsub.f32 %v1805_v8, %v1993_v6  ;;  %v913_v52 = vmul.f32 %v881_v60, %v881_v60  ;;  %v961_v53 = vsel %vm272_vm0, %v911_v45, 0.0 }
 0x161   : > { %v884_v23 = vsub.f32 %v1853_v50, %v1993_v6  ;;  %v914_v41 = vmul.f32 %v882_v15, %v882_v15  ;;  %v963_v58 = vsel %vm272_vm0, %v912_v49, 0.0  ;;  %v885_v38 = vsub.f32 %v1878_v7, %v1993_v6 }
 0x162   : > { %v940_v3 = vadd.f32 %v939_v2, %v938_v63  ;;  %v915_v63 = vmul.f32 %v883_v56, %v883_v56  ;;  %v965_v4 = vsel %vm272_vm0, %v913_v52, 0.0  ;;  %v886_v8 = vsub.f32 %v1837_v37, %v1993_v6 }
 0x163   : > { %v916_v2 = vmul.f32 %v884_v23, %v884_v23  ;;  %v887_v50 = vsub.f32 %v1862_v59, %v1993_v6  ;;  %v917_v14 = vmul.f32 %v885_v38, %v885_v38  ;;  %v890_v37 = vsub.f32 %v1893_v18, %v1993_v6 }
 0x164   : > { %v942_v19 = vadd.f32 %v941_v16, %v940_v3  ;;  %v967_v3 = vsel %vm272_vm0, %v914_v41, 0.0  ;;  %v969_v16 = vsel %vm272_vm0, %v915_v63, 0.0  ;;  %v918_v54 = vmul.f32 %v886_v8, %v886_v8 }
 0x165   : > { %v971_v7 = vsel %vm272_vm0, %v916_v2, 0.0  ;;  %v920_v47 = vmul.f32 %v1999_v9, %v1999_v9  ;;  %v923_v18 = vmul.f32 %v2006_v13, %v2006_v13 }
 0x166   : > { %v944_v22 = vadd.f32 %v943_v20, %v942_v19  ;;  %v919_v20 = vmul.f32 %v887_v50, %v887_v50  ;;  %v975_v59 = vsel %vm272_vm0, %v918_v54, 0.0 }
 0x168   : > { %v946_v34 = vadd.f32 %v945_v24, %v944_v22  ;;  %v973_v22 = vsel %vm272_vm0, %v917_v14, 0.0  ;;  %v977_v43 = vsel %vm272_vm0, %v919_v20, 0.0 }
 0x16a   : > { %v948_v21 = vadd.f32 %v947_v1, %v946_v34  ;;  %v921_v34 = vmul.f32 %v2002_v10, %v2002_v10  ;;  %v922_v1 = vmul.f32 %v890_v37, %v890_v37 }
 0x16c   : > { %v950_v31 = vadd.f32 %v949_v57, %v948_v21  ;;  %v979_v21 = vsel %vm272_vm0, %v920_v47, 0.0  ;;  %v981_v6 = vsel %vm272_vm0, %v921_v34, 0.0  ;;  %v983_v30 = vsel %vm272_vm0, %v922_v1, 0.0 }
 0x16e   : > { %v952_v46 = vadd.f32 %v951_v32, %v950_v31  ;;  %v985_v31 = vsel %vm272_vm0, %v923_v18, 0.0 }
 0x170   : > { %v954_v12 = vadd.f32 %v953_v39, %v952_v46 }
 0x172   : > { %v956_v44 = vadd.f32 %v955_v42, %v954_v12 }
 0x174   : > { %v958_v48 = vadd.f32 %v957_v35, %v956_v44 }
 0x176   : > { %v960_v61 = vadd.f32 %v959_v51, %v958_v48 }
 0x178   : > { %v962_v55 = vadd.f32 %v961_v53, %v960_v61 }
 0x17a   : > { %v964_v62 = vadd.f32 %v963_v58, %v962_v55 }
 0x17c   : > { %v966_v0 = vadd.f32 %v965_v4, %v964_v62 }
 0x17e   : > { %v968_v27 = vadd.f32 %v967_v3, %v966_v0 }
 0x180   : > { %v970_v19 = vadd.f32 %v969_v16, %v968_v27 }
 0x182   : > { %v972_v28 = vadd.f32 %v971_v7, %v970_v19 }
 0x184   : > { %v974_v26 = vadd.f32 %v973_v22, %v972_v28 }
 0x186   : > { %v976_v24 = vadd.f32 %v975_v59, %v974_v26 }
 0x188   : > { %v978_v29 = vadd.f32 %v977_v43, %v976_v24 }
 0x18a   : > { %v980_v17 = vadd.f32 %v979_v21, %v978_v29 }
 0x18c   : > { %v982_v9 = vadd.f32 %v981_v6, %v980_v17 }
 0x18e   : > { %v984_v57 = vadd.f32 %v983_v30, %v982_v9 }
 0x190   : > { %v986_v10 = vadd.f32 %v985_v31, %v984_v57 }
 0x192   : > { %v987_v33 = vrot.slane %v986_v10, 4 }
 0x194   : > { %v988_v11 = vadd.f32 %v987_v33, %v986_v10 }
 0x196   : > { %v989_v32 = vrot.slane %v988_v11, 2 }
 0x198   : > { %v990_v46 = vadd.f32 %v989_v32, %v988_v11 }
 0x19a   : > { %v991_v5 = vrot.slane %v990_v46, 1 }
 0x19c   : > { %v992_v13 = vadd.f32 %v991_v5, %v990_v46 }
 0x19e   : > { %1155 = vst.msk [vmem:[%s266_s27] sm:$0xff] %vm272_vm0, %v992_v13 }
 0x19f PF: > { %s15_s17 = sadd.s32 1, %s1562_s17   ;;  %s2124_s15 = smov %s1558_s16 }
 0x1a0   : > { %p12_p6 = scmp.ge.s32.totalorder %s15_s17, 4   ;;  %s2125_s16 = smov %s2127_s18 }
 0x1a2   :  { %14 = sbr.rel (!%p12_p6) target bundleno = 2 (0x2), region = 93 }

// kernel: discriminator_forward.12
= control target key start
LH: loop header
LB: loop body
LE: loop exit
PB: predicated region body
PF: predicated region fallthrough
CT: control target
= control target key end

     0   :  { %s438_s0 = inlined_call_operand.vmem [shape: bf16[128,128], index: 0, kind: input, shape index: {}]   ;;  %s439_s1 = inlined_call_operand.vmem [shape: f32[1,128], index: 1, kind: input, shape index: {}]   ;;  %s440_s2 = inlined_call_operand.vmem [shape: f32[1,128], index: 2, kind: input, shape index: {}]   ;;  %s441_s3 = inlined_call_operand.vmem [shape: bf16[128,128], index: 3, kind: output, shape index: {}]  }
   0x1   :  { %v243_v0 = vld [vmem:[%s438_s0] sm:$0xff]   ;;  %v314_v4 = vld [vmem:[%s438_s0 + $0x8] sm:$0xff]   ;;  %v315_v5 = vld [vmem:[%s438_s0 + $0x10] sm:$0xff]  }
   0x2   :  { %v354_v1 = vld [vmem:[%s439_s1] ss:$0 sm:$0xff]  ;;  %v244_v2 = vunpack.c.l.bf16 %v243_v0  ;;  %v245_v3 = vunpack.c.h.bf16 %v243_v0  ;;  %v316_v6 = vld [vmem:[%s438_s0 + $0x18] sm:$0xff]   ;;  %v248_v8 = vunpack.c.l.bf16 %v314_v4  ;;  %v249_v9 = vunpack.c.h.bf16 %v314_v4  ;;  %v318_v41 = vld [vmem:[%s438_s0 + $0x28] sm:$0xff]  }
   0x3   :  { %v368_v7 = vld [vmem:[%s440_s2] ss:$0 sm:$0xff]  ;;  %v252_v10 = vunpack.c.l.bf16 %v315_v5  ;;  %v253_v11 = vunpack.c.h.bf16 %v315_v5  ;;  %v256_v14 = vunpack.c.l.bf16 %v316_v6  ;;  %v257_v15 = vunpack.c.h.bf16 %v316_v6  ;;  %v319_v46 = vld [vmem:[%s438_s0 + $0x30] sm:$0xff]   ;;  %v320_v55 = vld [vmem:[%s438_s0 + $0x38] sm:$0xff]  }
   0x4   :  { %v53_v12 = vmul.f32 %v244_v2, %v354_v1  ;;  %v54_v13 = vmul.f32 %v245_v3, %v354_v1  ;;  %v55_v16 = vmul.f32 %v248_v8, %v354_v1  ;;  %v56_v17 = vmul.f32 %v249_v9, %v354_v1  ;;  %v317_v24 = vld [vmem:[%s438_s0 + $0x20] sm:$0xff]  }
   0x5   :  { %v57_v18 = vmul.f32 %v252_v10, %v354_v1  ;;  %v58_v19 = vmul.f32 %v253_v11, %v354_v1  ;;  %v59_v22 = vmul.f32 %v256_v14, %v354_v1  ;;  %v60_v23 = vmul.f32 %v257_v15, %v354_v1 }
   0x6   :  { %v76_v20 = vadd.f32 %v368_v7, %v53_v12  ;;  %v77_v21 = vadd.f32 %v368_v7, %v54_v13  ;;  %v78_v25 = vadd.f32 %v368_v7, %v55_v16  ;;  %v79_v26 = vadd.f32 %v368_v7, %v56_v17 }
   0x7   :  { %v80_v27 = vadd.f32 %v368_v7, %v57_v18  ;;  %v81_v28 = vadd.f32 %v368_v7, %v58_v19  ;;  %v82_v31 = vadd.f32 %v368_v7, %v59_v22  ;;  %v83_v32 = vadd.f32 %v368_v7, %v60_v23 }
   0x8   :  { %v92_v29 = vmul.f32 0.1, %v76_v20  ;;  %v93_v30 = vmul.f32 0.1, %v77_v21  ;;  %v94_v33 = vmul.f32 0.1, %v78_v25  ;;  %v260_v36 = vunpack.c.l.bf16 %v317_v24 }
   0x9   :  { %v95_v34 = vmul.f32 0.1, %v79_v26  ;;  %v96_v35 = vmul.f32 0.1, %v80_v27  ;;  %v97_v39 = vmul.f32 0.1, %v81_v28  ;;  %v261_v50 = vunpack.c.h.bf16 %v317_v24 }
   0xa   :  { %v108_v37 = vmax.f32 %v76_v20, %v92_v29  ;;  %v109_v38 = vmax.f32 %v77_v21, %v93_v30  ;;  %v98_v40 = vmul.f32 0.1, %v82_v31  ;;  %v110_v42 = vmax.f32 %v78_v25, %v94_v33 }
   0xb   :  { %v111_v43 = vmax.f32 %v79_v26, %v95_v34  ;;  %v112_v44 = vmax.f32 %v80_v27, %v96_v35  ;;  %v99_v45 = vmul.f32 0.1, %v83_v32  ;;  %v113_v48 = vmax.f32 %v81_v28, %v97_v39 }
   0xc   :  { %v277_v47 = vpack.c.bf16 %v109_v38, %v108_v37  ;;  %v114_v49 = vmax.f32 %v82_v31, %v98_v40  ;;  %v61_v53 = vmul.f32 %v260_v36, %v354_v1  ;;  %v264_v54 = vunpack.c.l.bf16 %v318_v41 }
   0xd   :  { %v282_v51 = vpack.c.bf16 %v111_v43, %v110_v42  ;;  %v115_v52 = vmax.f32 %v83_v32, %v99_v45  ;;  %v287_v56 = vpack.c.bf16 %v113_v48, %v112_v44  ;;  %v62_v57 = vmul.f32 %v261_v50, %v354_v1 }
   0xe   :  { %278 = vst [vmem:[%s441_s3] sm:$0xff] %v277_v47   ;;  %v265_v58 = vunpack.c.h.bf16 %v318_v41  ;;  %v268_v59 = vunpack.c.l.bf16 %v319_v46  ;;  %v84_v61 = vadd.f32 %v368_v7, %v61_v53  ;;  %v63_v62 = vmul.f32 %v264_v54, %v354_v1 }
   0xf   :  { %321 = vst [vmem:[%s441_s3 + $0x8] sm:$0xff] %v282_v51   ;;  %v292_v60 = vpack.c.bf16 %v115_v52, %v114_v49  ;;  %v269_v63 = vunpack.c.h.bf16 %v319_v46  ;;  %322 = vst [vmem:[%s441_s3 + $0x10] sm:$0xff] %v287_v56   ;;  %v85_v0 = vadd.f32 %v368_v7, %v62_v57  ;;  %v272_v4 = vunpack.c.l.bf16 %v320_v55 }
  0x10   :  { %v64_v2 = vmul.f32 %v265_v58, %v354_v1  ;;  %v65_v3 = vmul.f32 %v268_v59, %v354_v1  ;;  %v100_v5 = vmul.f32 0.1, %v84_v61  ;;  %v86_v6 = vadd.f32 %v368_v7, %v63_v62 }
  0x11   :  { %323 = vst [vmem:[%s441_s3 + $0x18] sm:$0xff] %v292_v60   ;;  %v66_v8 = vmul.f32 %v269_v63, %v354_v1  ;;  %v273_v9 = vunpack.c.h.bf16 %v320_v55  ;;  %v101_v10 = vmul.f32 0.1, %v85_v0  ;;  %v67_v13 = vmul.f32 %v272_v4, %v354_v1 }
  0x12   :  { %v87_v11 = vadd.f32 %v368_v7, %v64_v2  ;;  %v88_v12 = vadd.f32 %v368_v7, %v65_v3  ;;  %v116_v14 = vmax.f32 %v84_v61, %v100_v5  ;;  %v102_v15 = vmul.f32 0.1, %v86_v6 }
  0x13   :  { %v89_v16 = vadd.f32 %v368_v7, %v66_v8  ;;  %v68_v17 = vmul.f32 %v273_v9, %v354_v1  ;;  %v117_v18 = vmax.f32 %v85_v0, %v101_v10  ;;  %v90_v21 = vadd.f32 %v368_v7, %v67_v13 }
  0x14   :  { %v103_v19 = vmul.f32 0.1, %v87_v11  ;;  %v104_v20 = vmul.f32 0.1, %v88_v12  ;;  %v118_v22 = vmax.f32 %v86_v6, %v102_v15 }
  0x15   :  { %v105_v23 = vmul.f32 0.1, %v89_v16  ;;  %v91_v24 = vadd.f32 %v368_v7, %v68_v17  ;;  %v297_v25 = vpack.c.bf16 %v117_v18, %v116_v14  ;;  %v106_v28 = vmul.f32 0.1, %v90_v21 }
  0x16   :  { %v119_v26 = vmax.f32 %v87_v11, %v103_v19  ;;  %v120_v27 = vmax.f32 %v88_v12, %v104_v20 }
  0x17   :  { %v121_v29 = vmax.f32 %v89_v16, %v105_v23  ;;  %v107_v30 = vmul.f32 0.1, %v91_v24  ;;  %324 = vst [vmem:[%s441_s3 + $0x20] sm:$0xff] %v297_v25   ;;  %v122_v31 = vmax.f32 %v90_v21, %v106_v28 }
  0x18   :  { %v302_v1 = vpack.c.bf16 %v119_v26, %v118_v22 }
  0x19   :  { %v307_v32 = vpack.c.bf16 %v121_v29, %v120_v27  ;;  %v123_v33 = vmax.f32 %v91_v24, %v107_v30 }
  0x1a   :  { %325 = vst [vmem:[%s441_s3 + $0x28] sm:$0xff] %v302_v1  }
  0x1b   :  { %326 = vst [vmem:[%s441_s3 + $0x30] sm:$0xff] %v307_v32   ;;  %v312_v7 = vpack.c.bf16 %v123_v33, %v122_v31 }
  0x1d   :  { %327 = vst [vmem:[%s441_s3 + $0x38] sm:$0xff] %v312_v7  }

// kernel: discriminator_forward.11
= control target key start
LH: loop header
LB: loop body
LE: loop exit
PB: predicated region body
PF: predicated region fallthrough
CT: control target
= control target key end

     0   :  { %s1271_s15 = smov 0   ;;  %s1273_s16 = smov 0   ;;  %s1421_s0 = inlined_call_operand.vmem [shape: bf16[128,1664], index: 0, kind: input, shape index: {}]   ;;  %s1422_s1 = inlined_call_operand.vmem [shape: bf16[1664,128], index: 1, kind: input, shape index: {}]   ;;  %s1423_s2 = inlined_call_operand.vmem [shape: bf16[128,128], index: 2, kind: output, shape index: {0}]   ;;  %s1424_s3 = inlined_call_operand.vmem [shape: f32[1,8,128], index: 3, kind: output, shape index: {1}]   ;;  %s1425_s4 = inlined_call_operand.vmem [shape: f32[1,8,128], index: 4, kind: output, shape index: {2}]  }
   0x1   :  { %s1275_s17 = smov 0   ;;  %s1277_s18 = smov 0  }
   0x2   :  { %s1279_s19 = smov 0  }
   0x3 LB: > { %s24_s20 = sadd.s32 1, %s1239_s18  ;;  %p43_p1 = scmp.ne.s32.totalorder %s1231_s16, %s1227_s15  ;;  %s1243_s19 = sphi %s1279_s19, %s15_s19   ;;  %s1239_s18 = sphi %s1277_s18, %s1429_s18   ;;  %s1235_s17 = sphi %s1275_s17, %s1428_s17   ;;  %s1231_s16 = sphi %s1273_s16, %s1427_s16   ;;  %s1227_s15 = sphi %s1271_s15, %s1426_s15  }
   0x4   : > { %p25_p0 = scmp.ge.s32.totalorder %s24_s20, 13  ;;  %p44_p2 = scmp.eq.s32.totalorder %s1243_s19, 0 }
   0x5   : > { %s36_s22 = sadd.s32 1, %s1231_s16  ;;  %p974_p5 = scmp.ge.s32.totalorder %s1243_s19, 13 }
   0x6   : > { %s1431_s20 = smov (%p25_p0, %s24_s20), 0  ;;  %p45_p3 = por %p44_p2, %p43_p1 }
   0x7   : > { %s32_s21 = ssub.s32 %s1239_s18, %s1431_s20  ;;  %173 = sbr.rel (%p974_p5) target bundleno = 26 (0x1a), region = 16 }
   0x8   : > { %p34_p4 = scmp.eq.s32.totalorder %s32_s21, 0 }
   0xa   : > { %s1306_s23 = scalar_select %p34_p4, %s1231_s16, %s36_s22  }
   0xc   : > { %176 = sbr.rel (!%p45_p3) target bundleno = 26 (0x1a), region = 20  ;;  %s178_s24 = sand.u32 (%p45_p3), 1, %s1231_s16  }
   0xd   : > { %s976_s25 = sshll.u32 (%p45_p3), %s1239_s18, 2  ;;  %s975_s26 = sshll.u32 (%p45_p3), %s178_s24, 6 }
   0xe   : > { %s1314_s29 = scalar_lea.vmem (%p45_p3), %s1421_s0, %s976_s25  ;;  %s180_s30 = scalar_lea.vmem (%p45_p3), [#allocation3], %s975_s26 }
   0xf   : > { %v202_v0 = vld [vmem:[%s1314_s29] sm:$0xf] (%p45_p3)  ;;  %v204_v1 = vld [vmem:[%s1314_s29 + $0x34] sm:$0xf] (%p45_p3)  ;;  %v206_v2 = vld [vmem:[%s1314_s29 + $0x68] sm:$0xf] (%p45_p3) }
  0x10   : > { %203 = vst [vmem:[%s180_s30] sm:$0xf] (%p45_p3), %v202_v0  ;;  %205 = vst [vmem:[%s180_s30 + $0x4] sm:$0xf] (%p45_p3), %v204_v1  ;;  %v208_v3 = vld [vmem:[%s1314_s29 + $0x9c] sm:$0xf] (%p45_p3) }
  0x11   : > { %v210_v4 = vld [vmem:[%s1314_s29 + $0xd0] sm:$0xf]  ;;  %207 = vst [vmem:[%s180_s30 + $0x8] sm:$0xf] %v206_v2  ;;  %209 = vst [vmem:[%s180_s30 + $0xc] sm:$0xf] %v208_v3 }
  0x12   : > { %211 = vst [vmem:[%s180_s30 + $0x10] sm:$0xf] %v210_v4  ;;  %v212_v5 = vld [vmem:[%s1314_s29 + $0x104] sm:$0xf]  ;;  %v214_v6 = vld [vmem:[%s1314_s29 + $0x138] sm:$0xf] }
  0x13   : > { %v216_v7 = vld [vmem:[%s1314_s29 + $0x16c] sm:$0xf]  ;;  %213 = vst [vmem:[%s180_s30 + $0x14] sm:$0xf] %v212_v5  ;;  %215 = vst [vmem:[%s180_s30 + $0x18] sm:$0xf] %v214_v6 }
  0x14   : > { %217 = vst [vmem:[%s180_s30 + $0x1c] sm:$0xf] %v216_v7  ;;  %v218_v8 = vld [vmem:[%s1314_s29 + $0x1a0] sm:$0xf]  ;;  %v220_v9 = vld [vmem:[%s1314_s29 + $0x1d4] sm:$0xf] }
  0x15   : > { %v222_v10 = vld [vmem:[%s1314_s29 + $0x208] sm:$0xf]  ;;  %219 = vst [vmem:[%s180_s30 + $0x20] sm:$0xf] %v218_v8  ;;  %221 = vst [vmem:[%s180_s30 + $0x24] sm:$0xf] %v220_v9 }
  0x16   : > { %223 = vst [vmem:[%s180_s30 + $0x28] sm:$0xf] %v222_v10  ;;  %v224_v11 = vld [vmem:[%s1314_s29 + $0x23c] sm:$0xf]  ;;  %v226_v12 = vld [vmem:[%s1314_s29 + $0x270] sm:$0xf] }
  0x17   : > { %v228_v13 = vld [vmem:[%s1314_s29 + $0x2a4] sm:$0xf]  ;;  %225 = vst [vmem:[%s180_s30 + $0x2c] sm:$0xf] %v224_v11  ;;  %227 = vst [vmem:[%s180_s30 + $0x30] sm:$0xf] %v226_v12 }
  0x18   : > { %229 = vst [vmem:[%s180_s30 + $0x34] sm:$0xf] %v228_v13  ;;  %v230_v14 = vld [vmem:[%s1314_s29 + $0x2d8] sm:$0xf]  ;;  %v232_v15 = vld [vmem:[%s1314_s29 + $0x30c] sm:$0xf] }
  0x19   : > { %231 = vst [vmem:[%s180_s30 + $0x38] sm:$0xf] %v230_v14  ;;  %233 = vst [vmem:[%s180_s30 + $0x3c] sm:$0xf] %v232_v15 }
  0x1a PF: > { %p977_p6 = scmp.ge.s32.totalorder %s1243_s19, 1  ;;  %p297_p7 = scmp.lt.s32.totalorder %s1243_s19, 14 }
  0x1c   : > { %p298_p8 = pnand %p977_p6, %p297_p7 }
  0x1d   : > { %s304_s5 = sand.u32 (!%p298_p8), 1, %s1227_s15   ;;  %s979_s6 = sshll.u32 (!%p298_p8), %s1235_s17, 4 }
  0x1e   : > { %301 = sbr.rel (%p298_p8) target bundleno = 384 (0x180), region = 65  ;;  %s978_s7 = sshll.u32 (!%p298_p8), %s304_s5, 6 }
  0x1f   : > { %p344_p9 = scmp.lt.s32.totalorder (!%p298_p8), %s979_s6, 207  ;;  %s1341_s12 = scalar_lea.vmem (!%p298_p8), [#allocation3], %s978_s7 }
  0x20   : > { %p981_p10 = scmp.ne.s32.totalorder (!%p298_p8), %s1235_s17, 0 }
  0x23   : > { %s1433_s6 = smov (!%p344_p9, %s979_s6), 207  ;;  %367 = sbr.rel (%p981_p10) target bundleno = 49 (0x31), region = 73 }
  0x24   : > { %s980_s8 = sshll.u32 %s1433_s6, 2 }
  0x25   : > { %s1339_s11 = scalar_lea.vmem %s1422_s1, %s980_s8 }
  0x28   : > { %v1245_v16 = vmov 0.0  }
  0x29   : > { %368 = vst [vmem:[#allocation2 + $0x30] sm:$0xff] %v1245_v16  ;;  %369 = vst [vmem:[#allocation2] sm:$0xff] %v1245_v16 }
  0x2a   : > { %370 = vst [vmem:[#allocation2 + $0x58] sm:$0xff] %v1245_v16  ;;  %371 = vst [vmem:[#allocation2 + $0x18] sm:$0xff] %v1245_v16 }
  0x2b   : > { %372 = vst [vmem:[#allocation2 + $0x50] sm:$0xff] %v1245_v16  ;;  %373 = vst [vmem:[#allocation2 + $0x68] sm:$0xff] %v1245_v16 }
  0x2c   : > { %374 = vst [vmem:[#allocation2 + $0x8] sm:$0xff] %v1245_v16  ;;  %375 = vst [vmem:[#allocation2 + $0x48] sm:$0xff] %v1245_v16 }
  0x2d   : > { %376 = vst [vmem:[#allocation2 + $0x40] sm:$0xff] %v1245_v16  ;;  %377 = vst [vmem:[#allocation2 + $0x20] sm:$0xff] %v1245_v16 }
  0x2e   : > { %378 = vst [vmem:[#allocation2 + $0x10] sm:$0xff] %v1245_v16  ;;  %379 = vst [vmem:[#allocation2 + $0x38] sm:$0xff] %v1245_v16 }
  0x2f   : > { %380 = vst [vmem:[#allocation2 + $0x60] sm:$0xff] %v1245_v16  ;;  %381 = vst [vmem:[#allocation2 + $0x70] sm:$0xff] %v1245_v16 }
  0x30   : > { %382 = vst [vmem:[#allocation2 + $0x78] sm:$0xff] %v1245_v16  ;;  %383 = vst [vmem:[#allocation2 + $0x28] sm:$0xff] %v1245_v16 }
  0x31 PF: > { %v1189_v17 = vld [vmem:[%s1339_s11 + $0x38] sm:$0xff]   ;;  %v1190_v18 = vld [vmem:[%s1339_s11 + $0x30] sm:$0xff]   ;;  %v1191_v19 = vld [vmem:[%s1339_s11 + $0x28] sm:$0xff]   ;;  %p998_p11 = scmp.ne.s32.totalorder %s1235_s17, 12 }
  0x32   : > { %1100 = vmatprep.subr.bf16.mxu0 %v1189_v17  ;;  %1132 = vmatprep.subr.bf16.mxu1 %v1189_v17  ;;  %v1192_v20 = vld [vmem:[%s1339_s11 + $0x20] sm:$0xff]   ;;  %v1193_v23 = vld [vmem:[%s1339_s11 + $0x18] sm:$0xff]   ;;  %v1194_v24 = vld [vmem:[%s1339_s11 + $0x10] sm:$0xff]  }
  0x33   : > { %1101 = vmatpush3.bf16.msra.mxu0 %v1189_v17  ;;  %1140 = vmatpush3.bf16.msra.mxu1 %v1189_v17  ;;  %v1197_v21 = vld [vmem:[%s1341_s12] sm:$0xff]   ;;  %v1195_v25 = vld [vmem:[%s1339_s11 + $0x8] sm:$0xff]   ;;  %v1201_v29 = vld [vmem:[%s1341_s12 + $0x10] sm:$0xff]  }
  0x34   : > { %1102 = vmatprep.subr.bf16.mxu0 %v1190_v18  ;;  %1133 = vmatprep.subr.bf16.mxu1 %v1190_v18  ;;  %v1198_v22 = vld [vmem:[%s1341_s12 + $0x20] sm:$0xff]   ;;  %v1199_v27 = vld [vmem:[%s1341_s12 + $0x8] sm:$0xff]   ;;  %v1202_v30 = vld [vmem:[%s1341_s12 + $0x30] sm:$0xff]  }
  0x35   : > { %1116 = vmatprep.mubr.bf16.mxu0 %v1197_v21  ;;  %1124 = vmatprep.mubr.bf16.mxu1 %v1198_v22  ;;  %v1196_v26 = vld [vmem:[%s1339_s11] sm:$0xff]   ;;  %v1200_v28 = vld [vmem:[%s1341_s12 + $0x28] sm:$0xff]   ;;  %v1203_v31 = vld [vmem:[%s1341_s12 + $0x18] sm:$0xff]  }
  0x36   : > { %v1204_v32 = vld [vmem:[%s1341_s12 + $0x38] sm:$0xff]   ;;  %v394_v34 = vld [vmem:[#allocation2 + $0x10] sm:$0xff]  ;;  %v392_v38 = vld [vmem:[#allocation2 + $0x40] sm:$0xff] }
  0x37   : > { %1103 = vmatpush3.bf16.msra.mxu0 %v1190_v18  ;;  %1141 = vmatpush3.bf16.msra.mxu1 %v1190_v18  ;;  %v386_v33 = vld [vmem:[#allocation2 + $0x58] sm:$0xff]  ;;  %v384_v37 = vld [vmem:[#allocation2 + $0x30] sm:$0xff]  ;;  %v385_v49 = vld [vmem:[#allocation2] sm:$0xff] }
  0x38   : > { %1104 = vmatprep.subr.bf16.mxu0 %v1191_v19  ;;  %1134 = vmatprep.subr.bf16.mxu1 %v1191_v19  ;;  %v387_v43 = vld [vmem:[#allocation2 + $0x18] sm:$0xff]  ;;  %v393_v50 = vld [vmem:[#allocation2 + $0x20] sm:$0xff]  ;;  %v390_v55 = vld [vmem:[#allocation2 + $0x8] sm:$0xff] }
  0x39   : > { %v395_v44 = vld [vmem:[#allocation2 + $0x38] sm:$0xff]  ;;  %v388_v61 = vld [vmem:[#allocation2 + $0x50] sm:$0xff]  ;;  %v396_v62 = vld [vmem:[#allocation2 + $0x60] sm:$0xff] }
  0x3a   : > { %v398_v56 = vld [vmem:[#allocation2 + $0x78] sm:$0xff]  ;;  %v391_v3 = vld [vmem:[#allocation2 + $0x48] sm:$0xff]  ;;  %v397_v10 = vld [vmem:[#allocation2 + $0x70] sm:$0xff] }
  0x3b   : > { %1105 = vmatpush3.bf16.msra.mxu0 %v1191_v19  ;;  %1142 = vmatpush3.bf16.msra.mxu1 %v1191_v19  ;;  %v399_v4 = vld [vmem:[#allocation2 + $0x28] sm:$0xff] }
  0x3c   : > { %1106 = vmatprep.subr.bf16.mxu0 %v1192_v20  ;;  %1135 = vmatprep.subr.bf16.mxu1 %v1192_v20  ;;  %v389_v9 = vld [vmem:[#allocation2 + $0x68] sm:$0xff] }
  0x3f   : > { %1107 = vmatpush3.bf16.msra.mxu0 %v1192_v20  ;;  %1143 = vmatpush3.bf16.msra.mxu1 %v1192_v20 }
  0x40   : > { %1108 = vmatprep.subr.bf16.mxu0 %v1193_v23  ;;  %1136 = vmatprep.subr.bf16.mxu1 %v1193_v23 }
  0x43   : > { %1109 = vmatpush3.bf16.msra.mxu0 %v1193_v23  ;;  %1144 = vmatpush3.bf16.msra.mxu1 %v1193_v23 }
  0x44   : > { %1110 = vmatprep.subr.bf16.mxu0 %v1194_v24  ;;  %1137 = vmatprep.subr.bf16.mxu1 %v1194_v24 }
  0x47   : > { %1111 = vmatpush3.bf16.msra.mxu0 %v1194_v24  ;;  %1145 = vmatpush3.bf16.msra.mxu1 %v1194_v24 }
  0x48   : > { %1112 = vmatprep.subr.bf16.mxu0 %v1195_v25  ;;  %1138 = vmatprep.subr.bf16.mxu1 %v1195_v25 }
  0x4b   : > { %1113 = vmatpush3.bf16.msra.mxu0 %v1195_v25  ;;  %1146 = vmatpush3.bf16.msra.mxu1 %v1195_v25 }
  0x4c   : > { %1114 = vmatprep.subr.bf16.mxu0 %v1196_v26  ;;  %1139 = vmatprep.subr.bf16.mxu1 %v1196_v26 }
  0x4f   : > { %1115 = vmatpush3.bf16.msra.mxu0 %v1196_v26  ;;  %1147 = vmatpush3.bf16.msra.mxu1 %v1196_v26 }
  0x52   : > { %1117 = vmatmul.mubr.bf16.vlgmr.msra.gmra.mxu0 %v1199_v27  ;;  %1125 = vmatmul.mubr.bf16.vlgmr.msra.gmra.mxu1 %v1200_v28 }
  0x53   : > { %1120 = vmatprep.mubr.bf16.mxu0 %v1201_v29  ;;  %1128 = vmatprep.mubr.bf16.mxu1 %v1202_v30 }
  0x5a   : > { %1121 = vmatmul.mubr.bf16.gmra.mxu0 %v1203_v31  ;;  %1129 = vmatmul.mubr.bf16.gmra.mxu1 %v1204_v32 }
 0x112   : > { %v1118_v35 = vpop.f32.mrf.mxu0  ;;  %v1126_v36 = vpop.f32.mrf.mxu1 }
 0x113   : > { %v627_v39 = vadd.f32 %v1118_v35, %v386_v33  ;;  %v635_v40 = vadd.f32 %v1126_v36, %v394_v34 }
 0x114   : > { %v562_v41 = vpop.f32.mrf.mxu0  ;;  %v594_v42 = vpop.f32.mrf.mxu1 }
 0x115   : > { %643 = vst [vmem:[#allocation2 + $0x58] sm:$0xff] %v627_v39  ;;  %651 = vst [vmem:[#allocation2 + $0x10] sm:$0xff] %v635_v40  ;;  %v625_v45 = vadd.f32 %v562_v41, %v384_v37  ;;  %v633_v46 = vadd.f32 %v594_v42, %v392_v38 }
 0x116   : > { %v1119_v47 = vpop.f32.mrf.mxu0  ;;  %v1127_v48 = vpop.f32.mrf.mxu1 }
 0x117   : > { %641 = vst [vmem:[#allocation2 + $0x30] sm:$0xff] %v625_v45  ;;  %649 = vst [vmem:[#allocation2 + $0x40] sm:$0xff] %v633_v46  ;;  %v628_v51 = vadd.f32 %v1119_v47, %v387_v43  ;;  %v636_v52 = vadd.f32 %v1127_v48, %v395_v44 }
 0x118   : > { %v565_v53 = vpop.f32.mrf.mxu0  ;;  %v597_v54 = vpop.f32.mrf.mxu1 }
 0x119   : > { %644 = vst [vmem:[#allocation2 + $0x18] sm:$0xff] %v628_v51  ;;  %652 = vst [vmem:[#allocation2 + $0x38] sm:$0xff] %v636_v52  ;;  %v626_v57 = vadd.f32 %v565_v53, %v385_v49  ;;  %v634_v58 = vadd.f32 %v597_v54, %v393_v50 }
 0x11a   : > { %v1122_v59 = vpop.f32.mrf.mxu0  ;;  %v1130_v60 = vpop.f32.mrf.mxu1 }
 0x11b   : > { %642 = vst [vmem:[#allocation2] sm:$0xff] %v626_v57  ;;  %650 = vst [vmem:[#allocation2 + $0x20] sm:$0xff] %v634_v58  ;;  %v631_v63 = vadd.f32 %v1122_v59, %v390_v55  ;;  %v639_v0 = vadd.f32 %v1130_v60, %v398_v56 }
 0x11c   : > { %v578_v1 = vpop.f32.mrf.mxu0  ;;  %v610_v2 = vpop.f32.mrf.mxu1 }
 0x11d   : > { %647 = vst [vmem:[#allocation2 + $0x8] sm:$0xff] %v631_v63  ;;  %655 = vst [vmem:[#allocation2 + $0x78] sm:$0xff] %v639_v0  ;;  %v629_v5 = vadd.f32 %v578_v1, %v388_v61  ;;  %v637_v6 = vadd.f32 %v610_v2, %v396_v62 }
 0x11e   : > { %v1123_v7 = vpop.f32.mrf.mxu0  ;;  %v1131_v8 = vpop.f32.mrf.mxu1 }
 0x11f   : > { %645 = vst [vmem:[#allocation2 + $0x50] sm:$0xff] %v629_v5  ;;  %653 = vst [vmem:[#allocation2 + $0x60] sm:$0xff] %v637_v6  ;;  %v632_v11 = vadd.f32 %v1123_v7, %v391_v3  ;;  %v640_v12 = vadd.f32 %v1131_v8, %v399_v4  ;;  %660 = sbr.rel (%p998_p11) target bundleno = 384 (0x180), region = 77 }
 0x120   : > { %v581_v13 = vpop.f32.mrf.mxu0  ;;  %v613_v14 = vpop.f32.mrf.mxu1 }
 0x121   : > { %648 = vst [vmem:[#allocation2 + $0x48] sm:$0xff] %v632_v11  ;;  %656 = vst [vmem:[#allocation2 + $0x28] sm:$0xff] %v640_v12  ;;  %v630_v15 = vadd.f32 %v581_v13, %v389_v9  ;;  %v638_v16 = vadd.f32 %v613_v14, %v397_v10 }
 0x123   : > { %646 = vst [vmem:[#allocation2 + $0x68] sm:$0xff] %v630_v15  ;;  %654 = vst [vmem:[#allocation2 + $0x70] sm:$0xff] %v638_v16 }
 0x124   : > { %v661_v17 = vld [vmem:[#allocation2 + $0x30] sm:$0xff]  ;;  %v662_v18 = vld [vmem:[#allocation2] sm:$0xff]  ;;  %v663_v19 = vld [vmem:[#allocation2 + $0x58] sm:$0xff] }
 0x125   : > { %v677_v20 = vadd.f32 %v662_v18, %v661_v17  ;;  %v1040_v21 = vpack.c.bf16 %v662_v18, %v661_v17  ;;  %v664_v22 = vld [vmem:[#allocation2 + $0x18] sm:$0xff]  ;;  %v667_v27 = vld [vmem:[#allocation2 + $0x8] sm:$0xff]  ;;  %v669_v29 = vld [vmem:[#allocation2 + $0x40] sm:$0xff] }
 0x126   : > { %v665_v23 = vld [vmem:[#allocation2 + $0x50] sm:$0xff]  ;;  %v1045_v25 = vpack.c.bf16 %v664_v22, %v663_v19  ;;  %v670_v32 = vld [vmem:[#allocation2 + $0x20] sm:$0xff]  ;;  %v1364_v34 = vld [vmem:[#allocation2 + $0x38] sm:$0xff] }
 0x127   : > { %1041 = vst [vmem:[%s1423_s2] sm:$0xff] %v1040_v21   ;;  %v678_v30 = vadd.f32 %v677_v20, %v663_v19  ;;  %v671_v33 = vld [vmem:[#allocation2 + $0x10] sm:$0xff]  ;;  %v1060_v35 = vpack.c.bf16 %v670_v32, %v669_v29  ;;  %v673_v37 = vld [vmem:[#allocation2 + $0x60] sm:$0xff]  ;;  %v675_v41 = vld [vmem:[#allocation2 + $0x78] sm:$0xff] }
 0x128   : > { %v668_v28 = vld [vmem:[#allocation2 + $0x48] sm:$0xff]  ;;  %1077 = vst [vmem:[%s1423_s2 + $0x8] sm:$0xff] %v1045_v25   ;;  %v1065_v36 = vpack.c.bf16 %v1364_v34, %v671_v33 }
 0x129   : > { %v1055_v31 = vpack.c.bf16 %v668_v28, %v667_v27  ;;  %v679_v39 = vadd.f32 %v678_v30, %v664_v22  ;;  %v1379_v42 = vld [vmem:[#allocation2 + $0x28] sm:$0xff]  ;;  %1080 = vst [vmem:[%s1423_s2 + $0x20] sm:$0xff] %v1060_v35  }
 0x12a   : > { %v666_v24 = vld [vmem:[#allocation2 + $0x68] sm:$0xff]  ;;  %v1373_v38 = vld [vmem:[#allocation2 + $0x70] sm:$0xff]  ;;  %1081 = vst [vmem:[%s1423_s2 + $0x28] sm:$0xff] %v1065_v36   ;;  %v1075_v43 = vpack.c.bf16 %v1379_v42, %v675_v41 }
 0x12b   : > { %v1050_v26 = vpack.c.bf16 %v666_v24, %v665_v23  ;;  %1079 = vst [vmem:[%s1423_s2 + $0x18] sm:$0xff] %v1055_v31   ;;  %v1070_v40 = vpack.c.bf16 %v1373_v38, %v673_v37  ;;  %v680_v44 = vadd.f32 %v679_v39, %v665_v23 }
 0x12c   : > { %1083 = vst [vmem:[%s1423_s2 + $0x38] sm:$0xff] %v1075_v43  }
 0x12d   : > { %1078 = vst [vmem:[%s1423_s2 + $0x10] sm:$0xff] %v1050_v26   ;;  %1082 = vst [vmem:[%s1423_s2 + $0x30] sm:$0xff] %v1070_v40   ;;  %v681_v45 = vadd.f32 %v680_v44, %v666_v24 }
 0x12f   : > { %v682_v46 = vadd.f32 %v681_v45, %v667_v27 }
 0x131   : > { %v683_v47 = vadd.f32 %v682_v46, %v668_v28 }
 0x133   : > { %v684_v48 = vadd.f32 %v683_v47, %v669_v29 }
 0x135   : > { %v685_v49 = vadd.f32 %v684_v48, %v670_v32 }
 0x137   : > { %v686_v50 = vadd.f32 %v685_v49, %v671_v33 }
 0x139   : > { %v687_v51 = vadd.f32 %v686_v50, %v1364_v34 }
 0x13b   : > { %v688_v52 = vadd.f32 %v687_v51, %v673_v37 }
 0x13d   : > { %v689_v53 = vadd.f32 %v688_v52, %v1373_v38 }
 0x13f   : > { %v690_v54 = vadd.f32 %v689_v53, %v675_v41 }
 0x141   : > { %v691_v55 = vadd.f32 %v690_v54, %v1379_v42 }
 0x143   : > { %v692_v56 = vrot.slane %v691_v55, 4 }
 0x145   : > { %v693_v57 = vadd.f32 %v692_v56, %v691_v55 }
 0x147   : > { %v694_v58 = vrot.slane %v693_v57, 2 }
 0x149   : > { %v695_v59 = vadd.f32 %v694_v58, %v693_v57 }
 0x14b   : > { %v696_v60 = vrot.slane %v695_v59, 1 }
 0x14d   : > { %v697_v61 = vadd.f32 %v696_v60, %v695_v59 }
 0x14f   : > { %v698_v62 = vmul.f32 0.0078125, %v697_v61 }
 0x151   : > { %v699_v63 = vsub.f32 %v661_v17, %v698_v62  ;;  %v700_v0 = vsub.f32 %v662_v18, %v698_v62  ;;  %832 = vst [vmem:[%s1424_s3] sm:$0xff] %v698_v62  ;;  %v701_v1 = vsub.f32 %v663_v19, %v698_v62  ;;  %v702_v2 = vsub.f32 %v664_v22, %v698_v62 }
 0x152   : > { %v703_v5 = vsub.f32 %v665_v23, %v698_v62  ;;  %v704_v7 = vsub.f32 %v666_v24, %v698_v62  ;;  %v705_v10 = vsub.f32 %v667_v27, %v698_v62  ;;  %v706_v13 = vsub.f32 %v668_v28, %v698_v62 }
 0x153   : > { %v715_v3 = vmul.f32 %v699_v63, %v699_v63  ;;  %v716_v4 = vmul.f32 %v700_v0, %v700_v0  ;;  %v717_v6 = vmul.f32 %v701_v1, %v701_v1  ;;  %v718_v8 = vmul.f32 %v702_v2, %v702_v2 }
 0x154   : > { %v719_v11 = vmul.f32 %v703_v5, %v703_v5  ;;  %v720_v14 = vmul.f32 %v704_v7, %v704_v7  ;;  %v707_v16 = vsub.f32 %v669_v29, %v698_v62  ;;  %v721_v17 = vmul.f32 %v705_v10, %v705_v10 }
 0x155   : > { %v731_v9 = vadd.f32 %v716_v4, %v715_v3  ;;  %v708_v20 = vsub.f32 %v670_v32, %v698_v62  ;;  %v722_v21 = vmul.f32 %v706_v13, %v706_v13  ;;  %v709_v22 = vsub.f32 %v671_v33, %v698_v62 }
 0x156   : > { %v723_v25 = vmul.f32 %v707_v16, %v707_v16  ;;  %v710_v23 = vsub.f32 %v1364_v34, %v698_v62  ;;  %v711_v31 = vsub.f32 %v673_v37, %v698_v62  ;;  %v712_v28 = vsub.f32 %v1373_v38, %v698_v62 }
 0x157   : > { %v732_v12 = vadd.f32 %v731_v9, %v717_v6  ;;  %v724_v24 = vmul.f32 %v708_v20, %v708_v20  ;;  %v725_v27 = vmul.f32 %v709_v22, %v709_v22  ;;  %v713_v29 = vsub.f32 %v675_v41, %v698_v62 }
 0x158   : > { %v726_v36 = vmul.f32 %v710_v23, %v710_v23  ;;  %v727_v40 = vmul.f32 %v711_v31, %v711_v31  ;;  %v714_v32 = vsub.f32 %v1379_v42, %v698_v62  ;;  %v728_v44 = vmul.f32 %v712_v28, %v712_v28 }
 0x159   : > { %v733_v15 = vadd.f32 %v732_v12, %v718_v8  ;;  %v729_v45 = vmul.f32 %v713_v29, %v713_v29 }
 0x15a   : > { %v730_v47 = vmul.f32 %v714_v32, %v714_v32 }
 0x15b   : > { %v734_v18 = vadd.f32 %v733_v15, %v719_v11 }
 0x15d   : > { %v735_v19 = vadd.f32 %v734_v18, %v720_v14 }
 0x15f   : > { %v736_v26 = vadd.f32 %v735_v19, %v721_v17 }
 0x161   : > { %v737_v30 = vadd.f32 %v736_v26, %v722_v21 }
 0x163   : > { %v738_v35 = vadd.f32 %v737_v30, %v723_v25 }
 0x165   : > { %v739_v39 = vadd.f32 %v738_v35, %v724_v24 }
 0x167   : > { %v740_v43 = vadd.f32 %v739_v39, %v725_v27 }
 0x169   : > { %v741_v33 = vadd.f32 %v740_v43, %v726_v36 }
 0x16b   : > { %v742_v46 = vadd.f32 %v741_v33, %v727_v40 }
 0x16d   : > { %v743_v34 = vadd.f32 %v742_v46, %v728_v44 }
 0x16f   : > { %v744_v48 = vadd.f32 %v743_v34, %v729_v45 }
 0x171   : > { %v745_v49 = vadd.f32 %v744_v48, %v730_v47 }
 0x173   : > { %v746_v37 = vrot.slane %v745_v49, 4 }
 0x175   : > { %v747_v50 = vadd.f32 %v746_v37, %v745_v49 }
 0x177   : > { %v748_v51 = vrot.slane %v747_v50, 2 }
 0x179   : > { %v749_v52 = vadd.f32 %v748_v51, %v747_v50 }
 0x17b   : > { %v750_v38 = vrot.slane %v749_v52, 1 }
 0x17d   : > { %v751_v53 = vadd.f32 %v750_v38, %v749_v52 }
 0x17f   : > { %833 = vst [vmem:[%s1425_s4] sm:$0xff] %v751_v53 }
 0x180 PF: > { %s15_s19 = sadd.s32 1, %s1243_s19   ;;  %s1426_s15 = smov %s1231_s16 }
 0x181   : > { %p12_p12 = scmp.ge.s32.totalorder %s15_s19, 15   ;;  %s1427_s16 = smov %s1306_s23 }
 0x182   : > { %s1428_s17 = smov %s1239_s18  ;;  %s1429_s18 = smov %s1431_s20 }
 0x183   :  { %14 = sbr.rel (!%p12_p12) target bundleno = 3 (0x3), region = 139 }

// kernel: discriminator_forward.14
= control target key start
LH: loop header
LB: loop body
LE: loop exit
PB: predicated region body
PF: predicated region fallthrough
CT: control target
= control target key end

     0   :  { %v28_v0 = vlaneseq  ;;  %s172_s0 = inlined_call_operand.vmem [shape: bf16[32,256], index: 0, kind: input, shape index: {}]   ;;  %s173_s1 = inlined_call_operand.vmem [shape: f32[1,256], index: 1, kind: input, shape index: {}]   ;;  %s174_s2 = inlined_call_operand.vmem [shape: f32[1,256], index: 2, kind: input, shape index: {}]   ;;  %s175_s3 = inlined_call_operand.vmem [shape: bf16[32,256], index: 3, kind: output, shape index: {}]  }
   0x1   :  { %v14_v1 = vld [vmem:[%s172_s0] sm:$0xff]  ;;  %v15_v3 = vld [vmem:[%s172_s0 + $0x8] sm:$0xff]  ;;  %v16_v4 = vld [vmem:[%s172_s0 + $0x10] sm:$0xff] }
   0x2   :  { %v29_v2 = vshrl.u32 %v28_v0, 7  ;;  %v17_v5 = vld [vmem:[%s172_s0 + $0x18] sm:$0xff]  ;;  %v18_v6 = vunpack.c.l.bf16 %v14_v1  ;;  %v19_v7 = vunpack.c.h.bf16 %v14_v1  ;;  %v26_v8 = vld [vmem:[%s173_s1] sm:$0x3]  ;;  %v20_v12 = vunpack.c.l.bf16 %v15_v3 }
   0x3   :  { %v46_v9 = vld [vmem:[%s174_s2] sm:$0x3]  ;;  %v21_v13 = vunpack.c.h.bf16 %v15_v3  ;;  %v22_v14 = vunpack.c.l.bf16 %v16_v4  ;;  %v23_v15 = vunpack.c.h.bf16 %v16_v4  ;;  %v24_v16 = vunpack.c.l.bf16 %v17_v5 }
   0x4   :  { %v30_v10 = vsub.s32 0, %v29_v2  ;;  %v34_v11 = vsub.s32 1, %v29_v2  ;;  %v25_v17 = vunpack.c.h.bf16 %v17_v5 }
   0x6   :  { %v31_v18 = vrot.slane %v26_v8, %v30_v10  ;;  %v35_v19 = vrot.slane %v26_v8, %v34_v11  ;;  %v51_v20 = vrot.slane %v46_v9, %v30_v10  ;;  %v55_v21 = vrot.slane %v46_v9, %v34_v11 }
   0x8   :  { %v38_v22 = vmul.f32 %v31_v18, %v18_v6  ;;  %v39_v23 = vmul.f32 %v35_v19, %v19_v7  ;;  %v40_v24 = vmul.f32 %v31_v18, %v20_v12  ;;  %v41_v25 = vmul.f32 %v35_v19, %v21_v13 }
   0x9   :  { %v42_v26 = vmul.f32 %v31_v18, %v22_v14  ;;  %v43_v27 = vmul.f32 %v35_v19, %v23_v15  ;;  %v44_v28 = vmul.f32 %v31_v18, %v24_v16  ;;  %v45_v29 = vmul.f32 %v35_v19, %v25_v17 }
   0xa   :  { %v58_v30 = vadd.f32 %v51_v20, %v38_v22  ;;  %v59_v31 = vadd.f32 %v55_v21, %v39_v23  ;;  %v60_v32 = vadd.f32 %v51_v20, %v40_v24  ;;  %v61_v33 = vadd.f32 %v55_v21, %v41_v25 }
   0xb   :  { %v62_v34 = vadd.f32 %v51_v20, %v42_v26  ;;  %v63_v35 = vadd.f32 %v55_v21, %v43_v27  ;;  %v64_v36 = vadd.f32 %v51_v20, %v44_v28  ;;  %v65_v37 = vadd.f32 %v55_v21, %v45_v29 }
   0xc   :  { %v66_v38 = vmul.f32 0.1, %v58_v30  ;;  %v67_v39 = vmul.f32 0.1, %v59_v31  ;;  %v68_v40 = vmul.f32 0.1, %v60_v32 }
   0xd   :  { %v69_v41 = vmul.f32 0.1, %v61_v33  ;;  %v70_v42 = vmul.f32 0.1, %v62_v34  ;;  %v71_v43 = vmul.f32 0.1, %v63_v35 }
   0xe   :  { %v74_v44 = vmax.f32 %v58_v30, %v66_v38  ;;  %v75_v45 = vmax.f32 %v59_v31, %v67_v39  ;;  %v76_v46 = vmax.f32 %v60_v32, %v68_v40  ;;  %v72_v47 = vmul.f32 0.1, %v64_v36 }
   0xf   :  { %v77_v48 = vmax.f32 %v61_v33, %v69_v41  ;;  %v78_v49 = vmax.f32 %v62_v34, %v70_v42  ;;  %v79_v50 = vmax.f32 %v63_v35, %v71_v43  ;;  %v73_v51 = vmul.f32 0.1, %v65_v37 }
  0x10   :  { %v118_v52 = vpack.c.bf16 %v75_v45, %v74_v44  ;;  %v80_v53 = vmax.f32 %v64_v36, %v72_v47 }
  0x11   :  { %v119_v54 = vpack.c.bf16 %v77_v48, %v76_v46  ;;  %v120_v55 = vpack.c.bf16 %v79_v50, %v78_v49  ;;  %v81_v56 = vmax.f32 %v65_v37, %v73_v51 }
  0x12   :  { %106 = vst [vmem:[%s175_s3] sm:$0xff] %v118_v52 }
  0x13   :  { %107 = vst [vmem:[%s175_s3 + $0x8] sm:$0xff] %v119_v54  ;;  %108 = vst [vmem:[%s175_s3 + $0x10] sm:$0xff] %v120_v55  ;;  %v121_v57 = vpack.c.bf16 %v81_v56, %v80_v53 }
  0x15   :  { %109 = vst [vmem:[%s175_s3 + $0x18] sm:$0xff] %v121_v57 }

// kernel: discriminator_forward.13
= control target key start
LH: loop header
LB: loop body
LE: loop exit
PB: predicated region body
PF: predicated region fallthrough
CT: control target
= control target key end

     0   :  { %s1693_s15 = smov 0   ;;  %s1695_s16 = smov 0   ;;  %s1878_s0 = inlined_call_operand.vmem [shape: bf16[32,3200], index: 0, kind: input, shape index: {}]   ;;  %s1879_s1 = inlined_call_operand.vmem [shape: bf16[3200,256], index: 1, kind: input, shape index: {}]   ;;  %s1880_s2 = inlined_call_operand.vmem [shape: bf16[32,256], index: 2, kind: output, shape index: {0}]   ;;  %s1881_s3 = inlined_call_operand.vmem [shape: f32[1,8,256], index: 3, kind: output, shape index: {1}]   ;;  %s1882_s4 = inlined_call_operand.vmem [shape: f32[1,8,256], index: 4, kind: output, shape index: {2}]  }
   0x1   :  { %s1697_s17 = smov 0   ;;  %s1699_s18 = smov 0  }
   0x2   :  { %s1701_s19 = smov 0  }
   0x3 LB: > { %s24_s20 = sadd.s32 1, %s1660_s18  ;;  %p43_p1 = scmp.ne.s32.totalorder %s1652_s16, %s1648_s15  ;;  %s1664_s19 = sphi %s1701_s19, %s15_s19   ;;  %s1660_s18 = sphi %s1699_s18, %s1886_s18   ;;  %s1656_s17 = sphi %s1697_s17, %s1885_s17   ;;  %s1652_s16 = sphi %s1695_s16, %s1884_s16   ;;  %s1648_s15 = sphi %s1693_s15, %s1883_s15  }
   0x4   : > { %p25_p0 = scmp.ge.s32.totalorder %s24_s20, 5  ;;  %p44_p2 = scmp.eq.s32.totalorder %s1664_s19, 0 }
   0x5   : > { %s36_s22 = sadd.s32 1, %s1652_s16  ;;  %p1311_p5 = scmp.ge.s32.totalorder %s1664_s19, 5 }
   0x6   : > { %s1888_s20 = smov (%p25_p0, %s24_s20), 0  ;;  %p45_p3 = por %p44_p2, %p43_p1 }
   0x7   : > { %s32_s21 = ssub.s32 %s1660_s18, %s1888_s20  ;;  %173 = sbr.rel (%p1311_p5) target bundleno = 23 (0x17), region = 16 }
   0x8   : > { %p34_p4 = scmp.eq.s32.totalorder %s32_s21, 0 }
   0xa   : > { %s1728_s23 = scalar_select %p34_p4, %s1652_s16, %s36_s22  }
   0xc   : > { %176 = sbr.rel (!%p45_p3) target bundleno = 23 (0x17), region = 20  ;;  %s178_s24 = sand.u32 (%p45_p3), 1, %s1652_s16  }
   0xd   : > { %s1426_s25 = smul.u32 (%p45_p3), 20, %s1660_s18 }
   0xe   : > { %s1448_s26 = smul.u32 (%p45_p3), 80, %s178_s24 }
   0xf   : > { %s186_s29 = scalar_lea.vmem (%p45_p3), %s1878_s0, %s1426_s25 }
  0x10   : > { %v201_v0 = vld [vmem:[%s186_s29] sm:$0xff] (%p45_p3)  ;;  %v203_v1 = vld [vmem:[%s186_s29 + $0x8] sm:$0xff] (%p45_p3)  ;;  %s180_s30 = scalar_lea.vmem (%p45_p3), [#allocation3], %s1448_s26  ;;  %v211_v5 = vld [vmem:[%s186_s29 + $0xd0] sm:$0xff] (%p45_p3) }
  0x11   : > { %v205_v2 = vld [vmem:[%s186_s29 + $0x64] sm:$0xff]  ;;  %202 = vst [vmem:[%s180_s30] sm:$0xff] %v201_v0  ;;  %204 = vst [vmem:[%s180_s30 + $0x8] sm:$0xff] %v203_v1  ;;  %v207_v3 = vld [vmem:[%s186_s29 + $0x6c] sm:$0xff] }
  0x12   : > { %206 = vst [vmem:[%s180_s30 + $0x14] sm:$0xff] %v205_v2  ;;  %v209_v4 = vld [vmem:[%s186_s29 + $0xc8] sm:$0xff]  ;;  %208 = vst [vmem:[%s180_s30 + $0x1c] sm:$0xff] %v207_v3  ;;  %v215_v7 = vld [vmem:[%s186_s29 + $0x134] sm:$0xff] }
  0x13   : > { %210 = vst [vmem:[%s180_s30 + $0x28] sm:$0xff] %v209_v4  ;;  %212 = vst [vmem:[%s180_s30 + $0x30] sm:$0xff] %v211_v5  ;;  %v213_v6 = vld [vmem:[%s186_s29 + $0x12c] sm:$0xff]  ;;  %v1315_v9 = vld [vmem:[%s186_s29 + $0x74] sm:$0xf] }
  0x14   : > { %v1313_v8 = vld [vmem:[%s186_s29 + $0x10] sm:$0xf]  ;;  %214 = vst [vmem:[%s180_s30 + $0x3c] sm:$0xff] %v213_v6  ;;  %216 = vst [vmem:[%s180_s30 + $0x44] sm:$0xff] %v215_v7  ;;  %v1317_v10 = vld [vmem:[%s186_s29 + $0xd8] sm:$0xf] }
  0x15   : > { %1314 = vst [vmem:[%s180_s30 + $0x10] sm:$0xf] %v1313_v8  ;;  %v1319_v11 = vld [vmem:[%s186_s29 + $0x13c] sm:$0xf]  ;;  %1316 = vst [vmem:[%s180_s30 + $0x24] sm:$0xf] %v1315_v9 }
  0x16   : > { %1318 = vst [vmem:[%s180_s30 + $0x38] sm:$0xf] %v1317_v10  ;;  %1320 = vst [vmem:[%s180_s30 + $0x4c] sm:$0xf] %v1319_v11 }
  0x17 PF: > { %p1321_p6 = scmp.ge.s32.totalorder %s1664_s19, 1  ;;  %p247_p7 = scmp.lt.s32.totalorder %s1664_s19, 6 }
  0x19   : > { %p248_p8 = pnand %p1321_p6, %p247_p7 }
  0x1a   : > { %s254_s5 = sand.u32 (!%p248_p8), 1, %s1648_s15   ;;  %s298_s6 = smul.u32 (!%p248_p8), 80, %s1656_s17 }
  0x1b   : > { %251 = sbr.rel (%p248_p8) target bundleno = 393 (0x189), region = 50  ;;  %p1324_p10 = scmp.ne.s32.totalorder (!%p248_p8), %s1656_s17, 0 }
  0x1c   : > { %s1449_s7 = smul.u32 (!%p248_p8), 80, %s254_s5  ;;  %p299_p9 = scmp.lt.s32.totalorder (!%p248_p8), %s298_s6, 399 }
  0x1e   : > { %s1745_s12 = scalar_lea.vmem (!%p248_p8), [#allocation3], %s1449_s7 }
  0x20   : > { %s1890_s6 = smov (!%p299_p9, %s298_s6), 399  ;;  %326 = sbr.rel (%p1324_p10) target bundleno = 42 (0x2a), region = 58 }
  0x21   : > { %s1427_s8 = sshll.u32 %s1890_s6, 3 }
  0x22   : > { %s1743_s11 = scalar_lea.vmem %s1879_s1, %s1427_s8 }
  0x25   : > { %v1666_v12 = vmov 0.0  }
  0x26   : > { %327 = vst [vmem:[#allocation2 + $0x30] sm:$0xff] %v1666_v12  ;;  %328 = vst [vmem:[#allocation2] sm:$0xff] %v1666_v12 }
  0x27   : > { %329 = vst [vmem:[#allocation2 + $0x18] sm:$0xff] %v1666_v12  ;;  %330 = vst [vmem:[#allocation2 + $0x10] sm:$0xff] %v1666_v12 }
  0x28   : > { %331 = vst [vmem:[#allocation2 + $0x8] sm:$0xff] %v1666_v12  ;;  %332 = vst [vmem:[#allocation2 + $0x20] sm:$0xff] %v1666_v12 }
  0x29   : > { %333 = vst [vmem:[#allocation2 + $0x28] sm:$0xff] %v1666_v12  ;;  %334 = vst [vmem:[#allocation2 + $0x38] sm:$0xff] %v1666_v12 }
  0x2a PF: > { %v1492_v13 = vld [vmem:[%s1743_s11 + $0x74] ss:$8 sps:$4 sm:$0xff]   ;;  %v1496_v15 = vld [vmem:[%s1743_s11 + $0x70] ss:$8 sps:$4 sm:$0xff]   ;;  %v1498_v17 = vld [vmem:[%s1743_s11 + $0x64] ss:$8 sps:$4 sm:$0xff]  }
  0x2b   : > { %v1494_v14 = vld [vmem:[%s1743_s11 + $0x174] ss:$8 sps:$4 sm:$0xff]   ;;  %887 = vmatprep.subr.bf16.mxu0 %v1492_v13  ;;  %v1497_v16 = vld [vmem:[%s1743_s11 + $0x170] ss:$8 sps:$4 sm:$0xff]   ;;  %v1500_v18 = vld [vmem:[%s1743_s11 + $0x164] ss:$8 sps:$4 sm:$0xff]  }
  0x2c   : > { %940 = vmatprep.subr.bf16.mxu1 %v1494_v14  ;;  %888 = vmatpush1.bf16.msra.mxu0 %v1496_v15  ;;  %v1502_v19 = vld [vmem:[%s1743_s11 + $0x60] ss:$8 sps:$4 sm:$0xff]   ;;  %v1504_v21 = vld [vmem:[%s1743_s11 + $0x54] ss:$8 sps:$4 sm:$0xff]   ;;  %v1508_v23 = vld [vmem:[%s1743_s11 + $0x50] ss:$8 sps:$4 sm:$0xff]  }
  0x2d   : > { %941 = vmatpush1.bf16.msra.mxu1 %v1497_v16  ;;  %889 = vmatprep.subr.bf16.mxu0 %v1498_v17  ;;  %v1503_v20 = vld [vmem:[%s1743_s11 + $0x160] ss:$8 sps:$4 sm:$0xff]   ;;  %v1506_v22 = vld [vmem:[%s1743_s11 + $0x154] ss:$8 sps:$4 sm:$0xff]   ;;  %v1509_v24 = vld [vmem:[%s1743_s11 + $0x150] ss:$8 sps:$4 sm:$0xff]  }
  0x2e   : > { %942 = vmatprep.subr.bf16.mxu1 %v1500_v18  ;;  %v1510_v25 = vld [vmem:[%s1743_s11 + $0x44] ss:$8 sps:$4 sm:$0xff]   ;;  %v1514_v27 = vld [vmem:[%s1743_s11 + $0x40] ss:$8 sps:$4 sm:$0xff]   ;;  %v1516_v29 = vld [vmem:[%s1743_s11 + $0x34] ss:$8 sps:$4 sm:$0xff]  }
  0x2f   : > { %v1512_v26 = vld [vmem:[%s1743_s11 + $0x144] ss:$8 sps:$4 sm:$0xff]   ;;  %v1515_v28 = vld [vmem:[%s1743_s11 + $0x140] ss:$8 sps:$4 sm:$0xff]   ;;  %v1518_v30 = vld [vmem:[%s1743_s11 + $0x134] ss:$8 sps:$4 sm:$0xff]  }
  0x30   : > { %890 = vmatpush1.bf16.msra.mxu0 %v1502_v19  ;;  %v1520_v31 = vld [vmem:[%s1743_s11 + $0x30] ss:$8 sps:$4 sm:$0xff]   ;;  %v1522_v33 = vld [vmem:[%s1743_s11 + $0x24] ss:$8 sps:$4 sm:$0xff]   ;;  %v1526_v35 = vld [vmem:[%s1743_s11 + $0x20] ss:$8 sps:$4 sm:$0xff]  }
  0x31   : > { %943 = vmatpush1.bf16.msra.mxu1 %v1503_v20  ;;  %891 = vmatprep.subr.bf16.mxu0 %v1504_v21  ;;  %v1521_v32 = vld [vmem:[%s1743_s11 + $0x130] ss:$8 sps:$4 sm:$0xff]   ;;  %v1524_v34 = vld [vmem:[%s1743_s11 + $0x124] ss:$8 sps:$4 sm:$0xff]   ;;  %v1527_v36 = vld [vmem:[%s1743_s11 + $0x120] ss:$8 sps:$4 sm:$0xff]  }
  0x32   : > { %944 = vmatprep.subr.bf16.mxu1 %v1506_v22  ;;  %v1528_v37 = vld [vmem:[%s1743_s11 + $0x14] ss:$8 sps:$4 sm:$0xff]   ;;  %v1532_v39 = vld [vmem:[%s1743_s11 + $0x10] ss:$8 sps:$4 sm:$0xff]   ;;  %v1534_v41 = vld [vmem:[%s1743_s11 + $0x4] ss:$8 sps:$4 sm:$0xff]  }
  0x33   : > { %v1530_v38 = vld [vmem:[%s1743_s11 + $0x114] ss:$8 sps:$4 sm:$0xff]   ;;  %v1533_v40 = vld [vmem:[%s1743_s11 + $0x110] ss:$8 sps:$4 sm:$0xff]   ;;  %v1536_v42 = vld [vmem:[%s1743_s11 + $0x104] ss:$8 sps:$4 sm:$0xff]  }
  0x34   : > { %892 = vmatpush1.bf16.msra.mxu0 %v1508_v23  ;;  %v1538_v43 = vld [vmem:[%s1743_s11] ss:$8 sps:$4 sm:$0xff]   ;;  %v1540_v45 = vld [vmem:[%s1743_s11 + $0xf4] ss:$8 sps:$4 sm:$0xff]   ;;  %v1544_v47 = vld [vmem:[%s1743_s11 + $0xf0] ss:$8 sps:$4 sm:$0xff]  }
  0x35   : > { %945 = vmatpush1.bf16.msra.mxu1 %v1509_v24  ;;  %893 = vmatprep.subr.bf16.mxu0 %v1510_v25  ;;  %v1539_v44 = vld [vmem:[%s1743_s11 + $0x100] ss:$8 sps:$4 sm:$0xff]   ;;  %v1542_v46 = vld [vmem:[%s1743_s11 + $0x1f4] ss:$8 sps:$4 sm:$0xff]   ;;  %v1545_v48 = vld [vmem:[%s1743_s11 + $0x1f0] ss:$8 sps:$4 sm:$0xff]  }
  0x36   : > { %946 = vmatprep.subr.bf16.mxu1 %v1512_v26  ;;  %v1546_v49 = vld [vmem:[%s1743_s11 + $0xe4] ss:$8 sps:$4 sm:$0xff]   ;;  %v1550_v51 = vld [vmem:[%s1743_s11 + $0xe0] ss:$8 sps:$4 sm:$0xff]   ;;  %v1552_v53 = vld [vmem:[%s1743_s11 + $0xd4] ss:$8 sps:$4 sm:$0xff]  }
  0x37   : > { %v1548_v50 = vld [vmem:[%s1743_s11 + $0x1e4] ss:$8 sps:$4 sm:$0xff]   ;;  %v1551_v52 = vld [vmem:[%s1743_s11 + $0x1e0] ss:$8 sps:$4 sm:$0xff]   ;;  %v1554_v54 = vld [vmem:[%s1743_s11 + $0x1d4] ss:$8 sps:$4 sm:$0xff]  }
  0x38   : > { %894 = vmatpush1.bf16.msra.mxu0 %v1514_v27  ;;  %v1556_v55 = vld [vmem:[%s1743_s11 + $0xd0] ss:$8 sps:$4 sm:$0xff]   ;;  %v1558_v57 = vld [vmem:[%s1743_s11 + $0xc4] ss:$8 sps:$4 sm:$0xff]   ;;  %v1562_v59 = vld [vmem:[%s1743_s11 + $0xc0] ss:$8 sps:$4 sm:$0xff]  }
  0x39   : > { %947 = vmatpush1.bf16.msra.mxu1 %v1515_v28  ;;  %895 = vmatprep.subr.bf16.mxu0 %v1516_v29  ;;  %v1557_v56 = vld [vmem:[%s1743_s11 + $0x1d0] ss:$8 sps:$4 sm:$0xff]   ;;  %v1560_v58 = vld [vmem:[%s1743_s11 + $0x1c4] ss:$8 sps:$4 sm:$0xff]   ;;  %v1563_v60 = vld [vmem:[%s1743_s11 + $0x1c0] ss:$8 sps:$4 sm:$0xff]  }
  0x3a   : > { %948 = vmatprep.subr.bf16.mxu1 %v1518_v30  ;;  %v1564_v61 = vld [vmem:[%s1743_s11 + $0xb4] ss:$8 sps:$4 sm:$0xff]   ;;  %v1568_v1 = vld [vmem:[%s1743_s11 + $0xb0] ss:$8 sps:$4 sm:$0xff]   ;;  %v1570_v3 = vld [vmem:[%s1743_s11 + $0xa4] ss:$8 sps:$4 sm:$0xff]  }
  0x3b   : > { %v1590_v62 = vld [vmem:[%s1745_s12 + $0x4] ss:$20 sps:$4 sm:$0xff]   ;;  %v1593_v0 = vld [vmem:[%s1745_s12 + $0xc] ss:$20 sps:$4 sm:$0xff]   ;;  %v1591_v17 = vld [vmem:[%s1745_s12 + $0x8] ss:$20 sps:$4 sm:$0xff]  }
  0x3c   : > { %896 = vmatpush1.bf16.msra.mxu0 %v1520_v31  ;;  %v1566_v63 = vld [vmem:[%s1743_s11 + $0x1b4] ss:$8 sps:$4 sm:$0xff]   ;;  %919 = vmatprep.mubr.bf16.mxu0 %v1590_v62  ;;  %v1569_v2 = vld [vmem:[%s1743_s11 + $0x1b0] ss:$8 sps:$4 sm:$0xff]   ;;  %v1572_v4 = vld [vmem:[%s1743_s11 + $0x1a4] ss:$8 sps:$4 sm:$0xff]  }
  0x3d   : > { %949 = vmatpush1.bf16.msra.mxu1 %v1521_v32  ;;  %897 = vmatprep.subr.bf16.mxu0 %v1522_v33  ;;  %v1574_v5 = vld [vmem:[%s1743_s11 + $0xa0] ss:$8 sps:$4 sm:$0xff]   ;;  %v1576_v7 = vld [vmem:[%s1743_s11 + $0x94] ss:$8 sps:$4 sm:$0xff]   ;;  %v1580_v9 = vld [vmem:[%s1743_s11 + $0x90] ss:$8 sps:$4 sm:$0xff]  }
  0x3e   : > { %950 = vmatprep.subr.bf16.mxu1 %v1524_v34  ;;  %972 = vmatprep.mubr.bf16.mxu1 %v1593_v0  ;;  %v1575_v6 = vld [vmem:[%s1743_s11 + $0x1a0] ss:$8 sps:$4 sm:$0xff]   ;;  %v1578_v8 = vld [vmem:[%s1743_s11 + $0x194] ss:$8 sps:$4 sm:$0xff]   ;;  %v1581_v10 = vld [vmem:[%s1743_s11 + $0x190] ss:$8 sps:$4 sm:$0xff]  }
  0x3f   : > { %v1582_v11 = vld [vmem:[%s1743_s11 + $0x84] ss:$8 sps:$4 sm:$0xff]   ;;  %v1586_v13 = vld [vmem:[%s1743_s11 + $0x80] ss:$8 sps:$4 sm:$0xff]   ;;  %v1596_v15 = vld [vmem:[%s1743_s11 + $0x274] ss:$8 sps:$4 sm:$0xff]  }
  0x40   : > { %898 = vmatpush1.bf16.msra.mxu0 %v1526_v35  ;;  %v1584_v12 = vld [vmem:[%s1743_s11 + $0x184] ss:$8 sps:$4 sm:$0xff]   ;;  %v1587_v14 = vld [vmem:[%s1743_s11 + $0x180] ss:$8 sps:$4 sm:$0xff]   ;;  %v1594_v18 = vld [vmem:[%s1743_s11 + $0x270] ss:$8 sps:$4 sm:$0xff]  }
  0x41   : > { %951 = vmatpush1.bf16.msra.mxu1 %v1527_v36  ;;  %899 = vmatprep.subr.bf16.mxu0 %v1528_v37  ;;  %v1588_v16 = vld [vmem:[%s1745_s12] ss:$20 sps:$4 sm:$0xff]   ;;  %v1613_v24 = vld [vmem:[%s1745_s12 + $0x28] ss:$20 sps:$4 sm:$0xff]   ;;  %v1614_v25 = vld [vmem:[%s1745_s12 + $0x30] ss:$20 sps:$4 sm:$0xff]  }
  0x42   : > { %952 = vmatprep.subr.bf16.mxu1 %v1530_v38  ;;  %v1599_v19 = vld [vmem:[%s1743_s11 + $0x264] ss:$8 sps:$4 sm:$0xff]   ;;  %v1597_v22 = vld [vmem:[%s1743_s11 + $0x260] ss:$8 sps:$4 sm:$0xff]   ;;  %v1602_v23 = vld [vmem:[%s1743_s11 + $0x254] ss:$8 sps:$4 sm:$0xff]  }
  0x43   : > { %v1609_v20 = vld [vmem:[%s1745_s12 + $0x2c] ss:$20 sps:$4 sm:$0xff]   ;;  %v1611_v21 = vld [vmem:[%s1745_s12 + $0x34] ss:$20 sps:$4 sm:$0xff]   ;;  %v1667_v30 = vmov 0   ;;  %p1415_p11 = scmp.ne.s32.totalorder %s1656_s17, 4 }
  0x44   : > { %900 = vmatpush1.bf16.msra.mxu0 %v1532_v39  ;;  %v1600_v26 = vld [vmem:[%s1743_s11 + $0x250] ss:$8 sps:$4 sm:$0xff]   ;;  %v1605_v27 = vld [vmem:[%s1743_s11 + $0x244] ss:$8 sps:$4 sm:$0xff]   ;;  %v1603_v28 = vld [vmem:[%s1743_s11 + $0x240] ss:$8 sps:$4 sm:$0xff]  }
  0x45   : > { %953 = vmatpush1.bf16.msra.mxu1 %v1533_v40  ;;  %901 = vmatprep.subr.bf16.mxu0 %v1534_v41  ;;  %v1608_v29 = vld [vmem:[%s1743_s11 + $0x234] ss:$8 sps:$4 sm:$0xff]   ;;  %v1606_v31 = vld [vmem:[%s1743_s11 + $0x230] ss:$8 sps:$4 sm:$0xff]   ;;  %v1617_v32 = vld [vmem:[%s1743_s11 + $0x224] ss:$8 sps:$4 sm:$0xff]  }
  0x46   : > { %954 = vmatprep.subr.bf16.mxu1 %v1536_v42  ;;  %v1615_v33 = vld [vmem:[%s1743_s11 + $0x220] ss:$8 sps:$4 sm:$0xff]   ;;  %v1620_v34 = vld [vmem:[%s1743_s11 + $0x214] ss:$8 sps:$4 sm:$0xff]   ;;  %v1618_v35 = vld [vmem:[%s1743_s11 + $0x210] ss:$8 sps:$4 sm:$0xff]  }
  0x47   : > { %v1623_v36 = vld [vmem:[%s1743_s11 + $0x204] ss:$8 sps:$4 sm:$0xff]   ;;  %v1621_v37 = vld [vmem:[%s1743_s11 + $0x200] ss:$8 sps:$4 sm:$0xff]  }
  0x48   : > { %902 = vmatpush1.bf16.msra.mxu0 %v1538_v43  ;;  %v1624_v38 = vld [vmem:[%s1745_s12 + $0x10] ss:$20 sps:$4 sm:$0xff]   ;;  %v1625_v39 = vld [vmem:[%s1745_s12 + $0x38] ss:$20 sps:$4 sm:$0xff]  }
  0x49   : > { %955 = vmatpush1.bf16.msra.mxu1 %v1539_v44  ;;  %903 = vmatprep.subr.bf16.mxu0 %v1540_v45 }
  0x4a   : > { %956 = vmatprep.subr.bf16.mxu1 %v1542_v46 }
  0x4c   : > { %904 = vmatpush2.bf16.msra.mxu0 %v1544_v47 }
  0x4d   : > { %957 = vmatpush2.bf16.msra.mxu1 %v1545_v48  ;;  %905 = vmatprep.subr.bf16.mxu0 %v1546_v49 }
  0x4e   : > { %958 = vmatprep.subr.bf16.mxu1 %v1548_v50 }
  0x50   : > { %906 = vmatpush2.bf16.msra.mxu0 %v1550_v51 }
  0x51   : > { %959 = vmatpush2.bf16.msra.mxu1 %v1551_v52  ;;  %907 = vmatprep.subr.bf16.mxu0 %v1552_v53 }
  0x52   : > { %960 = vmatprep.subr.bf16.mxu1 %v1554_v54 }
  0x54   : > { %908 = vmatpush2.bf16.msra.mxu0 %v1556_v55 }
  0x55   : > { %961 = vmatpush2.bf16.msra.mxu1 %v1557_v56  ;;  %909 = vmatprep.subr.bf16.mxu0 %v1558_v57 }
  0x56   : > { %962 = vmatprep.subr.bf16.mxu1 %v1560_v58  ;;  %v335_v58 = vld [vmem:[#allocation2 + $0x30] sm:$0xff] }
  0x58   : > { %910 = vmatpush2.bf16.msra.mxu0 %v1562_v59 }
  0x59   : > { %963 = vmatpush2.bf16.msra.mxu1 %v1563_v60  ;;  %911 = vmatprep.subr.bf16.mxu0 %v1564_v61  ;;  %v339_v60 = vld [vmem:[#allocation2 + $0x8] sm:$0xff] }
  0x5a   : > { %964 = vmatprep.subr.bf16.mxu1 %v1566_v63 }
  0x5c   : > { %912 = vmatpush2.bf16.msra.mxu0 %v1568_v1 }
  0x5d   : > { %965 = vmatpush2.bf16.msra.mxu1 %v1569_v2  ;;  %913 = vmatprep.subr.bf16.mxu0 %v1570_v3 }
  0x5e   : > { %966 = vmatprep.subr.bf16.mxu1 %v1572_v4  ;;  %v336_v4 = vld [vmem:[#allocation2] sm:$0xff] }
  0x60   : > { %914 = vmatpush2.bf16.msra.mxu0 %v1574_v5 }
  0x61   : > { %967 = vmatpush2.bf16.msra.mxu1 %v1575_v6  ;;  %915 = vmatprep.subr.bf16.mxu0 %v1576_v7  ;;  %v340_v6 = vld [vmem:[#allocation2 + $0x20] sm:$0xff] }
  0x62   : > { %968 = vmatprep.subr.bf16.mxu1 %v1578_v8 }
  0x64   : > { %916 = vmatpush2.bf16.msra.mxu0 %v1580_v9 }
  0x65   : > { %969 = vmatpush2.bf16.msra.mxu1 %v1581_v10  ;;  %917 = vmatprep.subr.bf16.mxu0 %v1582_v11 }
  0x66   : > { %970 = vmatprep.subr.bf16.mxu1 %v1584_v12 }
  0x68   : > { %918 = vmatpush2.bf16.msra.mxu0 %v1586_v13 }
  0x69   : > { %971 = vmatpush2.bf16.msra.mxu1 %v1587_v14  ;;  %993 = vmatprep.subr.bf16.mxu0 %v1596_v15  ;;  %v337_v14 = vld [vmem:[#allocation2 + $0x18] sm:$0xff] }
  0x6a   : > { %1432 = vmatprep.subr.bf16.mxu1 %v1596_v15 }
  0x6b   : > { %920 = vmatmul.mubr.bf16.vlgmr.msra.gmra.mxu0 %v1588_v16  ;;  %v341_v16 = vld [vmem:[#allocation2 + $0x28] sm:$0xff] }
  0x6c   : > { %973 = vmatmul.mubr.bf16.vlgmr.msra.gmra.mxu1 %v1591_v17  ;;  %994 = vmatpush1.bf16.msra.mxu0 %v1594_v18 }
  0x6d   : > { %1440 = vmatpush1.bf16.msra.mxu1 %v1594_v18  ;;  %995 = vmatprep.subr.bf16.mxu0 %v1599_v19 }
  0x6e   : > { %1433 = vmatprep.subr.bf16.mxu1 %v1599_v19  ;;  %929 = vmatprep.mubr.bf16.mxu0 %v1609_v20 }
  0x6f   : > { %982 = vmatprep.mubr.bf16.mxu1 %v1611_v21 }
  0x70   : > { %996 = vmatpush1.bf16.msra.mxu0 %v1597_v22 }
  0x71   : > { %1441 = vmatpush1.bf16.msra.mxu1 %v1597_v22  ;;  %997 = vmatprep.subr.bf16.mxu0 %v1602_v23  ;;  %v338_v22 = vld [vmem:[#allocation2 + $0x10] sm:$0xff] }
  0x72   : > { %1434 = vmatprep.subr.bf16.mxu1 %v1602_v23 }
  0x73   : > { %930 = vmatmul.mubr.bf16.gmra.mxu0 %v1613_v24  ;;  %v342_v24 = vld [vmem:[#allocation2 + $0x38] sm:$0xff] }
  0x74   : > { %983 = vmatmul.mubr.bf16.gmra.mxu1 %v1614_v25  ;;  %998 = vmatpush1.bf16.msra.mxu0 %v1600_v26 }
  0x75   : > { %1442 = vmatpush1.bf16.msra.mxu1 %v1600_v26  ;;  %999 = vmatprep.subr.bf16.mxu0 %v1605_v27 }
  0x76   : > { %1435 = vmatprep.subr.bf16.mxu1 %v1605_v27  ;;  %1025 = vmatprep.mubr.bf16.mxu0 %v1667_v30 }
  0x77   : > { %1035 = vmatprep.mubr.bf16.mxu1 %v1667_v30 }
  0x78   : > { %1000 = vmatpush1.bf16.msra.mxu0 %v1603_v28 }
  0x79   : > { %1443 = vmatpush1.bf16.msra.mxu1 %v1603_v28  ;;  %1001 = vmatprep.subr.bf16.mxu0 %v1608_v29 }
  0x7a   : > { %1436 = vmatprep.subr.bf16.mxu1 %v1608_v29 }
  0x7c   : > { %1002 = vmatpush1.bf16.msra.mxu0 %v1606_v31 }
  0x7d   : > { %1444 = vmatpush1.bf16.msra.mxu1 %v1606_v31  ;;  %1003 = vmatprep.subr.bf16.mxu0 %v1617_v32 }
  0x7e   : > { %1437 = vmatprep.subr.bf16.mxu1 %v1617_v32 }
  0x80   : > { %1004 = vmatpush1.bf16.msra.mxu0 %v1615_v33 }
  0x81   : > { %1445 = vmatpush1.bf16.msra.mxu1 %v1615_v33  ;;  %1005 = vmatprep.subr.bf16.mxu0 %v1620_v34 }
  0x82   : > { %1438 = vmatprep.subr.bf16.mxu1 %v1620_v34 }
  0x84   : > { %1006 = vmatpush1.bf16.msra.mxu0 %v1618_v35 }
  0x85   : > { %1446 = vmatpush1.bf16.msra.mxu1 %v1618_v35  ;;  %1007 = vmatprep.subr.bf16.mxu0 %v1623_v36 }
  0x86   : > { %1439 = vmatprep.subr.bf16.mxu1 %v1623_v36 }
  0x88   : > { %1008 = vmatpush1.bf16.msra.mxu0 %v1621_v37 }
  0x89   : > { %1447 = vmatpush1.bf16.msra.mxu1 %v1621_v37 }
  0x8b   : > { %1026 = vmatmul.mubr.bf16.vlgmr.msra.gmra.mxu0 %v1624_v38 }
  0x8c   : > { %1036 = vmatmul.mubr.bf16.vlgmr.msra.gmra.mxu1 %v1625_v39 }
 0x12b   : > { %v921_v40 = vpop.f32.mrf.mxu0 }
 0x12c   : > { %v974_v41 = vpop.f32.mrf.mxu1 }
 0x12d   : > { %v923_v42 = vpop.f32.mrf.mxu0  ;;  %v975_v56 = vadd.f32 %v974_v41, %v921_v40 }
 0x12e   : > { %v976_v43 = vpop.f32.mrf.mxu1 }
 0x12f   : > { %v925_v44 = vpop.f32.mrf.mxu0  ;;  %v977_v62 = vadd.f32 %v976_v43, %v923_v42 }
 0x130   : > { %v978_v45 = vpop.f32.mrf.mxu1 }
 0x131   : > { %v927_v46 = vpop.f32.mrf.mxu0  ;;  %v979_v2 = vadd.f32 %v978_v45, %v925_v44 }
 0x132   : > { %v980_v47 = vpop.f32.mrf.mxu1 }
 0x133   : > { %v931_v48 = vpop.f32.mrf.mxu0  ;;  %v981_v12 = vadd.f32 %v980_v47, %v927_v46 }
 0x134   : > { %v984_v49 = vpop.f32.mrf.mxu1 }
 0x135   : > { %v933_v50 = vpop.f32.mrf.mxu0  ;;  %v985_v57 = vadd.f32 %v984_v49, %v931_v48 }
 0x136   : > { %v986_v51 = vpop.f32.mrf.mxu1 }
 0x137   : > { %v935_v52 = vpop.f32.mrf.mxu0  ;;  %v987_v63 = vadd.f32 %v986_v51, %v933_v50 }
 0x138   : > { %v988_v53 = vpop.f32.mrf.mxu1 }
 0x139   : > { %v937_v54 = vpop.f32.mrf.mxu0  ;;  %v989_v3 = vadd.f32 %v988_v53, %v935_v52 }
 0x13a   : > { %v990_v55 = vpop.f32.mrf.mxu1 }
 0x13b   : > { %v991_v13 = vadd.f32 %v990_v55, %v937_v54 }
 0x14b   : > { %v1027_v59 = vpop.f32.mrf.mxu0 }
 0x14c   : > { %v1037_v61 = vpop.f32.mrf.mxu1  ;;  %v1028_v0 = vadd.f32 %v1027_v59, %v975_v56 }
 0x14d   : > { %v1038_v1 = vadd.f32 %v1037_v61, %v985_v57  ;;  %v1029_v5 = vpop.f32.mrf.mxu0 }
 0x14e   : > { %v1039_v7 = vpop.f32.mrf.mxu1  ;;  %v1046_v8 = vadd.f32 %v1028_v0, %v335_v58  ;;  %v1030_v10 = vadd.f32 %v1029_v5, %v977_v62 }
 0x14f   : > { %v1050_v9 = vadd.f32 %v1038_v1, %v339_v60  ;;  %v1040_v11 = vadd.f32 %v1039_v7, %v987_v63  ;;  %v1031_v15 = vpop.f32.mrf.mxu0 }
 0x150   : > { %v1041_v17 = vpop.f32.mrf.mxu1  ;;  %1054 = vst [vmem:[#allocation2 + $0x30] sm:$0xff] %v1046_v8  ;;  %v1047_v18 = vadd.f32 %v1030_v10, %v336_v4  ;;  %v1032_v20 = vadd.f32 %v1031_v15, %v979_v2 }
 0x151   : > { %1058 = vst [vmem:[#allocation2 + $0x8] sm:$0xff] %v1050_v9  ;;  %v1051_v19 = vadd.f32 %v1040_v11, %v340_v6  ;;  %v1042_v21 = vadd.f32 %v1041_v17, %v989_v3  ;;  %v1033_v23 = vpop.f32.mrf.mxu0 }
 0x152   : > { %v1043_v25 = vpop.f32.mrf.mxu1  ;;  %1055 = vst [vmem:[#allocation2] sm:$0xff] %v1047_v18  ;;  %v1048_v26 = vadd.f32 %v1032_v20, %v337_v14  ;;  %v1034_v28 = vadd.f32 %v1033_v23, %v981_v12 }
 0x153   : > { %1059 = vst [vmem:[#allocation2 + $0x20] sm:$0xff] %v1051_v19  ;;  %v1052_v27 = vadd.f32 %v1042_v21, %v341_v16  ;;  %v1044_v29 = vadd.f32 %v1043_v25, %v991_v13  ;;  %1065 = sbr.rel (%p1415_p11) target bundleno = 393 (0x189), region = 62 }
 0x154   : > { %1056 = vst [vmem:[#allocation2 + $0x18] sm:$0xff] %v1048_v26  ;;  %v1049_v30 = vadd.f32 %v1034_v28, %v338_v22 }
 0x155   : > { %1060 = vst [vmem:[#allocation2 + $0x28] sm:$0xff] %v1052_v27  ;;  %v1053_v31 = vadd.f32 %v1044_v29, %v342_v24 }
 0x156   : > { %1057 = vst [vmem:[#allocation2 + $0x10] sm:$0xff] %v1049_v30 }
 0x157   : > { %1061 = vst [vmem:[#allocation2 + $0x38] sm:$0xff] %v1053_v31 }
 0x158   : > { %v1066_v32 = vld [vmem:[#allocation2 + $0x30] sm:$0xff]  ;;  %v1070_v38 = vld [vmem:[#allocation2 + $0x8] sm:$0xff] }
 0x159   : > { %v1067_v33 = vld [vmem:[#allocation2] sm:$0xff] }
 0x15a   : > { %v1428_v35 = vpack.c.bf16 %v1067_v33, %v1066_v32  ;;  %v1071_v39 = vld [vmem:[#allocation2 + $0x20] sm:$0xff] }
 0x15b   : > { %v1068_v34 = vld [vmem:[#allocation2 + $0x18] sm:$0xff]  ;;  %v1430_v42 = vpack.c.bf16 %v1071_v39, %v1070_v38 }
 0x15c   : > { %v1074_v37 = vadd.f32 %v1068_v34, %v1066_v32  ;;  %v1072_v43 = vld [vmem:[#allocation2 + $0x28] sm:$0xff]  ;;  %1152 = vst [vmem:[%s1880_s2] sm:$0xff] %v1428_v35 }
 0x15d   : > { %v1069_v36 = vld [vmem:[#allocation2 + $0x10] sm:$0xff]  ;;  %1154 = vst [vmem:[%s1880_s2 + $0x10] sm:$0xff] %v1430_v42 }
 0x15e   : > { %v1083_v40 = vadd.f32 %v1069_v36, %v1067_v33  ;;  %v1429_v41 = vpack.c.bf16 %v1069_v36, %v1068_v34  ;;  %v1073_v44 = vld [vmem:[#allocation2 + $0x38] sm:$0xff]  ;;  %v1075_v45 = vadd.f32 %v1074_v37, %v1070_v38 }
 0x15f   : > { %v1431_v46 = vpack.c.bf16 %v1073_v44, %v1072_v43 }
 0x160   : > { %1153 = vst [vmem:[%s1880_s2 + $0x8] sm:$0xff] %v1429_v41  ;;  %v1084_v47 = vadd.f32 %v1083_v40, %v1071_v39  ;;  %v1076_v48 = vadd.f32 %v1075_v45, %v1072_v43 }
 0x161   : > { %1155 = vst [vmem:[%s1880_s2 + $0x18] sm:$0xff] %v1431_v46 }
 0x162   : > { %v1085_v49 = vadd.f32 %v1084_v47, %v1073_v44  ;;  %v1077_v50 = vrot.slane %v1076_v48, 4 }
 0x164   : > { %v1086_v51 = vrot.slane %v1085_v49, 4  ;;  %v1078_v52 = vadd.f32 %v1077_v50, %v1076_v48 }
 0x166   : > { %v1087_v53 = vadd.f32 %v1086_v51, %v1085_v49  ;;  %v1079_v54 = vrot.slane %v1078_v52, 2 }
 0x168   : > { %v1088_v55 = vrot.slane %v1087_v53, 2  ;;  %v1080_v56 = vadd.f32 %v1079_v54, %v1078_v52 }
 0x16a   : > { %v1089_v57 = vadd.f32 %v1088_v55, %v1087_v53  ;;  %v1081_v58 = vrot.slane %v1080_v56, 1 }
 0x16c   : > { %v1090_v59 = vrot.slane %v1089_v57, 1  ;;  %v1082_v60 = vadd.f32 %v1081_v58, %v1080_v56 }
 0x16e   : > { %v1091_v61 = vadd.f32 %v1090_v59, %v1089_v57  ;;  %v1092_v62 = vmul.f32 0.03125, %v1082_v60 }
 0x170   : > { %v1093_v63 = vmul.f32 0.03125, %v1091_v61  ;;  %v1100_v0 = vsub.f32 %v1072_v43, %v1092_v62  ;;  %1156 = vst [vmem:[%s1881_s3] sm:$0xff] %v1092_v62  ;;  %v1094_v1 = vsub.f32 %v1066_v32, %v1092_v62  ;;  %v1096_v2 = vsub.f32 %v1068_v34, %v1092_v62 }
 0x171   : > { %v1098_v3 = vsub.f32 %v1070_v38, %v1092_v62 }
 0x172   : > { %v1101_v4 = vsub.f32 %v1073_v44, %v1093_v63  ;;  %1157 = vst [vmem:[%s1881_s3 + $0x8] sm:$0xff] %v1093_v63  ;;  %v1095_v5 = vsub.f32 %v1067_v33, %v1093_v63  ;;  %v1097_v6 = vsub.f32 %v1069_v36, %v1093_v63  ;;  %v1099_v7 = vsub.f32 %v1071_v39, %v1093_v63 }
 0x173   : > { %v1102_v8 = vmul.f32 %v1094_v1, %v1094_v1  ;;  %v1104_v9 = vmul.f32 %v1096_v2, %v1096_v2  ;;  %v1106_v10 = vmul.f32 %v1098_v3, %v1098_v3  ;;  %v1108_v14 = vmul.f32 %v1100_v0, %v1100_v0 }
 0x174   : > { %v1103_v11 = vmul.f32 %v1095_v5, %v1095_v5  ;;  %v1105_v12 = vmul.f32 %v1097_v6, %v1097_v6  ;;  %v1107_v13 = vmul.f32 %v1099_v7, %v1099_v7  ;;  %v1109_v16 = vmul.f32 %v1101_v4, %v1101_v4 }
 0x175   : > { %v1110_v15 = vadd.f32 %v1104_v9, %v1102_v8 }
 0x176   : > { %v1119_v17 = vadd.f32 %v1105_v12, %v1103_v11 }
 0x177   : > { %v1111_v18 = vadd.f32 %v1110_v15, %v1106_v10 }
 0x178   : > { %v1120_v19 = vadd.f32 %v1119_v17, %v1107_v13 }
 0x179   : > { %v1112_v20 = vadd.f32 %v1111_v18, %v1108_v14 }
 0x17a   : > { %v1121_v21 = vadd.f32 %v1120_v19, %v1109_v16 }
 0x17b   : > { %v1113_v22 = vrot.slane %v1112_v20, 4 }
 0x17c   : > { %v1122_v23 = vrot.slane %v1121_v21, 4 }
 0x17d   : > { %v1114_v24 = vadd.f32 %v1113_v22, %v1112_v20 }
 0x17e   : > { %v1123_v25 = vadd.f32 %v1122_v23, %v1121_v21 }
 0x17f   : > { %v1115_v26 = vrot.slane %v1114_v24, 2 }
 0x180   : > { %v1124_v27 = vrot.slane %v1123_v25, 2 }
 0x181   : > { %v1116_v28 = vadd.f32 %v1115_v26, %v1114_v24 }
 0x182   : > { %v1125_v29 = vadd.f32 %v1124_v27, %v1123_v25 }
 0x183   : > { %v1117_v30 = vrot.slane %v1116_v28, 1 }
 0x184   : > { %v1126_v31 = vrot.slane %v1125_v29, 1 }
 0x185   : > { %v1118_v32 = vadd.f32 %v1117_v30, %v1116_v28 }
 0x186   : > { %v1127_v33 = vadd.f32 %v1126_v31, %v1125_v29 }
 0x187   : > { %1158 = vst [vmem:[%s1882_s4] sm:$0xff] %v1118_v32 }
 0x188   : > { %1159 = vst [vmem:[%s1882_s4 + $0x8] sm:$0xff] %v1127_v33 }
 0x189 PF: > { %s15_s19 = sadd.s32 1, %s1664_s19   ;;  %s1883_s15 = smov %s1652_s16 }
 0x18a   : > { %p12_p12 = scmp.ge.s32.totalorder %s15_s19, 7   ;;  %s1884_s16 = smov %s1728_s23 }
 0x18b   : > { %s1885_s17 = smov %s1660_s18  ;;  %s1886_s18 = smov %s1888_s20 }
 0x18c   :  { %14 = sbr.rel (!%p12_p12) target bundleno = 3 (0x3), region = 130 }

// kernel: discriminator_forward.16
= control target key start
LH: loop header
LB: loop body
LE: loop exit
PB: predicated region body
PF: predicated region fallthrough
CT: control target
= control target key end

     0   :  { %v22_v0 = vlaneseq  ;;  %s144_s0 = inlined_call_operand.vmem [shape: bf16[8,512], index: 0, kind: input, shape index: {}]   ;;  %s145_s1 = inlined_call_operand.vmem [shape: f32[1,512], index: 1, kind: input, shape index: {}]   ;;  %s146_s2 = inlined_call_operand.vmem [shape: f32[1,512], index: 2, kind: input, shape index: {}]   ;;  %s147_s3 = inlined_call_operand.vmem [shape: bf16[8,512], index: 3, kind: output, shape index: {}]  }
   0x1   :  { %v14_v1 = vld [vmem:[%s144_s0] sm:$0xff]  ;;  %v15_v3 = vld [vmem:[%s144_s0 + $0x8] sm:$0xff] }
   0x2   :  { %v23_v2 = vshrl.u32 %v22_v0, 7  ;;  %v16_v4 = vunpack.c.l.bf16 %v14_v1  ;;  %v17_v5 = vunpack.c.h.bf16 %v14_v1  ;;  %v20_v6 = vld [vmem:[%s145_s1] sm:$0xf]  ;;  %v18_v12 = vunpack.c.l.bf16 %v15_v3 }
   0x3   :  { %v46_v7 = vld [vmem:[%s146_s2] sm:$0xf]  ;;  %v19_v13 = vunpack.c.h.bf16 %v15_v3 }
   0x4   :  { %v24_v8 = vsub.s32 0, %v23_v2  ;;  %v28_v9 = vsub.s32 1, %v23_v2  ;;  %v32_v10 = vsub.s32 2, %v23_v2  ;;  %v36_v11 = vsub.s32 3, %v23_v2 }
   0x6   :  { %v25_v14 = vrot.slane %v20_v6, %v24_v8  ;;  %v29_v15 = vrot.slane %v20_v6, %v28_v9  ;;  %v51_v16 = vrot.slane %v46_v7, %v24_v8  ;;  %v55_v17 = vrot.slane %v46_v7, %v28_v9 }
   0x7   :  { %v33_v18 = vrot.slane %v20_v6, %v32_v10  ;;  %v37_v19 = vrot.slane %v20_v6, %v36_v11  ;;  %v59_v20 = vrot.slane %v46_v7, %v32_v10  ;;  %v63_v21 = vrot.slane %v46_v7, %v36_v11 }
   0x8   :  { %v42_v22 = vmul.f32 %v25_v14, %v16_v4  ;;  %v43_v23 = vmul.f32 %v29_v15, %v17_v5 }
   0x9   :  { %v44_v24 = vmul.f32 %v33_v18, %v18_v12  ;;  %v45_v25 = vmul.f32 %v37_v19, %v19_v13 }
   0xa   :  { %v68_v26 = vadd.f32 %v51_v16, %v42_v22  ;;  %v69_v27 = vadd.f32 %v55_v17, %v43_v23 }
   0xb   :  { %v70_v28 = vadd.f32 %v59_v20, %v44_v24  ;;  %v71_v29 = vadd.f32 %v63_v21, %v45_v25 }
   0xc   :  { %v72_v30 = vmul.f32 0.1, %v68_v26  ;;  %v73_v31 = vmul.f32 0.1, %v69_v27 }
   0xd   :  { %v74_v32 = vmul.f32 0.1, %v70_v28  ;;  %v75_v33 = vmul.f32 0.1, %v71_v29 }
   0xe   :  { %v76_v34 = vmax.f32 %v68_v26, %v72_v30  ;;  %v77_v35 = vmax.f32 %v69_v27, %v73_v31 }
   0xf   :  { %v78_v36 = vmax.f32 %v70_v28, %v74_v32  ;;  %v79_v37 = vmax.f32 %v71_v29, %v75_v33 }
  0x10   :  { %v104_v38 = vpack.c.bf16 %v77_v35, %v76_v34 }
  0x11   :  { %v105_v39 = vpack.c.bf16 %v79_v37, %v78_v36 }
  0x12   :  { %96 = vst [vmem:[%s147_s3] sm:$0xff] %v104_v38 }
  0x13   :  { %97 = vst [vmem:[%s147_s3 + $0x8] sm:$0xff] %v105_v39 }

// kernel: discriminator_forward.15
= control target key start
LH: loop header
LB: loop body
LE: loop exit
PB: predicated region body
PF: predicated region fallthrough
CT: control target
= control target key end

     0   :  { %s2263_s15 = smov 0   ;;  %s2265_s16 = smov 0   ;;  %s2521_s0 = inlined_call_operand.vmem [shape: bf16[8,6400], index: 0, kind: input, shape index: {}]   ;;  %s2522_s1 = inlined_call_operand.vmem [shape: bf16[6400,512], index: 1, kind: input, shape index: {}]   ;;  %s2523_s2 = inlined_call_operand.vmem [shape: bf16[8,512], index: 2, kind: output, shape index: {0}]   ;;  %s2524_s3 = inlined_call_operand.vmem [shape: f32[1,8,512], index: 3, kind: output, shape index: {1}]   ;;  %s2525_s4 = inlined_call_operand.vmem [shape: f32[1,8,512], index: 4, kind: output, shape index: {2}]  }
   0x1   :  { %s2267_s17 = smov 0  }
   0x2 LB: > { %s24_s18 = sadd.s32 1, %s2230_s16  ;;  %p1760_p0 = scmp.ge.s32.totalorder %s2234_s17, 1  ;;  %s2234_s17 = sphi %s2267_s17, %s15_s17   ;;  %s2230_s16 = sphi %s2265_s16, %s2527_s16   ;;  %s2226_s15 = sphi %s2263_s15, %s2526_s15  }
   0x3   : > { %p25_p1 = scmp.ge.s32.totalorder %s24_s18, 10  ;;  %p198_p2 = scmp.lt.s32.totalorder %s2234_s17, 11 }
   0x5   : > { %s2529_s18 = smov (%p25_p1, %s24_s18), 0  ;;  %p199_p3 = pnand %p1760_p0, %p198_p2 }
   0x6   : > { %s244_s19 = smul.u32 (!%p199_p3), 5, %s2226_s15  ;;  %p1764_p6 = scmp.ne.s32.totalorder (!%p199_p3), %s2226_s15, 0 }
   0x7   : > { %202 = sbr.rel (%p199_p3) target bundleno = 424 (0x1a8), region = 28 }
   0x8   : > { %s254_s20 = smul.u32 (!%p199_p3), 80, %s2226_s15  ;;  %p247_p4 = scmp.lt.s32.totalorder (!%p199_p3), %s244_s19, 49 }
   0xa   : > { %p255_p5 = scmp.lt.s32.totalorder (!%p199_p3), %s254_s20, 799 }
   0xc   : > { %s2531_s19 = smov (!%p247_p4, %s244_s19), 49  ;;  %s2533_s20 = smov (!%p255_p5, %s254_s20), 799 }
   0xd   : > { %s1761_s21 = sshll.u32 %s2531_s19, 2  ;;  %s1938_s25 = sshll.u32 %s2533_s20, 4 }
   0xe   : > { %s2288_s24 = scalar_lea.vmem %s2521_s0, %s1761_s21  ;;  %s2293_s28 = scalar_lea.vmem %s2522_s1, %s1938_s25 }
   0xf   : > { %280 = sbr.rel (%p1764_p6) target bundleno = 23 (0x17), region = 32 }
  0x14   : > { %v2236_v0 = vmov 0.0  }
  0x15   : > { %281 = vst [vmem:[#allocation2 + $0x10] sm:$0xff] %v2236_v0  ;;  %282 = vst [vmem:[#allocation2] sm:$0xff] %v2236_v0 }
  0x16   : > { %283 = vst [vmem:[#allocation2 + $0x18] sm:$0xff] %v2236_v0  ;;  %284 = vst [vmem:[#allocation2 + $0x8] sm:$0xff] %v2236_v0 }
  0x17 PF: > { %v1967_v1 = vld [vmem:[%s2293_s28 + $0xe4] ss:$16 sps:$4 sm:$0xff]   ;;  %v1971_v3 = vld [vmem:[%s2293_s28 + $0xe0] ss:$16 sps:$4 sm:$0xff]   ;;  %v290_v49 = vld [vmem:[%s2288_s24 + $0x8] sm:$0xff]  ;;  %p1930_p7 = scmp.ne.s32.totalorder %s2226_s15, 9 }
  0x18   : > { %v1969_v2 = vld [vmem:[%s2293_s28 + $0x2e4] ss:$16 sps:$4 sm:$0xff]   ;;  %1270 = vmatprep.subr.bf16.mxu0 %v1967_v1  ;;  %v1972_v4 = vld [vmem:[%s2293_s28 + $0x2e0] ss:$16 sps:$4 sm:$0xff]   ;;  %v2348_v52 = vcombine.high %v290_v49, %v290_v49 }
  0x19   : > { %1311 = vmatprep.subr.bf16.mxu1 %v1969_v2  ;;  %v1973_v5 = vld [vmem:[%s2293_s28 + $0xc4] ss:$16 sps:$4 sm:$0xff]   ;;  %1271 = vmatpush1.bf16.msra.mxu0 %v1971_v3  ;;  %v1977_v7 = vld [vmem:[%s2293_s28 + $0xc0] ss:$16 sps:$4 sm:$0xff]  }
  0x1a   : > { %1312 = vmatpush1.bf16.msra.mxu1 %v1972_v4  ;;  %v1975_v6 = vld [vmem:[%s2293_s28 + $0x2c4] ss:$16 sps:$4 sm:$0xff]   ;;  %1272 = vmatprep.subr.bf16.mxu0 %v1973_v5  ;;  %v1978_v8 = vld [vmem:[%s2293_s28 + $0x2c0] ss:$16 sps:$4 sm:$0xff]  }
  0x1b   : > { %1313 = vmatprep.subr.bf16.mxu1 %v1975_v6  ;;  %v1979_v9 = vld [vmem:[%s2293_s28 + $0xa4] ss:$16 sps:$4 sm:$0xff]   ;;  %v1983_v11 = vld [vmem:[%s2293_s28 + $0xa0] ss:$16 sps:$4 sm:$0xff]   ;;  %1343 = vmatprep.mubr.bf16.mxu1 %v2348_v52  ;;  %v2072_v6 = vld [vmem:[%s2293_s28 + $0xec] ss:$16 sps:$4 sm:$0xff]  }
  0x1c   : > { %v1981_v10 = vld [vmem:[%s2293_s28 + $0x2a4] ss:$16 sps:$4 sm:$0xff]   ;;  %v1984_v12 = vld [vmem:[%s2293_s28 + $0x2a0] ss:$16 sps:$4 sm:$0xff]  }
  0x1d   : > { %1273 = vmatpush1.bf16.msra.mxu0 %v1977_v7  ;;  %v1985_v13 = vld [vmem:[%s2293_s28 + $0x84] ss:$16 sps:$4 sm:$0xff]   ;;  %v1989_v15 = vld [vmem:[%s2293_s28 + $0x80] ss:$16 sps:$4 sm:$0xff]  }
  0x1e   : > { %1314 = vmatpush1.bf16.msra.mxu1 %v1978_v8  ;;  %1274 = vmatprep.subr.bf16.mxu0 %v1979_v9  ;;  %v1987_v14 = vld [vmem:[%s2293_s28 + $0x284] ss:$16 sps:$4 sm:$0xff]   ;;  %v1990_v16 = vld [vmem:[%s2293_s28 + $0x280] ss:$16 sps:$4 sm:$0xff]   ;;  %v2372_v8 = vcombine.low %v290_v49, %v290_v49  ;;  %v2130_v49 = vld [vmem:[%s2293_s28 + $0x1ac] ss:$16 sps:$4 sm:$0xff]  }
  0x1f   : > { %1315 = vmatprep.subr.bf16.mxu1 %v1981_v10  ;;  %v1991_v17 = vld [vmem:[%s2293_s28 + $0x64] ss:$16 sps:$4 sm:$0xff]   ;;  %v1995_v19 = vld [vmem:[%s2293_s28 + $0x60] ss:$16 sps:$4 sm:$0xff]   ;;  %v2070_v10 = vld [vmem:[%s2293_s28 + $0xe8] ss:$16 sps:$4 sm:$0xff]  }
  0x20   : > { %v1993_v18 = vld [vmem:[%s2293_s28 + $0x264] ss:$16 sps:$4 sm:$0xff]   ;;  %v1996_v20 = vld [vmem:[%s2293_s28 + $0x260] ss:$16 sps:$4 sm:$0xff]  }
  0x21   : > { %1275 = vmatpush1.bf16.msra.mxu0 %v1983_v11  ;;  %v1997_v21 = vld [vmem:[%s2293_s28 + $0x44] ss:$16 sps:$4 sm:$0xff]   ;;  %v2001_v23 = vld [vmem:[%s2293_s28 + $0x40] ss:$16 sps:$4 sm:$0xff]  }
  0x22   : > { %1316 = vmatpush1.bf16.msra.mxu1 %v1984_v12  ;;  %1276 = vmatprep.subr.bf16.mxu0 %v1985_v13  ;;  %v1999_v22 = vld [vmem:[%s2293_s28 + $0x244] ss:$16 sps:$4 sm:$0xff]   ;;  %v2002_v24 = vld [vmem:[%s2293_s28 + $0x240] ss:$16 sps:$4 sm:$0xff]   ;;  %v2078_v12 = vld [vmem:[%s2293_s28 + $0xcc] ss:$16 sps:$4 sm:$0xff]  }
  0x23   : > { %1317 = vmatprep.subr.bf16.mxu1 %v1987_v14  ;;  %v2003_v25 = vld [vmem:[%s2293_s28 + $0x24] ss:$16 sps:$4 sm:$0xff]   ;;  %v2007_v27 = vld [vmem:[%s2293_s28 + $0x20] ss:$16 sps:$4 sm:$0xff]   ;;  %v2076_v14 = vld [vmem:[%s2293_s28 + $0xc8] ss:$16 sps:$4 sm:$0xff]  }
  0x24   : > { %v2005_v26 = vld [vmem:[%s2293_s28 + $0x224] ss:$16 sps:$4 sm:$0xff]   ;;  %v2008_v28 = vld [vmem:[%s2293_s28 + $0x220] ss:$16 sps:$4 sm:$0xff]  }
  0x25   : > { %1277 = vmatpush1.bf16.msra.mxu0 %v1989_v15  ;;  %v2009_v29 = vld [vmem:[%s2293_s28 + $0x4] ss:$16 sps:$4 sm:$0xff]   ;;  %v2013_v31 = vld [vmem:[%s2293_s28] ss:$16 sps:$4 sm:$0xff]  }
  0x26   : > { %1318 = vmatpush1.bf16.msra.mxu1 %v1990_v16  ;;  %1278 = vmatprep.subr.bf16.mxu0 %v1991_v17  ;;  %v2011_v30 = vld [vmem:[%s2293_s28 + $0x204] ss:$16 sps:$4 sm:$0xff]   ;;  %v2014_v32 = vld [vmem:[%s2293_s28 + $0x200] ss:$16 sps:$4 sm:$0xff]   ;;  %v2084_v16 = vld [vmem:[%s2293_s28 + $0xac] ss:$16 sps:$4 sm:$0xff]  }
  0x27   : > { %1319 = vmatprep.subr.bf16.mxu1 %v1993_v18  ;;  %v2015_v33 = vld [vmem:[%s2293_s28 + $0x1e4] ss:$16 sps:$4 sm:$0xff]   ;;  %v2019_v35 = vld [vmem:[%s2293_s28 + $0x1e0] ss:$16 sps:$4 sm:$0xff]   ;;  %v2237_v17 = vmov 0  }
  0x28   : > { %v2017_v34 = vld [vmem:[%s2293_s28 + $0x3e4] ss:$16 sps:$4 sm:$0xff]   ;;  %v2020_v36 = vld [vmem:[%s2293_s28 + $0x3e0] ss:$16 sps:$4 sm:$0xff]  }
  0x29   : > { %1279 = vmatpush1.bf16.msra.mxu0 %v1995_v19  ;;  %v2021_v37 = vld [vmem:[%s2293_s28 + $0x1c4] ss:$16 sps:$4 sm:$0xff]   ;;  %v2025_v39 = vld [vmem:[%s2293_s28 + $0x1c0] ss:$16 sps:$4 sm:$0xff]   ;;  %v2082_v19 = vld [vmem:[%s2293_s28 + $0xa8] ss:$16 sps:$4 sm:$0xff]  }
  0x2a   : > { %1320 = vmatpush1.bf16.msra.mxu1 %v1996_v20  ;;  %1280 = vmatprep.subr.bf16.mxu0 %v1997_v21  ;;  %v2023_v38 = vld [vmem:[%s2293_s28 + $0x3c4] ss:$16 sps:$4 sm:$0xff]   ;;  %v2026_v40 = vld [vmem:[%s2293_s28 + $0x3c0] ss:$16 sps:$4 sm:$0xff]   ;;  %v2090_v21 = vld [vmem:[%s2293_s28 + $0x8c] ss:$16 sps:$4 sm:$0xff]  }
  0x2b   : > { %1321 = vmatprep.subr.bf16.mxu1 %v1999_v22  ;;  %v2027_v41 = vld [vmem:[%s2293_s28 + $0x1a4] ss:$16 sps:$4 sm:$0xff]   ;;  %v2031_v43 = vld [vmem:[%s2293_s28 + $0x1a0] ss:$16 sps:$4 sm:$0xff]  }
  0x2c   : > { %v2029_v42 = vld [vmem:[%s2293_s28 + $0x3a4] ss:$16 sps:$4 sm:$0xff]   ;;  %v2032_v44 = vld [vmem:[%s2293_s28 + $0x3a0] ss:$16 sps:$4 sm:$0xff]  }
  0x2d   : > { %1281 = vmatpush1.bf16.msra.mxu0 %v2001_v23  ;;  %v2033_v45 = vld [vmem:[%s2293_s28 + $0x184] ss:$16 sps:$4 sm:$0xff]   ;;  %v2037_v50 = vld [vmem:[%s2293_s28 + $0x180] ss:$16 sps:$4 sm:$0xff]   ;;  %v2088_v23 = vld [vmem:[%s2293_s28 + $0x88] ss:$16 sps:$4 sm:$0xff]  }
  0x2e   : > { %1322 = vmatpush1.bf16.msra.mxu1 %v2002_v24  ;;  %1282 = vmatprep.subr.bf16.mxu0 %v2003_v25  ;;  %v2035_v46 = vld [vmem:[%s2293_s28 + $0x384] ss:$16 sps:$4 sm:$0xff]   ;;  %v2038_v51 = vld [vmem:[%s2293_s28 + $0x380] ss:$16 sps:$4 sm:$0xff]   ;;  %v2096_v25 = vld [vmem:[%s2293_s28 + $0x6c] ss:$16 sps:$4 sm:$0xff]  }
  0x2f   : > { %1323 = vmatprep.subr.bf16.mxu1 %v2005_v26  ;;  %v289_v47 = vld [vmem:[%s2288_s24] sm:$0xff] }
  0x30   : > { %v2343_v48 = vcombine.high %v289_v47, %v289_v47  ;;  %v2039_v53 = vld [vmem:[%s2293_s28 + $0x164] ss:$16 sps:$4 sm:$0xff]   ;;  %v2043_v55 = vld [vmem:[%s2293_s28 + $0x160] ss:$16 sps:$4 sm:$0xff]   ;;  %v2370_v7 = vcombine.low %v289_v47, %v289_v47  ;;  %v2122_v47 = vld [vmem:[%s2293_s28 + $0x1c8] ss:$16 sps:$4 sm:$0xff]  }
  0x31   : > { %1283 = vmatpush1.bf16.msra.mxu0 %v2007_v27  ;;  %v2041_v54 = vld [vmem:[%s2293_s28 + $0x364] ss:$16 sps:$4 sm:$0xff]   ;;  %v2044_v56 = vld [vmem:[%s2293_s28 + $0x360] ss:$16 sps:$4 sm:$0xff]   ;;  %v2094_v27 = vld [vmem:[%s2293_s28 + $0x68] ss:$16 sps:$4 sm:$0xff]  }
  0x32   : > { %1324 = vmatpush1.bf16.msra.mxu1 %v2008_v28  ;;  %1284 = vmatprep.subr.bf16.mxu0 %v2009_v29  ;;  %v2045_v57 = vld [vmem:[%s2293_s28 + $0x144] ss:$16 sps:$4 sm:$0xff]   ;;  %v2049_v59 = vld [vmem:[%s2293_s28 + $0x140] ss:$16 sps:$4 sm:$0xff]   ;;  %v2102_v29 = vld [vmem:[%s2293_s28 + $0x4c] ss:$16 sps:$4 sm:$0xff]  }
  0x33   : > { %1325 = vmatprep.subr.bf16.mxu1 %v2011_v30  ;;  %1302 = vmatprep.mubr.bf16.mxu0 %v2343_v48  ;;  %v2047_v58 = vld [vmem:[%s2293_s28 + $0x344] ss:$16 sps:$4 sm:$0xff]   ;;  %v2050_v60 = vld [vmem:[%s2293_s28 + $0x340] ss:$16 sps:$4 sm:$0xff]  }
  0x34   : > { %v2051_v61 = vld [vmem:[%s2293_s28 + $0x124] ss:$16 sps:$4 sm:$0xff]   ;;  %v2055_v63 = vld [vmem:[%s2293_s28 + $0x120] ss:$16 sps:$4 sm:$0xff]  }
  0x35   : > { %1285 = vmatpush1.bf16.msra.mxu0 %v2013_v31  ;;  %v2053_v62 = vld [vmem:[%s2293_s28 + $0x324] ss:$16 sps:$4 sm:$0xff]   ;;  %v2056_v0 = vld [vmem:[%s2293_s28 + $0x320] ss:$16 sps:$4 sm:$0xff]   ;;  %v2100_v31 = vld [vmem:[%s2293_s28 + $0x48] ss:$16 sps:$4 sm:$0xff]  }
  0x36   : > { %1326 = vmatpush1.bf16.msra.mxu1 %v2014_v32  ;;  %1286 = vmatprep.subr.bf16.mxu0 %v2015_v33  ;;  %v2057_v1 = vld [vmem:[%s2293_s28 + $0x104] ss:$16 sps:$4 sm:$0xff]   ;;  %v2061_v3 = vld [vmem:[%s2293_s28 + $0x100] ss:$16 sps:$4 sm:$0xff]   ;;  %v2108_v33 = vld [vmem:[%s2293_s28 + $0x2c] ss:$16 sps:$4 sm:$0xff]  }
  0x37   : > { %1327 = vmatprep.subr.bf16.mxu1 %v2017_v34  ;;  %v2059_v2 = vld [vmem:[%s2293_s28 + $0x304] ss:$16 sps:$4 sm:$0xff]   ;;  %v2062_v4 = vld [vmem:[%s2293_s28 + $0x300] ss:$16 sps:$4 sm:$0xff]  }
  0x38   : > { %v2069_v5 = vld [vmem:[%s2293_s28 + $0x4e4] ss:$16 sps:$4 sm:$0xff]   ;;  %v2067_v9 = vld [vmem:[%s2293_s28 + $0x4e0] ss:$16 sps:$4 sm:$0xff]  }
  0x39   : > { %1287 = vmatpush2.bf16.msra.mxu0 %v2019_v35  ;;  %v2075_v11 = vld [vmem:[%s2293_s28 + $0x4c4] ss:$16 sps:$4 sm:$0xff]   ;;  %v2073_v13 = vld [vmem:[%s2293_s28 + $0x4c0] ss:$16 sps:$4 sm:$0xff]   ;;  %v2106_v35 = vld [vmem:[%s2293_s28 + $0x28] ss:$16 sps:$4 sm:$0xff]  }
  0x3a   : > { %1328 = vmatpush2.bf16.msra.mxu1 %v2020_v36  ;;  %1288 = vmatprep.subr.bf16.mxu0 %v2021_v37  ;;  %v2081_v15 = vld [vmem:[%s2293_s28 + $0x4a4] ss:$16 sps:$4 sm:$0xff]   ;;  %v2079_v18 = vld [vmem:[%s2293_s28 + $0x4a0] ss:$16 sps:$4 sm:$0xff]   ;;  %v2114_v37 = vld [vmem:[%s2293_s28 + $0xc] ss:$16 sps:$4 sm:$0xff]  }
  0x3b   : > { %1329 = vmatprep.subr.bf16.mxu1 %v2023_v38  ;;  %v2087_v20 = vld [vmem:[%s2293_s28 + $0x484] ss:$16 sps:$4 sm:$0xff]   ;;  %v2085_v22 = vld [vmem:[%s2293_s28 + $0x480] ss:$16 sps:$4 sm:$0xff]  }
  0x3c   : > { %v2093_v24 = vld [vmem:[%s2293_s28 + $0x464] ss:$16 sps:$4 sm:$0xff]   ;;  %v2091_v26 = vld [vmem:[%s2293_s28 + $0x460] ss:$16 sps:$4 sm:$0xff]  }
  0x3d   : > { %1289 = vmatpush2.bf16.msra.mxu0 %v2025_v39  ;;  %v2099_v28 = vld [vmem:[%s2293_s28 + $0x444] ss:$16 sps:$4 sm:$0xff]   ;;  %v2097_v30 = vld [vmem:[%s2293_s28 + $0x440] ss:$16 sps:$4 sm:$0xff]   ;;  %v2112_v39 = vld [vmem:[%s2293_s28 + $0x8] ss:$16 sps:$4 sm:$0xff]  }
  0x3e   : > { %1330 = vmatpush2.bf16.msra.mxu1 %v2026_v40  ;;  %1290 = vmatprep.subr.bf16.mxu0 %v2027_v41  ;;  %v2105_v32 = vld [vmem:[%s2293_s28 + $0x424] ss:$16 sps:$4 sm:$0xff]   ;;  %v2103_v34 = vld [vmem:[%s2293_s28 + $0x420] ss:$16 sps:$4 sm:$0xff]   ;;  %v2118_v40 = vld [vmem:[%s2293_s28 + $0x1ec] ss:$16 sps:$4 sm:$0xff]  }
  0x3f   : > { %1331 = vmatprep.subr.bf16.mxu1 %v2029_v42  ;;  %v2111_v36 = vld [vmem:[%s2293_s28 + $0x404] ss:$16 sps:$4 sm:$0xff]   ;;  %v2109_v38 = vld [vmem:[%s2293_s28 + $0x400] ss:$16 sps:$4 sm:$0xff]   ;;  %v2121_v41 = vld [vmem:[%s2293_s28 + $0x2ec] ss:$16 sps:$4 sm:$0xff]  }
  0x40   : > { %v2411_v42 = vld [vmem:[%s2288_s24 + $0x10] ss:$0 sps:$4 sm:$0xff]  }
  0x41   : > { %1291 = vmatpush2.bf16.msra.mxu0 %v2031_v43  ;;  %v2116_v43 = vld [vmem:[%s2293_s28 + $0x1e8] ss:$16 sps:$4 sm:$0xff]  }
  0x42   : > { %1332 = vmatpush2.bf16.msra.mxu1 %v2032_v44  ;;  %1292 = vmatprep.subr.bf16.mxu0 %v2033_v45  ;;  %v2119_v44 = vld [vmem:[%s2293_s28 + $0x2e8] ss:$16 sps:$4 sm:$0xff]   ;;  %v2124_v45 = vld [vmem:[%s2293_s28 + $0x1cc] ss:$16 sps:$4 sm:$0xff]  }
  0x43   : > { %1333 = vmatprep.subr.bf16.mxu1 %v2035_v46  ;;  %v2127_v46 = vld [vmem:[%s2293_s28 + $0x2cc] ss:$16 sps:$4 sm:$0xff]  }
  0x45   : > { %1293 = vmatpush2.bf16.msra.mxu0 %v2037_v50  ;;  %v2133_v50 = vld [vmem:[%s2293_s28 + $0x2ac] ss:$16 sps:$4 sm:$0xff]  }
  0x46   : > { %1334 = vmatpush2.bf16.msra.mxu1 %v2038_v51  ;;  %1294 = vmatprep.subr.bf16.mxu0 %v2039_v53  ;;  %v2128_v51 = vld [vmem:[%s2293_s28 + $0x1a8] ss:$16 sps:$4 sm:$0xff]  }
  0x47   : > { %1335 = vmatprep.subr.bf16.mxu1 %v2041_v54  ;;  %v2131_v53 = vld [vmem:[%s2293_s28 + $0x2a8] ss:$16 sps:$4 sm:$0xff]   ;;  %v2136_v54 = vld [vmem:[%s2293_s28 + $0x18c] ss:$16 sps:$4 sm:$0xff]  }
  0x49   : > { %1295 = vmatpush2.bf16.msra.mxu0 %v2043_v55  ;;  %v2139_v55 = vld [vmem:[%s2293_s28 + $0x28c] ss:$16 sps:$4 sm:$0xff]  }
  0x4a   : > { %1336 = vmatpush2.bf16.msra.mxu1 %v2044_v56  ;;  %1296 = vmatprep.subr.bf16.mxu0 %v2045_v57  ;;  %v2134_v56 = vld [vmem:[%s2293_s28 + $0x188] ss:$16 sps:$4 sm:$0xff]  }
  0x4b   : > { %1337 = vmatprep.subr.bf16.mxu1 %v2047_v58  ;;  %v2137_v57 = vld [vmem:[%s2293_s28 + $0x288] ss:$16 sps:$4 sm:$0xff]   ;;  %v2145_v58 = vld [vmem:[%s2293_s28 + $0x26c] ss:$16 sps:$4 sm:$0xff]  }
  0x4d   : > { %1297 = vmatpush2.bf16.msra.mxu0 %v2049_v59  ;;  %v2140_v59 = vld [vmem:[%s2293_s28 + $0x168] ss:$16 sps:$4 sm:$0xff]  }
  0x4e   : > { %1338 = vmatpush2.bf16.msra.mxu1 %v2050_v60  ;;  %1298 = vmatprep.subr.bf16.mxu0 %v2051_v61  ;;  %v2143_v60 = vld [vmem:[%s2293_s28 + $0x268] ss:$16 sps:$4 sm:$0xff]   ;;  %v2148_v61 = vld [vmem:[%s2293_s28 + $0x14c] ss:$16 sps:$4 sm:$0xff]  }
  0x4f   : > { %1339 = vmatprep.subr.bf16.mxu1 %v2053_v62  ;;  %v2151_v62 = vld [vmem:[%s2293_s28 + $0x24c] ss:$16 sps:$4 sm:$0xff]  }
  0x51   : > { %1299 = vmatpush2.bf16.msra.mxu0 %v2055_v63  ;;  %v2146_v63 = vld [vmem:[%s2293_s28 + $0x148] ss:$16 sps:$4 sm:$0xff]  }
  0x52   : > { %1340 = vmatpush2.bf16.msra.mxu1 %v2056_v0  ;;  %1300 = vmatprep.subr.bf16.mxu0 %v2057_v1  ;;  %v2149_v0 = vld [vmem:[%s2293_s28 + $0x248] ss:$16 sps:$4 sm:$0xff]   ;;  %v2154_v1 = vld [vmem:[%s2293_s28 + $0x12c] ss:$16 sps:$4 sm:$0xff]  }
  0x53   : > { %1341 = vmatprep.subr.bf16.mxu1 %v2059_v2  ;;  %v2157_v2 = vld [vmem:[%s2293_s28 + $0x22c] ss:$16 sps:$4 sm:$0xff]  }
  0x55   : > { %1301 = vmatpush2.bf16.msra.mxu0 %v2061_v3  ;;  %v2152_v3 = vld [vmem:[%s2293_s28 + $0x128] ss:$16 sps:$4 sm:$0xff]  }
  0x56   : > { %1342 = vmatpush2.bf16.msra.mxu1 %v2062_v4  ;;  %1352 = vmatprep.subr.bf16.mxu0 %v2069_v5  ;;  %v2155_v4 = vld [vmem:[%s2293_s28 + $0x228] ss:$16 sps:$4 sm:$0xff]   ;;  %v2160_v5 = vld [vmem:[%s2293_s28 + $0x10c] ss:$16 sps:$4 sm:$0xff]  }
  0x57   : > { %1393 = vmatprep.subr.bf16.mxu1 %v2072_v6  ;;  %v2163_v6 = vld [vmem:[%s2293_s28 + $0x20c] ss:$16 sps:$4 sm:$0xff]  }
  0x58   : > { %1303 = vmatmul.mubr.bf16.vlgmr.msra.gmra.mxu0 %v2370_v7 }
  0x59   : > { %1344 = vmatmul.mubr.bf16.vlgmr.msra.gmra.mxu1 %v2372_v8  ;;  %1353 = vmatpush1.bf16.msra.mxu0 %v2067_v9  ;;  %v2158_v9 = vld [vmem:[%s2293_s28 + $0x108] ss:$16 sps:$4 sm:$0xff]  }
  0x5a   : > { %1394 = vmatpush1.bf16.msra.mxu1 %v2070_v10  ;;  %1354 = vmatprep.subr.bf16.mxu0 %v2075_v11  ;;  %v2161_v10 = vld [vmem:[%s2293_s28 + $0x208] ss:$16 sps:$4 sm:$0xff]   ;;  %v2166_v11 = vld [vmem:[%s2293_s28 + $0x3ec] ss:$16 sps:$4 sm:$0xff]  }
  0x5b   : > { %1395 = vmatprep.subr.bf16.mxu1 %v2078_v12  ;;  %1384 = vmatprep.mubr.bf16.mxu0 %v2237_v17  ;;  %v2169_v12 = vld [vmem:[%s2293_s28 + $0x4ec] ss:$16 sps:$4 sm:$0xff]  }
  0x5c   : > { %1425 = vmatprep.mubr.bf16.mxu1 %v2343_v48  ;;  %v2125_v48 = vld [vmem:[%s2293_s28 + $0x2c8] ss:$16 sps:$4 sm:$0xff]  }
  0x5d   : > { %1355 = vmatpush1.bf16.msra.mxu0 %v2073_v13  ;;  %v2164_v13 = vld [vmem:[%s2293_s28 + $0x3e8] ss:$16 sps:$4 sm:$0xff]  }
  0x5e   : > { %1396 = vmatpush1.bf16.msra.mxu1 %v2076_v14  ;;  %1356 = vmatprep.subr.bf16.mxu0 %v2081_v15  ;;  %v2167_v14 = vld [vmem:[%s2293_s28 + $0x4e8] ss:$16 sps:$4 sm:$0xff]   ;;  %v2172_v15 = vld [vmem:[%s2293_s28 + $0x3cc] ss:$16 sps:$4 sm:$0xff]  }
  0x5f   : > { %1397 = vmatprep.subr.bf16.mxu1 %v2084_v16  ;;  %v2175_v16 = vld [vmem:[%s2293_s28 + $0x4cc] ss:$16 sps:$4 sm:$0xff]  }
  0x61   : > { %1357 = vmatpush1.bf16.msra.mxu0 %v2079_v18  ;;  %v2170_v18 = vld [vmem:[%s2293_s28 + $0x3c8] ss:$16 sps:$4 sm:$0xff]  }
  0x62   : > { %1398 = vmatpush1.bf16.msra.mxu1 %v2082_v19  ;;  %1358 = vmatprep.subr.bf16.mxu0 %v2087_v20  ;;  %v2173_v19 = vld [vmem:[%s2293_s28 + $0x4c8] ss:$16 sps:$4 sm:$0xff]   ;;  %v2178_v20 = vld [vmem:[%s2293_s28 + $0x3ac] ss:$16 sps:$4 sm:$0xff]  }
  0x63   : > { %1399 = vmatprep.subr.bf16.mxu1 %v2090_v21  ;;  %v2181_v21 = vld [vmem:[%s2293_s28 + $0x4ac] ss:$16 sps:$4 sm:$0xff]  }
  0x65   : > { %1359 = vmatpush1.bf16.msra.mxu0 %v2085_v22  ;;  %v2176_v22 = vld [vmem:[%s2293_s28 + $0x3a8] ss:$16 sps:$4 sm:$0xff]  }
  0x66   : > { %1400 = vmatpush1.bf16.msra.mxu1 %v2088_v23  ;;  %1360 = vmatprep.subr.bf16.mxu0 %v2093_v24  ;;  %v2184_v23 = vld [vmem:[%s2293_s28 + $0x38c] ss:$16 sps:$4 sm:$0xff]  }
  0x67   : > { %1401 = vmatprep.subr.bf16.mxu1 %v2096_v25  ;;  %v2187_v24 = vld [vmem:[%s2293_s28 + $0x48c] ss:$16 sps:$4 sm:$0xff]   ;;  %v2182_v25 = vld [vmem:[%s2293_s28 + $0x388] ss:$16 sps:$4 sm:$0xff]  }
  0x69   : > { %1361 = vmatpush1.bf16.msra.mxu0 %v2091_v26  ;;  %v2185_v26 = vld [vmem:[%s2293_s28 + $0x488] ss:$16 sps:$4 sm:$0xff]  }
  0x6a   : > { %1402 = vmatpush1.bf16.msra.mxu1 %v2094_v27  ;;  %1362 = vmatprep.subr.bf16.mxu0 %v2099_v28  ;;  %v2193_v27 = vld [vmem:[%s2293_s28 + $0x46c] ss:$16 sps:$4 sm:$0xff]   ;;  %v2188_v28 = vld [vmem:[%s2293_s28 + $0x368] ss:$16 sps:$4 sm:$0xff]  }
  0x6b   : > { %1403 = vmatprep.subr.bf16.mxu1 %v2102_v29  ;;  %v2191_v29 = vld [vmem:[%s2293_s28 + $0x468] ss:$16 sps:$4 sm:$0xff]  }
  0x6d   : > { %1363 = vmatpush1.bf16.msra.mxu0 %v2097_v30  ;;  %v2196_v30 = vld [vmem:[%s2293_s28 + $0x34c] ss:$16 sps:$4 sm:$0xff]  }
  0x6e   : > { %1404 = vmatpush1.bf16.msra.mxu1 %v2100_v31  ;;  %1364 = vmatprep.subr.bf16.mxu0 %v2105_v32  ;;  %v2199_v31 = vld [vmem:[%s2293_s28 + $0x44c] ss:$16 sps:$4 sm:$0xff]   ;;  %v2194_v32 = vld [vmem:[%s2293_s28 + $0x348] ss:$16 sps:$4 sm:$0xff]  }
  0x6f   : > { %1405 = vmatprep.subr.bf16.mxu1 %v2108_v33  ;;  %v2197_v33 = vld [vmem:[%s2293_s28 + $0x448] ss:$16 sps:$4 sm:$0xff]  }
  0x71   : > { %1365 = vmatpush1.bf16.msra.mxu0 %v2103_v34  ;;  %v2202_v34 = vld [vmem:[%s2293_s28 + $0x32c] ss:$16 sps:$4 sm:$0xff]  }
  0x72   : > { %1406 = vmatpush1.bf16.msra.mxu1 %v2106_v35  ;;  %1366 = vmatprep.subr.bf16.mxu0 %v2111_v36  ;;  %v2205_v35 = vld [vmem:[%s2293_s28 + $0x42c] ss:$16 sps:$4 sm:$0xff]   ;;  %v2200_v36 = vld [vmem:[%s2293_s28 + $0x328] ss:$16 sps:$4 sm:$0xff]  }
  0x73   : > { %1407 = vmatprep.subr.bf16.mxu1 %v2114_v37  ;;  %v2203_v37 = vld [vmem:[%s2293_s28 + $0x428] ss:$16 sps:$4 sm:$0xff]  }
  0x75   : > { %1367 = vmatpush1.bf16.msra.mxu0 %v2109_v38  ;;  %v2208_v38 = vld [vmem:[%s2293_s28 + $0x30c] ss:$16 sps:$4 sm:$0xff]  }
  0x76   : > { %1408 = vmatpush1.bf16.msra.mxu1 %v2112_v39  ;;  %1434 = vmatprep.subr.bf16.mxu0 %v2121_v41  ;;  %v2211_v39 = vld [vmem:[%s2293_s28 + $0x40c] ss:$16 sps:$4 sm:$0xff]   ;;  %v2209_v41 = vld [vmem:[%s2293_s28 + $0x408] ss:$16 sps:$4 sm:$0xff]  }
  0x77   : > { %1409 = vmatprep.subr.bf16.mxu1 %v2118_v40  ;;  %v2206_v40 = vld [vmem:[%s2293_s28 + $0x308] ss:$16 sps:$4 sm:$0xff]  }
  0x78   : > { %1385 = vmatmul.mubr.bf16.vlgmr.msra.gmra.mxu0 %v2411_v42 }
  0x79   : > { %1435 = vmatpush1.bf16.msra.mxu0 %v2119_v44  ;;  %1466 = vmatprep.mubr.bf16.mxu0 %v2348_v52  ;;  %v2142_v52 = vld [vmem:[%s2293_s28 + $0x16c] ss:$16 sps:$4 sm:$0xff]  }
  0x7a   : > { %1410 = vmatpush2.bf16.msra.mxu1 %v2116_v43  ;;  %1436 = vmatprep.subr.bf16.mxu0 %v2127_v46 }
  0x7b   : > { %1411 = vmatprep.subr.bf16.mxu1 %v2124_v45 }
  0x7d   : > { %1437 = vmatpush1.bf16.msra.mxu0 %v2125_v48 }
  0x7e   : > { %1412 = vmatpush2.bf16.msra.mxu1 %v2122_v47  ;;  %1438 = vmatprep.subr.bf16.mxu0 %v2133_v50 }
  0x7f   : > { %1413 = vmatprep.subr.bf16.mxu1 %v2130_v49 }
  0x81   : > { %1439 = vmatpush1.bf16.msra.mxu0 %v2131_v53  ;;  %v285_v53 = vld [vmem:[#allocation2 + $0x10] sm:$0xff] }
  0x82   : > { %1414 = vmatpush2.bf16.msra.mxu1 %v2128_v51  ;;  %1440 = vmatprep.subr.bf16.mxu0 %v2139_v55 }
  0x83   : > { %1415 = vmatprep.subr.bf16.mxu1 %v2136_v54 }
  0x85   : > { %1441 = vmatpush1.bf16.msra.mxu0 %v2137_v57  ;;  %v286_v57 = vld [vmem:[#allocation2] sm:$0xff] }
  0x86   : > { %1416 = vmatpush2.bf16.msra.mxu1 %v2134_v56  ;;  %1442 = vmatprep.subr.bf16.mxu0 %v2145_v58 }
  0x87   : > { %1417 = vmatprep.subr.bf16.mxu1 %v2142_v52 }
  0x89   : > { %1443 = vmatpush1.bf16.msra.mxu0 %v2143_v60 }
  0x8a   : > { %1418 = vmatpush2.bf16.msra.mxu1 %v2140_v59  ;;  %1444 = vmatprep.subr.bf16.mxu0 %v2151_v62 }
  0x8b   : > { %1419 = vmatprep.subr.bf16.mxu1 %v2148_v61 }
  0x8d   : > { %1445 = vmatpush1.bf16.msra.mxu0 %v2149_v0 }
  0x8e   : > { %1420 = vmatpush2.bf16.msra.mxu1 %v2146_v63  ;;  %1446 = vmatprep.subr.bf16.mxu0 %v2157_v2 }
  0x8f   : > { %1421 = vmatprep.subr.bf16.mxu1 %v2154_v1 }
  0x91   : > { %1447 = vmatpush1.bf16.msra.mxu0 %v2155_v4  ;;  %v287_v4 = vld [vmem:[#allocation2 + $0x18] sm:$0xff] }
  0x92   : > { %1422 = vmatpush2.bf16.msra.mxu1 %v2152_v3  ;;  %1448 = vmatprep.subr.bf16.mxu0 %v2163_v6 }
  0x93   : > { %1423 = vmatprep.subr.bf16.mxu1 %v2160_v5 }
  0x95   : > { %1449 = vmatpush1.bf16.msra.mxu0 %v2161_v10 }
  0x96   : > { %1424 = vmatpush2.bf16.msra.mxu1 %v2158_v9  ;;  %1450 = vmatprep.subr.bf16.mxu0 %v2166_v11  ;;  %v288_v11 = vld [vmem:[#allocation2 + $0x8] sm:$0xff] }
  0x97   : > { %1475 = vmatprep.subr.bf16.mxu1 %v2169_v12 }
  0x99   : > { %1426 = vmatmul.mubr.bf16.vlgmr.msra.gmra.mxu1 %v2370_v7  ;;  %1451 = vmatpush2.bf16.msra.mxu0 %v2164_v13  ;;  %v2179_v7 = vld [vmem:[%s2293_s28 + $0x4a8] ss:$16 sps:$4 sm:$0xff]  }
  0x9a   : > { %1476 = vmatpush1.bf16.msra.mxu1 %v2167_v14  ;;  %1452 = vmatprep.subr.bf16.mxu0 %v2172_v15 }
  0x9b   : > { %1477 = vmatprep.subr.bf16.mxu1 %v2175_v16  ;;  %1507 = vmatprep.mubr.bf16.mxu1 %v2237_v17  ;;  %v2190_v17 = vld [vmem:[%s2293_s28 + $0x36c] ss:$16 sps:$4 sm:$0xff]  }
  0x9d   : > { %1453 = vmatpush2.bf16.msra.mxu0 %v2170_v18 }
  0x9e   : > { %1478 = vmatpush1.bf16.msra.mxu1 %v2173_v19  ;;  %1454 = vmatprep.subr.bf16.mxu0 %v2178_v20 }
  0x9f   : > { %1479 = vmatprep.subr.bf16.mxu1 %v2181_v21 }
  0xa1   : > { %1455 = vmatpush2.bf16.msra.mxu0 %v2176_v22 }
  0xa2   : > { %1480 = vmatpush1.bf16.msra.mxu1 %v2179_v7  ;;  %1456 = vmatprep.subr.bf16.mxu0 %v2184_v23 }
  0xa3   : > { %1481 = vmatprep.subr.bf16.mxu1 %v2187_v24 }
  0xa5   : > { %1457 = vmatpush2.bf16.msra.mxu0 %v2182_v25 }
  0xa6   : > { %1482 = vmatpush1.bf16.msra.mxu1 %v2185_v26  ;;  %1458 = vmatprep.subr.bf16.mxu0 %v2190_v17 }
  0xa7   : > { %1483 = vmatprep.subr.bf16.mxu1 %v2193_v27 }
  0xa9   : > { %1459 = vmatpush2.bf16.msra.mxu0 %v2188_v28 }
  0xaa   : > { %1484 = vmatpush1.bf16.msra.mxu1 %v2191_v29  ;;  %1460 = vmatprep.subr.bf16.mxu0 %v2196_v30 }
  0xab   : > { %1485 = vmatprep.subr.bf16.mxu1 %v2199_v31 }
  0xad   : > { %1461 = vmatpush2.bf16.msra.mxu0 %v2194_v32 }
  0xae   : > { %1486 = vmatpush1.bf16.msra.mxu1 %v2197_v33  ;;  %1462 = vmatprep.subr.bf16.mxu0 %v2202_v34 }
  0xaf   : > { %1487 = vmatprep.subr.bf16.mxu1 %v2205_v35 }
  0xb1   : > { %1463 = vmatpush2.bf16.msra.mxu0 %v2200_v36 }
  0xb2   : > { %1488 = vmatpush1.bf16.msra.mxu1 %v2203_v37  ;;  %1464 = vmatprep.subr.bf16.mxu0 %v2208_v38 }
  0xb3   : > { %1489 = vmatprep.subr.bf16.mxu1 %v2211_v39 }
  0xb5   : > { %1465 = vmatpush2.bf16.msra.mxu0 %v2206_v40 }
  0xb6   : > { %1490 = vmatpush1.bf16.msra.mxu1 %v2209_v41 }
  0xb8   : > { %1467 = vmatmul.mubr.bf16.vlgmr.msra.gmra.mxu0 %v2372_v8 }
  0xb9   : > { %1508 = vmatmul.mubr.bf16.vlgmr.msra.gmra.mxu1 %v2411_v42 }
 0x118   : > { %v1304_v43 = vpop.f32.mrf.mxu0 }
 0x119   : > { %v1345_v44 = vpop.f32.mrf.mxu1 }
 0x11a   : > { %v1306_v45 = vpop.f32.mrf.mxu0  ;;  %v1346_v51 = vadd.f32 %v1345_v44, %v1304_v43 }
 0x11b   : > { %v1347_v46 = vpop.f32.mrf.mxu1 }
 0x11c   : > { %v1308_v47 = vpop.f32.mrf.mxu0  ;;  %v1348_v55 = vadd.f32 %v1347_v46, %v1306_v45 }
 0x11d   : > { %v1349_v48 = vpop.f32.mrf.mxu1 }
 0x11e   : > { %v1309_v49 = vpop.f32.mrf.mxu0 }
 0x11f   : > { %v1350_v50 = vpop.f32.mrf.mxu1 }
 0x138   : > { %v1386_v54 = vpop.f32.mrf.mxu0 }
 0x139   : > { %v1387_v56 = vadd.f32 %v1386_v54, %v1346_v51 }
 0x13a   : > { %v1388_v52 = vpop.f32.mrf.mxu0 }
 0x13b   : > { %v1516_v58 = vadd.f32 %v1387_v56, %v285_v53  ;;  %v1389_v59 = vadd.f32 %v1388_v52, %v1348_v55 }
 0x13c   : > { %v1390_v8 = vpop.f32.mrf.mxu0 }
 0x13d   : > { %1520 = vst [vmem:[#allocation2 + $0x10] sm:$0xff] %v1516_v58  ;;  %v1517_v42 = vadd.f32 %v1389_v59, %v286_v57 }
 0x13e   : > { %v1391_v60 = vpop.f32.mrf.mxu0 }
 0x13f   : > { %1521 = vst [vmem:[#allocation2] sm:$0xff] %v1517_v42 }
 0x159   : > { %v1427_v61 = vpop.f32.mrf.mxu1 }
 0x15b   : > { %v1429_v62 = vpop.f32.mrf.mxu1 }
 0x15d   : > { %v1431_v63 = vpop.f32.mrf.mxu1 }
 0x15f   : > { %v1432_v0 = vpop.f32.mrf.mxu1 }
 0x178   : > { %v1468_v1 = vpop.f32.mrf.mxu0 }
 0x179   : > { %v1509_v2 = vpop.f32.mrf.mxu1  ;;  %v1469_v3 = vadd.f32 %v1468_v1, %v1427_v61 }
 0x17a   : > { %v1470_v5 = vpop.f32.mrf.mxu0 }
 0x17b   : > { %v1511_v6 = vpop.f32.mrf.mxu1  ;;  %v1510_v9 = vadd.f32 %v1509_v2, %v1469_v3  ;;  %v1471_v10 = vadd.f32 %v1470_v5, %v1429_v62 }
 0x17c   : > { %v1472_v12 = vpop.f32.mrf.mxu0 }
 0x17d   : > { %v1513_v13 = vpop.f32.mrf.mxu1  ;;  %v1518_v14 = vadd.f32 %v1510_v9, %v287_v4  ;;  %v1512_v15 = vadd.f32 %v1511_v6, %v1471_v10  ;;  %1527 = sbr.rel (%p1930_p7) target bundleno = 424 (0x1a8), region = 36 }
 0x17e   : > { %v1473_v16 = vpop.f32.mrf.mxu0 }
 0x17f   : > { %v1514_v18 = vpop.f32.mrf.mxu1  ;;  %1522 = vst [vmem:[#allocation2 + $0x18] sm:$0xff] %v1518_v14  ;;  %v1519_v19 = vadd.f32 %v1512_v15, %v288_v11 }
 0x181   : > { %1523 = vst [vmem:[#allocation2 + $0x8] sm:$0xff] %v1519_v19 }
 0x182   : > { %v1528_v20 = vld [vmem:[#allocation2 + $0x10] sm:$0xff]  ;;  %v1529_v21 = vld [vmem:[#allocation2] sm:$0xff] }
 0x183   : > { %v1939_v7 = vpack.c.bf16 %v1529_v21, %v1528_v20  ;;  %v1532_v24 = vrot.slane %v1528_v20, 4  ;;  %v1538_v25 = vrot.slane %v1529_v21, 4 }
 0x185   : > { %1608 = vst [vmem:[%s2523_s2] sm:$0xff] %v1939_v7  ;;  %v1533_v28 = vadd.f32 %v1532_v24, %v1528_v20  ;;  %v1539_v29 = vadd.f32 %v1538_v25, %v1529_v21 }
 0x186   : > { %v1530_v22 = vld [vmem:[#allocation2 + $0x18] sm:$0xff] }
 0x187   : > { %v1544_v26 = vrot.slane %v1530_v22, 4  ;;  %v1534_v32 = vrot.slane %v1533_v28, 2  ;;  %v1540_v33 = vrot.slane %v1539_v29, 2 }
 0x188   : > { %v1531_v23 = vld [vmem:[#allocation2 + $0x8] sm:$0xff] }
 0x189   : > { %v1940_v17 = vpack.c.bf16 %v1531_v23, %v1530_v22  ;;  %v1550_v27 = vrot.slane %v1531_v23, 4  ;;  %v1545_v30 = vadd.f32 %v1544_v26, %v1530_v22  ;;  %v1535_v36 = vadd.f32 %v1534_v32, %v1533_v28 }
 0x18a   : > { %v1541_v37 = vadd.f32 %v1540_v33, %v1539_v29 }
 0x18b   : > { %1609 = vst [vmem:[%s2523_s2 + $0x8] sm:$0xff] %v1940_v17  ;;  %v1551_v31 = vadd.f32 %v1550_v27, %v1531_v23  ;;  %v1546_v34 = vrot.slane %v1545_v30, 2  ;;  %v1536_v40 = vrot.slane %v1535_v36, 1 }
 0x18c   : > { %v1542_v41 = vrot.slane %v1541_v37, 1 }
 0x18d   : > { %v1552_v35 = vrot.slane %v1551_v31, 2  ;;  %v1547_v38 = vadd.f32 %v1546_v34, %v1545_v30  ;;  %v1537_v45 = vadd.f32 %v1536_v40, %v1535_v36 }
 0x18e   : > { %v1543_v46 = vadd.f32 %v1542_v41, %v1541_v37 }
 0x18f   : > { %v1553_v39 = vadd.f32 %v1552_v35, %v1551_v31  ;;  %v1548_v43 = vrot.slane %v1547_v38, 1  ;;  %v1556_v49 = vmul.f32 0.125, %v1537_v45 }
 0x190   : > { %v1557_v50 = vmul.f32 0.125, %v1543_v46 }
 0x191   : > { %v1554_v44 = vrot.slane %v1553_v39, 1  ;;  %v1549_v47 = vadd.f32 %v1548_v43, %v1547_v38  ;;  %v1560_v54 = vsub.f32 %v1528_v20, %v1556_v49  ;;  %1610 = vst [vmem:[%s2524_s3] sm:$0xff] %v1556_v49 }
 0x192   : > { %v1561_v55 = vsub.f32 %v1529_v21, %v1557_v50  ;;  %1611 = vst [vmem:[%s2524_s3 + $0x8] sm:$0xff] %v1557_v50 }
 0x193   : > { %v1555_v48 = vadd.f32 %v1554_v44, %v1553_v39  ;;  %v1558_v51 = vmul.f32 0.125, %v1549_v47  ;;  %v1564_v52 = vmul.f32 %v1560_v54, %v1560_v54 }
 0x194   : > { %v1565_v58 = vmul.f32 %v1561_v55, %v1561_v55 }
 0x195   : > { %v1559_v53 = vmul.f32 0.125, %v1555_v48  ;;  %v1562_v56 = vsub.f32 %v1530_v22, %v1558_v51  ;;  %1612 = vst [vmem:[%s2524_s3 + $0x10] sm:$0xff] %v1558_v51  ;;  %v1568_v42 = vrot.slane %v1564_v52, 4 }
 0x196   : > { %v1574_v60 = vrot.slane %v1565_v58, 4 }
 0x197   : > { %v1563_v57 = vsub.f32 %v1531_v23, %v1559_v53  ;;  %1613 = vst [vmem:[%s2524_s3 + $0x18] sm:$0xff] %v1559_v53  ;;  %v1566_v59 = vmul.f32 %v1562_v56, %v1562_v56  ;;  %v1569_v63 = vadd.f32 %v1568_v42, %v1564_v52 }
 0x198   : > { %v1575_v0 = vadd.f32 %v1574_v60, %v1565_v58 }
 0x199   : > { %v1567_v8 = vmul.f32 %v1563_v57, %v1563_v57  ;;  %v1580_v61 = vrot.slane %v1566_v59, 4  ;;  %v1570_v3 = vrot.slane %v1569_v63, 2 }
 0x19a   : > { %v1576_v4 = vrot.slane %v1575_v0, 2 }
 0x19b   : > { %v1586_v62 = vrot.slane %v1567_v8, 4  ;;  %v1581_v1 = vadd.f32 %v1580_v61, %v1566_v59  ;;  %v1571_v9 = vadd.f32 %v1570_v3, %v1569_v63 }
 0x19c   : > { %v1577_v10 = vadd.f32 %v1576_v4, %v1575_v0 }
 0x19d   : > { %v1587_v2 = vadd.f32 %v1586_v62, %v1567_v8  ;;  %v1582_v5 = vrot.slane %v1581_v1, 2  ;;  %v1572_v13 = vrot.slane %v1571_v9, 1 }
 0x19e   : > { %v1578_v14 = vrot.slane %v1577_v10, 1 }
 0x19f   : > { %v1588_v6 = vrot.slane %v1587_v2, 2  ;;  %v1583_v11 = vadd.f32 %v1582_v5, %v1581_v1  ;;  %v1573_v18 = vadd.f32 %v1572_v13, %v1571_v9 }
 0x1a0   : > { %v1579_v19 = vadd.f32 %v1578_v14, %v1577_v10 }
 0x1a1   : > { %v1589_v12 = vadd.f32 %v1588_v6, %v1587_v2  ;;  %v1584_v15 = vrot.slane %v1583_v11, 1  ;;  %1614 = vst [vmem:[%s2525_s4] sm:$0xff] %v1573_v18 }
 0x1a2   : > { %1615 = vst [vmem:[%s2525_s4 + $0x8] sm:$0xff] %v1579_v19 }
 0x1a3   : > { %v1590_v16 = vrot.slane %v1589_v12, 1  ;;  %v1585_v20 = vadd.f32 %v1584_v15, %v1583_v11 }
 0x1a5   : > { %v1591_v21 = vadd.f32 %v1590_v16, %v1589_v12  ;;  %1616 = vst [vmem:[%s2525_s4 + $0x10] sm:$0xff] %v1585_v20 }
 0x1a7   : > { %1617 = vst [vmem:[%s2525_s4 + $0x18] sm:$0xff] %v1591_v21 }
 0x1a8 PF: > { %s15_s17 = sadd.s32 1, %s2234_s17   ;;  %s2526_s15 = smov %s2230_s16 }
 0x1a9   : > { %p12_p8 = scmp.ge.s32.totalorder %s15_s17, 12   ;;  %s2527_s16 = smov %s2529_s18 }
 0x1ab   :  { %14 = sbr.rel (!%p12_p8) target bundleno = 2 (0x2), region = 93 }

// kernel: discriminator_forward.17
= control target key start
LH: loop header
LB: loop body
LE: loop exit
PB: predicated region body
PF: predicated region fallthrough
CT: control target
= control target key end

     0   :  { %v571_v36 = vlaneseq  ;;  %v5606_v37 = vmov 1966171168   ;;  %vm4211_vm0 = vcmask 1041408   ;;  %vm4230_vm1 = vcmask 1024   ;;  %s7477_s1 = inlined_call_operand.vmem [shape: bf16[2176,512], index: 1, kind: input, shape index: {}]   ;;  %s7478_s0 = inlined_call_operand.vmem [shape: bf16[2,2176], index: 0, kind: input, shape index: {}]   ;;  %s7479_s2 = inlined_call_operand.vmem [shape: f32[1,512], index: 2, kind: input, shape index: {}]   ;;  %s7480_s3 = inlined_call_operand.vmem [shape: f32[1,512], index: 3, kind: input, shape index: {}]   ;;  %s7481_s4 = inlined_call_operand.<no memory space> [shape: f32[1,1], index: 4, kind: input, shape index: {}]   ;;  %s7482_s5 = inlined_call_operand.vmem [shape: f32[2,1], index: 5, kind: output, shape index: {}]  }
   0x1   :  { %v4783_v0 = vld [vmem:[%s7477_s1 + $0xe4] ss:$16 sps:$4 sm:$0xff]   ;;  %v4787_v2 = vld [vmem:[%s7477_s1 + $0xe0] ss:$16 sps:$4 sm:$0xff]   ;;  %v596_v38 = vunpack.c.l.s4 %v5606_v37 }
   0x2   :  { %v4785_v1 = vld [vmem:[%s7477_s1 + $0x2e4] ss:$16 sps:$4 sm:$0xff]   ;;  %3443 = vmatprep.subr.bf16.mxu0 %v4783_v0  ;;  %v4788_v3 = vld [vmem:[%s7477_s1 + $0x2e0] ss:$16 sps:$4 sm:$0xff]   ;;  %v5755_v42 = vshrl.u32 %v571_v36, 7 }
   0x3   :  { %3484 = vmatprep.subr.bf16.mxu1 %v4785_v1  ;;  %v4789_v4 = vld [vmem:[%s7477_s1 + $0xc4] ss:$16 sps:$4 sm:$0xff]   ;;  %3444 = vmatpush1.bf16.msra.mxu0 %v4787_v2  ;;  %v4793_v6 = vld [vmem:[%s7477_s1 + $0xc0] ss:$16 sps:$4 sm:$0xff]   ;;  %v597_v43 = vunpack.c.0.s8 %v596_v38 }
   0x4   :  { %3485 = vmatpush1.bf16.msra.mxu1 %v4788_v3  ;;  %v4791_v5 = vld [vmem:[%s7477_s1 + $0x2c4] ss:$16 sps:$4 sm:$0xff]   ;;  %3445 = vmatprep.subr.bf16.mxu0 %v4789_v4  ;;  %v4794_v7 = vld [vmem:[%s7477_s1 + $0x2c0] ss:$16 sps:$4 sm:$0xff]  }
   0x5   :  { %3486 = vmatprep.subr.bf16.mxu1 %v4791_v5  ;;  %v4795_v8 = vld [vmem:[%s7477_s1 + $0xa4] ss:$16 sps:$4 sm:$0xff]   ;;  %v4799_v10 = vld [vmem:[%s7477_s1 + $0xa0] ss:$16 sps:$4 sm:$0xff]   ;;  %v5773_v49 = vsub.s32 %v597_v43, %v5755_v42 }
   0x6   :  { %v4797_v9 = vld [vmem:[%s7477_s1 + $0x2a4] ss:$16 sps:$4 sm:$0xff]   ;;  %v4800_v11 = vld [vmem:[%s7477_s1 + $0x2a0] ss:$16 sps:$4 sm:$0xff]  }
   0x7   :  { %3446 = vmatpush1.bf16.msra.mxu0 %v4793_v6  ;;  %v4801_v12 = vld [vmem:[%s7477_s1 + $0x84] ss:$16 sps:$4 sm:$0xff]   ;;  %v4805_v14 = vld [vmem:[%s7477_s1 + $0x80] ss:$16 sps:$4 sm:$0xff]  }
   0x8   :  { %3487 = vmatpush1.bf16.msra.mxu1 %v4794_v7  ;;  %3447 = vmatprep.subr.bf16.mxu0 %v4795_v8  ;;  %v4803_v13 = vld [vmem:[%s7477_s1 + $0x284] ss:$16 sps:$4 sm:$0xff]   ;;  %v4806_v15 = vld [vmem:[%s7477_s1 + $0x280] ss:$16 sps:$4 sm:$0xff]  }
   0x9   :  { %3488 = vmatprep.subr.bf16.mxu1 %v4797_v9  ;;  %v4807_v16 = vld [vmem:[%s7477_s1 + $0x64] ss:$16 sps:$4 sm:$0xff]   ;;  %v4811_v18 = vld [vmem:[%s7477_s1 + $0x60] ss:$16 sps:$4 sm:$0xff]  }
   0xa   :  { %v4809_v17 = vld [vmem:[%s7477_s1 + $0x264] ss:$16 sps:$4 sm:$0xff]   ;;  %v4812_v19 = vld [vmem:[%s7477_s1 + $0x260] ss:$16 sps:$4 sm:$0xff]  }
   0xb   :  { %3448 = vmatpush1.bf16.msra.mxu0 %v4799_v10  ;;  %v4813_v20 = vld [vmem:[%s7477_s1 + $0x44] ss:$16 sps:$4 sm:$0xff]   ;;  %v4817_v22 = vld [vmem:[%s7477_s1 + $0x40] ss:$16 sps:$4 sm:$0xff]  }
   0xc   :  { %3489 = vmatpush1.bf16.msra.mxu1 %v4800_v11  ;;  %3449 = vmatprep.subr.bf16.mxu0 %v4801_v12  ;;  %v4815_v21 = vld [vmem:[%s7477_s1 + $0x244] ss:$16 sps:$4 sm:$0xff]   ;;  %v4818_v23 = vld [vmem:[%s7477_s1 + $0x240] ss:$16 sps:$4 sm:$0xff]  }
   0xd   :  { %3490 = vmatprep.subr.bf16.mxu1 %v4803_v13  ;;  %v4819_v24 = vld [vmem:[%s7477_s1 + $0x24] ss:$16 sps:$4 sm:$0xff]   ;;  %v4823_v26 = vld [vmem:[%s7477_s1 + $0x20] ss:$16 sps:$4 sm:$0xff]  }
   0xe   :  { %v4821_v25 = vld [vmem:[%s7477_s1 + $0x224] ss:$16 sps:$4 sm:$0xff]   ;;  %v4824_v27 = vld [vmem:[%s7477_s1 + $0x220] ss:$16 sps:$4 sm:$0xff]  }
   0xf   :  { %3450 = vmatpush1.bf16.msra.mxu0 %v4805_v14  ;;  %v4825_v28 = vld [vmem:[%s7477_s1 + $0x4] ss:$16 sps:$4 sm:$0xff]   ;;  %v4829_v30 = vld [vmem:[%s7477_s1] ss:$16 sps:$4 sm:$0xff]  }
  0x10   :  { %3491 = vmatpush1.bf16.msra.mxu1 %v4806_v15  ;;  %3451 = vmatprep.subr.bf16.mxu0 %v4807_v16  ;;  %v4827_v29 = vld [vmem:[%s7477_s1 + $0x204] ss:$16 sps:$4 sm:$0xff]   ;;  %v4830_v31 = vld [vmem:[%s7477_s1 + $0x200] ss:$16 sps:$4 sm:$0xff]  }
  0x11   :  { %3492 = vmatprep.subr.bf16.mxu1 %v4809_v17  ;;  %v4831_v32 = vld [vmem:[%s7477_s1 + $0x1e4] ss:$16 sps:$4 sm:$0xff]   ;;  %v4835_v34 = vld [vmem:[%s7477_s1 + $0x1e0] ss:$16 sps:$4 sm:$0xff]  }
  0x12   :  { %v4833_v33 = vld [vmem:[%s7477_s1 + $0x3e4] ss:$16 sps:$4 sm:$0xff]   ;;  %v4836_v35 = vld [vmem:[%s7477_s1 + $0x3e0] ss:$16 sps:$4 sm:$0xff]  }
  0x13   :  { %3452 = vmatpush1.bf16.msra.mxu0 %v4811_v18  ;;  %v4837_v39 = vld [vmem:[%s7477_s1 + $0x1c4] ss:$16 sps:$4 sm:$0xff]   ;;  %v4841_v41 = vld [vmem:[%s7477_s1 + $0x1c0] ss:$16 sps:$4 sm:$0xff]  }
  0x14   :  { %3493 = vmatpush1.bf16.msra.mxu1 %v4812_v19  ;;  %3453 = vmatprep.subr.bf16.mxu0 %v4813_v20  ;;  %v4839_v40 = vld [vmem:[%s7477_s1 + $0x3c4] ss:$16 sps:$4 sm:$0xff]   ;;  %v4842_v44 = vld [vmem:[%s7477_s1 + $0x3c0] ss:$16 sps:$4 sm:$0xff]  }
  0x15   :  { %3494 = vmatprep.subr.bf16.mxu1 %v4815_v21  ;;  %v4843_v45 = vld [vmem:[%s7477_s1 + $0x1a4] ss:$16 sps:$4 sm:$0xff]   ;;  %v4847_v47 = vld [vmem:[%s7477_s1 + $0x1a0] ss:$16 sps:$4 sm:$0xff]  }
  0x16   :  { %v4845_v46 = vld [vmem:[%s7477_s1 + $0x3a4] ss:$16 sps:$4 sm:$0xff]   ;;  %v4848_v48 = vld [vmem:[%s7477_s1 + $0x3a0] ss:$16 sps:$4 sm:$0xff]  }
  0x17   :  { %3454 = vmatpush1.bf16.msra.mxu0 %v4817_v22  ;;  %v4849_v50 = vld [vmem:[%s7477_s1 + $0x184] ss:$16 sps:$4 sm:$0xff]   ;;  %v4853_v53 = vld [vmem:[%s7477_s1 + $0x180] ss:$16 sps:$4 sm:$0xff]  }
  0x18   :  { %3495 = vmatpush1.bf16.msra.mxu1 %v4818_v23  ;;  %3455 = vmatprep.subr.bf16.mxu0 %v4819_v24  ;;  %v4851_v51 = vld [vmem:[%s7477_s1 + $0x384] ss:$16 sps:$4 sm:$0xff]   ;;  %v4854_v55 = vld [vmem:[%s7477_s1 + $0x380] ss:$16 sps:$4 sm:$0xff]  }
  0x19   :  { %3496 = vmatprep.subr.bf16.mxu1 %v4821_v25  ;;  %v22_v52 = vld [vmem:[%s7478_s0] sm:$0xff] }
  0x1a   :  { %v601_v54 = vrot.slane %v22_v52, %v5773_v49  ;;  %v4855_v56 = vld [vmem:[%s7477_s1 + $0x164] ss:$16 sps:$4 sm:$0xff]   ;;  %v4859_v59 = vld [vmem:[%s7477_s1 + $0x160] ss:$16 sps:$4 sm:$0xff]   ;;  %v594_v1 = vcombine.high %v22_v52, %v22_v52 }
  0x1b   :  { %3456 = vmatpush1.bf16.msra.mxu0 %v4823_v26  ;;  %v4857_v57 = vld [vmem:[%s7477_s1 + $0x364] ss:$16 sps:$4 sm:$0xff]   ;;  %v4860_v61 = vld [vmem:[%s7477_s1 + $0x360] ss:$16 sps:$4 sm:$0xff]  }
  0x1c   :  { %3497 = vmatpush1.bf16.msra.mxu1 %v4824_v27  ;;  %3457 = vmatprep.subr.bf16.mxu0 %v4825_v28  ;;  %v609_v58 = vcombine.high %v601_v54, %v601_v54  ;;  %v4861_v62 = vld [vmem:[%s7477_s1 + $0x144] ss:$16 sps:$4 sm:$0xff]   ;;  %v4865_v2 = vld [vmem:[%s7477_s1 + $0x140] ss:$16 sps:$4 sm:$0xff]   ;;  %v5831_v6 = vrot.slane %v594_v1, %v5773_v49  ;;  %v5851_v13 = vrot.slane %v601_v54, %v5773_v49 }
  0x1d   :  { %3498 = vmatprep.subr.bf16.mxu1 %v4827_v29  ;;  %v4863_v63 = vld [vmem:[%s7477_s1 + $0x344] ss:$16 sps:$4 sm:$0xff]   ;;  %v4866_v3 = vld [vmem:[%s7477_s1 + $0x340] ss:$16 sps:$4 sm:$0xff]  }
  0x1e   :  { %v5801_v60 = vrot.slane %v609_v58, %v5773_v49  ;;  %v4867_v4 = vld [vmem:[%s7477_s1 + $0x124] ss:$16 sps:$4 sm:$0xff]   ;;  %v4871_v7 = vld [vmem:[%s7477_s1 + $0x120] ss:$16 sps:$4 sm:$0xff]   ;;  %v610_v11 = vcombine.high %v5831_v6, %v5831_v6  ;;  %v5867_v18 = vcombine.high %v5851_v13, %v5851_v13 }
  0x1f   :  { %3458 = vmatpush1.bf16.msra.mxu0 %v4829_v30  ;;  %v4869_v5 = vld [vmem:[%s7477_s1 + $0x324] ss:$16 sps:$4 sm:$0xff]   ;;  %v4872_v8 = vld [vmem:[%s7477_s1 + $0x320] ss:$16 sps:$4 sm:$0xff]  }
  0x20   :  { %3499 = vmatpush1.bf16.msra.mxu1 %v4830_v31  ;;  %3459 = vmatprep.subr.bf16.mxu0 %v4831_v32  ;;  %v5814_v0 = vcombine.high %v5801_v60, %v5801_v60  ;;  %v4873_v9 = vld [vmem:[%s7477_s1 + $0x104] ss:$16 sps:$4 sm:$0xff]   ;;  %v4877_v12 = vld [vmem:[%s7477_s1 + $0x100] ss:$16 sps:$4 sm:$0xff]   ;;  %v5863_v17 = vrot.slane %v610_v11, %v5773_v49 }
  0x21   :  { %3500 = vmatprep.subr.bf16.mxu1 %v4833_v33  ;;  %3475 = vmatprep.mubr.bf16.mxu0 %v5801_v60  ;;  %v4875_v10 = vld [vmem:[%s7477_s1 + $0x304] ss:$16 sps:$4 sm:$0xff]   ;;  %v4878_v14 = vld [vmem:[%s7477_s1 + $0x300] ss:$16 sps:$4 sm:$0xff]  }
  0x22   :  { %3516 = vmatprep.mubr.bf16.mxu1 %v5814_v0  ;;  %v4881_v15 = vld [vmem:[%s7477_s1 + $0x4e4] ss:$16 sps:$4 sm:$0xff]   ;;  %v4879_v19 = vld [vmem:[%s7477_s1 + $0x4e0] ss:$16 sps:$4 sm:$0xff]   ;;  %v5883_v23 = vcombine.high %v5863_v17, %v5863_v17 }
  0x23   :  { %3460 = vmatpush2.bf16.msra.mxu0 %v4835_v34  ;;  %v4884_v16 = vld [vmem:[%s7477_s1 + $0x6e4] ss:$16 sps:$4 sm:$0xff]   ;;  %v4882_v20 = vld [vmem:[%s7477_s1 + $0x6e0] ss:$16 sps:$4 sm:$0xff]  }
  0x24   :  { %3501 = vmatpush2.bf16.msra.mxu1 %v4836_v35  ;;  %3461 = vmatprep.subr.bf16.mxu0 %v4837_v39  ;;  %v4887_v21 = vld [vmem:[%s7477_s1 + $0x4c4] ss:$16 sps:$4 sm:$0xff]   ;;  %v4885_v24 = vld [vmem:[%s7477_s1 + $0x4c0] ss:$16 sps:$4 sm:$0xff]  }
  0x25   :  { %3502 = vmatprep.subr.bf16.mxu1 %v4839_v40  ;;  %v4890_v22 = vld [vmem:[%s7477_s1 + $0x6c4] ss:$16 sps:$4 sm:$0xff]   ;;  %v4888_v25 = vld [vmem:[%s7477_s1 + $0x6c0] ss:$16 sps:$4 sm:$0xff]  }
  0x26   :  { %v4893_v26 = vld [vmem:[%s7477_s1 + $0x4a4] ss:$16 sps:$4 sm:$0xff]   ;;  %v4891_v28 = vld [vmem:[%s7477_s1 + $0x4a0] ss:$16 sps:$4 sm:$0xff]  }
  0x27   :  { %3462 = vmatpush2.bf16.msra.mxu0 %v4841_v41  ;;  %v4896_v27 = vld [vmem:[%s7477_s1 + $0x6a4] ss:$16 sps:$4 sm:$0xff]   ;;  %v4894_v29 = vld [vmem:[%s7477_s1 + $0x6a0] ss:$16 sps:$4 sm:$0xff]  }
  0x28   :  { %3503 = vmatpush2.bf16.msra.mxu1 %v4842_v44  ;;  %3463 = vmatprep.subr.bf16.mxu0 %v4843_v45  ;;  %v4899_v30 = vld [vmem:[%s7477_s1 + $0x484] ss:$16 sps:$4 sm:$0xff]   ;;  %v4897_v32 = vld [vmem:[%s7477_s1 + $0x480] ss:$16 sps:$4 sm:$0xff]  }
  0x29   :  { %3504 = vmatprep.subr.bf16.mxu1 %v4845_v46  ;;  %v4902_v31 = vld [vmem:[%s7477_s1 + $0x684] ss:$16 sps:$4 sm:$0xff]   ;;  %v4900_v33 = vld [vmem:[%s7477_s1 + $0x680] ss:$16 sps:$4 sm:$0xff]  }
  0x2a   :  { %v4905_v34 = vld [vmem:[%s7477_s1 + $0x464] ss:$16 sps:$4 sm:$0xff]   ;;  %v4903_v36 = vld [vmem:[%s7477_s1 + $0x460] ss:$16 sps:$4 sm:$0xff]  }
  0x2b   :  { %3464 = vmatpush2.bf16.msra.mxu0 %v4847_v47  ;;  %v4908_v35 = vld [vmem:[%s7477_s1 + $0x664] ss:$16 sps:$4 sm:$0xff]   ;;  %v4906_v37 = vld [vmem:[%s7477_s1 + $0x660] ss:$16 sps:$4 sm:$0xff]  }
  0x2c   :  { %3505 = vmatpush2.bf16.msra.mxu1 %v4848_v48  ;;  %3465 = vmatprep.subr.bf16.mxu0 %v4849_v50  ;;  %v4911_v38 = vld [vmem:[%s7477_s1 + $0x444] ss:$16 sps:$4 sm:$0xff]   ;;  %v4909_v40 = vld [vmem:[%s7477_s1 + $0x440] ss:$16 sps:$4 sm:$0xff]  }
  0x2d   :  { %3506 = vmatprep.subr.bf16.mxu1 %v4851_v51  ;;  %v4914_v39 = vld [vmem:[%s7477_s1 + $0x644] ss:$16 sps:$4 sm:$0xff]   ;;  %v4912_v41 = vld [vmem:[%s7477_s1 + $0x640] ss:$16 sps:$4 sm:$0xff]  }
  0x2e   :  { %v4917_v43 = vld [vmem:[%s7477_s1 + $0x424] ss:$16 sps:$4 sm:$0xff]   ;;  %v4915_v45 = vld [vmem:[%s7477_s1 + $0x420] ss:$16 sps:$4 sm:$0xff]  }
  0x2f   :  { %3466 = vmatpush2.bf16.msra.mxu0 %v4853_v53  ;;  %v4920_v44 = vld [vmem:[%s7477_s1 + $0x624] ss:$16 sps:$4 sm:$0xff]   ;;  %v4918_v46 = vld [vmem:[%s7477_s1 + $0x620] ss:$16 sps:$4 sm:$0xff]  }
  0x30   :  { %3507 = vmatpush2.bf16.msra.mxu1 %v4854_v55  ;;  %3467 = vmatprep.subr.bf16.mxu0 %v4855_v56  ;;  %v4923_v47 = vld [vmem:[%s7477_s1 + $0x404] ss:$16 sps:$4 sm:$0xff]   ;;  %v4921_v50 = vld [vmem:[%s7477_s1 + $0x400] ss:$16 sps:$4 sm:$0xff]  }
  0x31   :  { %3508 = vmatprep.subr.bf16.mxu1 %v4857_v57  ;;  %v4926_v48 = vld [vmem:[%s7477_s1 + $0x604] ss:$16 sps:$4 sm:$0xff]   ;;  %v4924_v51 = vld [vmem:[%s7477_s1 + $0x600] ss:$16 sps:$4 sm:$0xff]  }
  0x32   :  { %v4929_v52 = vld [vmem:[%s7477_s1 + $0x5e4] ss:$16 sps:$4 sm:$0xff]   ;;  %v4927_v54 = vld [vmem:[%s7477_s1 + $0x5e0] ss:$16 sps:$4 sm:$0xff]  }
  0x33   :  { %3468 = vmatpush2.bf16.msra.mxu0 %v4859_v59  ;;  %v4932_v53 = vld [vmem:[%s7477_s1 + $0x7e4] ss:$16 sps:$4 sm:$0xff]   ;;  %v4930_v55 = vld [vmem:[%s7477_s1 + $0x7e0] ss:$16 sps:$4 sm:$0xff]  }
  0x34   :  { %3509 = vmatpush2.bf16.msra.mxu1 %v4860_v61  ;;  %3469 = vmatprep.subr.bf16.mxu0 %v4861_v62  ;;  %v4935_v56 = vld [vmem:[%s7477_s1 + $0x5c4] ss:$16 sps:$4 sm:$0xff]   ;;  %v4933_v58 = vld [vmem:[%s7477_s1 + $0x5c0] ss:$16 sps:$4 sm:$0xff]  }
  0x35   :  { %3510 = vmatprep.subr.bf16.mxu1 %v4863_v63  ;;  %v4938_v57 = vld [vmem:[%s7477_s1 + $0x7c4] ss:$16 sps:$4 sm:$0xff]   ;;  %v4936_v59 = vld [vmem:[%s7477_s1 + $0x7c0] ss:$16 sps:$4 sm:$0xff]  }
  0x36   :  { %v4941_v61 = vld [vmem:[%s7477_s1 + $0x5a4] ss:$16 sps:$4 sm:$0xff]   ;;  %v4939_v63 = vld [vmem:[%s7477_s1 + $0x5a0] ss:$16 sps:$4 sm:$0xff]  }
  0x37   :  { %3470 = vmatpush2.bf16.msra.mxu0 %v4865_v2  ;;  %v4944_v62 = vld [vmem:[%s7477_s1 + $0x7a4] ss:$16 sps:$4 sm:$0xff]   ;;  %v4942_v1 = vld [vmem:[%s7477_s1 + $0x7a0] ss:$16 sps:$4 sm:$0xff]  }
  0x38   :  { %3511 = vmatpush2.bf16.msra.mxu1 %v4866_v3  ;;  %3471 = vmatprep.subr.bf16.mxu0 %v4867_v4  ;;  %v4947_v2 = vld [vmem:[%s7477_s1 + $0x584] ss:$16 sps:$4 sm:$0xff]   ;;  %v4945_v4 = vld [vmem:[%s7477_s1 + $0x580] ss:$16 sps:$4 sm:$0xff]  }
  0x39   :  { %3512 = vmatprep.subr.bf16.mxu1 %v4869_v5  ;;  %v4950_v3 = vld [vmem:[%s7477_s1 + $0x784] ss:$16 sps:$4 sm:$0xff]   ;;  %v4948_v5 = vld [vmem:[%s7477_s1 + $0x780] ss:$16 sps:$4 sm:$0xff]  }
  0x3a   :  { %v4959_v11 = vld [vmem:[%s7477_s1 + $0x544] ss:$16 sps:$4 sm:$0xff]  }
  0x3b   :  { %3472 = vmatpush2.bf16.msra.mxu0 %v4871_v7  ;;  %v4953_v7 = vld [vmem:[%s7477_s1 + $0x564] ss:$16 sps:$4 sm:$0xff]  }
  0x3c   :  { %3513 = vmatpush2.bf16.msra.mxu1 %v4872_v8  ;;  %3473 = vmatprep.subr.bf16.mxu0 %v4873_v9  ;;  %v4956_v8 = vld [vmem:[%s7477_s1 + $0x764] ss:$16 sps:$4 sm:$0xff]   ;;  %v4951_v9 = vld [vmem:[%s7477_s1 + $0x560] ss:$16 sps:$4 sm:$0xff]  }
  0x3d   :  { %3514 = vmatprep.subr.bf16.mxu1 %v4875_v10  ;;  %v4954_v10 = vld [vmem:[%s7477_s1 + $0x760] ss:$16 sps:$4 sm:$0xff]  }
  0x3f   :  { %3474 = vmatpush2.bf16.msra.mxu0 %v4877_v12  ;;  %v4962_v12 = vld [vmem:[%s7477_s1 + $0x744] ss:$16 sps:$4 sm:$0xff]  }
  0x40   :  { %3515 = vmatpush2.bf16.msra.mxu1 %v4878_v14  ;;  %3525 = vmatprep.subr.bf16.mxu0 %v4881_v15  ;;  %v4957_v14 = vld [vmem:[%s7477_s1 + $0x540] ss:$16 sps:$4 sm:$0xff]  }
  0x41   :  { %3566 = vmatprep.subr.bf16.mxu1 %v4884_v16  ;;  %v4960_v15 = vld [vmem:[%s7477_s1 + $0x740] ss:$16 sps:$4 sm:$0xff]   ;;  %v4965_v16 = vld [vmem:[%s7477_s1 + $0x524] ss:$16 sps:$4 sm:$0xff]  }
  0x42   :  { %3476 = vmatmul.mubr.bf16.vlgmr.msra.gmra.mxu0 %v5851_v13 }
  0x43   :  { %3517 = vmatmul.mubr.bf16.vlgmr.msra.gmra.mxu1 %v5867_v18  ;;  %3526 = vmatpush1.bf16.msra.mxu0 %v4879_v19  ;;  %v4968_v19 = vld [vmem:[%s7477_s1 + $0x724] ss:$16 sps:$4 sm:$0xff]  }
  0x44   :  { %3567 = vmatpush1.bf16.msra.mxu1 %v4882_v20  ;;  %3527 = vmatprep.subr.bf16.mxu0 %v4887_v21  ;;  %v4963_v20 = vld [vmem:[%s7477_s1 + $0x520] ss:$16 sps:$4 sm:$0xff]  }
  0x45   :  { %3568 = vmatprep.subr.bf16.mxu1 %v4890_v22  ;;  %3557 = vmatprep.mubr.bf16.mxu0 %v5863_v17  ;;  %v4966_v21 = vld [vmem:[%s7477_s1 + $0x720] ss:$16 sps:$4 sm:$0xff]   ;;  %v4971_v22 = vld [vmem:[%s7477_s1 + $0x504] ss:$16 sps:$4 sm:$0xff]  }
  0x46   :  { %3598 = vmatprep.mubr.bf16.mxu1 %v5883_v23 }
  0x47   :  { %3528 = vmatpush1.bf16.msra.mxu0 %v4885_v24  ;;  %v4974_v24 = vld [vmem:[%s7477_s1 + $0x704] ss:$16 sps:$4 sm:$0xff]  }
  0x48   :  { %3569 = vmatpush1.bf16.msra.mxu1 %v4888_v25  ;;  %3529 = vmatprep.subr.bf16.mxu0 %v4893_v26  ;;  %v4969_v25 = vld [vmem:[%s7477_s1 + $0x500] ss:$16 sps:$4 sm:$0xff]   ;;  %v6062_v26 = vrot.slane %v5831_v6, %v5773_v49 }
  0x49   :  { %3570 = vmatprep.subr.bf16.mxu1 %v4896_v27  ;;  %v4972_v27 = vld [vmem:[%s7477_s1 + $0x700] ss:$16 sps:$4 sm:$0xff]  }
  0x4a   :  { %v6075_v6 = vcombine.high %v6062_v26, %v6062_v26 }
  0x4b   :  { %3530 = vmatpush1.bf16.msra.mxu0 %v4891_v28  ;;  %v4978_v28 = vld [vmem:[%s7477_s1 + $0x8e4] ss:$16 sps:$4 sm:$0xff]  }
  0x4c   :  { %3571 = vmatpush1.bf16.msra.mxu1 %v4894_v29  ;;  %3531 = vmatprep.subr.bf16.mxu0 %v4899_v30  ;;  %v4981_v29 = vld [vmem:[%s7477_s1 + $0xae4] ss:$16 sps:$4 sm:$0xff]   ;;  %v4976_v30 = vld [vmem:[%s7477_s1 + $0x8e0] ss:$16 sps:$4 sm:$0xff]  }
  0x4d   :  { %3572 = vmatprep.subr.bf16.mxu1 %v4902_v31  ;;  %v4979_v31 = vld [vmem:[%s7477_s1 + $0xae0] ss:$16 sps:$4 sm:$0xff]  }
  0x4f   :  { %3532 = vmatpush1.bf16.msra.mxu0 %v4897_v32  ;;  %v6086_v32 = vld [vmem:[%s7478_s0 + $0x8] sm:$0xff] }
  0x50   :  { %3573 = vmatpush1.bf16.msra.mxu1 %v4900_v33  ;;  %3533 = vmatprep.subr.bf16.mxu0 %v4905_v34  ;;  %v4984_v33 = vld [vmem:[%s7477_s1 + $0x8c4] ss:$16 sps:$4 sm:$0xff]  }
  0x51   :  { %3574 = vmatprep.subr.bf16.mxu1 %v4908_v35  ;;  %v4987_v34 = vld [vmem:[%s7477_s1 + $0xac4] ss:$16 sps:$4 sm:$0xff]   ;;  %v6096_v35 = vrot.slane %v6086_v32, %v5773_v49 }
  0x53   :  { %3534 = vmatpush1.bf16.msra.mxu0 %v4903_v36  ;;  %v658_v36 = vcombine.high %v6096_v35, %v6096_v35 }
  0x54   :  { %3575 = vmatpush1.bf16.msra.mxu1 %v4906_v37  ;;  %3535 = vmatprep.subr.bf16.mxu0 %v4911_v38  ;;  %v4982_v37 = vld [vmem:[%s7477_s1 + $0x8c0] ss:$16 sps:$4 sm:$0xff]  }
  0x55   :  { %3576 = vmatprep.subr.bf16.mxu1 %v4914_v39  ;;  %v4985_v38 = vld [vmem:[%s7477_s1 + $0xac0] ss:$16 sps:$4 sm:$0xff]   ;;  %v4990_v39 = vld [vmem:[%s7477_s1 + $0x8a4] ss:$16 sps:$4 sm:$0xff]  }
  0x57   :  { %3536 = vmatpush1.bf16.msra.mxu0 %v4909_v40  ;;  %v4993_v40 = vld [vmem:[%s7477_s1 + $0xaa4] ss:$16 sps:$4 sm:$0xff]  }
  0x58   :  { %3577 = vmatpush1.bf16.msra.mxu1 %v4912_v41  ;;  %3537 = vmatprep.subr.bf16.mxu0 %v4917_v43  ;;  %v6115_v41 = vrot.slane %v658_v36, %v5773_v49  ;;  %v5054_v36 = vld [vmem:[%s7477_s1 + $0x940] ss:$16 sps:$4 sm:$0xff]  }
  0x59   :  { %3578 = vmatprep.subr.bf16.mxu1 %v4920_v44  ;;  %v4988_v44 = vld [vmem:[%s7477_s1 + $0x8a0] ss:$16 sps:$4 sm:$0xff]  }
  0x5a   :  { %v6120_v43 = vcombine.high %v6115_v41, %v6115_v41 }
  0x5b   :  { %3538 = vmatpush1.bf16.msra.mxu0 %v4915_v45  ;;  %v4991_v45 = vld [vmem:[%s7477_s1 + $0xaa0] ss:$16 sps:$4 sm:$0xff]  }
  0x5c   :  { %3579 = vmatpush1.bf16.msra.mxu1 %v4918_v46  ;;  %3539 = vmatprep.subr.bf16.mxu0 %v4923_v47  ;;  %v4996_v46 = vld [vmem:[%s7477_s1 + $0x884] ss:$16 sps:$4 sm:$0xff]  }
  0x5d   :  { %3580 = vmatprep.subr.bf16.mxu1 %v4926_v48  ;;  %v4999_v47 = vld [vmem:[%s7477_s1 + $0xa84] ss:$16 sps:$4 sm:$0xff]   ;;  %v4994_v48 = vld [vmem:[%s7477_s1 + $0x880] ss:$16 sps:$4 sm:$0xff]  }
  0x5f   :  { %3540 = vmatpush1.bf16.msra.mxu0 %v4921_v50  ;;  %v4997_v50 = vld [vmem:[%s7477_s1 + $0xa80] ss:$16 sps:$4 sm:$0xff]  }
  0x60   :  { %3581 = vmatpush1.bf16.msra.mxu1 %v4924_v51  ;;  %3541 = vmatprep.subr.bf16.mxu0 %v4929_v52  ;;  %v5002_v51 = vld [vmem:[%s7477_s1 + $0x864] ss:$16 sps:$4 sm:$0xff]  }
  0x61   :  { %3582 = vmatprep.subr.bf16.mxu1 %v4932_v53  ;;  %v5005_v52 = vld [vmem:[%s7477_s1 + $0xa64] ss:$16 sps:$4 sm:$0xff]   ;;  %v5000_v53 = vld [vmem:[%s7477_s1 + $0x860] ss:$16 sps:$4 sm:$0xff]  }
  0x63   :  { %3542 = vmatpush2.bf16.msra.mxu0 %v4927_v54  ;;  %v5003_v54 = vld [vmem:[%s7477_s1 + $0xa60] ss:$16 sps:$4 sm:$0xff]  }
  0x64   :  { %3583 = vmatpush2.bf16.msra.mxu1 %v4930_v55  ;;  %3543 = vmatprep.subr.bf16.mxu0 %v4935_v56  ;;  %v5008_v55 = vld [vmem:[%s7477_s1 + $0x844] ss:$16 sps:$4 sm:$0xff]  }
  0x65   :  { %3584 = vmatprep.subr.bf16.mxu1 %v4938_v57  ;;  %v5011_v56 = vld [vmem:[%s7477_s1 + $0xa44] ss:$16 sps:$4 sm:$0xff]   ;;  %v5006_v57 = vld [vmem:[%s7477_s1 + $0x840] ss:$16 sps:$4 sm:$0xff]  }
  0x67   :  { %3544 = vmatpush2.bf16.msra.mxu0 %v4933_v58  ;;  %v5009_v58 = vld [vmem:[%s7477_s1 + $0xa40] ss:$16 sps:$4 sm:$0xff]  }
  0x68   :  { %3585 = vmatpush2.bf16.msra.mxu1 %v4936_v59  ;;  %3545 = vmatprep.subr.bf16.mxu0 %v4941_v61  ;;  %v5014_v59 = vld [vmem:[%s7477_s1 + $0x824] ss:$16 sps:$4 sm:$0xff]  }
  0x69   :  { %3586 = vmatprep.subr.bf16.mxu1 %v4944_v62  ;;  %v5017_v61 = vld [vmem:[%s7477_s1 + $0xa24] ss:$16 sps:$4 sm:$0xff]   ;;  %v5012_v62 = vld [vmem:[%s7477_s1 + $0x820] ss:$16 sps:$4 sm:$0xff]  }
  0x6b   :  { %3546 = vmatpush2.bf16.msra.mxu0 %v4939_v63  ;;  %v5015_v63 = vld [vmem:[%s7477_s1 + $0xa20] ss:$16 sps:$4 sm:$0xff]  }
  0x6c   :  { %3587 = vmatpush2.bf16.msra.mxu1 %v4942_v1  ;;  %3547 = vmatprep.subr.bf16.mxu0 %v4947_v2  ;;  %v5020_v1 = vld [vmem:[%s7477_s1 + $0x804] ss:$16 sps:$4 sm:$0xff]  }
  0x6d   :  { %3588 = vmatprep.subr.bf16.mxu1 %v4950_v3  ;;  %v5023_v2 = vld [vmem:[%s7477_s1 + $0xa04] ss:$16 sps:$4 sm:$0xff]   ;;  %v5018_v3 = vld [vmem:[%s7477_s1 + $0x800] ss:$16 sps:$4 sm:$0xff]  }
  0x6f   :  { %3548 = vmatpush2.bf16.msra.mxu0 %v4945_v4  ;;  %v5021_v4 = vld [vmem:[%s7477_s1 + $0xa00] ss:$16 sps:$4 sm:$0xff]  }
  0x70   :  { %3589 = vmatpush2.bf16.msra.mxu1 %v4948_v5  ;;  %3549 = vmatprep.subr.bf16.mxu0 %v4953_v7  ;;  %v5026_v5 = vld [vmem:[%s7477_s1 + $0x9e4] ss:$16 sps:$4 sm:$0xff]  }
  0x71   :  { %3590 = vmatprep.subr.bf16.mxu1 %v4956_v8  ;;  %v5029_v7 = vld [vmem:[%s7477_s1 + $0xbe4] ss:$16 sps:$4 sm:$0xff]   ;;  %v5024_v8 = vld [vmem:[%s7477_s1 + $0x9e0] ss:$16 sps:$4 sm:$0xff]  }
  0x73   :  { %3550 = vmatpush2.bf16.msra.mxu0 %v4951_v9  ;;  %v5027_v9 = vld [vmem:[%s7477_s1 + $0xbe0] ss:$16 sps:$4 sm:$0xff]  }
  0x74   :  { %3591 = vmatpush2.bf16.msra.mxu1 %v4954_v10  ;;  %3551 = vmatprep.subr.bf16.mxu0 %v4959_v11  ;;  %v5032_v10 = vld [vmem:[%s7477_s1 + $0x9c4] ss:$16 sps:$4 sm:$0xff]  }
  0x75   :  { %3592 = vmatprep.subr.bf16.mxu1 %v4962_v12  ;;  %v5035_v11 = vld [vmem:[%s7477_s1 + $0xbc4] ss:$16 sps:$4 sm:$0xff]   ;;  %v5030_v12 = vld [vmem:[%s7477_s1 + $0x9c0] ss:$16 sps:$4 sm:$0xff]  }
  0x77   :  { %3552 = vmatpush2.bf16.msra.mxu0 %v4957_v14  ;;  %v5033_v14 = vld [vmem:[%s7477_s1 + $0xbc0] ss:$16 sps:$4 sm:$0xff]  }
  0x78   :  { %3593 = vmatpush2.bf16.msra.mxu1 %v4960_v15  ;;  %3553 = vmatprep.subr.bf16.mxu0 %v4965_v16  ;;  %v5038_v15 = vld [vmem:[%s7477_s1 + $0x9a4] ss:$16 sps:$4 sm:$0xff]  }
  0x79   :  { %3594 = vmatprep.subr.bf16.mxu1 %v4968_v19  ;;  %v5041_v16 = vld [vmem:[%s7477_s1 + $0xba4] ss:$16 sps:$4 sm:$0xff]   ;;  %v5036_v19 = vld [vmem:[%s7477_s1 + $0x9a0] ss:$16 sps:$4 sm:$0xff]  }
  0x7b   :  { %3554 = vmatpush2.bf16.msra.mxu0 %v4963_v20  ;;  %v5039_v20 = vld [vmem:[%s7477_s1 + $0xba0] ss:$16 sps:$4 sm:$0xff]  }
  0x7c   :  { %3595 = vmatpush2.bf16.msra.mxu1 %v4966_v21  ;;  %3555 = vmatprep.subr.bf16.mxu0 %v4971_v22  ;;  %v5044_v21 = vld [vmem:[%s7477_s1 + $0x984] ss:$16 sps:$4 sm:$0xff]  }
  0x7d   :  { %3596 = vmatprep.subr.bf16.mxu1 %v4974_v24  ;;  %v5047_v22 = vld [vmem:[%s7477_s1 + $0xb84] ss:$16 sps:$4 sm:$0xff]   ;;  %v5042_v24 = vld [vmem:[%s7477_s1 + $0x980] ss:$16 sps:$4 sm:$0xff]  }
  0x7f   :  { %3556 = vmatpush2.bf16.msra.mxu0 %v4969_v25  ;;  %v5045_v25 = vld [vmem:[%s7477_s1 + $0xb80] ss:$16 sps:$4 sm:$0xff]  }
  0x80   :  { %3597 = vmatpush2.bf16.msra.mxu1 %v4972_v27  ;;  %3607 = vmatprep.subr.bf16.mxu0 %v4978_v28  ;;  %v5050_v27 = vld [vmem:[%s7477_s1 + $0x964] ss:$16 sps:$4 sm:$0xff]  }
  0x81   :  { %3648 = vmatprep.subr.bf16.mxu1 %v4981_v29  ;;  %v5053_v28 = vld [vmem:[%s7477_s1 + $0xb64] ss:$16 sps:$4 sm:$0xff]   ;;  %v5048_v29 = vld [vmem:[%s7477_s1 + $0x960] ss:$16 sps:$4 sm:$0xff]  }
  0x82   :  { %3558 = vmatmul.mubr.bf16.vlgmr.msra.gmra.mxu0 %v6062_v26 }
  0x83   :  { %3599 = vmatmul.mubr.bf16.vlgmr.msra.gmra.mxu1 %v6075_v6  ;;  %3608 = vmatpush1.bf16.msra.mxu0 %v4976_v30  ;;  %v5051_v30 = vld [vmem:[%s7477_s1 + $0xb60] ss:$16 sps:$4 sm:$0xff]  }
  0x84   :  { %3649 = vmatpush1.bf16.msra.mxu1 %v4979_v31  ;;  %3609 = vmatprep.subr.bf16.mxu0 %v4984_v33  ;;  %v5056_v31 = vld [vmem:[%s7477_s1 + $0x944] ss:$16 sps:$4 sm:$0xff]  }
  0x85   :  { %3650 = vmatprep.subr.bf16.mxu1 %v4987_v34  ;;  %3639 = vmatprep.mubr.bf16.mxu0 %v6115_v41  ;;  %v5059_v33 = vld [vmem:[%s7477_s1 + $0xb44] ss:$16 sps:$4 sm:$0xff]   ;;  %v643_v34 = vcombine.high %v6086_v32, %v6086_v32 }
  0x86   :  { %3680 = vmatprep.mubr.bf16.mxu1 %v6120_v43  ;;  %v5065_v32 = vld [vmem:[%s7477_s1 + $0xb24] ss:$16 sps:$4 sm:$0xff]  }
  0x87   :  { %3610 = vmatpush1.bf16.msra.mxu0 %v4982_v37  ;;  %v5057_v37 = vld [vmem:[%s7477_s1 + $0xb40] ss:$16 sps:$4 sm:$0xff]  }
  0x88   :  { %3651 = vmatpush1.bf16.msra.mxu1 %v4985_v38  ;;  %3611 = vmatprep.subr.bf16.mxu0 %v4990_v39  ;;  %v5062_v38 = vld [vmem:[%s7477_s1 + $0x924] ss:$16 sps:$4 sm:$0xff]   ;;  %v6270_v39 = vrot.slane %v643_v34, %v5773_v49  ;;  %v5123_v34 = vld [vmem:[%s7477_s1 + $0xfe0] ss:$16 sps:$4 sm:$0xff]  }
  0x89   :  { %3652 = vmatprep.subr.bf16.mxu1 %v4993_v40  ;;  %v5060_v40 = vld [vmem:[%s7477_s1 + $0x920] ss:$16 sps:$4 sm:$0xff]  }
  0x8b   :  { %3612 = vmatpush1.bf16.msra.mxu0 %v4988_v44  ;;  %v5063_v44 = vld [vmem:[%s7477_s1 + $0xb20] ss:$16 sps:$4 sm:$0xff]  }
  0x8c   :  { %3653 = vmatpush1.bf16.msra.mxu1 %v4991_v45  ;;  %3613 = vmatprep.subr.bf16.mxu0 %v4996_v46  ;;  %v5068_v45 = vld [vmem:[%s7477_s1 + $0x904] ss:$16 sps:$4 sm:$0xff]  }
  0x8d   :  { %3654 = vmatprep.subr.bf16.mxu1 %v4999_v47  ;;  %v5071_v46 = vld [vmem:[%s7477_s1 + $0xb04] ss:$16 sps:$4 sm:$0xff]   ;;  %v659_v47 = vcombine.high %v6270_v39, %v6270_v39 }
  0x8f   :  { %3614 = vmatpush1.bf16.msra.mxu0 %v4994_v48  ;;  %v5066_v48 = vld [vmem:[%s7477_s1 + $0x900] ss:$16 sps:$4 sm:$0xff]  }
  0x90   :  { %3655 = vmatpush1.bf16.msra.mxu1 %v4997_v50  ;;  %3615 = vmatprep.subr.bf16.mxu0 %v5002_v51  ;;  %v6291_v50 = vrot.slane %v6096_v35, %v5773_v49  ;;  %v5069_v51 = vld [vmem:[%s7477_s1 + $0xb00] ss:$16 sps:$4 sm:$0xff]  }
  0x91   :  { %3656 = vmatprep.subr.bf16.mxu1 %v5005_v52  ;;  %v5074_v52 = vld [vmem:[%s7477_s1 + $0xce4] ss:$16 sps:$4 sm:$0xff]  }
  0x92   :  { %v6307_v35 = vcombine.high %v6291_v50, %v6291_v50 }
  0x93   :  { %3616 = vmatpush1.bf16.msra.mxu0 %v5000_v53  ;;  %v5077_v53 = vld [vmem:[%s7477_s1 + $0xee4] ss:$16 sps:$4 sm:$0xff]  }
  0x94   :  { %3657 = vmatpush1.bf16.msra.mxu1 %v5003_v54  ;;  %3617 = vmatprep.subr.bf16.mxu0 %v5008_v55  ;;  %v6303_v54 = vrot.slane %v659_v47, %v5773_v49  ;;  %v5072_v55 = vld [vmem:[%s7477_s1 + $0xce0] ss:$16 sps:$4 sm:$0xff]   ;;  %v5140_v47 = vld [vmem:[%s7477_s1 + $0xd84] ss:$16 sps:$4 sm:$0xff]  }
  0x95   :  { %3658 = vmatprep.subr.bf16.mxu1 %v5011_v56  ;;  %v5075_v56 = vld [vmem:[%s7477_s1 + $0xee0] ss:$16 sps:$4 sm:$0xff]  }
  0x97   :  { %3618 = vmatpush1.bf16.msra.mxu0 %v5006_v57  ;;  %v5080_v57 = vld [vmem:[%s7477_s1 + $0xcc4] ss:$16 sps:$4 sm:$0xff]  }
  0x98   :  { %3659 = vmatpush1.bf16.msra.mxu1 %v5009_v58  ;;  %3619 = vmatprep.subr.bf16.mxu0 %v5014_v59  ;;  %v5083_v58 = vld [vmem:[%s7477_s1 + $0xec4] ss:$16 sps:$4 sm:$0xff]   ;;  %v6323_v59 = vcombine.high %v6303_v54, %v6303_v54 }
  0x99   :  { %3660 = vmatprep.subr.bf16.mxu1 %v5017_v61  ;;  %v5078_v61 = vld [vmem:[%s7477_s1 + $0xcc0] ss:$16 sps:$4 sm:$0xff]  }
  0x9b   :  { %3620 = vmatpush1.bf16.msra.mxu0 %v5012_v62  ;;  %v5081_v62 = vld [vmem:[%s7477_s1 + $0xec0] ss:$16 sps:$4 sm:$0xff]  }
  0x9c   :  { %3661 = vmatpush1.bf16.msra.mxu1 %v5015_v63  ;;  %3621 = vmatprep.subr.bf16.mxu0 %v5020_v1  ;;  %v5086_v63 = vld [vmem:[%s7477_s1 + $0xca4] ss:$16 sps:$4 sm:$0xff]  }
  0x9d   :  { %3662 = vmatprep.subr.bf16.mxu1 %v5023_v2  ;;  %v5089_v1 = vld [vmem:[%s7477_s1 + $0xea4] ss:$16 sps:$4 sm:$0xff]   ;;  %v5084_v2 = vld [vmem:[%s7477_s1 + $0xca0] ss:$16 sps:$4 sm:$0xff]  }
  0x9f   :  { %3622 = vmatpush1.bf16.msra.mxu0 %v5018_v3  ;;  %v5087_v3 = vld [vmem:[%s7477_s1 + $0xea0] ss:$16 sps:$4 sm:$0xff]  }
  0xa0   :  { %3663 = vmatpush1.bf16.msra.mxu1 %v5021_v4  ;;  %3623 = vmatprep.subr.bf16.mxu0 %v5026_v5  ;;  %v5092_v4 = vld [vmem:[%s7477_s1 + $0xc84] ss:$16 sps:$4 sm:$0xff]  }
  0xa1   :  { %3664 = vmatprep.subr.bf16.mxu1 %v5029_v7  ;;  %v5095_v5 = vld [vmem:[%s7477_s1 + $0xe84] ss:$16 sps:$4 sm:$0xff]   ;;  %v5090_v7 = vld [vmem:[%s7477_s1 + $0xc80] ss:$16 sps:$4 sm:$0xff]  }
  0xa3   :  { %3624 = vmatpush2.bf16.msra.mxu0 %v5024_v8  ;;  %v5093_v8 = vld [vmem:[%s7477_s1 + $0xe80] ss:$16 sps:$4 sm:$0xff]  }
  0xa4   :  { %3665 = vmatpush2.bf16.msra.mxu1 %v5027_v9  ;;  %3625 = vmatprep.subr.bf16.mxu0 %v5032_v10  ;;  %v5098_v9 = vld [vmem:[%s7477_s1 + $0xc64] ss:$16 sps:$4 sm:$0xff]  }
  0xa5   :  { %3666 = vmatprep.subr.bf16.mxu1 %v5035_v11  ;;  %v5101_v10 = vld [vmem:[%s7477_s1 + $0xe64] ss:$16 sps:$4 sm:$0xff]   ;;  %v5096_v11 = vld [vmem:[%s7477_s1 + $0xc60] ss:$16 sps:$4 sm:$0xff]  }
  0xa7   :  { %3626 = vmatpush2.bf16.msra.mxu0 %v5030_v12  ;;  %v5099_v12 = vld [vmem:[%s7477_s1 + $0xe60] ss:$16 sps:$4 sm:$0xff]  }
  0xa8   :  { %3667 = vmatpush2.bf16.msra.mxu1 %v5033_v14  ;;  %3627 = vmatprep.subr.bf16.mxu0 %v5038_v15  ;;  %v5104_v14 = vld [vmem:[%s7477_s1 + $0xc44] ss:$16 sps:$4 sm:$0xff]  }
  0xa9   :  { %3668 = vmatprep.subr.bf16.mxu1 %v5041_v16  ;;  %v5107_v15 = vld [vmem:[%s7477_s1 + $0xe44] ss:$16 sps:$4 sm:$0xff]   ;;  %v5102_v16 = vld [vmem:[%s7477_s1 + $0xc40] ss:$16 sps:$4 sm:$0xff]  }
  0xab   :  { %3628 = vmatpush2.bf16.msra.mxu0 %v5036_v19  ;;  %v5105_v19 = vld [vmem:[%s7477_s1 + $0xe40] ss:$16 sps:$4 sm:$0xff]  }
  0xac   :  { %3669 = vmatpush2.bf16.msra.mxu1 %v5039_v20  ;;  %3629 = vmatprep.subr.bf16.mxu0 %v5044_v21  ;;  %v5110_v20 = vld [vmem:[%s7477_s1 + $0xc24] ss:$16 sps:$4 sm:$0xff]  }
  0xad   :  { %3670 = vmatprep.subr.bf16.mxu1 %v5047_v22  ;;  %v5113_v21 = vld [vmem:[%s7477_s1 + $0xe24] ss:$16 sps:$4 sm:$0xff]   ;;  %v5108_v22 = vld [vmem:[%s7477_s1 + $0xc20] ss:$16 sps:$4 sm:$0xff]  }
  0xaf   :  { %3630 = vmatpush2.bf16.msra.mxu0 %v5042_v24  ;;  %v5111_v24 = vld [vmem:[%s7477_s1 + $0xe20] ss:$16 sps:$4 sm:$0xff]  }
  0xb0   :  { %3671 = vmatpush2.bf16.msra.mxu1 %v5045_v25  ;;  %3631 = vmatprep.subr.bf16.mxu0 %v5050_v27  ;;  %v5116_v25 = vld [vmem:[%s7477_s1 + $0xc04] ss:$16 sps:$4 sm:$0xff]  }
  0xb1   :  { %3672 = vmatprep.subr.bf16.mxu1 %v5053_v28  ;;  %v5119_v27 = vld [vmem:[%s7477_s1 + $0xe04] ss:$16 sps:$4 sm:$0xff]   ;;  %v5114_v28 = vld [vmem:[%s7477_s1 + $0xc00] ss:$16 sps:$4 sm:$0xff]  }
  0xb3   :  { %3632 = vmatpush2.bf16.msra.mxu0 %v5048_v29  ;;  %v5117_v29 = vld [vmem:[%s7477_s1 + $0xe00] ss:$16 sps:$4 sm:$0xff]  }
  0xb4   :  { %3673 = vmatpush2.bf16.msra.mxu1 %v5051_v30  ;;  %3633 = vmatprep.subr.bf16.mxu0 %v5056_v31  ;;  %v5122_v30 = vld [vmem:[%s7477_s1 + $0xde4] ss:$16 sps:$4 sm:$0xff]  }
  0xb5   :  { %3674 = vmatprep.subr.bf16.mxu1 %v5059_v33  ;;  %v5125_v31 = vld [vmem:[%s7477_s1 + $0xfe4] ss:$16 sps:$4 sm:$0xff]   ;;  %v5120_v33 = vld [vmem:[%s7477_s1 + $0xde0] ss:$16 sps:$4 sm:$0xff]  }
  0xb7   :  { %3634 = vmatpush2.bf16.msra.mxu0 %v5054_v36  ;;  %v5128_v36 = vld [vmem:[%s7477_s1 + $0xdc4] ss:$16 sps:$4 sm:$0xff]  }
  0xb8   :  { %3675 = vmatpush2.bf16.msra.mxu1 %v5057_v37  ;;  %3635 = vmatprep.subr.bf16.mxu0 %v5062_v38  ;;  %v5131_v37 = vld [vmem:[%s7477_s1 + $0xfc4] ss:$16 sps:$4 sm:$0xff]   ;;  %v5126_v38 = vld [vmem:[%s7477_s1 + $0xdc0] ss:$16 sps:$4 sm:$0xff]  }
  0xb9   :  { %3676 = vmatprep.subr.bf16.mxu1 %v5065_v32  ;;  %v5129_v32 = vld [vmem:[%s7477_s1 + $0xfc0] ss:$16 sps:$4 sm:$0xff]  }
  0xbb   :  { %3636 = vmatpush2.bf16.msra.mxu0 %v5060_v40  ;;  %v5134_v40 = vld [vmem:[%s7477_s1 + $0xda4] ss:$16 sps:$4 sm:$0xff]  }
  0xbc   :  { %3677 = vmatpush2.bf16.msra.mxu1 %v5063_v44  ;;  %3637 = vmatprep.subr.bf16.mxu0 %v5068_v45  ;;  %v5137_v44 = vld [vmem:[%s7477_s1 + $0xfa4] ss:$16 sps:$4 sm:$0xff]   ;;  %v5132_v45 = vld [vmem:[%s7477_s1 + $0xda0] ss:$16 sps:$4 sm:$0xff]  }
  0xbd   :  { %3678 = vmatprep.subr.bf16.mxu1 %v5071_v46  ;;  %v5135_v46 = vld [vmem:[%s7477_s1 + $0xfa0] ss:$16 sps:$4 sm:$0xff]  }
  0xbf   :  { %3638 = vmatpush2.bf16.msra.mxu0 %v5066_v48  ;;  %v5143_v48 = vld [vmem:[%s7477_s1 + $0xf84] ss:$16 sps:$4 sm:$0xff]  }
  0xc0   :  { %3679 = vmatpush2.bf16.msra.mxu1 %v5069_v51  ;;  %3689 = vmatprep.subr.bf16.mxu0 %v5074_v52  ;;  %v5138_v51 = vld [vmem:[%s7477_s1 + $0xd80] ss:$16 sps:$4 sm:$0xff]  }
  0xc1   :  { %3730 = vmatprep.subr.bf16.mxu1 %v5077_v53  ;;  %v5141_v52 = vld [vmem:[%s7477_s1 + $0xf80] ss:$16 sps:$4 sm:$0xff]   ;;  %v5146_v53 = vld [vmem:[%s7477_s1 + $0xd64] ss:$16 sps:$4 sm:$0xff]  }
  0xc2   :  { %3640 = vmatmul.mubr.bf16.vlgmr.msra.gmra.mxu0 %v6291_v50 }
  0xc3   :  { %3681 = vmatmul.mubr.bf16.vlgmr.msra.gmra.mxu1 %v6307_v35  ;;  %3690 = vmatpush1.bf16.msra.mxu0 %v5072_v55  ;;  %v5149_v55 = vld [vmem:[%s7477_s1 + $0xf64] ss:$16 sps:$4 sm:$0xff]  }
  0xc4   :  { %3731 = vmatpush1.bf16.msra.mxu1 %v5075_v56  ;;  %3691 = vmatprep.subr.bf16.mxu0 %v5080_v57  ;;  %v5144_v56 = vld [vmem:[%s7477_s1 + $0xd60] ss:$16 sps:$4 sm:$0xff]  }
  0xc5   :  { %3732 = vmatprep.subr.bf16.mxu1 %v5083_v58  ;;  %3721 = vmatprep.mubr.bf16.mxu0 %v6303_v54  ;;  %v5147_v57 = vld [vmem:[%s7477_s1 + $0xf60] ss:$16 sps:$4 sm:$0xff]   ;;  %v5152_v58 = vld [vmem:[%s7477_s1 + $0xd44] ss:$16 sps:$4 sm:$0xff]  }
  0xc6   :  { %3762 = vmatprep.mubr.bf16.mxu1 %v6323_v59 }
  0xc7   :  { %3692 = vmatpush1.bf16.msra.mxu0 %v5078_v61  ;;  %v5155_v61 = vld [vmem:[%s7477_s1 + $0xf44] ss:$16 sps:$4 sm:$0xff]  }
  0xc8   :  { %3733 = vmatpush1.bf16.msra.mxu1 %v5081_v62  ;;  %3693 = vmatprep.subr.bf16.mxu0 %v5086_v63  ;;  %v5150_v62 = vld [vmem:[%s7477_s1 + $0xd40] ss:$16 sps:$4 sm:$0xff]  }
  0xc9   :  { %3734 = vmatprep.subr.bf16.mxu1 %v5089_v1  ;;  %v5153_v63 = vld [vmem:[%s7477_s1 + $0xf40] ss:$16 sps:$4 sm:$0xff]   ;;  %v5158_v1 = vld [vmem:[%s7477_s1 + $0xd24] ss:$16 sps:$4 sm:$0xff]  }
  0xcb   :  { %3694 = vmatpush1.bf16.msra.mxu0 %v5084_v2  ;;  %v5161_v2 = vld [vmem:[%s7477_s1 + $0xf24] ss:$16 sps:$4 sm:$0xff]  }
  0xcc   :  { %3735 = vmatpush1.bf16.msra.mxu1 %v5087_v3  ;;  %3695 = vmatprep.subr.bf16.mxu0 %v5092_v4  ;;  %v5156_v3 = vld [vmem:[%s7477_s1 + $0xd20] ss:$16 sps:$4 sm:$0xff]  }
  0xcd   :  { %3736 = vmatprep.subr.bf16.mxu1 %v5095_v5  ;;  %v5159_v4 = vld [vmem:[%s7477_s1 + $0xf20] ss:$16 sps:$4 sm:$0xff]   ;;  %v5164_v5 = vld [vmem:[%s7477_s1 + $0xd04] ss:$16 sps:$4 sm:$0xff]  }
  0xcf   :  { %3696 = vmatpush1.bf16.msra.mxu0 %v5090_v7  ;;  %v5167_v7 = vld [vmem:[%s7477_s1 + $0xf04] ss:$16 sps:$4 sm:$0xff]  }
  0xd0   :  { %3737 = vmatpush1.bf16.msra.mxu1 %v5093_v8  ;;  %3697 = vmatprep.subr.bf16.mxu0 %v5098_v9  ;;  %v5162_v8 = vld [vmem:[%s7477_s1 + $0xd00] ss:$16 sps:$4 sm:$0xff]  }
  0xd1   :  { %3738 = vmatprep.subr.bf16.mxu1 %v5101_v10  ;;  %v5165_v9 = vld [vmem:[%s7477_s1 + $0xf00] ss:$16 sps:$4 sm:$0xff]  }
  0xd2   :  { %v569_v10 = vld [vmem:[%s7479_s2] sm:$0xf] }
  0xd3   :  { %3698 = vmatpush1.bf16.msra.mxu0 %v5096_v11  ;;  %v6508_v11 = vrot.slane %v6270_v39, %v5773_v49 }
  0xd4   :  { %3739 = vmatpush1.bf16.msra.mxu1 %v5099_v12  ;;  %3699 = vmatprep.subr.bf16.mxu0 %v5104_v14  ;;  %v573_v12 = vsub.s32 0, %v5755_v42  ;;  %v5171_v14 = vld [vmem:[%s7477_s1 + $0x10e4] ss:$16 sps:$4 sm:$0xff]  }
  0xd5   :  { %3740 = vmatprep.subr.bf16.mxu1 %v5107_v15  ;;  %v5174_v15 = vld [vmem:[%s7477_s1 + $0xec] ss:$16 sps:$4 sm:$0xff]   ;;  %v6520_v39 = vcombine.high %v6508_v11, %v6508_v11 }
  0xd7   :  { %3700 = vmatpush1.bf16.msra.mxu0 %v5102_v16  ;;  %v577_v16 = vsub.s32 1, %v5755_v42 }
  0xd8   :  { %3741 = vmatpush1.bf16.msra.mxu1 %v5105_v19  ;;  %3701 = vmatprep.subr.bf16.mxu0 %v5110_v20  ;;  %v5169_v19 = vld [vmem:[%s7477_s1 + $0x10e0] ss:$16 sps:$4 sm:$0xff]   ;;  %v5172_v20 = vld [vmem:[%s7477_s1 + $0xe8] ss:$16 sps:$4 sm:$0xff]  }
  0xd9   :  { %3742 = vmatprep.subr.bf16.mxu1 %v5113_v21  ;;  %v574_v21 = vrot.slane %v569_v10, %v573_v12 }
  0xdb   :  { %3702 = vmatpush1.bf16.msra.mxu0 %v5108_v22  ;;  %v5177_v22 = vld [vmem:[%s7477_s1 + $0x10c4] ss:$16 sps:$4 sm:$0xff]  }
  0xdc   :  { %3743 = vmatpush1.bf16.msra.mxu1 %v5111_v24  ;;  %3703 = vmatprep.subr.bf16.mxu0 %v5116_v25  ;;  %v5180_v24 = vld [vmem:[%s7477_s1 + $0xcc] ss:$16 sps:$4 sm:$0xff]   ;;  %v578_v25 = vrot.slane %v569_v10, %v577_v16 }
  0xdd   :  { %3744 = vmatprep.subr.bf16.mxu1 %v5119_v27  ;;  %v5216_v10 = vld [vmem:[%s7477_s1 + $0xc] ss:$16 sps:$4 sm:$0xff]  }
  0xdf   :  { %3704 = vmatpush1.bf16.msra.mxu0 %v5114_v28 }
  0xe0   :  { %3745 = vmatpush1.bf16.msra.mxu1 %v5117_v29  ;;  %3705 = vmatprep.subr.bf16.mxu0 %v5122_v30  ;;  %v5175_v29 = vld [vmem:[%s7477_s1 + $0x10c0] ss:$16 sps:$4 sm:$0xff]   ;;  %v5178_v30 = vld [vmem:[%s7477_s1 + $0xc8] ss:$16 sps:$4 sm:$0xff]  }
  0xe1   :  { %3746 = vmatprep.subr.bf16.mxu1 %v5125_v31 }
  0xe3   :  { %3706 = vmatpush2.bf16.msra.mxu0 %v5120_v33 }
  0xe4   :  { %3747 = vmatpush2.bf16.msra.mxu1 %v5123_v34  ;;  %3707 = vmatprep.subr.bf16.mxu0 %v5128_v36  ;;  %v5183_v36 = vld [vmem:[%s7477_s1 + $0x10a4] ss:$16 sps:$4 sm:$0xff]  }
  0xe5   :  { %3748 = vmatprep.subr.bf16.mxu1 %v5131_v37  ;;  %v5186_v37 = vld [vmem:[%s7477_s1 + $0xac] ss:$16 sps:$4 sm:$0xff]  }
  0xe7   :  { %3708 = vmatpush2.bf16.msra.mxu0 %v5126_v38 }
  0xe8   :  { %3749 = vmatpush2.bf16.msra.mxu1 %v5129_v32  ;;  %3709 = vmatprep.subr.bf16.mxu0 %v5134_v40  ;;  %v5181_v40 = vld [vmem:[%s7477_s1 + $0x10a0] ss:$16 sps:$4 sm:$0xff]  }
  0xe9   :  { %3750 = vmatprep.subr.bf16.mxu1 %v5137_v44  ;;  %v5184_v44 = vld [vmem:[%s7477_s1 + $0xa8] ss:$16 sps:$4 sm:$0xff]  }
  0xeb   :  { %3710 = vmatpush2.bf16.msra.mxu0 %v5132_v45  ;;  %v5607_v45 = vmov 0  }
  0xec   :  { %3751 = vmatpush2.bf16.msra.mxu1 %v5135_v46  ;;  %3711 = vmatprep.subr.bf16.mxu0 %v5140_v47 }
  0xed   :  { %3752 = vmatprep.subr.bf16.mxu1 %v5143_v48 }
  0xef   :  { %3712 = vmatpush2.bf16.msra.mxu0 %v5138_v51 }
  0xf0   :  { %3753 = vmatpush2.bf16.msra.mxu1 %v5141_v52  ;;  %3713 = vmatprep.subr.bf16.mxu0 %v5146_v53  ;;  %v5189_v53 = vld [vmem:[%s7477_s1 + $0x1084] ss:$16 sps:$4 sm:$0xff]  }
  0xf1   :  { %3754 = vmatprep.subr.bf16.mxu1 %v5149_v55  ;;  %v5192_v55 = vld [vmem:[%s7477_s1 + $0x8c] ss:$16 sps:$4 sm:$0xff]  }
  0xf3   :  { %3714 = vmatpush2.bf16.msra.mxu0 %v5144_v56  ;;  %v5190_v56 = vld [vmem:[%s7477_s1 + $0x88] ss:$16 sps:$4 sm:$0xff]  }
  0xf4   :  { %3755 = vmatpush2.bf16.msra.mxu1 %v5147_v57  ;;  %3715 = vmatprep.subr.bf16.mxu0 %v5152_v58  ;;  %v5195_v57 = vld [vmem:[%s7477_s1 + $0x1064] ss:$16 sps:$4 sm:$0xff]   ;;  %v5198_v58 = vld [vmem:[%s7477_s1 + $0x6c] ss:$16 sps:$4 sm:$0xff]  }
  0xf5   :  { %3756 = vmatprep.subr.bf16.mxu1 %v5155_v61  ;;  %v5193_v61 = vld [vmem:[%s7477_s1 + $0x1060] ss:$16 sps:$4 sm:$0xff]  }
  0xf7   :  { %3716 = vmatpush2.bf16.msra.mxu0 %v5150_v62  ;;  %v5196_v62 = vld [vmem:[%s7477_s1 + $0x68] ss:$16 sps:$4 sm:$0xff]  }
  0xf8   :  { %3757 = vmatpush2.bf16.msra.mxu1 %v5153_v63  ;;  %3717 = vmatprep.subr.bf16.mxu0 %v5158_v1  ;;  %v5201_v63 = vld [vmem:[%s7477_s1 + $0x1044] ss:$16 sps:$4 sm:$0xff]   ;;  %v5204_v1 = vld [vmem:[%s7477_s1 + $0x4c] ss:$16 sps:$4 sm:$0xff]  }
  0xf9   :  { %3758 = vmatprep.subr.bf16.mxu1 %v5161_v2  ;;  %v5199_v2 = vld [vmem:[%s7477_s1 + $0x1040] ss:$16 sps:$4 sm:$0xff]  }
  0xfb   :  { %3718 = vmatpush2.bf16.msra.mxu0 %v5156_v3  ;;  %v5202_v3 = vld [vmem:[%s7477_s1 + $0x48] ss:$16 sps:$4 sm:$0xff]  }
  0xfc   :  { %3759 = vmatpush2.bf16.msra.mxu1 %v5159_v4  ;;  %3719 = vmatprep.subr.bf16.mxu0 %v5164_v5  ;;  %v5207_v4 = vld [vmem:[%s7477_s1 + $0x1024] ss:$16 sps:$4 sm:$0xff]   ;;  %v5210_v5 = vld [vmem:[%s7477_s1 + $0x2c] ss:$16 sps:$4 sm:$0xff]  }
  0xfd   :  { %3760 = vmatprep.subr.bf16.mxu1 %v5167_v7  ;;  %v5205_v7 = vld [vmem:[%s7477_s1 + $0x1020] ss:$16 sps:$4 sm:$0xff]  }
  0xff   :  { %3720 = vmatpush2.bf16.msra.mxu0 %v5162_v8  ;;  %v5208_v8 = vld [vmem:[%s7477_s1 + $0x28] ss:$16 sps:$4 sm:$0xff]  }
 0x100   :  { %3761 = vmatpush2.bf16.msra.mxu1 %v5165_v9  ;;  %3771 = vmatprep.subr.bf16.mxu0 %v5171_v14  ;;  %v5213_v9 = vld [vmem:[%s7477_s1 + $0x1004] ss:$16 sps:$4 sm:$0xff]   ;;  %v5211_v14 = vld [vmem:[%s7477_s1 + $0x1000] ss:$16 sps:$4 sm:$0xff]  }
 0x101   :  { %3812 = vmatprep.subr.bf16.mxu1 %v5174_v15  ;;  %v5214_v15 = vld [vmem:[%s7477_s1 + $0x8] ss:$16 sps:$4 sm:$0xff]  }
 0x102   :  { %v3477_v27 = vpop.f32.mrf.mxu0  ;;  %3722 = vmatmul.mubr.bf16.vlgmr.msra.gmra.mxu0 %v6508_v11 }
 0x103   :  { %v3518_v28 = vpop.f32.mrf.mxu1  ;;  %3763 = vmatmul.mubr.bf16.vlgmr.msra.gmra.mxu1 %v6520_v39  ;;  %v3478_v31 = vadd.f32 %v3477_v27, %v574_v21  ;;  %3772 = vmatpush1.bf16.msra.mxu0 %v5169_v19  ;;  %v4236_v19 = vld.sshfl [vmem:[%s7478_s0 + $0x10] sm:$0x1 pattern:$0x75316420]  ;;  %v5222_v21 = vld [vmem:[%s7477_s1 + $0x2ec] ss:$16 sps:$4 sm:$0xff]  }
 0x104   :  { %3813 = vmatpush1.bf16.msra.mxu1 %v5172_v20  ;;  %v3479_v33 = vpop.f32.mrf.mxu0  ;;  %3773 = vmatprep.subr.bf16.mxu0 %v5177_v22  ;;  %v5219_v20 = vld [vmem:[%s7477_s1 + $0x1ec] ss:$16 sps:$4 sm:$0xff]   ;;  %v5217_v22 = vld [vmem:[%s7477_s1 + $0x1e8] ss:$16 sps:$4 sm:$0xff]  }
 0x105   :  { %v3520_v34 = vpop.f32.mrf.mxu1  ;;  %3814 = vmatprep.subr.bf16.mxu1 %v5180_v24  ;;  %v6552_v38 = vadd.f32 %v3518_v28, %v3478_v31  ;;  %v3480_v32 = vadd.f32 %v3479_v33, %v578_v25  ;;  %3803 = vmatprep.mubr.bf16.mxu0 %v5607_v45  ;;  %v5220_v24 = vld [vmem:[%s7477_s1 + $0x2e8] ss:$16 sps:$4 sm:$0xff]   ;;  %v6640_v25 = vrot.slane %v4236_v19, %v5773_v49  ;;  %v5225_v27 = vld [vmem:[%s7477_s1 + $0x1cc] ss:$16 sps:$4 sm:$0xff]  }
 0x106   :  { %3844 = vmatprep.mubr.bf16.mxu1 %v5801_v60  ;;  %v3481_v46 = vpop.f32.mrf.mxu0  ;;  %v5187_v60 = vld [vmem:[%s7477_s1 + $0x1080] ss:$16 sps:$4 sm:$0xff]   ;;  %v5228_v28 = vld [vmem:[%s7477_s1 + $0x2cc] ss:$16 sps:$4 sm:$0xff]   ;;  %v5223_v49 = vld [vmem:[%s7477_s1 + $0x1c8] ss:$16 sps:$4 sm:$0xff]  }
 0x107   :  { %v3522_v47 = vpop.f32.mrf.mxu1  ;;  %v6562_v48 = vadd.f32 %v3520_v34, %v3480_v32  ;;  %3774 = vmatpush1.bf16.msra.mxu0 %v5175_v29  ;;  %v5226_v29 = vld [vmem:[%s7477_s1 + $0x2c8] ss:$16 sps:$4 sm:$0xff]   ;;  %v5234_v31 = vld [vmem:[%s7477_s1 + $0x2ac] ss:$16 sps:$4 sm:$0xff]  }
 0x108   :  { %3815 = vmatpush1.bf16.msra.mxu1 %v5178_v30  ;;  %v3482_v51 = vpop.f32.mrf.mxu0  ;;  %3775 = vmatprep.subr.bf16.mxu0 %v5183_v36  ;;  %v5231_v30 = vld [vmem:[%s7477_s1 + $0x1ac] ss:$16 sps:$4 sm:$0xff]   ;;  %v5229_v33 = vld [vmem:[%s7477_s1 + $0x1a8] ss:$16 sps:$4 sm:$0xff]  }
 0x109   :  { %v3523_v52 = vpop.f32.mrf.mxu1  ;;  %3816 = vmatprep.subr.bf16.mxu1 %v5186_v37  ;;  %v5232_v34 = vld [vmem:[%s7477_s1 + $0x2a8] ss:$16 sps:$4 sm:$0xff]   ;;  %v5237_v36 = vld [vmem:[%s7477_s1 + $0x18c] ss:$16 sps:$4 sm:$0xff]  }
 0x10a   :  { %v5235_v37 = vld [vmem:[%s7477_s1 + $0x188] ss:$16 sps:$4 sm:$0xff]   ;;  %v5249_v51 = vld [vmem:[%s7477_s1 + $0x14c] ss:$16 sps:$4 sm:$0xff]  }
 0x10b   :  { %3776 = vmatpush1.bf16.msra.mxu0 %v5181_v40  ;;  %v5238_v32 = vld [vmem:[%s7477_s1 + $0x288] ss:$16 sps:$4 sm:$0xff]   ;;  %v5243_v40 = vld [vmem:[%s7477_s1 + $0x16c] ss:$16 sps:$4 sm:$0xff]  }
 0x10c   :  { %3817 = vmatpush1.bf16.msra.mxu1 %v5184_v44  ;;  %3777 = vmatprep.subr.bf16.mxu0 %v5189_v53  ;;  %v5246_v44 = vld [vmem:[%s7477_s1 + $0x26c] ss:$16 sps:$4 sm:$0xff]   ;;  %v5241_v46 = vld [vmem:[%s7477_s1 + $0x168] ss:$16 sps:$4 sm:$0xff]  }
 0x10d   :  { %3818 = vmatprep.subr.bf16.mxu1 %v5192_v55  ;;  %v5244_v47 = vld [vmem:[%s7477_s1 + $0x268] ss:$16 sps:$4 sm:$0xff]   ;;  %v5252_v52 = vld [vmem:[%s7477_s1 + $0x24c] ss:$16 sps:$4 sm:$0xff]  }
 0x10e   :  { %v5247_v53 = vld [vmem:[%s7477_s1 + $0x148] ss:$16 sps:$4 sm:$0xff]  }
 0x10f   :  { %3778 = vmatpush1.bf16.msra.mxu0 %v5187_v60  ;;  %v5250_v55 = vld [vmem:[%s7477_s1 + $0x248] ss:$16 sps:$4 sm:$0xff]   ;;  %v5255_v60 = vld [vmem:[%s7477_s1 + $0x12c] ss:$16 sps:$4 sm:$0xff]  }
 0x110   :  { %3819 = vmatpush1.bf16.msra.mxu1 %v5190_v56  ;;  %3779 = vmatprep.subr.bf16.mxu0 %v5195_v57  ;;  %v5258_v56 = vld [vmem:[%s7477_s1 + $0x22c] ss:$16 sps:$4 sm:$0xff]   ;;  %v5253_v57 = vld [vmem:[%s7477_s1 + $0x128] ss:$16 sps:$4 sm:$0xff]  }
 0x111   :  { %3820 = vmatprep.subr.bf16.mxu1 %v5198_v58  ;;  %v5256_v58 = vld [vmem:[%s7477_s1 + $0x228] ss:$16 sps:$4 sm:$0xff]  }
 0x113   :  { %3780 = vmatpush1.bf16.msra.mxu0 %v5193_v61  ;;  %v5261_v61 = vld [vmem:[%s7477_s1 + $0x10c] ss:$16 sps:$4 sm:$0xff]  }
 0x114   :  { %3821 = vmatpush1.bf16.msra.mxu1 %v5196_v62  ;;  %3781 = vmatprep.subr.bf16.mxu0 %v5201_v63  ;;  %v5264_v62 = vld [vmem:[%s7477_s1 + $0x20c] ss:$16 sps:$4 sm:$0xff]   ;;  %v5259_v63 = vld [vmem:[%s7477_s1 + $0x108] ss:$16 sps:$4 sm:$0xff]  }
 0x115   :  { %3822 = vmatprep.subr.bf16.mxu1 %v5204_v1  ;;  %v5262_v1 = vld [vmem:[%s7477_s1 + $0x208] ss:$16 sps:$4 sm:$0xff]  }
 0x117   :  { %3782 = vmatpush1.bf16.msra.mxu0 %v5199_v2  ;;  %v5267_v2 = vld [vmem:[%s7477_s1 + $0x3ec] ss:$16 sps:$4 sm:$0xff]  }
 0x118   :  { %3823 = vmatpush1.bf16.msra.mxu1 %v5202_v3  ;;  %3783 = vmatprep.subr.bf16.mxu0 %v5207_v4  ;;  %v5270_v3 = vld [vmem:[%s7477_s1 + $0x4ec] ss:$16 sps:$4 sm:$0xff]   ;;  %v5265_v4 = vld [vmem:[%s7477_s1 + $0x3e8] ss:$16 sps:$4 sm:$0xff]  }
 0x119   :  { %3824 = vmatprep.subr.bf16.mxu1 %v5210_v5  ;;  %v5268_v5 = vld [vmem:[%s7477_s1 + $0x4e8] ss:$16 sps:$4 sm:$0xff]  }
 0x11b   :  { %3784 = vmatpush1.bf16.msra.mxu0 %v5205_v7  ;;  %v5273_v7 = vld [vmem:[%s7477_s1 + $0x3cc] ss:$16 sps:$4 sm:$0xff]  }
 0x11c   :  { %3825 = vmatpush1.bf16.msra.mxu1 %v5208_v8  ;;  %3785 = vmatprep.subr.bf16.mxu0 %v5213_v9  ;;  %v5276_v8 = vld [vmem:[%s7477_s1 + $0x4cc] ss:$16 sps:$4 sm:$0xff]   ;;  %v5271_v9 = vld [vmem:[%s7477_s1 + $0x3c8] ss:$16 sps:$4 sm:$0xff]  }
 0x11d   :  { %3826 = vmatprep.subr.bf16.mxu1 %v5216_v10  ;;  %v5274_v10 = vld [vmem:[%s7477_s1 + $0x4c8] ss:$16 sps:$4 sm:$0xff]  }
 0x11f   :  { %3786 = vmatpush1.bf16.msra.mxu0 %v5211_v14 }
 0x120   :  { %3827 = vmatpush1.bf16.msra.mxu1 %v5214_v15  ;;  %3853 = vmatprep.subr.bf16.mxu0 %v5222_v21 }
 0x121   :  { %3828 = vmatprep.subr.bf16.mxu1 %v5219_v20 }
 0x122   :  { %3804 = vmatmul.mubr.bf16.vlgmr.msra.gmra.mxu0 %v6640_v25 }
 0x123   :  { %3854 = vmatpush1.bf16.msra.mxu0 %v5220_v24  ;;  %3885 = vmatprep.mubr.bf16.mxu0 %v5814_v0  ;;  %v5240_v0 = vld [vmem:[%s7477_s1 + $0x28c] ss:$16 sps:$4 sm:$0xff]  }
 0x124   :  { %3829 = vmatpush2.bf16.msra.mxu1 %v5217_v22  ;;  %3855 = vmatprep.subr.bf16.mxu0 %v5228_v28  ;;  %v5279_v22 = vld [vmem:[%s7477_s1 + $0x3ac] ss:$16 sps:$4 sm:$0xff]   ;;  %v5280_v28 = vld [vmem:[%s7477_s1 + $0x4a8] ss:$16 sps:$4 sm:$0xff]  }
 0x125   :  { %3830 = vmatprep.subr.bf16.mxu1 %v5225_v27  ;;  %v5282_v24 = vld [vmem:[%s7477_s1 + $0x4ac] ss:$16 sps:$4 sm:$0xff]  }
 0x127   :  { %3856 = vmatpush1.bf16.msra.mxu0 %v5226_v29 }
 0x128   :  { %3831 = vmatpush2.bf16.msra.mxu1 %v5223_v49  ;;  %3857 = vmatprep.subr.bf16.mxu0 %v5234_v31 }
 0x129   :  { %3832 = vmatprep.subr.bf16.mxu1 %v5231_v30 }
 0x12b   :  { %3858 = vmatpush1.bf16.msra.mxu0 %v5232_v34  ;;  %v5288_v34 = vld [vmem:[%s7477_s1 + $0x48c] ss:$16 sps:$4 sm:$0xff]  }
 0x12c   :  { %3833 = vmatpush2.bf16.msra.mxu1 %v5229_v33  ;;  %3859 = vmatprep.subr.bf16.mxu0 %v5240_v0  ;;  %v5291_v0 = vld [vmem:[%s7477_s1 + $0x36c] ss:$16 sps:$4 sm:$0xff]  }
 0x12d   :  { %3834 = vmatprep.subr.bf16.mxu1 %v5237_v36  ;;  %v5286_v36 = vld [vmem:[%s7477_s1 + $0x488] ss:$16 sps:$4 sm:$0xff]  }
 0x12f   :  { %3860 = vmatpush1.bf16.msra.mxu0 %v5238_v32  ;;  %v5289_v32 = vld [vmem:[%s7477_s1 + $0x368] ss:$16 sps:$4 sm:$0xff]  }
 0x130   :  { %3835 = vmatpush2.bf16.msra.mxu1 %v5235_v37  ;;  %3861 = vmatprep.subr.bf16.mxu0 %v5246_v44  ;;  %v5294_v37 = vld [vmem:[%s7477_s1 + $0x46c] ss:$16 sps:$4 sm:$0xff]  }
 0x131   :  { %3836 = vmatprep.subr.bf16.mxu1 %v5243_v40  ;;  %v5292_v40 = vld [vmem:[%s7477_s1 + $0x468] ss:$16 sps:$4 sm:$0xff]   ;;  %v5297_v44 = vld [vmem:[%s7477_s1 + $0x34c] ss:$16 sps:$4 sm:$0xff]  }
 0x133   :  { %3862 = vmatpush1.bf16.msra.mxu0 %v5244_v47  ;;  %v5295_v47 = vld [vmem:[%s7477_s1 + $0x348] ss:$16 sps:$4 sm:$0xff]  }
 0x134   :  { %3837 = vmatpush2.bf16.msra.mxu1 %v5241_v46  ;;  %3863 = vmatprep.subr.bf16.mxu0 %v5252_v52  ;;  %v5300_v46 = vld [vmem:[%s7477_s1 + $0x44c] ss:$16 sps:$4 sm:$0xff]  }
 0x135   :  { %3838 = vmatprep.subr.bf16.mxu1 %v5249_v51  ;;  %v5298_v51 = vld [vmem:[%s7477_s1 + $0x448] ss:$16 sps:$4 sm:$0xff]   ;;  %v5303_v52 = vld [vmem:[%s7477_s1 + $0x32c] ss:$16 sps:$4 sm:$0xff]  }
 0x137   :  { %3864 = vmatpush1.bf16.msra.mxu0 %v5250_v55  ;;  %v5301_v55 = vld [vmem:[%s7477_s1 + $0x328] ss:$16 sps:$4 sm:$0xff]  }
 0x138   :  { %3839 = vmatpush2.bf16.msra.mxu1 %v5247_v53  ;;  %3865 = vmatprep.subr.bf16.mxu0 %v5258_v56  ;;  %v5306_v53 = vld [vmem:[%s7477_s1 + $0x42c] ss:$16 sps:$4 sm:$0xff]  }
 0x139   :  { %3840 = vmatprep.subr.bf16.mxu1 %v5255_v60  ;;  %v5304_v60 = vld [vmem:[%s7477_s1 + $0x428] ss:$16 sps:$4 sm:$0xff]   ;;  %v5309_v56 = vld [vmem:[%s7477_s1 + $0x30c] ss:$16 sps:$4 sm:$0xff]  }
 0x13b   :  { %3866 = vmatpush1.bf16.msra.mxu0 %v5256_v58  ;;  %v5307_v58 = vld [vmem:[%s7477_s1 + $0x308] ss:$16 sps:$4 sm:$0xff]  }
 0x13c   :  { %3841 = vmatpush2.bf16.msra.mxu1 %v5253_v57  ;;  %3867 = vmatprep.subr.bf16.mxu0 %v5264_v62  ;;  %v5312_v57 = vld [vmem:[%s7477_s1 + $0x40c] ss:$16 sps:$4 sm:$0xff]  }
 0x13d   :  { %3842 = vmatprep.subr.bf16.mxu1 %v5261_v61  ;;  %v5310_v61 = vld [vmem:[%s7477_s1 + $0x408] ss:$16 sps:$4 sm:$0xff]   ;;  %v5315_v62 = vld [vmem:[%s7477_s1 + $0x5ec] ss:$16 sps:$4 sm:$0xff]  }
 0x13f   :  { %3868 = vmatpush1.bf16.msra.mxu0 %v5262_v1  ;;  %v5313_v1 = vld [vmem:[%s7477_s1 + $0x5e8] ss:$16 sps:$4 sm:$0xff]  }
 0x140   :  { %3843 = vmatpush2.bf16.msra.mxu1 %v5259_v63  ;;  %3869 = vmatprep.subr.bf16.mxu0 %v5267_v2  ;;  %v5318_v63 = vld [vmem:[%s7477_s1 + $0x6ec] ss:$16 sps:$4 sm:$0xff]   ;;  %v5316_v2 = vld [vmem:[%s7477_s1 + $0x6e8] ss:$16 sps:$4 sm:$0xff]  }
 0x141   :  { %3894 = vmatprep.subr.bf16.mxu1 %v5270_v3  ;;  %v5321_v3 = vld [vmem:[%s7477_s1 + $0x5cc] ss:$16 sps:$4 sm:$0xff]  }
 0x142   :  { %v3559_v14 = vpop.f32.mrf.mxu0 }
 0x143   :  { %v3600_v15 = vpop.f32.mrf.mxu1  ;;  %3845 = vmatmul.mubr.bf16.vlgmr.msra.gmra.mxu1 %v5851_v13  ;;  %v3560_v19 = vadd.f32 %v3559_v14, %v6552_v38  ;;  %3870 = vmatpush2.bf16.msra.mxu0 %v5265_v4  ;;  %v5277_v38 = vld [vmem:[%s7477_s1 + $0x3a8] ss:$16 sps:$4 sm:$0xff]   ;;  %v5324_v4 = vld [vmem:[%s7477_s1 + $0x6cc] ss:$16 sps:$4 sm:$0xff]  }
 0x144   :  { %3895 = vmatpush1.bf16.msra.mxu1 %v5268_v5  ;;  %v3561_v20 = vpop.f32.mrf.mxu0  ;;  %3871 = vmatprep.subr.bf16.mxu0 %v5273_v7  ;;  %v5319_v5 = vld [vmem:[%s7477_s1 + $0x5c8] ss:$16 sps:$4 sm:$0xff]   ;;  %v5333_v14 = vld [vmem:[%s7477_s1 + $0x58c] ss:$16 sps:$4 sm:$0xff]  }
 0x145   :  { %v3602_v21 = vpop.f32.mrf.mxu1  ;;  %3896 = vmatprep.subr.bf16.mxu1 %v5276_v8  ;;  %v6760_v27 = vadd.f32 %v3600_v15, %v3560_v19  ;;  %v3562_v13 = vadd.f32 %v3561_v20, %v6562_v48  ;;  %3926 = vmatprep.mubr.bf16.mxu1 %v5863_v17  ;;  %v5285_v48 = vld [vmem:[%s7477_s1 + $0x38c] ss:$16 sps:$4 sm:$0xff]   ;;  %v5283_v17 = vld [vmem:[%s7477_s1 + $0x388] ss:$16 sps:$4 sm:$0xff]  }
 0x146   :  { %v3563_v49 = vpop.f32.mrf.mxu0  ;;  %v5322_v7 = vld [vmem:[%s7477_s1 + $0x6c8] ss:$16 sps:$4 sm:$0xff]   ;;  %v5327_v8 = vld [vmem:[%s7477_s1 + $0x5ac] ss:$16 sps:$4 sm:$0xff]  }
 0x147   :  { %v3604_v29 = vpop.f32.mrf.mxu1  ;;  %v6770_v30 = vadd.f32 %v3602_v21, %v3562_v13  ;;  %3872 = vmatpush2.bf16.msra.mxu0 %v5271_v9  ;;  %v5325_v9 = vld [vmem:[%s7477_s1 + $0x5a8] ss:$16 sps:$4 sm:$0xff]   ;;  %v5339_v20 = vld [vmem:[%s7477_s1 + $0x56c] ss:$16 sps:$4 sm:$0xff]  }
 0x148   :  { %3897 = vmatpush1.bf16.msra.mxu1 %v5274_v10  ;;  %v3564_v31 = vpop.f32.mrf.mxu0  ;;  %3873 = vmatprep.subr.bf16.mxu0 %v5279_v22  ;;  %v5328_v10 = vld [vmem:[%s7477_s1 + $0x6a8] ss:$16 sps:$4 sm:$0xff]   ;;  %v5342_v21 = vld [vmem:[%s7477_s1 + $0x66c] ss:$16 sps:$4 sm:$0xff]  }
 0x149   :  { %v3605_v33 = vpop.f32.mrf.mxu1  ;;  %3898 = vmatprep.subr.bf16.mxu1 %v5282_v24  ;;  %v5331_v15 = vld [vmem:[%s7477_s1 + $0x588] ss:$16 sps:$4 sm:$0xff]   ;;  %v5345_v13 = vld [vmem:[%s7477_s1 + $0x54c] ss:$16 sps:$4 sm:$0xff]  }
 0x14a   :  { %v5334_v19 = vld [vmem:[%s7477_s1 + $0x688] ss:$16 sps:$4 sm:$0xff]   ;;  %v5351_v29 = vld [vmem:[%s7477_s1 + $0x52c] ss:$16 sps:$4 sm:$0xff]  }
 0x14b   :  { %3874 = vmatpush2.bf16.msra.mxu0 %v5277_v38  ;;  %v5337_v22 = vld [vmem:[%s7477_s1 + $0x568] ss:$16 sps:$4 sm:$0xff]   ;;  %v5348_v38 = vld [vmem:[%s7477_s1 + $0x64c] ss:$16 sps:$4 sm:$0xff]  }
 0x14c   :  { %3899 = vmatpush1.bf16.msra.mxu1 %v5280_v28  ;;  %3875 = vmatprep.subr.bf16.mxu0 %v5285_v48  ;;  %v5340_v24 = vld [vmem:[%s7477_s1 + $0x668] ss:$16 sps:$4 sm:$0xff]   ;;  %v5354_v31 = vld [vmem:[%s7477_s1 + $0x62c] ss:$16 sps:$4 sm:$0xff]  }
 0x14d   :  { %3900 = vmatprep.subr.bf16.mxu1 %v5288_v34  ;;  %v5343_v28 = vld [vmem:[%s7477_s1 + $0x548] ss:$16 sps:$4 sm:$0xff]   ;;  %v5357_v34 = vld [vmem:[%s7477_s1 + $0x50c] ss:$16 sps:$4 sm:$0xff]  }
 0x14e   :  { %v5346_v49 = vld [vmem:[%s7477_s1 + $0x648] ss:$16 sps:$4 sm:$0xff]  }
 0x14f   :  { %3876 = vmatpush2.bf16.msra.mxu0 %v5283_v17  ;;  %v5349_v33 = vld [vmem:[%s7477_s1 + $0x528] ss:$16 sps:$4 sm:$0xff]   ;;  %v5360_v17 = vld [vmem:[%s7477_s1 + $0x60c] ss:$16 sps:$4 sm:$0xff]  }
 0x150   :  { %3901 = vmatpush1.bf16.msra.mxu1 %v5286_v36  ;;  %3877 = vmatprep.subr.bf16.mxu0 %v5291_v0  ;;  %v5352_v48 = vld [vmem:[%s7477_s1 + $0x628] ss:$16 sps:$4 sm:$0xff]  }
 0x151   :  { %3902 = vmatprep.subr.bf16.mxu1 %v5294_v37  ;;  %v5355_v36 = vld [vmem:[%s7477_s1 + $0x508] ss:$16 sps:$4 sm:$0xff]   ;;  %v5363_v37 = vld [vmem:[%s7477_s1 + $0x7ec] ss:$16 sps:$4 sm:$0xff]  }
 0x152   :  { %v5358_v0 = vld [vmem:[%s7477_s1 + $0x608] ss:$16 sps:$4 sm:$0xff]  }
 0x153   :  { %3878 = vmatpush2.bf16.msra.mxu0 %v5289_v32  ;;  %v5366_v32 = vld [vmem:[%s7477_s1 + $0x8ec] ss:$16 sps:$4 sm:$0xff]  }
 0x154   :  { %3903 = vmatpush1.bf16.msra.mxu1 %v5292_v40  ;;  %3879 = vmatprep.subr.bf16.mxu0 %v5297_v44  ;;  %v5361_v40 = vld [vmem:[%s7477_s1 + $0x7e8] ss:$16 sps:$4 sm:$0xff]  }
 0x155   :  { %3904 = vmatprep.subr.bf16.mxu1 %v5300_v46  ;;  %v5364_v44 = vld [vmem:[%s7477_s1 + $0x8e8] ss:$16 sps:$4 sm:$0xff]   ;;  %v5369_v46 = vld [vmem:[%s7477_s1 + $0x7cc] ss:$16 sps:$4 sm:$0xff]  }
 0x157   :  { %3880 = vmatpush2.bf16.msra.mxu0 %v5295_v47  ;;  %v5372_v47 = vld [vmem:[%s7477_s1 + $0x8cc] ss:$16 sps:$4 sm:$0xff]  }
 0x158   :  { %3905 = vmatpush1.bf16.msra.mxu1 %v5298_v51  ;;  %3881 = vmatprep.subr.bf16.mxu0 %v5303_v52 }
 0x159   :  { %3906 = vmatprep.subr.bf16.mxu1 %v5306_v53 }
 0x15b   :  { %3882 = vmatpush2.bf16.msra.mxu0 %v5301_v55  ;;  %v5367_v55 = vld [vmem:[%s7477_s1 + $0x7c8] ss:$16 sps:$4 sm:$0xff]  }
 0x15c   :  { %3907 = vmatpush1.bf16.msra.mxu1 %v5304_v60  ;;  %3883 = vmatprep.subr.bf16.mxu0 %v5309_v56  ;;  %v5370_v60 = vld [vmem:[%s7477_s1 + $0x8c8] ss:$16 sps:$4 sm:$0xff]  }
 0x15d   :  { %3908 = vmatprep.subr.bf16.mxu1 %v5312_v57 }
 0x15f   :  { %3884 = vmatpush2.bf16.msra.mxu0 %v5307_v58 }
 0x160   :  { %3909 = vmatpush1.bf16.msra.mxu1 %v5310_v61  ;;  %3935 = vmatprep.subr.bf16.mxu0 %v5318_v63 }
 0x161   :  { %3910 = vmatprep.subr.bf16.mxu1 %v5315_v62 }
 0x162   :  { %3886 = vmatmul.mubr.bf16.vlgmr.msra.gmra.mxu0 %v5867_v18  ;;  %v5330_v18 = vld [vmem:[%s7477_s1 + $0x6ac] ss:$16 sps:$4 sm:$0xff]  }
 0x163   :  { %3936 = vmatpush1.bf16.msra.mxu0 %v5316_v2  ;;  %3967 = vmatprep.mubr.bf16.mxu0 %v5883_v23  ;;  %v5336_v23 = vld [vmem:[%s7477_s1 + $0x68c] ss:$16 sps:$4 sm:$0xff]   ;;  %v5373_v2 = vld [vmem:[%s7477_s1 + $0x7a8] ss:$16 sps:$4 sm:$0xff]  }
 0x164   :  { %3911 = vmatpush2.bf16.msra.mxu1 %v5313_v1  ;;  %3937 = vmatprep.subr.bf16.mxu0 %v5324_v4 }
 0x165   :  { %3912 = vmatprep.subr.bf16.mxu1 %v5321_v3  ;;  %v5376_v3 = vld [vmem:[%s7477_s1 + $0x8a8] ss:$16 sps:$4 sm:$0xff]  }
 0x167   :  { %3938 = vmatpush1.bf16.msra.mxu0 %v5322_v7  ;;  %v5379_v7 = vld [vmem:[%s7477_s1 + $0x788] ss:$16 sps:$4 sm:$0xff]  }
 0x168   :  { %3913 = vmatpush2.bf16.msra.mxu1 %v5319_v5  ;;  %3939 = vmatprep.subr.bf16.mxu0 %v5330_v18  ;;  %v5387_v18 = vld [vmem:[%s7477_s1 + $0x76c] ss:$16 sps:$4 sm:$0xff]  }
 0x169   :  { %3914 = vmatprep.subr.bf16.mxu1 %v5327_v8  ;;  %v5382_v8 = vld [vmem:[%s7477_s1 + $0x888] ss:$16 sps:$4 sm:$0xff]  }
 0x16b   :  { %3940 = vmatpush1.bf16.msra.mxu0 %v5328_v10  ;;  %v5385_v10 = vld [vmem:[%s7477_s1 + $0x768] ss:$16 sps:$4 sm:$0xff]  }
 0x16c   :  { %3915 = vmatpush2.bf16.msra.mxu1 %v5325_v9  ;;  %3941 = vmatprep.subr.bf16.mxu0 %v5336_v23  ;;  %v5390_v9 = vld [vmem:[%s7477_s1 + $0x86c] ss:$16 sps:$4 sm:$0xff]  }
 0x16d   :  { %3916 = vmatprep.subr.bf16.mxu1 %v5333_v14  ;;  %v5388_v14 = vld [vmem:[%s7477_s1 + $0x868] ss:$16 sps:$4 sm:$0xff]   ;;  %v5393_v23 = vld [vmem:[%s7477_s1 + $0x74c] ss:$16 sps:$4 sm:$0xff]  }
 0x16f   :  { %3942 = vmatpush1.bf16.msra.mxu0 %v5334_v19  ;;  %v5391_v19 = vld [vmem:[%s7477_s1 + $0x748] ss:$16 sps:$4 sm:$0xff]  }
 0x170   :  { %3917 = vmatpush2.bf16.msra.mxu1 %v5331_v15  ;;  %3943 = vmatprep.subr.bf16.mxu0 %v5342_v21  ;;  %v5396_v15 = vld [vmem:[%s7477_s1 + $0x84c] ss:$16 sps:$4 sm:$0xff]  }
 0x171   :  { %3918 = vmatprep.subr.bf16.mxu1 %v5339_v20  ;;  %v5394_v20 = vld [vmem:[%s7477_s1 + $0x848] ss:$16 sps:$4 sm:$0xff]   ;;  %v5399_v21 = vld [vmem:[%s7477_s1 + $0x72c] ss:$16 sps:$4 sm:$0xff]  }
 0x173   :  { %3944 = vmatpush1.bf16.msra.mxu0 %v5340_v24  ;;  %v5397_v24 = vld [vmem:[%s7477_s1 + $0x728] ss:$16 sps:$4 sm:$0xff]  }
 0x174   :  { %3919 = vmatpush2.bf16.msra.mxu1 %v5337_v22  ;;  %3945 = vmatprep.subr.bf16.mxu0 %v5348_v38  ;;  %v5402_v22 = vld [vmem:[%s7477_s1 + $0x82c] ss:$16 sps:$4 sm:$0xff]  }
 0x175   :  { %3920 = vmatprep.subr.bf16.mxu1 %v5345_v13  ;;  %v5400_v13 = vld [vmem:[%s7477_s1 + $0x828] ss:$16 sps:$4 sm:$0xff]   ;;  %v5405_v38 = vld [vmem:[%s7477_s1 + $0x70c] ss:$16 sps:$4 sm:$0xff]  }
 0x177   :  { %3946 = vmatpush1.bf16.msra.mxu0 %v5346_v49  ;;  %v5403_v49 = vld [vmem:[%s7477_s1 + $0x708] ss:$16 sps:$4 sm:$0xff]  }
 0x178   :  { %3921 = vmatpush2.bf16.msra.mxu1 %v5343_v28  ;;  %3947 = vmatprep.subr.bf16.mxu0 %v5354_v31  ;;  %v5408_v28 = vld [vmem:[%s7477_s1 + $0x80c] ss:$16 sps:$4 sm:$0xff]  }
 0x179   :  { %3922 = vmatprep.subr.bf16.mxu1 %v5351_v29  ;;  %v5406_v29 = vld [vmem:[%s7477_s1 + $0x808] ss:$16 sps:$4 sm:$0xff]   ;;  %v5411_v31 = vld [vmem:[%s7477_s1 + $0x9ec] ss:$16 sps:$4 sm:$0xff]  }
 0x17b   :  { %3948 = vmatpush1.bf16.msra.mxu0 %v5352_v48  ;;  %v5409_v48 = vld [vmem:[%s7477_s1 + $0x9e8] ss:$16 sps:$4 sm:$0xff]  }
 0x17c   :  { %3923 = vmatpush2.bf16.msra.mxu1 %v5349_v33  ;;  %3949 = vmatprep.subr.bf16.mxu0 %v5360_v17  ;;  %v5414_v33 = vld [vmem:[%s7477_s1 + $0xaec] ss:$16 sps:$4 sm:$0xff]  }
 0x17d   :  { %3924 = vmatprep.subr.bf16.mxu1 %v5357_v34  ;;  %v5412_v34 = vld [vmem:[%s7477_s1 + $0xae8] ss:$16 sps:$4 sm:$0xff]   ;;  %v5417_v17 = vld [vmem:[%s7477_s1 + $0x9cc] ss:$16 sps:$4 sm:$0xff]  }
 0x17f   :  { %3950 = vmatpush1.bf16.msra.mxu0 %v5358_v0  ;;  %v5415_v0 = vld [vmem:[%s7477_s1 + $0x9c8] ss:$16 sps:$4 sm:$0xff]  }
 0x180   :  { %3925 = vmatpush2.bf16.msra.mxu1 %v5355_v36  ;;  %3951 = vmatprep.subr.bf16.mxu0 %v5363_v37  ;;  %v5420_v36 = vld [vmem:[%s7477_s1 + $0xacc] ss:$16 sps:$4 sm:$0xff]   ;;  %v5418_v37 = vld [vmem:[%s7477_s1 + $0xac8] ss:$16 sps:$4 sm:$0xff]  }
 0x181   :  { %3976 = vmatprep.subr.bf16.mxu1 %v5366_v32  ;;  %v5423_v32 = vld [vmem:[%s7477_s1 + $0x9ac] ss:$16 sps:$4 sm:$0xff]  }
 0x182   :  { %v3641_v51 = vpop.f32.mrf.mxu0 }
 0x183   :  { %v3682_v52 = vpop.f32.mrf.mxu1  ;;  %3927 = vmatmul.mubr.bf16.vlgmr.msra.gmra.mxu1 %v6062_v26  ;;  %v3642_v53 = vadd.f32 %v3641_v51, %v6760_v27  ;;  %3952 = vmatpush2.bf16.msra.mxu0 %v5361_v40  ;;  %v5375_v26 = vld [vmem:[%s7477_s1 + $0x7ac] ss:$16 sps:$4 sm:$0xff]   ;;  %v5421_v40 = vld [vmem:[%s7477_s1 + $0x9a8] ss:$16 sps:$4 sm:$0xff]  }
 0x184   :  { %3977 = vmatpush1.bf16.msra.mxu1 %v5364_v44  ;;  %v3643_v56 = vpop.f32.mrf.mxu0  ;;  %3953 = vmatprep.subr.bf16.mxu0 %v5369_v46  ;;  %v5378_v27 = vld [vmem:[%s7477_s1 + $0x8ac] ss:$16 sps:$4 sm:$0xff]   ;;  %v5424_v44 = vld [vmem:[%s7477_s1 + $0xaa8] ss:$16 sps:$4 sm:$0xff]  }
 0x185   :  { %v3684_v57 = vpop.f32.mrf.mxu1  ;;  %3978 = vmatprep.subr.bf16.mxu1 %v5372_v47  ;;  %v6962_v58 = vadd.f32 %v3682_v52, %v3642_v53  ;;  %v3644_v61 = vadd.f32 %v3643_v56, %v6770_v30  ;;  %4008 = vmatprep.mubr.bf16.mxu1 %v6115_v41  ;;  %v5381_v41 = vld [vmem:[%s7477_s1 + $0x78c] ss:$16 sps:$4 sm:$0xff]   ;;  %v5427_v47 = vld [vmem:[%s7477_s1 + $0x988] ss:$16 sps:$4 sm:$0xff]  }
 0x186   :  { %v3645_v62 = vpop.f32.mrf.mxu0  ;;  %v5384_v30 = vld [vmem:[%s7477_s1 + $0x88c] ss:$16 sps:$4 sm:$0xff]   ;;  %v5430_v51 = vld [vmem:[%s7477_s1 + $0xa88] ss:$16 sps:$4 sm:$0xff]  }
 0x187   :  { %v3686_v63 = vpop.f32.mrf.mxu1  ;;  %v6966_v1 = vadd.f32 %v3684_v57, %v3644_v61  ;;  %3954 = vmatpush2.bf16.msra.mxu0 %v5367_v55  ;;  %v5429_v46 = vld [vmem:[%s7477_s1 + $0x98c] ss:$16 sps:$4 sm:$0xff]   ;;  %v5433_v55 = vld [vmem:[%s7477_s1 + $0x968] ss:$16 sps:$4 sm:$0xff]  }
 0x188   :  { %3979 = vmatpush1.bf16.msra.mxu1 %v5370_v60  ;;  %v3646_v4 = vpop.f32.mrf.mxu0  ;;  %3955 = vmatprep.subr.bf16.mxu0 %v5375_v26  ;;  %v5435_v52 = vld [vmem:[%s7477_s1 + $0x96c] ss:$16 sps:$4 sm:$0xff]   ;;  %v5436_v60 = vld [vmem:[%s7477_s1 + $0xa68] ss:$16 sps:$4 sm:$0xff]  }
 0x189   :  { %v3687_v5 = vpop.f32.mrf.mxu1  ;;  %3980 = vmatprep.subr.bf16.mxu1 %v5378_v27  ;;  %v5438_v53 = vld [vmem:[%s7477_s1 + $0xa6c] ss:$16 sps:$4 sm:$0xff]   ;;  %v5439_v26 = vld [vmem:[%s7477_s1 + $0x948] ss:$16 sps:$4 sm:$0xff]  }
 0x18a   :  { %v5441_v56 = vld [vmem:[%s7477_s1 + $0x94c] ss:$16 sps:$4 sm:$0xff]   ;;  %v5442_v27 = vld [vmem:[%s7477_s1 + $0xa48] ss:$16 sps:$4 sm:$0xff]  }
 0x18b   :  { %3956 = vmatpush2.bf16.msra.mxu0 %v5373_v2  ;;  %v5444_v57 = vld [vmem:[%s7477_s1 + $0xa4c] ss:$16 sps:$4 sm:$0xff]   ;;  %v5445_v63 = vld [vmem:[%s7477_s1 + $0x928] ss:$16 sps:$4 sm:$0xff]  }
 0x18c   :  { %3981 = vmatpush1.bf16.msra.mxu1 %v5376_v3  ;;  %3957 = vmatprep.subr.bf16.mxu0 %v5381_v41  ;;  %v5447_v61 = vld [vmem:[%s7477_s1 + $0x92c] ss:$16 sps:$4 sm:$0xff]   ;;  %v5448_v2 = vld [vmem:[%s7477_s1 + $0xa28] ss:$16 sps:$4 sm:$0xff]  }
 0x18d   :  { %3982 = vmatprep.subr.bf16.mxu1 %v5384_v30  ;;  %v5450_v62 = vld [vmem:[%s7477_s1 + $0xa2c] ss:$16 sps:$4 sm:$0xff]   ;;  %v5451_v5 = vld [vmem:[%s7477_s1 + $0x908] ss:$16 sps:$4 sm:$0xff]  }
 0x18e   :  { %v5453_v3 = vld [vmem:[%s7477_s1 + $0x90c] ss:$16 sps:$4 sm:$0xff]   ;;  %v5454_v41 = vld [vmem:[%s7477_s1 + $0xa08] ss:$16 sps:$4 sm:$0xff]  }
 0x18f   :  { %3958 = vmatpush2.bf16.msra.mxu0 %v5379_v7  ;;  %v5456_v4 = vld [vmem:[%s7477_s1 + $0xa0c] ss:$16 sps:$4 sm:$0xff]  }
 0x190   :  { %3983 = vmatpush1.bf16.msra.mxu1 %v5382_v8  ;;  %3959 = vmatprep.subr.bf16.mxu0 %v5387_v18  ;;  %v5459_v30 = vld [vmem:[%s7477_s1 + $0xbec] ss:$16 sps:$4 sm:$0xff]   ;;  %v5457_v8 = vld [vmem:[%s7477_s1 + $0xbe8] ss:$16 sps:$4 sm:$0xff]  }
 0x191   :  { %3984 = vmatprep.subr.bf16.mxu1 %v5390_v9  ;;  %v5462_v7 = vld [vmem:[%s7477_s1 + $0xcec] ss:$16 sps:$4 sm:$0xff]   ;;  %v5460_v18 = vld [vmem:[%s7477_s1 + $0xce8] ss:$16 sps:$4 sm:$0xff]  }
 0x192   :  { %v5465_v9 = vld [vmem:[%s7477_s1 + $0xbcc] ss:$16 sps:$4 sm:$0xff]  }
 0x193   :  { %3960 = vmatpush2.bf16.msra.mxu0 %v5385_v10  ;;  %v5468_v10 = vld [vmem:[%s7477_s1 + $0xccc] ss:$16 sps:$4 sm:$0xff]  }
 0x194   :  { %3985 = vmatpush1.bf16.msra.mxu1 %v5388_v14  ;;  %3961 = vmatprep.subr.bf16.mxu0 %v5393_v23 }
 0x195   :  { %3986 = vmatprep.subr.bf16.mxu1 %v5396_v15 }
 0x197   :  { %3962 = vmatpush2.bf16.msra.mxu0 %v5391_v19  ;;  %v5463_v19 = vld [vmem:[%s7477_s1 + $0xbc8] ss:$16 sps:$4 sm:$0xff]  }
 0x198   :  { %3987 = vmatpush1.bf16.msra.mxu1 %v5394_v20  ;;  %3963 = vmatprep.subr.bf16.mxu0 %v5399_v21  ;;  %v5466_v20 = vld [vmem:[%s7477_s1 + $0xcc8] ss:$16 sps:$4 sm:$0xff]  }
 0x199   :  { %3988 = vmatprep.subr.bf16.mxu1 %v5402_v22 }
 0x19b   :  { %3964 = vmatpush2.bf16.msra.mxu0 %v5397_v24 }
 0x19c   :  { %3989 = vmatpush1.bf16.msra.mxu1 %v5400_v13  ;;  %3965 = vmatprep.subr.bf16.mxu0 %v5405_v38 }
 0x19d   :  { %3990 = vmatprep.subr.bf16.mxu1 %v5408_v28 }
 0x19f   :  { %3966 = vmatpush2.bf16.msra.mxu0 %v5403_v49 }
 0x1a0   :  { %3991 = vmatpush1.bf16.msra.mxu1 %v5406_v29  ;;  %4017 = vmatprep.subr.bf16.mxu0 %v5414_v33  ;;  %v5469_v29 = vld [vmem:[%s7477_s1 + $0xba8] ss:$16 sps:$4 sm:$0xff]  }
 0x1a1   :  { %3992 = vmatprep.subr.bf16.mxu1 %v5411_v31  ;;  %v5472_v31 = vld [vmem:[%s7477_s1 + $0xca8] ss:$16 sps:$4 sm:$0xff]  }
 0x1a2   :  { %3968 = vmatmul.mubr.bf16.vlgmr.msra.gmra.mxu0 %v6075_v6  ;;  %v5426_v6 = vld [vmem:[%s7477_s1 + $0xaac] ss:$16 sps:$4 sm:$0xff]  }
 0x1a3   :  { %4018 = vmatpush1.bf16.msra.mxu0 %v5412_v34  ;;  %4049 = vmatprep.mubr.bf16.mxu0 %v6120_v43  ;;  %v5432_v43 = vld [vmem:[%s7477_s1 + $0xa8c] ss:$16 sps:$4 sm:$0xff]   ;;  %v5475_v34 = vld [vmem:[%s7477_s1 + $0xb88] ss:$16 sps:$4 sm:$0xff]  }
 0x1a4   :  { %3993 = vmatpush2.bf16.msra.mxu1 %v5409_v48  ;;  %4019 = vmatprep.subr.bf16.mxu0 %v5420_v36  ;;  %v5483_v36 = vld [vmem:[%s7477_s1 + $0xb6c] ss:$16 sps:$4 sm:$0xff]  }
 0x1a5   :  { %3994 = vmatprep.subr.bf16.mxu1 %v5417_v17  ;;  %v5478_v17 = vld [vmem:[%s7477_s1 + $0xc88] ss:$16 sps:$4 sm:$0xff]  }
 0x1a7   :  { %4020 = vmatpush1.bf16.msra.mxu0 %v5418_v37  ;;  %v5481_v37 = vld [vmem:[%s7477_s1 + $0xb68] ss:$16 sps:$4 sm:$0xff]  }
 0x1a8   :  { %3995 = vmatpush2.bf16.msra.mxu1 %v5415_v0  ;;  %4021 = vmatprep.subr.bf16.mxu0 %v5426_v6  ;;  %v5486_v0 = vld [vmem:[%s7477_s1 + $0xc6c] ss:$16 sps:$4 sm:$0xff]  }
 0x1a9   :  { %3996 = vmatprep.subr.bf16.mxu1 %v5423_v32  ;;  %v5484_v32 = vld [vmem:[%s7477_s1 + $0xc68] ss:$16 sps:$4 sm:$0xff]   ;;  %v5489_v6 = vld [vmem:[%s7477_s1 + $0xb4c] ss:$16 sps:$4 sm:$0xff]  }
 0x1ab   :  { %4022 = vmatpush1.bf16.msra.mxu0 %v5424_v44  ;;  %v5487_v44 = vld [vmem:[%s7477_s1 + $0xb48] ss:$16 sps:$4 sm:$0xff]  }
 0x1ac   :  { %3997 = vmatpush2.bf16.msra.mxu1 %v5421_v40  ;;  %4023 = vmatprep.subr.bf16.mxu0 %v5432_v43  ;;  %v5492_v40 = vld [vmem:[%s7477_s1 + $0xc4c] ss:$16 sps:$4 sm:$0xff]  }
 0x1ad   :  { %3998 = vmatprep.subr.bf16.mxu1 %v5429_v46  ;;  %v5490_v46 = vld [vmem:[%s7477_s1 + $0xc48] ss:$16 sps:$4 sm:$0xff]   ;;  %v5495_v43 = vld [vmem:[%s7477_s1 + $0xb2c] ss:$16 sps:$4 sm:$0xff]  }
 0x1af   :  { %4024 = vmatpush1.bf16.msra.mxu0 %v5430_v51  ;;  %v5493_v51 = vld [vmem:[%s7477_s1 + $0xb28] ss:$16 sps:$4 sm:$0xff]  }
 0x1b0   :  { %3999 = vmatpush2.bf16.msra.mxu1 %v5427_v47  ;;  %4025 = vmatprep.subr.bf16.mxu0 %v5438_v53  ;;  %v5498_v47 = vld [vmem:[%s7477_s1 + $0xc2c] ss:$16 sps:$4 sm:$0xff]  }
 0x1b1   :  { %4000 = vmatprep.subr.bf16.mxu1 %v5435_v52  ;;  %v5496_v52 = vld [vmem:[%s7477_s1 + $0xc28] ss:$16 sps:$4 sm:$0xff]   ;;  %v5501_v53 = vld [vmem:[%s7477_s1 + $0xb0c] ss:$16 sps:$4 sm:$0xff]  }
 0x1b3   :  { %4026 = vmatpush1.bf16.msra.mxu0 %v5436_v60  ;;  %v5499_v60 = vld [vmem:[%s7477_s1 + $0xb08] ss:$16 sps:$4 sm:$0xff]  }
 0x1b4   :  { %4001 = vmatpush2.bf16.msra.mxu1 %v5433_v55  ;;  %4027 = vmatprep.subr.bf16.mxu0 %v5444_v57  ;;  %v5504_v55 = vld [vmem:[%s7477_s1 + $0xc0c] ss:$16 sps:$4 sm:$0xff]  }
 0x1b5   :  { %4002 = vmatprep.subr.bf16.mxu1 %v5441_v56  ;;  %v5502_v56 = vld [vmem:[%s7477_s1 + $0xc08] ss:$16 sps:$4 sm:$0xff]   ;;  %v5507_v57 = vld [vmem:[%s7477_s1 + $0xdec] ss:$16 sps:$4 sm:$0xff]  }
 0x1b7   :  { %4028 = vmatpush1.bf16.msra.mxu0 %v5442_v27  ;;  %v5505_v27 = vld [vmem:[%s7477_s1 + $0xde8] ss:$16 sps:$4 sm:$0xff]  }
 0x1b8   :  { %4003 = vmatpush2.bf16.msra.mxu1 %v5439_v26  ;;  %4029 = vmatprep.subr.bf16.mxu0 %v5450_v62  ;;  %v5510_v26 = vld [vmem:[%s7477_s1 + $0xeec] ss:$16 sps:$4 sm:$0xff]   ;;  %v7251_v62 = vld [vmem:[%s7480_s3] sm:$0xf] }
 0x1b9   :  { %4004 = vmatprep.subr.bf16.mxu1 %v5447_v61  ;;  %v5508_v61 = vld [vmem:[%s7477_s1 + $0xee8] ss:$16 sps:$4 sm:$0xff]  }
 0x1bb   :  { %4030 = vmatpush1.bf16.msra.mxu0 %v5448_v2  ;;  %v5516_v2 = vld [vmem:[%s7477_s1 + $0xecc] ss:$16 sps:$4 sm:$0xff]  }
 0x1bc   :  { %4005 = vmatpush2.bf16.msra.mxu1 %v5445_v63  ;;  %4031 = vmatprep.subr.bf16.mxu0 %v5456_v4  ;;  %v5513_v63 = vld [vmem:[%s7477_s1 + $0xdcc] ss:$16 sps:$4 sm:$0xff]  }
 0x1bd   :  { %4006 = vmatprep.subr.bf16.mxu1 %v5453_v3 }
 0x1bf   :  { %4032 = vmatpush1.bf16.msra.mxu0 %v5454_v41  ;;  %v5511_v41 = vld [vmem:[%s7477_s1 + $0xdc8] ss:$16 sps:$4 sm:$0xff]  }
 0x1c0   :  { %4007 = vmatpush2.bf16.msra.mxu1 %v5451_v5  ;;  %4033 = vmatprep.subr.bf16.mxu0 %v5459_v30  ;;  %v4190_v5 = vrot.slane %v7251_v62, %v573_v12  ;;  %v5514_v30 = vld [vmem:[%s7477_s1 + $0xec8] ss:$16 sps:$4 sm:$0xff]   ;;  %v5522_v12 = vld [vmem:[%s7477_s1 + $0xeac] ss:$16 sps:$4 sm:$0xff]  }
 0x1c1   :  { %4058 = vmatprep.subr.bf16.mxu1 %v5462_v7 }
 0x1c2   :  { %v3723_v14 = vpop.f32.mrf.mxu0 }
 0x1c3   :  { %v3764_v23 = vpop.f32.mrf.mxu1  ;;  %4009 = vmatmul.mubr.bf16.vlgmr.msra.gmra.mxu1 %v6291_v50  ;;  %v3724_v15 = vadd.f32 %v3723_v14, %v6962_v58  ;;  %4034 = vmatpush2.bf16.msra.mxu0 %v5457_v8  ;;  %v5471_v50 = vld [vmem:[%s7477_s1 + $0xbac] ss:$16 sps:$4 sm:$0xff]  }
 0x1c4   :  { %4059 = vmatpush1.bf16.msra.mxu1 %v5460_v18  ;;  %v3725_v21 = vpop.f32.mrf.mxu0  ;;  %4035 = vmatprep.subr.bf16.mxu0 %v5465_v9  ;;  %v5474_v58 = vld [vmem:[%s7477_s1 + $0xcac] ss:$16 sps:$4 sm:$0xff]   ;;  %v4194_v9 = vrot.slane %v7251_v62, %v577_v16 }
 0x1c5   :  { %v3766_v22 = vpop.f32.mrf.mxu1  ;;  %4060 = vmatprep.subr.bf16.mxu1 %v5468_v10  ;;  %v7164_v24 = vadd.f32 %v3764_v23, %v3724_v15  ;;  %v3726_v13 = vadd.f32 %v3725_v21, %v6966_v1  ;;  %4090 = vmatprep.mubr.bf16.mxu1 %v6303_v54  ;;  %v5477_v54 = vld [vmem:[%s7477_s1 + $0xb8c] ss:$16 sps:$4 sm:$0xff]   ;;  %v5517_v15 = vld [vmem:[%s7477_s1 + $0xda8] ss:$16 sps:$4 sm:$0xff]  }
 0x1c6   :  { %v3727_v38 = vpop.f32.mrf.mxu0  ;;  %v5480_v1 = vld [vmem:[%s7477_s1 + $0xc8c] ss:$16 sps:$4 sm:$0xff]  }
 0x1c7   :  { %v3768_v28 = vpop.f32.mrf.mxu1  ;;  %v7168_v49 = vadd.f32 %v3766_v22, %v3726_v13  ;;  %4036 = vmatpush2.bf16.msra.mxu0 %v5463_v19  ;;  %v5520_v19 = vld [vmem:[%s7477_s1 + $0xea8] ss:$16 sps:$4 sm:$0xff]   ;;  %v5528_v16 = vld [vmem:[%s7477_s1 + $0xe8c] ss:$16 sps:$4 sm:$0xff]  }
 0x1c8   :  { %4061 = vmatpush1.bf16.msra.mxu1 %v5466_v20  ;;  %v3728_v33 = vpop.f32.mrf.mxu0  ;;  %4037 = vmatprep.subr.bf16.mxu0 %v5471_v50  ;;  %v5523_v22 = vld [vmem:[%s7477_s1 + $0xd88] ss:$16 sps:$4 sm:$0xff]   ;;  %v5531_v13 = vld [vmem:[%s7477_s1 + $0xd6c] ss:$16 sps:$4 sm:$0xff]  }
 0x1c9   :  { %v3769_v48 = vpop.f32.mrf.mxu1  ;;  %4062 = vmatprep.subr.bf16.mxu1 %v5474_v58  ;;  %v5526_v50 = vld [vmem:[%s7477_s1 + $0xe88] ss:$16 sps:$4 sm:$0xff]   ;;  %v5534_v38 = vld [vmem:[%s7477_s1 + $0xe6c] ss:$16 sps:$4 sm:$0xff]  }
 0x1ca   :  { %v5540_v33 = vld [vmem:[%s7477_s1 + $0xe4c] ss:$16 sps:$4 sm:$0xff]   ;;  %v5535_v48 = vld [vmem:[%s7477_s1 + $0xd48] ss:$16 sps:$4 sm:$0xff]  }
 0x1cb   :  { %4038 = vmatpush2.bf16.msra.mxu0 %v5469_v29  ;;  %v5532_v29 = vld [vmem:[%s7477_s1 + $0xe68] ss:$16 sps:$4 sm:$0xff]  }
 0x1cc   :  { %4063 = vmatpush1.bf16.msra.mxu1 %v5472_v31  ;;  %4039 = vmatprep.subr.bf16.mxu0 %v5477_v54  ;;  %v5537_v31 = vld [vmem:[%s7477_s1 + $0xd4c] ss:$16 sps:$4 sm:$0xff]   ;;  %v5538_v54 = vld [vmem:[%s7477_s1 + $0xe48] ss:$16 sps:$4 sm:$0xff]  }
 0x1cd   :  { %4064 = vmatprep.subr.bf16.mxu1 %v5480_v1  ;;  %v5543_v1 = vld [vmem:[%s7477_s1 + $0xd2c] ss:$16 sps:$4 sm:$0xff]  }
 0x1cf   :  { %4040 = vmatpush2.bf16.msra.mxu0 %v5475_v34  ;;  %v5546_v34 = vld [vmem:[%s7477_s1 + $0xe2c] ss:$16 sps:$4 sm:$0xff]  }
 0x1d0   :  { %4065 = vmatpush1.bf16.msra.mxu1 %v5478_v17  ;;  %4041 = vmatprep.subr.bf16.mxu0 %v5483_v36  ;;  %v5541_v17 = vld [vmem:[%s7477_s1 + $0xd28] ss:$16 sps:$4 sm:$0xff]  }
 0x1d1   :  { %4066 = vmatprep.subr.bf16.mxu1 %v5486_v0  ;;  %v5544_v36 = vld [vmem:[%s7477_s1 + $0xe28] ss:$16 sps:$4 sm:$0xff]   ;;  %v5549_v0 = vld [vmem:[%s7477_s1 + $0xd0c] ss:$16 sps:$4 sm:$0xff]  }
 0x1d3   :  { %4042 = vmatpush2.bf16.msra.mxu0 %v5481_v37  ;;  %v5552_v37 = vld [vmem:[%s7477_s1 + $0xe0c] ss:$16 sps:$4 sm:$0xff]  }
 0x1d4   :  { %4067 = vmatpush1.bf16.msra.mxu1 %v5484_v32  ;;  %4043 = vmatprep.subr.bf16.mxu0 %v5489_v6  ;;  %v5547_v32 = vld [vmem:[%s7477_s1 + $0xd08] ss:$16 sps:$4 sm:$0xff]  }
 0x1d5   :  { %4068 = vmatprep.subr.bf16.mxu1 %v5492_v40  ;;  %v5550_v6 = vld [vmem:[%s7477_s1 + $0xe08] ss:$16 sps:$4 sm:$0xff]   ;;  %v5555_v40 = vld [vmem:[%s7477_s1 + $0xfec] ss:$16 sps:$4 sm:$0xff]  }
 0x1d7   :  { %4044 = vmatpush2.bf16.msra.mxu0 %v5487_v44  ;;  %v5558_v44 = vld [vmem:[%s7477_s1 + $0x10ec] ss:$16 sps:$4 sm:$0xff]  }
 0x1d8   :  { %4069 = vmatpush1.bf16.msra.mxu1 %v5490_v46  ;;  %4045 = vmatprep.subr.bf16.mxu0 %v5495_v43  ;;  %v5553_v46 = vld [vmem:[%s7477_s1 + $0xfe8] ss:$16 sps:$4 sm:$0xff]  }
 0x1d9   :  { %4070 = vmatprep.subr.bf16.mxu1 %v5498_v47  ;;  %v5556_v43 = vld [vmem:[%s7477_s1 + $0x10e8] ss:$16 sps:$4 sm:$0xff]   ;;  %v5561_v47 = vld [vmem:[%s7477_s1 + $0xfcc] ss:$16 sps:$4 sm:$0xff]  }
 0x1db   :  { %4046 = vmatpush2.bf16.msra.mxu0 %v5493_v51  ;;  %v5564_v51 = vld [vmem:[%s7477_s1 + $0x10cc] ss:$16 sps:$4 sm:$0xff]  }
 0x1dc   :  { %4071 = vmatpush1.bf16.msra.mxu1 %v5496_v52  ;;  %4047 = vmatprep.subr.bf16.mxu0 %v5501_v53  ;;  %v5559_v53 = vld [vmem:[%s7477_s1 + $0xfc8] ss:$16 sps:$4 sm:$0xff]  }
 0x1dd   :  { %4072 = vmatprep.subr.bf16.mxu1 %v5504_v55  ;;  %v5562_v55 = vld [vmem:[%s7477_s1 + $0x10c8] ss:$16 sps:$4 sm:$0xff]  }
 0x1df   :  { %4048 = vmatpush2.bf16.msra.mxu0 %v5499_v60 }
 0x1e0   :  { %4073 = vmatpush1.bf16.msra.mxu1 %v5502_v56  ;;  %4099 = vmatprep.subr.bf16.mxu0 %v5510_v26  ;;  %v5567_v56 = vld [vmem:[%s7477_s1 + $0xfac] ss:$16 sps:$4 sm:$0xff]   ;;  %v5565_v26 = vld [vmem:[%s7477_s1 + $0xfa8] ss:$16 sps:$4 sm:$0xff]  }
 0x1e1   :  { %4074 = vmatprep.subr.bf16.mxu1 %v5507_v57 }
 0x1e2   :  { %v3805_v3 = vpop.f32.mrf.mxu0  ;;  %4050 = vmatmul.mubr.bf16.vlgmr.msra.gmra.mxu0 %v6307_v35  ;;  %v5519_v35 = vld [vmem:[%s7477_s1 + $0xdac] ss:$16 sps:$4 sm:$0xff]  }
 0x1e3   :  { %v3806_v4 = vadd.f32 %v3805_v3, %v7164_v24  ;;  %4100 = vmatpush1.bf16.msra.mxu0 %v5508_v61  ;;  %4131 = vmatprep.mubr.bf16.mxu0 %v6323_v59  ;;  %v5525_v59 = vld [vmem:[%s7477_s1 + $0xd8c] ss:$16 sps:$4 sm:$0xff]   ;;  %v5574_v3 = vld [vmem:[%s7477_s1 + $0x1088] ss:$16 sps:$4 sm:$0xff]  }
 0x1e4   :  { %4075 = vmatpush2.bf16.msra.mxu1 %v5505_v27  ;;  %v3807_v7 = vpop.f32.mrf.mxu0  ;;  %4101 = vmatprep.subr.bf16.mxu0 %v5516_v2  ;;  %v5568_v27 = vld [vmem:[%s7477_s1 + $0x10a8] ss:$16 sps:$4 sm:$0xff]  }
 0x1e5   :  { %4076 = vmatprep.subr.bf16.mxu1 %v5513_v63  ;;  %v4181_v8 = vmax.f32 %v3806_v4, 0.0  ;;  %v3808_v18 = vadd.f32 %v3807_v7, %v7168_v49  ;;  %v5529_v49 = vld [vmem:[%s7477_s1 + $0xd68] ss:$16 sps:$4 sm:$0xff]   ;;  %v5573_v63 = vld [vmem:[%s7477_s1 + $0xf8c] ss:$16 sps:$4 sm:$0xff]  }
 0x1e6   :  { %v3809_v10 = vpop.f32.mrf.mxu0  ;;  %v5571_v2 = vld [vmem:[%s7477_s1 + $0xf88] ss:$16 sps:$4 sm:$0xff]   ;;  %v5579_v4 = vld [vmem:[%s7477_s1 + $0xf6c] ss:$16 sps:$4 sm:$0xff]  }
 0x1e7   :  { %v4207_v14 = vmul.f32 %v4190_v5, %v4181_v8  ;;  %v4182_v23 = vmax.f32 %v3808_v18, 0.0  ;;  %4102 = vmatpush1.bf16.msra.mxu0 %v5514_v30  ;;  %v5582_v5 = vld [vmem:[%s7477_s1 + $0x106c] ss:$16 sps:$4 sm:$0xff]   ;;  %v5580_v30 = vld [vmem:[%s7477_s1 + $0x1068] ss:$16 sps:$4 sm:$0xff]  }
 0x1e8   :  { %4077 = vmatpush2.bf16.msra.mxu1 %v5511_v41  ;;  %v3810_v20 = vpop.f32.mrf.mxu0  ;;  %4103 = vmatprep.subr.bf16.mxu0 %v5522_v12  ;;  %v5577_v41 = vld [vmem:[%s7477_s1 + $0xf68] ss:$16 sps:$4 sm:$0xff]   ;;  %v5585_v7 = vld [vmem:[%s7477_s1 + $0xf4c] ss:$16 sps:$4 sm:$0xff]  }
 0x1e9   :  { %4078 = vmatprep.subr.bf16.mxu1 %v5519_v35  ;;  %v4208_v21 = vmul.f32 %v4194_v9, %v4182_v23  ;;  %v4212_v58 = vsel %vm4211_vm0, %v4207_v14, 0.0  ;;  %v5588_v35 = vld [vmem:[%s7477_s1 + $0x104c] ss:$16 sps:$4 sm:$0xff]   ;;  %v5583_v12 = vld [vmem:[%s7477_s1 + $0xf48] ss:$16 sps:$4 sm:$0xff]   ;;  %v585_v20 = vsub.s32 3, %v5755_v42 }
 0x1ea   :  { %v5586_v8 = vld [vmem:[%s7477_s1 + $0x1048] ss:$16 sps:$4 sm:$0xff]   ;;  %v5591_v18 = vld [vmem:[%s7477_s1 + $0xf2c] ss:$16 sps:$4 sm:$0xff]  }
 0x1eb   :  { %4104 = vmatpush1.bf16.msra.mxu0 %v5520_v19  ;;  %v4213_v24 = vsel %vm4211_vm0, %v4208_v21, 0.0  ;;  %v5594_v9 = vld [vmem:[%s7477_s1 + $0x102c] ss:$16 sps:$4 sm:$0xff]   ;;  %v5589_v10 = vld [vmem:[%s7477_s1 + $0xf28] ss:$16 sps:$4 sm:$0xff]   ;;  %v581_v19 = vsub.s32 2, %v5755_v42 }
 0x1ec   :  { %4079 = vmatpush2.bf16.msra.mxu1 %v5517_v15  ;;  %4105 = vmatprep.subr.bf16.mxu0 %v5528_v16  ;;  %v7307_v28 = vadd.f32 %v4213_v24, %v4212_v58  ;;  %v5592_v14 = vld [vmem:[%s7477_s1 + $0x1028] ss:$16 sps:$4 sm:$0xff]   ;;  %v5597_v23 = vld [vmem:[%s7477_s1 + $0xf0c] ss:$16 sps:$4 sm:$0xff]   ;;  %v5605_v21 = vld [vmem:[%s7479_s2] sm:$0xf] }
 0x1ed   :  { %4080 = vmatprep.subr.bf16.mxu1 %v5525_v59  ;;  %v5600_v15 = vld [vmem:[%s7477_s1 + $0x100c] ss:$16 sps:$4 sm:$0xff]   ;;  %v5595_v59 = vld [vmem:[%s7477_s1 + $0xf08] ss:$16 sps:$4 sm:$0xff]  }
 0x1ee   :  { %v5598_v16 = vld [vmem:[%s7477_s1 + $0x1008] ss:$16 sps:$4 sm:$0xff]  }
 0x1ef   :  { %4106 = vmatpush1.bf16.msra.mxu0 %v5526_v50  ;;  %v586_v50 = vrot.slane %v5605_v21, %v585_v20 }
 0x1f0   :  { %4081 = vmatpush2.bf16.msra.mxu1 %v5523_v22  ;;  %4107 = vmatprep.subr.bf16.mxu0 %v5534_v38  ;;  %v582_v22 = vrot.slane %v5605_v21, %v581_v19 }
 0x1f1   :  { %4082 = vmatprep.subr.bf16.mxu1 %v5531_v13 }
 0x1f3   :  { %4108 = vmatpush1.bf16.msra.mxu0 %v5532_v29 }
 0x1f4   :  { %4083 = vmatpush2.bf16.msra.mxu1 %v5529_v49  ;;  %4109 = vmatprep.subr.bf16.mxu0 %v5540_v33 }
 0x1f5   :  { %4084 = vmatprep.subr.bf16.mxu1 %v5537_v31 }
 0x1f7   :  { %4110 = vmatpush1.bf16.msra.mxu0 %v5538_v54 }
 0x1f8   :  { %4085 = vmatpush2.bf16.msra.mxu1 %v5535_v48  ;;  %4111 = vmatprep.subr.bf16.mxu0 %v5546_v34 }
 0x1f9   :  { %4086 = vmatprep.subr.bf16.mxu1 %v5543_v1 }
 0x1fb   :  { %4112 = vmatpush1.bf16.msra.mxu0 %v5544_v36 }
 0x1fc   :  { %4087 = vmatpush2.bf16.msra.mxu1 %v5541_v17  ;;  %4113 = vmatprep.subr.bf16.mxu0 %v5552_v37 }
 0x1fd   :  { %4088 = vmatprep.subr.bf16.mxu1 %v5549_v0 }
 0x1ff   :  { %4114 = vmatpush1.bf16.msra.mxu0 %v5550_v6 }
 0x200   :  { %4089 = vmatpush2.bf16.msra.mxu1 %v5547_v32  ;;  %4115 = vmatprep.subr.bf16.mxu0 %v5555_v40 }
 0x201   :  { %4140 = vmatprep.subr.bf16.mxu1 %v5558_v44 }
 0x203   :  { %v7369_v52 = vpop.f32.mrf.mxu1  ;;  %4091 = vmatmul.mubr.bf16.vlgmr.msra.gmra.mxu1 %v6508_v11  ;;  %4116 = vmatpush2.bf16.msra.mxu0 %v5553_v46  ;;  %v5570_v11 = vld [vmem:[%s7477_s1 + $0x10ac] ss:$16 sps:$4 sm:$0xff]  }
 0x204   :  { %4141 = vmatpush1.bf16.msra.mxu1 %v5556_v43  ;;  %4117 = vmatprep.subr.bf16.mxu0 %v5561_v47  ;;  %v3847_v58 = vadd.f32 %v7369_v52, %v582_v22 }
 0x205   :  { %v7378_v60 = vpop.f32.mrf.mxu1  ;;  %4142 = vmatprep.subr.bf16.mxu1 %v5564_v51  ;;  %4172 = vmatprep.mubr.bf16.mxu1 %v5607_v45  ;;  %v5576_v45 = vld [vmem:[%s7477_s1 + $0x108c] ss:$16 sps:$4 sm:$0xff]  }
 0x206   :  { %v3849_v13 = vadd.f32 %v7378_v60, %v586_v50 }
 0x207   :  { %v3850_v57 = vpop.f32.mrf.mxu1  ;;  %4118 = vmatpush2.bf16.msra.mxu0 %v5559_v53 }
 0x208   :  { %4143 = vmatpush1.bf16.msra.mxu1 %v5562_v55  ;;  %4119 = vmatprep.subr.bf16.mxu0 %v5567_v56 }
 0x209   :  { %v3851_v61 = vpop.f32.mrf.mxu1  ;;  %4144 = vmatprep.subr.bf16.mxu1 %v5570_v11 }
 0x20b   :  { %4120 = vmatpush2.bf16.msra.mxu0 %v5565_v26 }
 0x20c   :  { %4145 = vmatpush1.bf16.msra.mxu1 %v5568_v27  ;;  %4121 = vmatprep.subr.bf16.mxu0 %v5573_v63 }
 0x20d   :  { %4146 = vmatprep.subr.bf16.mxu1 %v5576_v45 }
 0x20f   :  { %4122 = vmatpush2.bf16.msra.mxu0 %v5571_v2 }
 0x210   :  { %4147 = vmatpush1.bf16.msra.mxu1 %v5574_v3  ;;  %4123 = vmatprep.subr.bf16.mxu0 %v5579_v4 }
 0x211   :  { %4148 = vmatprep.subr.bf16.mxu1 %v5582_v5 }
 0x213   :  { %4124 = vmatpush2.bf16.msra.mxu0 %v5577_v41 }
 0x214   :  { %4149 = vmatpush1.bf16.msra.mxu1 %v5580_v30  ;;  %4125 = vmatprep.subr.bf16.mxu0 %v5585_v7  ;;  %v4198_v7 = vrot.slane %v7251_v62, %v581_v19 }
 0x215   :  { %4150 = vmatprep.subr.bf16.mxu1 %v5588_v35 }
 0x217   :  { %4126 = vmatpush2.bf16.msra.mxu0 %v5583_v12 }
 0x218   :  { %4151 = vmatpush1.bf16.msra.mxu1 %v5586_v8  ;;  %4127 = vmatprep.subr.bf16.mxu0 %v5591_v18 }
 0x219   :  { %4152 = vmatprep.subr.bf16.mxu1 %v5594_v9 }
 0x21b   :  { %4128 = vmatpush2.bf16.msra.mxu0 %v5589_v10  ;;  %v4202_v10 = vrot.slane %v7251_v62, %v585_v20 }
 0x21c   :  { %4153 = vmatpush1.bf16.msra.mxu1 %v5592_v14  ;;  %4129 = vmatprep.subr.bf16.mxu0 %v5597_v23 }
 0x21d   :  { %4154 = vmatprep.subr.bf16.mxu1 %v5600_v15 }
 0x21f   :  { %4130 = vmatpush2.bf16.msra.mxu0 %v5595_v59 }
 0x220   :  { %4155 = vmatpush1.bf16.msra.mxu1 %v5598_v16 }
 0x222   :  { %v3887_v24 = vpop.f32.mrf.mxu0  ;;  %4132 = vmatmul.mubr.bf16.vlgmr.msra.gmra.mxu0 %v6520_v39 }
 0x223   :  { %4173 = vmatmul.mubr.bf16.vlgmr.msra.gmra.mxu1 %v6640_v25  ;;  %v3888_v38 = vadd.f32 %v3887_v24, %v3847_v58  ;;  %v4222_v58 = vstv %s7481_s4 }
 0x224   :  { %v3889_v49 = vpop.f32.mrf.mxu0 }
 0x225   :  { %v3890_v29 = vadd.f32 %v3889_v49, %v3849_v13 }
 0x226   :  { %v3891_v31 = vpop.f32.mrf.mxu0 }
 0x228   :  { %v3892_v33 = vpop.f32.mrf.mxu0 }
 0x243   :  { %v3928_v48 = vpop.f32.mrf.mxu1 }
 0x244   :  { %v3929_v54 = vadd.f32 %v3928_v48, %v3888_v38 }
 0x245   :  { %v3930_v1 = vpop.f32.mrf.mxu1 }
 0x246   :  { %v3931_v34 = vadd.f32 %v3930_v1, %v3890_v29 }
 0x247   :  { %v3932_v17 = vpop.f32.mrf.mxu1 }
 0x249   :  { %v3933_v36 = vpop.f32.mrf.mxu1 }
 0x262   :  { %v3969_v0 = vpop.f32.mrf.mxu0 }
 0x263   :  { %v3970_v37 = vadd.f32 %v3969_v0, %v3929_v54 }
 0x264   :  { %v3971_v32 = vpop.f32.mrf.mxu0 }
 0x265   :  { %v3972_v6 = vadd.f32 %v3971_v32, %v3931_v34 }
 0x266   :  { %v3973_v39 = vpop.f32.mrf.mxu0 }
 0x268   :  { %v3974_v40 = vpop.f32.mrf.mxu0 }
 0x283   :  { %v4010_v25 = vpop.f32.mrf.mxu1 }
 0x284   :  { %v4011_v44 = vadd.f32 %v4010_v25, %v3970_v37 }
 0x285   :  { %v4012_v46 = vpop.f32.mrf.mxu1 }
 0x286   :  { %v4013_v43 = vadd.f32 %v4012_v46, %v3972_v6 }
 0x287   :  { %v4014_v47 = vpop.f32.mrf.mxu1 }
 0x289   :  { %v4015_v51 = vpop.f32.mrf.mxu1 }
 0x2a2   :  { %v4051_v52 = vpop.f32.mrf.mxu0 }
 0x2a3   :  { %v4052_v27 = vadd.f32 %v4051_v52, %v4011_v44 }
 0x2a4   :  { %v4053_v53 = vpop.f32.mrf.mxu0 }
 0x2a5   :  { %v4054_v61 = vadd.f32 %v4053_v53, %v4013_v43 }
 0x2a6   :  { %v4055_v55 = vpop.f32.mrf.mxu0 }
 0x2a8   :  { %v4056_v60 = vpop.f32.mrf.mxu0 }
 0x2c3   :  { %v4092_v56 = vpop.f32.mrf.mxu1 }
 0x2c4   :  { %v4093_v63 = vadd.f32 %v4092_v56, %v4052_v27 }
 0x2c5   :  { %v4094_v11 = vpop.f32.mrf.mxu1 }
 0x2c6   :  { %v4095_v3 = vadd.f32 %v4094_v11, %v4054_v61 }
 0x2c7   :  { %v4096_v57 = vpop.f32.mrf.mxu1 }
 0x2c9   :  { %v4097_v26 = vpop.f32.mrf.mxu1 }
 0x2e2   :  { %v4133_v45 = vpop.f32.mrf.mxu0 }
 0x2e3   :  { %v4174_v2 = vpop.f32.mrf.mxu1  ;;  %v4134_v4 = vadd.f32 %v4133_v45, %v4093_v63 }
 0x2e4   :  { %v4135_v5 = vpop.f32.mrf.mxu0 }
 0x2e5   :  { %v4176_v41 = vpop.f32.mrf.mxu1  ;;  %v4175_v30 = vadd.f32 %v4174_v2, %v4134_v4  ;;  %v4136_v35 = vadd.f32 %v4135_v5, %v4095_v3 }
 0x2e6   :  { %v4137_v12 = vpop.f32.mrf.mxu0 }
 0x2e7   :  { %v4178_v8 = vpop.f32.mrf.mxu1  ;;  %v4183_v18 = vmax.f32 %v4175_v30, 0.0  ;;  %v4177_v9 = vadd.f32 %v4176_v41, %v4136_v35 }
 0x2e8   :  { %v4138_v14 = vpop.f32.mrf.mxu0 }
 0x2e9   :  { %v4179_v23 = vpop.f32.mrf.mxu1  ;;  %v4209_v15 = vmul.f32 %v4198_v7, %v4183_v18  ;;  %v4184_v59 = vmax.f32 %v4177_v9, 0.0 }
 0x2eb   :  { %v4210_v16 = vmul.f32 %v4202_v10, %v4184_v59  ;;  %v4215_v21 = vsel %vm4211_vm0, %v4209_v15, 0.0 }
 0x2ec   :  { %v4216_v22 = vadd.f32 %v4215_v21, %v7307_v28 }
 0x2ed   :  { %v4217_v19 = vsel %vm4211_vm0, %v4210_v16, 0.0 }
 0x2ee   :  { %v4218_v50 = vadd.f32 %v4217_v19, %v4216_v22 }
 0x2f0   :  { %4219 = vadd.xlane.f32.xlu0 %v4218_v50 }
 0x379   :  { %v4220_v42 = vpop.xlane.xlu0 %4219 }
 0x37a   :  { %v4223_v24 = vadd.f32 %v4222_v58, %v4220_v42 }
 0x37c   :  { %v4224_v62 = vsub.f32 0.0, %v4223_v24 }
 0x37e   :  { %v4225_v20 = vmul.f32 1.442695, %v4224_v62 }
 0x380   :  { %5601 = vpow2.f32 %v4225_v20 }
 0x38d   :  { %v5602_v13 = vpop.eup %5601 }
 0x38e   :  { %v4227_v38 = vadd.f32 1.0, %v5602_v13 }
 0x390   :  { %5603 = vrcp.f32 %v4227_v38 }
 0x39d   :  { %v5604_v49 = vpop.eup %5603 }
 0x39e   :  { %4231 = vst.msk [vmem:[%s7482_s5] sm:$0x3] %vm4230_vm1, %v5604_v49 }

</bundles_post_ra>
